<compile_context>
chip_gen: v7x
topology: tpu7x:2x2x1
jax: 0.10.0
libtpu: 0.0.40
codegen_flags: <defaults>
</compile_context>

<pallas_src>
import math
import jax
import jax.numpy as jnp
from jax.experimental import pallas as pl
from jax.experimental.pallas import tpu as pltpu

N_MODELS = 6            # ac4c, m1a, m5c, m6a, m7g, psi (declaration order)
L = 9                   # positions / attention length (so that dim2 == 640)
D_IN = 16               # dim1: concatenated (seq, stat, bse) feature dim
HID = 32                # LSTM hidden size per direction
D_H = 2 * HID           # bidirectional LSTM feature dim = 64
D_FC_IN = D_H + L * D_H  # 640


def _sigmoid(x):
    # numerically stable sigmoid (== 0.5*(1+tanh(x/2))); tanh maps to the EUP.
    return 0.5 * (jnp.tanh(0.5 * x) + 1.0)


def _num_tensorcores():
    """2 on v7x-class (megacore) parts, else 1 (v5e / v6e). Misdetection is safe
    (only changes grid factorisation, never results)."""
    try:
        dev = jax.devices()[0]
        if dev.platform != "tpu":
            return 1
        nc = getattr(dev, "num_cores", None)
        if isinstance(nc, int) and nc >= 2:
            return 2
        kind = (getattr(dev, "device_kind", "") or "").lower()
        if "v7" in kind:
            return 2
    except Exception:
        pass
    return 1


def _make_kernel(B, MG):
    """Kernel processing MG sub-models per grid step for a batch of B samples."""
    Wf = MG * HID          # fused hidden width per direction
    GATE = 4 * Wf          # fused gate width per direction (multiple of 128)

    def kernel(x1_ref, sel_ref, selT_ref, e32_ref, oneh_ref, tile_ref,
               wih_ref, bih_ref, whhf_ref, whhb_ref,
               wa_ref, ba_ref, va_ref,
               w1m_ref, b1_ref, w1h_ref, w2_ref, b2_ref, w3_ref, b3_ref,
               y_ref, a_ref):
        f32 = jnp.float32

        # ---- hoisted fused input projection: one (9,16)@(16,2*GATE) matmul / step
        wih = wih_ref[0]                          # (16, 2*GATE)
        bih = bih_ref[0]                          # (1,  2*GATE)
        gin = [jnp.dot(x1_ref[t], wih, preferred_element_type=f32) + bih
               for t in range(B)]
        gin_f = [g[:, :GATE] for g in gin]        # lane-aligned slices (GATE%128==0)
        gin_b = [g[:, GATE:] for g in gin]

        whh_f = whhf_ref[0]                       # (Wf, GATE) block-diag over models
        whh_b = whhb_ref[0]

        def lstm_cell(g, c_prev):
            # gate-major, lane-dense layout: [i | f | g | o], each (L, Wf)
            i = _sigmoid(g[:, 0 * Wf:1 * Wf])
            f = _sigmoid(g[:, 1 * Wf:2 * Wf])
            gg = jnp.tanh(g[:, 2 * Wf:3 * Wf])
            o = _sigmoid(g[:, 3 * Wf:4 * Wf])
            c = f * c_prev + i * gg
            return o * jnp.tanh(c), c

        zeros = jnp.zeros((L, Wf), f32)
        h_f, c_f, h_b, c_b = zeros, zeros, zeros, zeros
        hist_f = [None] * B
        hist_b = [None] * B
        # Forward step s and backward step B-1-s interleaved: two independent
        # dependency chains, each driven by ONE block-diagonal matmul per step.
        for s in range(B):
            tb = B - 1 - s
            g_f = jnp.dot(h_f, whh_f, preferred_element_type=f32) + gin_f[s]
            g_b = jnp.dot(h_b, whh_b, preferred_element_type=f32) + gin_b[tb]
            h_f, c_f = lstm_cell(g_f, c_f)
            h_b, c_b = lstm_cell(g_b, c_b)
            hist_f[s] = h_f
            hist_b[tb] = h_b

        # Hall rows = b*L + l, columns = [fwd all models (Wf) | bwd all models (Wf)]
        Hall = jnp.concatenate(
            [jnp.concatenate([hist_f[t], hist_b[t]], axis=1) for t in range(B)],
            axis=0)                                # (B*L, 2*Wf)

        sel = sel_ref[...]                         # (B, B*L)   segment-sum selector
        selT = selT_ref[...]                       # (B*L, B)   segment broadcaster
        e32 = e32_ref[...]                         # (128, 2*Wf) per-model lane expander
        oneh = oneh_ref[...]                       # (B*L, L*64) one-hot(l) x 64 lanes
        tile = tile_ref[...]                       # (64, L*64)  L copies of I_64

        # ---- attention, fused across models & samples (matmuls + full-width ops)
        Tt = jnp.tanh(jnp.dot(Hall, wa_ref[0], preferred_element_type=f32)
                      + ba_ref[0])                 # (B*L, MG*64)
        e = jnp.dot(Tt, va_ref[0], preferred_element_type=f32)   # (B*L, 128)
        mcol = jnp.max(e, axis=0, keepdims=True)   # per-column shift (softmax-invariant)
        ex = jnp.exp(e - mcol)
        den = jnp.dot(sel, ex, preferred_element_type=f32)        # (B, 128) segment sums
        rden = pl.reciprocal(den, approx=True)
        Aw = ex * jnp.dot(selT, rden, preferred_element_type=f32)  # (B*L, 128) softmax
        # M = bmm(A, H), fused across models: expand per-model attention weights to
        # Hall lanes with a constant 0/1 matmul, weight, segment-sum on the MXU.
        Mcat = jnp.dot(sel,
                       jnp.dot(Aw, e32, preferred_element_type=f32) * Hall,
                       preferred_element_type=f32)                 # (B, 2*Wf)

        # ---- fc layer 1: M-part fused across models; flattened-H part as one
        #      K=576 contraction per model via the one-hot position mask.
        fc1 = (jnp.dot(Mcat, w1m_ref[0], preferred_element_type=f32)
               + b1_ref[0])                                        # (B, MG*128)
        d_cols = []
        for m in range(MG):
            Hm = jnp.concatenate(
                [Hall[:, m * HID:(m + 1) * HID],
                 Hall[:, Wf + m * HID:Wf + (m + 1) * HID]], axis=1)  # (B*L, 64)
            Hm_t = jnp.dot(Hm, tile, preferred_element_type=f32)     # (B*L, L*64)
            d_cols.append(jnp.dot(Hm_t * oneh, w1h_ref[0, m],
                                  preferred_element_type=f32))       # (B*L, 128)
        fc1 = fc1 + jnp.dot(sel, jnp.concatenate(d_cols, axis=1),
                            preferred_element_type=f32)              # (B, MG*128)
        h1 = jnp.maximum(fc1, 0.0)
        h2 = jnp.maximum(jnp.dot(h1, w2_ref[0], preferred_element_type=f32)
                         + b2_ref[0], 0.0)                            # (B, MG*64)
        dlog = (jnp.dot(h2, w3_ref[0], preferred_element_type=f32)
                + b3_ref[0])                                          # (B, 128)
        # Softmax(dim=1)[:, 1] == sigmoid(logit_1 - logit_0)
        y = _sigmoid(dlog)

        # lane-dense (128-wide) output stores; wrapper slices columns [:MG]
        y_ref[0] = y                                # (B, 128)
        a_ref[0] = Aw                               # (B*L, 128)

    return kernel


def _pack_params(params, G, MG):
    """Repack per-model stacked params for the fused grid (pure XLA, runs once)."""
    (wih_f, whh_f, b_f, wih_b, whh_b, b_b, wa, ba, va,
     w1, b1, w2, b2, w3, b3) = params
    Wf = MG * HID
    eye = jnp.eye(MG, dtype=jnp.float32)

    def gate_cols(w):      # (N, X, 4*HID) -> (G, X, 4*Wf); gate-major, model-minor
        X = w.shape[1]
        return (w.reshape(G, MG, X, 4, HID)
                 .transpose(0, 2, 3, 1, 4)
                 .reshape(G, X, 4 * Wf))

    wih_grp = jnp.concatenate([gate_cols(wih_f), gate_cols(wih_b)], axis=2)
    bih_grp = jnp.concatenate([gate_cols(b_f), gate_cols(b_b)], axis=2)

    def bd_whh(whh):       # (N, 32, 4*HID) -> (G, Wf, 4*Wf) block-diagonal
        wg = whh.reshape(G, MG, HID, 4, HID)
        return jnp.einsum('gmdke,mn->gmdkne', wg, eye).reshape(G, Wf, 4 * Wf)

    whhf_grp = bd_whh(whh_f)
    whhb_grp = bd_whh(whh_b)

    def bd_in64(w, out_dim):   # (N, 64, out) -> (G, 2*Wf, MG*out) block-diagonal
        wg = w.reshape(G, MG, 2, HID, out_dim)
        return (jnp.einsum('gmrdo,mn->grmdno', wg, eye)
                .reshape(G, 2 * Wf, MG * out_dim))

    wa_grp = bd_in64(wa, D_H)                                      # (G, 2Wf, MG*64)
    ba_grp = ba.reshape(G, 1, MG * D_H)
    va_grp = jnp.einsum('gmd,mn->gmdn', va.reshape(G, MG, D_H), eye
                        ).reshape(G, MG * D_H, MG)
    va_grp = jnp.concatenate(
        [va_grp, jnp.zeros((G, MG * D_H, 128 - MG), jnp.float32)], axis=2)

    w1m_grp = bd_in64(w1[:, :D_H, :], 128)                          # (G, 2Wf, MG*128)
    b1_grp = b1.reshape(G, 1, MG * 128)
    w1h_grp = w1[:, D_H:, :].reshape(G, MG, L * D_H, 128)           # (G, MG, 576, 128)

    w2_grp = jnp.einsum('gmdo,mn->gmdno', w2.reshape(G, MG, 128, D_H), eye
                        ).reshape(G, MG * 128, MG * D_H)
    b2_grp = b2.reshape(G, 1, MG * D_H)

    # only softmax column 1 is consumed -> keep (w3[:,1]-w3[:,0]) and (b3[1]-b3[0])
    w3d = (w3[:, :, 1] - w3[:, :, 0]).reshape(G, MG, D_H)
    w3_grp = jnp.einsum('gmd,mn->gmdn', w3d, eye).reshape(G, MG * D_H, MG)
    w3_grp = jnp.concatenate(
        [w3_grp, jnp.zeros((G, MG * D_H, 128 - MG), jnp.float32)], axis=2)
    b3d = (b3[:, 0, 1] - b3[:, 0, 0]).reshape(G, MG)
    b3_grp = jnp.concatenate(
        [b3d, jnp.zeros((G, 128 - MG), jnp.float32)], axis=1).reshape(G, 1, 128)

    return (wih_grp, bih_grp, whhf_grp, whhb_grp, wa_grp, ba_grp, va_grp,
            w1m_grp, b1_grp, w1h_grp, w2_grp, b2_grp, w3_grp, b3_grp)


def ml_model4_forward(x1, params, num_cores=None):
    """x1: (B, 9, 16) float32 (already positional-encoded).
    Returns (Y (B, 6) = per-model P(class=1), A (B, 6, 9) attention maps)."""
    B = x1.shape[0]
    assert x1.shape[1] == L and x1.shape[2] == D_IN
    if num_cores is None:
        num_cores = _num_tensorcores()
    G = 2 if num_cores >= 2 else 1       # v7x: one grid step per TensorCore
    MG = N_MODELS // G
    Wf = MG * HID

    packed = _pack_params(params, G, MG)

    # constant selector / expander matrices (tiny, built once in XLA)
    f32 = jnp.float32
    sel = jnp.kron(jnp.eye(B, dtype=f32), jnp.ones((1, L), f32))        # (B, B*L)
    selT = sel.T                                                         # (B*L, B)
    e32 = jnp.tile(jnp.kron(jnp.eye(MG, dtype=f32), jnp.ones((1, HID), f32)),
                   (1, 2))                                               # (MG, 2*Wf)
    e32 = jnp.concatenate([e32, jnp.zeros((128 - MG, 2 * Wf), f32)], axis=0)
    oneh = jnp.kron(jnp.tile(jnp.eye(L, dtype=f32), (B, 1)),
                    jnp.ones((1, D_H), f32))                             # (B*L, L*64)
    tile = jnp.tile(jnp.eye(D_H, dtype=f32), (1, L))                     # (64, L*64)
    consts = (sel, selT, e32, oneh, tile)

    kernel = _make_kernel(B, MG)

    def grp_spec(arr):
        nd = arr.ndim
        return pl.BlockSpec((1,) + arr.shape[1:],
                            lambda g, _nd=nd: (g,) + (0,) * (_nd - 1))

    def full_spec(arr):
        nd = arr.ndim
        return pl.BlockSpec(arr.shape, lambda g, _nd=nd: (0,) * _nd)

    in_specs = ([pl.BlockSpec(x1.shape, lambda g: (0, 0, 0))]
                + [full_spec(c) for c in consts]
                + [grp_spec(p) for p in packed])
    out_shape = (jax.ShapeDtypeStruct((G, B, 128), jnp.float32),
                 jax.ShapeDtypeStruct((G, B * L, 128), jnp.float32))
    out_specs = (pl.BlockSpec((1, B, 128), lambda g: (g, 0, 0)),
                 pl.BlockSpec((1, B * L, 128), lambda g: (g, 0, 0)))

    y_blk, a_blk = pl.pallas_call(
        kernel,
        grid=(G,),
        in_specs=in_specs,
        out_specs=out_specs,
        out_shape=out_shape,
        compiler_params=pltpu.CompilerParams(
            dimension_semantics=("parallel",),
            vmem_limit_bytes=48 * 1024 * 1024),
    )(x1, *consts, *packed)

    # model index m = g*MG + mi
    Y = y_blk[:, :, :MG].transpose(1, 0, 2).reshape(B, N_MODELS)          # (B, 6)
    A = (a_blk[:, :, :MG].reshape(G, B, L, MG)
         .transpose(1, 0, 3, 2).reshape(B, N_MODELS, L))                  # (B, 6, 9)
    return Y, A


def positional_encoding(length, dim):
    pos = jnp.arange(length, dtype=jnp.float32)[:, None]
    # matches the PyTorch source: div_term uses -math.log(1)/dim == 0 -> all ones
    div = jnp.exp(jnp.arange(0, dim, 2, dtype=jnp.float32) * (-math.log(1.0) / dim))
    pe = jnp.zeros((length, dim), jnp.float32)
    pe = pe.at[:, 0::2].set(jnp.sin(pos * div))
    pe = pe.at[:, 1::2].set(jnp.cos(pos * div))
    return pe


def init_params(key):
    """Deterministic synthetic parameters, stacked over the 6 sub-models.
    (When loading real PyTorch weights: transpose Linear/LSTM weight matrices to
     input-major, sum b_ih + b_hh, keep PyTorch's (i, f, g, o) gate order.)"""
    def stacked(k, shape, fan_in):
        return (jax.random.normal(k, (N_MODELS,) + shape, jnp.float32)
                / jnp.sqrt(jnp.float32(fan_in)))

    ks = jax.random.split(key, 15)
    wih_f = stacked(ks[0], (D_IN, 4 * HID), D_IN)   # LSTM fwd input weights [i|f|g|o]
    whh_f = stacked(ks[1], (HID, 4 * HID), HID)
    b_f = stacked(ks[2], (1, 4 * HID), HID)         # b_ih + b_hh combined
    wih_b = stacked(ks[3], (D_IN, 4 * HID), D_IN)   # reverse direction
    whh_b = stacked(ks[4], (HID, 4 * HID), HID)
    b_b = stacked(ks[5], (1, 4 * HID), HID)
    wa = stacked(ks[6], (D_H, D_H), D_H)            # Attention.W
    ba = stacked(ks[7], (1, D_H), D_H)
    va = stacked(ks[8], (D_H, 1), D_H)              # Attention.V (bias cancels)
    w1 = stacked(ks[9], (D_FC_IN, 128), D_FC_IN)    # fc[0]
    b1 = stacked(ks[10], (1, 128), D_FC_IN)
    w2 = stacked(ks[11], (128, 64), 128)            # fc[3]
    b2 = stacked(ks[12], (1, 64), 128)
    w3 = stacked(ks[13], (64, 2), 64)               # fc[6]
    b3 = stacked(ks[14], (1, 2), 64)
    return (wih_f, whh_f, b_f, wih_b, whh_b, b_b, wa, ba, va,
            w1, b1, w2, b2, w3, b3)


if __name__ == "__main__":
    B = 2
    key = jax.random.PRNGKey(0)
    k_seq, k_stat, k_bse, k_par = jax.random.split(key, 4)
    # feature split: 8 + 4 + 4 == 16 == dim1
    seq = jax.random.normal(k_seq, (B, L, 8), jnp.float32)
    stat = jax.random.normal(k_stat, (B, L, 4), jnp.float32)
    bse = jax.random.normal(k_bse, (B, L, 4), jnp.float32)
    params = init_params(k_par)

    # glue: concat + positional encoding (trivial elementwise work stays in JAX)
    x1 = jnp.concatenate([seq, stat, bse], axis=2) + positional_encoding(L, D_IN)[None]

    Y, A = jax.jit(ml_model4_forward)(x1, params)
    jax.block_until_ready((Y, A))
    assert Y.shape == (B, N_MODELS)
    assert A.shape == (B, N_MODELS, L)
    assert bool(jnp.all(jnp.isfinite(Y))) and bool(jnp.all(jnp.isfinite(A)))
    print("KERNEL_OK")
</pallas_src>

<mosaic_0001>
module attributes {stable_mosaic.version = 11 : i64} {
  func.func @kernel(%arg0: i32, %arg1: memref<2x9x16xf32, #tpu.memory_space<vmem>>, %arg2: memref<2x18xf32, #tpu.memory_space<vmem>>, %arg3: memref<18x2xf32, #tpu.memory_space<vmem>>, %arg4: memref<128x384xf32, #tpu.memory_space<vmem>>, %arg5: memref<18x576xf32, #tpu.memory_space<vmem>>, %arg6: memref<64x576xf32, #tpu.memory_space<vmem>>, %arg7: memref<1x16x1536xf32, #tpu.memory_space<vmem>>, %arg8: memref<1x1x1536xf32, #tpu.memory_space<vmem>>, %arg9: memref<1x192x768xf32, #tpu.memory_space<vmem>>, %arg10: memref<1x192x768xf32, #tpu.memory_space<vmem>>, %arg11: memref<1x384x384xf32, #tpu.memory_space<vmem>>, %arg12: memref<1x1x384xf32, #tpu.memory_space<vmem>>, %arg13: memref<1x384x128xf32, #tpu.memory_space<vmem>>, %arg14: memref<1x384x768xf32, #tpu.memory_space<vmem>>, %arg15: memref<1x1x768xf32, #tpu.memory_space<vmem>>, %arg16: memref<1x6x576x128xf32, #tpu.memory_space<vmem>>, %arg17: memref<1x768x384xf32, #tpu.memory_space<vmem>>, %arg18: memref<1x1x384xf32, #tpu.memory_space<vmem>>, %arg19: memref<1x384x128xf32, #tpu.memory_space<vmem>>, %arg20: memref<1x1x128xf32, #tpu.memory_space<vmem>>, %arg21: memref<1x2x128xf32, #tpu.memory_space<vmem>>, %arg22: memref<1x18x128xf32, #tpu.memory_space<vmem>>) attributes {dimension_semantics = [#tpu.dimension_semantics<parallel>], iteration_bounds = array<i64: 1>, scalar_prefetch = 0 : i64, scratch_operands = 0 : i64, tpu.core_type = #tpu.core_type<tc>, window_params = [{pipeline_mode = #tpu.pipeline_mode<synchronous>, transform_indices = @transform_0, window_bounds = array<i64: 2, 9, 16>}, {pipeline_mode = #tpu.pipeline_mode<synchronous>, transform_indices = @transform_1, window_bounds = array<i64: 2, 18>}, {pipeline_mode = #tpu.pipeline_mode<synchronous>, transform_indices = @transform_2, window_bounds = array<i64: 18, 2>}, {pipeline_mode = #tpu.pipeline_mode<synchronous>, transform_indices = @transform_3, window_bounds = array<i64: 128, 384>}, {pipeline_mode = #tpu.pipeline_mode<synchronous>, transform_indices = @transform_4, window_bounds = array<i64: 18, 576>}, {pipeline_mode = #tpu.pipeline_mode<synchronous>, transform_indices = @transform_5, window_bounds = array<i64: 64, 576>}, {transform_indices = @transform_6, window_bounds = array<i64: 1, 16, 1536>}, {transform_indices = @transform_7, window_bounds = array<i64: 1, 1, 1536>}, {transform_indices = @transform_8, window_bounds = array<i64: 1, 192, 768>}, {transform_indices = @transform_9, window_bounds = array<i64: 1, 192, 768>}, {transform_indices = @transform_10, window_bounds = array<i64: 1, 384, 384>}, {transform_indices = @transform_11, window_bounds = array<i64: 1, 1, 384>}, {transform_indices = @transform_12, window_bounds = array<i64: 1, 384, 128>}, {transform_indices = @transform_13, window_bounds = array<i64: 1, 384, 768>}, {transform_indices = @transform_14, window_bounds = array<i64: 1, 1, 768>}, {transform_indices = @transform_15, window_bounds = array<i64: 1, 6, 576, 128>}, {transform_indices = @transform_16, window_bounds = array<i64: 1, 768, 384>}, {transform_indices = @transform_17, window_bounds = array<i64: 1, 1, 384>}, {transform_indices = @transform_18, window_bounds = array<i64: 1, 384, 128>}, {transform_indices = @transform_19, window_bounds = array<i64: 1, 1, 128>}, {transform_indices = @transform_20, window_bounds = array<i64: 1, 2, 128>}, {transform_indices = @transform_21, window_bounds = array<i64: 1, 18, 128>}]} {
    %c0 = arith.constant 0 : index
    %c0_0 = arith.constant 0 : index
    %c0_1 = arith.constant 0 : index
    %0 = vector.load %arg7[%c0, %c0_0, %c0_1] : memref<1x16x1536xf32, #tpu.memory_space<vmem>>, vector<1x16x1536xf32>
    %1 = vector.shape_cast %0 : vector<1x16x1536xf32> to vector<16x1536xf32>
    %c0_2 = arith.constant 0 : index
    %c0_3 = arith.constant 0 : index
    %c0_4 = arith.constant 0 : index
    %2 = vector.load %arg8[%c0_2, %c0_3, %c0_4] : memref<1x1x1536xf32, #tpu.memory_space<vmem>>, vector<1x1x1536xf32>
    %3 = vector.shape_cast %2 : vector<1x1x1536xf32> to vector<1x1536xf32>
    %c0_5 = arith.constant 0 : index
    %c0_6 = arith.constant 0 : index
    %c0_7 = arith.constant 0 : index
    %4 = vector.load %arg1[%c0_5, %c0_6, %c0_7] : memref<2x9x16xf32, #tpu.memory_space<vmem>>, vector<1x9x16xf32>
    %5 = vector.shape_cast %4 : vector<1x9x16xf32> to vector<9x16xf32>
    %cst = arith.constant dense<0.000000e+00> : vector<9x1536xf32>
    %6 = tpu.matmul %5, %1, %cst {dimension_numbers = #tpu.dot_dimension_numbers<[1], [0], [0], [1], [0, 0, 1, 1], [], []>} : vector<9x16xf32>, vector<16x1536xf32>, vector<9x1536xf32> -> vector<9x1536xf32>
    %7 = vector.broadcast %3 : vector<1x1536xf32> to vector<9x1536xf32>
    %8 = arith.addf %6, %7 : vector<9x1536xf32>
    %c1 = arith.constant 1 : index
    %c0_8 = arith.constant 0 : index
    %c0_9 = arith.constant 0 : index
    %9 = vector.load %arg1[%c1, %c0_8, %c0_9] : memref<2x9x16xf32, #tpu.memory_space<vmem>>, vector<1x9x16xf32>
    %10 = vector.shape_cast %9 : vector<1x9x16xf32> to vector<9x16xf32>
    %cst_10 = arith.constant dense<0.000000e+00> : vector<9x1536xf32>
    %11 = tpu.matmul %10, %1, %cst_10 {dimension_numbers = #tpu.dot_dimension_numbers<[1], [0], [0], [1], [0, 0, 1, 1], [], []>} : vector<9x16xf32>, vector<16x1536xf32>, vector<9x1536xf32> -> vector<9x1536xf32>
    %12 = vector.broadcast %3 : vector<1x1536xf32> to vector<9x1536xf32>
    %13 = arith.addf %11, %12 : vector<9x1536xf32>
    %14 = vector.extract_strided_slice %8 {offsets = [0, 0], sizes = [9, 768], strides = [1, 1]} : vector<9x1536xf32> to vector<9x768xf32>
    %15 = vector.extract_strided_slice %13 {offsets = [0, 0], sizes = [9, 768], strides = [1, 1]} : vector<9x1536xf32> to vector<9x768xf32>
    %16 = vector.extract_strided_slice %8 {offsets = [0, 768], sizes = [9, 768], strides = [1, 1]} : vector<9x1536xf32> to vector<9x768xf32>
    %17 = vector.extract_strided_slice %13 {offsets = [0, 768], sizes = [9, 768], strides = [1, 1]} : vector<9x1536xf32> to vector<9x768xf32>
    %c0_11 = arith.constant 0 : index
    %c0_12 = arith.constant 0 : index
    %c0_13 = arith.constant 0 : index
    %18 = vector.load %arg9[%c0_11, %c0_12, %c0_13] : memref<1x192x768xf32, #tpu.memory_space<vmem>>, vector<1x192x768xf32>
    %19 = vector.shape_cast %18 : vector<1x192x768xf32> to vector<192x768xf32>
    %c0_14 = arith.constant 0 : index
    %c0_15 = arith.constant 0 : index
    %c0_16 = arith.constant 0 : index
    %20 = vector.load %arg10[%c0_14, %c0_15, %c0_16] : memref<1x192x768xf32, #tpu.memory_space<vmem>>, vector<1x192x768xf32>
    %21 = vector.shape_cast %20 : vector<1x192x768xf32> to vector<192x768xf32>
    %cst_17 = arith.constant 0.000000e+00 : f32
    %22 = vector.broadcast %cst_17 : f32 to vector<9x192xf32>
    %cst_18 = arith.constant dense<0.000000e+00> : vector<9x768xf32>
    %23 = tpu.matmul %22, %19, %cst_18 {dimension_numbers = #tpu.dot_dimension_numbers<[1], [0], [0], [1], [0, 0, 1, 1], [], []>} : vector<9x192xf32>, vector<192x768xf32>, vector<9x768xf32> -> vector<9x768xf32>
    %24 = arith.addf %23, %14 : vector<9x768xf32>
    %cst_19 = arith.constant dense<0.000000e+00> : vector<9x768xf32>
    %25 = tpu.matmul %22, %21, %cst_19 {dimension_numbers = #tpu.dot_dimension_numbers<[1], [0], [0], [1], [0, 0, 1, 1], [], []>} : vector<9x192xf32>, vector<192x768xf32>, vector<9x768xf32> -> vector<9x768xf32>
    %26 = arith.addf %25, %17 : vector<9x768xf32>
    %27 = vector.extract_strided_slice %24 {offsets = [0, 0], sizes = [9, 192], strides = [1, 1]} : vector<9x768xf32> to vector<9x192xf32>
    %cst_20 = arith.constant 5.000000e-01 : f32
    %28 = vector.broadcast %cst_20 : f32 to vector<9x192xf32>
    %29 = arith.mulf %28, %27 : vector<9x192xf32>
    %30 = math.tanh %29 : vector<9x192xf32>
    %cst_21 = arith.constant 1.000000e+00 : f32
    %31 = vector.broadcast %cst_21 : f32 to vector<9x192xf32>
    %32 = arith.addf %30, %31 : vector<9x192xf32>
    %cst_22 = arith.constant 5.000000e-01 : f32
    %33 = vector.broadcast %cst_22 : f32 to vector<9x192xf32>
    %34 = arith.mulf %33, %32 : vector<9x192xf32>
    %35 = vector.extract_strided_slice %24 {offsets = [0, 192], sizes = [9, 192], strides = [1, 1]} : vector<9x768xf32> to vector<9x192xf32>
    %cst_23 = arith.constant 5.000000e-01 : f32
    %36 = vector.broadcast %cst_23 : f32 to vector<9x192xf32>
    %37 = arith.mulf %36, %35 : vector<9x192xf32>
    %38 = math.tanh %37 : vector<9x192xf32>
    %cst_24 = arith.constant 1.000000e+00 : f32
    %39 = vector.broadcast %cst_24 : f32 to vector<9x192xf32>
    %40 = arith.addf %38, %39 : vector<9x192xf32>
    %cst_25 = arith.constant 5.000000e-01 : f32
    %41 = vector.broadcast %cst_25 : f32 to vector<9x192xf32>
    %42 = arith.mulf %41, %40 : vector<9x192xf32>
    %43 = vector.extract_strided_slice %24 {offsets = [0, 384], sizes = [9, 192], strides = [1, 1]} : vector<9x768xf32> to vector<9x192xf32>
    %44 = math.tanh %43 : vector<9x192xf32>
    %45 = vector.extract_strided_slice %24 {offsets = [0, 576], sizes = [9, 192], strides = [1, 1]} : vector<9x768xf32> to vector<9x192xf32>
    %cst_26 = arith.constant 5.000000e-01 : f32
    %46 = vector.broadcast %cst_26 : f32 to vector<9x192xf32>
    %47 = arith.mulf %46, %45 : vector<9x192xf32>
    %48 = math.tanh %47 : vector<9x192xf32>
    %cst_27 = arith.constant 1.000000e+00 : f32
    %49 = vector.broadcast %cst_27 : f32 to vector<9x192xf32>
    %50 = arith.addf %48, %49 : vector<9x192xf32>
    %cst_28 = arith.constant 5.000000e-01 : f32
    %51 = vector.broadcast %cst_28 : f32 to vector<9x192xf32>
    %52 = arith.mulf %51, %50 : vector<9x192xf32>
    %53 = arith.mulf %42, %22 : vector<9x192xf32>
    %54 = arith.mulf %34, %44 : vector<9x192xf32>
    %55 = arith.addf %53, %54 : vector<9x192xf32>
    %56 = math.tanh %55 : vector<9x192xf32>
    %57 = arith.mulf %52, %56 : vector<9x192xf32>
    %58 = vector.extract_strided_slice %26 {offsets = [0, 0], sizes = [9, 192], strides = [1, 1]} : vector<9x768xf32> to vector<9x192xf32>
    %cst_29 = arith.constant 5.000000e-01 : f32
    %59 = vector.broadcast %cst_29 : f32 to vector<9x192xf32>
    %60 = arith.mulf %59, %58 : vector<9x192xf32>
    %61 = math.tanh %60 : vector<9x192xf32>
    %cst_30 = arith.constant 1.000000e+00 : f32
    %62 = vector.broadcast %cst_30 : f32 to vector<9x192xf32>
    %63 = arith.addf %61, %62 : vector<9x192xf32>
    %cst_31 = arith.constant 5.000000e-01 : f32
    %64 = vector.broadcast %cst_31 : f32 to vector<9x192xf32>
    %65 = arith.mulf %64, %63 : vector<9x192xf32>
    %66 = vector.extract_strided_slice %26 {offsets = [0, 192], sizes = [9, 192], strides = [1, 1]} : vector<9x768xf32> to vector<9x192xf32>
    %cst_32 = arith.constant 5.000000e-01 : f32
    %67 = vector.broadcast %cst_32 : f32 to vector<9x192xf32>
    %68 = arith.mulf %67, %66 : vector<9x192xf32>
    %69 = math.tanh %68 : vector<9x192xf32>
    %cst_33 = arith.constant 1.000000e+00 : f32
    %70 = vector.broadcast %cst_33 : f32 to vector<9x192xf32>
    %71 = arith.addf %69, %70 : vector<9x192xf32>
    %cst_34 = arith.constant 5.000000e-01 : f32
    %72 = vector.broadcast %cst_34 : f32 to vector<9x192xf32>
    %73 = arith.mulf %72, %71 : vector<9x192xf32>
    %74 = vector.extract_strided_slice %26 {offsets = [0, 384], sizes = [9, 192], strides = [1, 1]} : vector<9x768xf32> to vector<9x192xf32>
    %75 = math.tanh %74 : vector<9x192xf32>
    %76 = vector.extract_strided_slice %26 {offsets = [0, 576], sizes = [9, 192], strides = [1, 1]} : vector<9x768xf32> to vector<9x192xf32>
    %cst_35 = arith.constant 5.000000e-01 : f32
    %77 = vector.broadcast %cst_35 : f32 to vector<9x192xf32>
    %78 = arith.mulf %77, %76 : vector<9x192xf32>
    %79 = math.tanh %78 : vector<9x192xf32>
    %cst_36 = arith.constant 1.000000e+00 : f32
    %80 = vector.broadcast %cst_36 : f32 to vector<9x192xf32>
    %81 = arith.addf %79, %80 : vector<9x192xf32>
    %cst_37 = arith.constant 5.000000e-01 : f32
    %82 = vector.broadcast %cst_37 : f32 to vector<9x192xf32>
    %83 = arith.mulf %82, %81 : vector<9x192xf32>
    %84 = arith.mulf %73, %22 : vector<9x192xf32>
    %85 = arith.mulf %65, %75 : vector<9x192xf32>
    %86 = arith.addf %84, %85 : vector<9x192xf32>
    %87 = math.tanh %86 : vector<9x192xf32>
    %88 = arith.mulf %83, %87 : vector<9x192xf32>
    %cst_38 = arith.constant dense<0.000000e+00> : vector<9x768xf32>
    %89 = tpu.matmul %57, %19, %cst_38 {dimension_numbers = #tpu.dot_dimension_numbers<[1], [0], [0], [1], [0, 0, 1, 1], [], []>} : vector<9x192xf32>, vector<192x768xf32>, vector<9x768xf32> -> vector<9x768xf32>
    %90 = arith.addf %89, %15 : vector<9x768xf32>
    %cst_39 = arith.constant dense<0.000000e+00> : vector<9x768xf32>
    %91 = tpu.matmul %88, %21, %cst_39 {dimension_numbers = #tpu.dot_dimension_numbers<[1], [0], [0], [1], [0, 0, 1, 1], [], []>} : vector<9x192xf32>, vector<192x768xf32>, vector<9x768xf32> -> vector<9x768xf32>
    %92 = arith.addf %91, %16 : vector<9x768xf32>
    %93 = vector.extract_strided_slice %90 {offsets = [0, 0], sizes = [9, 192], strides = [1, 1]} : vector<9x768xf32> to vector<9x192xf32>
    %cst_40 = arith.constant 5.000000e-01 : f32
    %94 = vector.broadcast %cst_40 : f32 to vector<9x192xf32>
    %95 = arith.mulf %94, %93 : vector<9x192xf32>
    %96 = math.tanh %95 : vector<9x192xf32>
    %cst_41 = arith.constant 1.000000e+00 : f32
    %97 = vector.broadcast %cst_41 : f32 to vector<9x192xf32>
    %98 = arith.addf %96, %97 : vector<9x192xf32>
    %cst_42 = arith.constant 5.000000e-01 : f32
    %99 = vector.broadcast %cst_42 : f32 to vector<9x192xf32>
    %100 = arith.mulf %99, %98 : vector<9x192xf32>
    %101 = vector.extract_strided_slice %90 {offsets = [0, 192], sizes = [9, 192], strides = [1, 1]} : vector<9x768xf32> to vector<9x192xf32>
    %cst_43 = arith.constant 5.000000e-01 : f32
    %102 = vector.broadcast %cst_43 : f32 to vector<9x192xf32>
    %103 = arith.mulf %102, %101 : vector<9x192xf32>
    %104 = math.tanh %103 : vector<9x192xf32>
    %cst_44 = arith.constant 1.000000e+00 : f32
    %105 = vector.broadcast %cst_44 : f32 to vector<9x192xf32>
    %106 = arith.addf %104, %105 : vector<9x192xf32>
    %cst_45 = arith.constant 5.000000e-01 : f32
    %107 = vector.broadcast %cst_45 : f32 to vector<9x192xf32>
    %108 = arith.mulf %107, %106 : vector<9x192xf32>
    %109 = vector.extract_strided_slice %90 {offsets = [0, 384], sizes = [9, 192], strides = [1, 1]} : vector<9x768xf32> to vector<9x192xf32>
    %110 = math.tanh %109 : vector<9x192xf32>
    %111 = vector.extract_strided_slice %90 {offsets = [0, 576], sizes = [9, 192], strides = [1, 1]} : vector<9x768xf32> to vector<9x192xf32>
    %cst_46 = arith.constant 5.000000e-01 : f32
    %112 = vector.broadcast %cst_46 : f32 to vector<9x192xf32>
    %113 = arith.mulf %112, %111 : vector<9x192xf32>
    %114 = math.tanh %113 : vector<9x192xf32>
    %cst_47 = arith.constant 1.000000e+00 : f32
    %115 = vector.broadcast %cst_47 : f32 to vector<9x192xf32>
    %116 = arith.addf %114, %115 : vector<9x192xf32>
    %cst_48 = arith.constant 5.000000e-01 : f32
    %117 = vector.broadcast %cst_48 : f32 to vector<9x192xf32>
    %118 = arith.mulf %117, %116 : vector<9x192xf32>
    %119 = arith.mulf %108, %55 : vector<9x192xf32>
    %120 = arith.mulf %100, %110 : vector<9x192xf32>
    %121 = arith.addf %119, %120 : vector<9x192xf32>
    %122 = math.tanh %121 : vector<9x192xf32>
    %123 = arith.mulf %118, %122 : vector<9x192xf32>
    %124 = vector.extract_strided_slice %92 {offsets = [0, 0], sizes = [9, 192], strides = [1, 1]} : vector<9x768xf32> to vector<9x192xf32>
    %cst_49 = arith.constant 5.000000e-01 : f32
    %125 = vector.broadcast %cst_49 : f32 to vector<9x192xf32>
    %126 = arith.mulf %125, %124 : vector<9x192xf32>
    %127 = math.tanh %126 : vector<9x192xf32>
    %cst_50 = arith.constant 1.000000e+00 : f32
    %128 = vector.broadcast %cst_50 : f32 to vector<9x192xf32>
    %129 = arith.addf %127, %128 : vector<9x192xf32>
    %cst_51 = arith.constant 5.000000e-01 : f32
    %130 = vector.broadcast %cst_51 : f32 to vector<9x192xf32>
    %131 = arith.mulf %130, %129 : vector<9x192xf32>
    %132 = vector.extract_strided_slice %92 {offsets = [0, 192], sizes = [9, 192], strides = [1, 1]} : vector<9x768xf32> to vector<9x192xf32>
    %cst_52 = arith.constant 5.000000e-01 : f32
    %133 = vector.broadcast %cst_52 : f32 to vector<9x192xf32>
    %134 = arith.mulf %133, %132 : vector<9x192xf32>
    %135 = math.tanh %134 : vector<9x192xf32>
    %cst_53 = arith.constant 1.000000e+00 : f32
    %136 = vector.broadcast %cst_53 : f32 to vector<9x192xf32>
    %137 = arith.addf %135, %136 : vector<9x192xf32>
    %cst_54 = arith.constant 5.000000e-01 : f32
    %138 = vector.broadcast %cst_54 : f32 to vector<9x192xf32>
    %139 = arith.mulf %138, %137 : vector<9x192xf32>
    %140 = vector.extract_strided_slice %92 {offsets = [0, 384], sizes = [9, 192], strides = [1, 1]} : vector<9x768xf32> to vector<9x192xf32>
    %141 = math.tanh %140 : vector<9x192xf32>
    %142 = vector.extract_strided_slice %92 {offsets = [0, 576], sizes = [9, 192], strides = [1, 1]} : vector<9x768xf32> to vector<9x192xf32>
    %cst_55 = arith.constant 5.000000e-01 : f32
    %143 = vector.broadcast %cst_55 : f32 to vector<9x192xf32>
    %144 = arith.mulf %143, %142 : vector<9x192xf32>
    %145 = math.tanh %144 : vector<9x192xf32>
    %cst_56 = arith.constant 1.000000e+00 : f32
    %146 = vector.broadcast %cst_56 : f32 to vector<9x192xf32>
    %147 = arith.addf %145, %146 : vector<9x192xf32>
    %cst_57 = arith.constant 5.000000e-01 : f32
    %148 = vector.broadcast %cst_57 : f32 to vector<9x192xf32>
    %149 = arith.mulf %148, %147 : vector<9x192xf32>
    %150 = arith.mulf %139, %86 : vector<9x192xf32>
    %151 = arith.mulf %131, %141 : vector<9x192xf32>
    %152 = arith.addf %150, %151 : vector<9x192xf32>
    %153 = math.tanh %152 : vector<9x192xf32>
    %154 = arith.mulf %149, %153 : vector<9x192xf32>
    %155 = tpu.concatenate %57, %154 in 1 : vector<9x192xf32>, vector<9x192xf32> -> vector<9x384xf32>
    %156 = tpu.concatenate %123, %88 in 1 : vector<9x192xf32>, vector<9x192xf32> -> vector<9x384xf32>
    %157 = tpu.concatenate %155, %156 in 0 : vector<9x384xf32>, vector<9x384xf32> -> vector<18x384xf32>
    %c0_58 = arith.constant 0 : index
    %c0_59 = arith.constant 0 : index
    %158 = vector.load %arg2[%c0_58, %c0_59] : memref<2x18xf32, #tpu.memory_space<vmem>>, vector<2x18xf32>
    %c0_60 = arith.constant 0 : index
    %c0_61 = arith.constant 0 : index
    %159 = vector.load %arg3[%c0_60, %c0_61] : memref<18x2xf32, #tpu.memory_space<vmem>>, vector<18x2xf32>
    %c0_62 = arith.constant 0 : index
    %c0_63 = arith.constant 0 : index
    %160 = vector.load %arg4[%c0_62, %c0_63] : memref<128x384xf32, #tpu.memory_space<vmem>>, vector<128x384xf32>
    %c0_64 = arith.constant 0 : index
    %c0_65 = arith.constant 0 : index
    %161 = vector.load %arg5[%c0_64, %c0_65] : memref<18x576xf32, #tpu.memory_space<vmem>>, vector<18x576xf32>
    %c0_66 = arith.constant 0 : index
    %c0_67 = arith.constant 0 : index
    %162 = vector.load %arg6[%c0_66, %c0_67] : memref<64x576xf32, #tpu.memory_space<vmem>>, vector<64x576xf32>
    %c0_68 = arith.constant 0 : index
    %c0_69 = arith.constant 0 : index
    %c0_70 = arith.constant 0 : index
    %163 = vector.load %arg11[%c0_68, %c0_69, %c0_70] : memref<1x384x384xf32, #tpu.memory_space<vmem>>, vector<1x384x384xf32>
    %164 = vector.shape_cast %163 : vector<1x384x384xf32> to vector<384x384xf32>
    %cst_71 = arith.constant dense<0.000000e+00> : vector<18x384xf32>
    %165 = tpu.matmul %157, %164, %cst_71 {dimension_numbers = #tpu.dot_dimension_numbers<[1], [0], [0], [1], [0, 0, 1, 1], [], []>} : vector<18x384xf32>, vector<384x384xf32>, vector<18x384xf32> -> vector<18x384xf32>
    %c0_72 = arith.constant 0 : index
    %c0_73 = arith.constant 0 : index
    %c0_74 = arith.constant 0 : index
    %166 = vector.load %arg12[%c0_72, %c0_73, %c0_74] : memref<1x1x384xf32, #tpu.memory_space<vmem>>, vector<1x1x384xf32>
    %167 = vector.shape_cast %166 : vector<1x1x384xf32> to vector<1x384xf32>
    %168 = vector.broadcast %167 : vector<1x384xf32> to vector<18x384xf32>
    %169 = arith.addf %165, %168 : vector<18x384xf32>
    %170 = math.tanh %169 : vector<18x384xf32>
    %c0_75 = arith.constant 0 : index
    %c0_76 = arith.constant 0 : index
    %c0_77 = arith.constant 0 : index
    %171 = vector.load %arg13[%c0_75, %c0_76, %c0_77] : memref<1x384x128xf32, #tpu.memory_space<vmem>>, vector<1x384x128xf32>
    %172 = vector.shape_cast %171 : vector<1x384x128xf32> to vector<384x128xf32>
    %cst_78 = arith.constant dense<0.000000e+00> : vector<18x128xf32>
    %173 = tpu.matmul %170, %172, %cst_78 {dimension_numbers = #tpu.dot_dimension_numbers<[1], [0], [0], [1], [0, 0, 1, 1], [], []>} : vector<18x384xf32>, vector<384x128xf32>, vector<18x128xf32> -> vector<18x128xf32>
    %cst_79 = arith.constant dense<0xFF800000> : vector<128xf32>
    %174 = vector.multi_reduction <maximumf>, %173, %cst_79 [0] : vector<18x128xf32> to vector<128xf32>
    %175 = vector.shape_cast %174 : vector<128xf32> to vector<1x128xf32>
    %176 = vector.broadcast %175 : vector<1x128xf32> to vector<18x128xf32>
    %177 = arith.subf %173, %176 : vector<18x128xf32>
    %178 = math.exp %177 : vector<18x128xf32>
    %cst_80 = arith.constant dense<0.000000e+00> : vector<2x128xf32>
    %179 = tpu.matmul %158, %178, %cst_80 {dimension_numbers = #tpu.dot_dimension_numbers<[1], [0], [0], [1], [0, 0, 1, 1], [], []>} : vector<2x18xf32>, vector<18x128xf32>, vector<2x128xf32> -> vector<2x128xf32>
    %180 = tpu.reciprocal %179 {approx = true} : vector<2x128xf32> -> vector<2x128xf32>
    %cst_81 = arith.constant dense<0.000000e+00> : vector<18x128xf32>
    %181 = tpu.matmul %159, %180, %cst_81 {dimension_numbers = #tpu.dot_dimension_numbers<[1], [0], [0], [1], [0, 0, 1, 1], [], []>} : vector<18x2xf32>, vector<2x128xf32>, vector<18x128xf32> -> vector<18x128xf32>
    %182 = arith.mulf %178, %181 : vector<18x128xf32>
    %cst_82 = arith.constant dense<0.000000e+00> : vector<18x384xf32>
    %183 = tpu.matmul %182, %160, %cst_82 {dimension_numbers = #tpu.dot_dimension_numbers<[1], [0], [0], [1], [0, 0, 1, 1], [], []>} : vector<18x128xf32>, vector<128x384xf32>, vector<18x384xf32> -> vector<18x384xf32>
    %184 = arith.mulf %183, %157 : vector<18x384xf32>
    %cst_83 = arith.constant dense<0.000000e+00> : vector<2x384xf32>
    %185 = tpu.matmul %158, %184, %cst_83 {dimension_numbers = #tpu.dot_dimension_numbers<[1], [0], [0], [1], [0, 0, 1, 1], [], []>} : vector<2x18xf32>, vector<18x384xf32>, vector<2x384xf32> -> vector<2x384xf32>
    %c0_84 = arith.constant 0 : index
    %c0_85 = arith.constant 0 : index
    %c0_86 = arith.constant 0 : index
    %186 = vector.load %arg14[%c0_84, %c0_85, %c0_86] : memref<1x384x768xf32, #tpu.memory_space<vmem>>, vector<1x384x768xf32>
    %187 = vector.shape_cast %186 : vector<1x384x768xf32> to vector<384x768xf32>
    %cst_87 = arith.constant dense<0.000000e+00> : vector<2x768xf32>
    %188 = tpu.matmul %185, %187, %cst_87 {dimension_numbers = #tpu.dot_dimension_numbers<[1], [0], [0], [1], [0, 0, 1, 1], [], []>} : vector<2x384xf32>, vector<384x768xf32>, vector<2x768xf32> -> vector<2x768xf32>
    %c0_88 = arith.constant 0 : index
    %c0_89 = arith.constant 0 : index
    %c0_90 = arith.constant 0 : index
    %189 = vector.load %arg15[%c0_88, %c0_89, %c0_90] : memref<1x1x768xf32, #tpu.memory_space<vmem>>, vector<1x1x768xf32>
    %190 = vector.shape_cast %189 : vector<1x1x768xf32> to vector<1x768xf32>
    %191 = vector.broadcast %190 : vector<1x768xf32> to vector<2x768xf32>
    %192 = arith.addf %188, %191 : vector<2x768xf32>
    %193 = vector.extract_strided_slice %157 {offsets = [0, 0], sizes = [18, 32], strides = [1, 1]} : vector<18x384xf32> to vector<18x32xf32>
    %194 = vector.extract_strided_slice %157 {offsets = [0, 192], sizes = [18, 32], strides = [1, 1]} : vector<18x384xf32> to vector<18x32xf32>
    %195 = tpu.concatenate %193, %194 in 1 : vector<18x32xf32>, vector<18x32xf32> -> vector<18x64xf32>
    %cst_91 = arith.constant dense<0.000000e+00> : vector<18x576xf32>
    %196 = tpu.matmul %195, %162, %cst_91 {dimension_numbers = #tpu.dot_dimension_numbers<[1], [0], [0], [1], [0, 0, 1, 1], [], []>} : vector<18x64xf32>, vector<64x576xf32>, vector<18x576xf32> -> vector<18x576xf32>
    %197 = arith.mulf %196, %161 : vector<18x576xf32>
    %c0_92 = arith.constant 0 : index
    %c0_93 = arith.constant 0 : index
    %c0_94 = arith.constant 0 : index
    %c0_95 = arith.constant 0 : index
    %198 = vector.load %arg16[%c0_92, %c0_93, %c0_94, %c0_95] : memref<1x6x576x128xf32, #tpu.memory_space<vmem>>, vector<1x1x576x128xf32>
    %199 = vector.shape_cast %198 : vector<1x1x576x128xf32> to vector<576x128xf32>
    %cst_96 = arith.constant dense<0.000000e+00> : vector<18x128xf32>
    %200 = tpu.matmul %197, %199, %cst_96 {dimension_numbers = #tpu.dot_dimension_numbers<[1], [0], [0], [1], [0, 0, 1, 1], [], []>} : vector<18x576xf32>, vector<576x128xf32>, vector<18x128xf32> -> vector<18x128xf32>
    %201 = vector.extract_strided_slice %157 {offsets = [0, 32], sizes = [18, 32], strides = [1, 1]} : vector<18x384xf32> to vector<18x32xf32>
    %202 = vector.extract_strided_slice %157 {offsets = [0, 224], sizes = [18, 32], strides = [1, 1]} : vector<18x384xf32> to vector<18x32xf32>
    %203 = tpu.concatenate %201, %202 in 1 : vector<18x32xf32>, vector<18x32xf32> -> vector<18x64xf32>
    %cst_97 = arith.constant dense<0.000000e+00> : vector<18x576xf32>
    %204 = tpu.matmul %203, %162, %cst_97 {dimension_numbers = #tpu.dot_dimension_numbers<[1], [0], [0], [1], [0, 0, 1, 1], [], []>} : vector<18x64xf32>, vector<64x576xf32>, vector<18x576xf32> -> vector<18x576xf32>
    %205 = arith.mulf %204, %161 : vector<18x576xf32>
    %c0_98 = arith.constant 0 : index
    %c1_99 = arith.constant 1 : index
    %c0_100 = arith.constant 0 : index
    %c0_101 = arith.constant 0 : index
    %206 = vector.load %arg16[%c0_98, %c1_99, %c0_100, %c0_101] : memref<1x6x576x128xf32, #tpu.memory_space<vmem>>, vector<1x1x576x128xf32>
    %207 = vector.shape_cast %206 : vector<1x1x576x128xf32> to vector<576x128xf32>
    %cst_102 = arith.constant dense<0.000000e+00> : vector<18x128xf32>
    %208 = tpu.matmul %205, %207, %cst_102 {dimension_numbers = #tpu.dot_dimension_numbers<[1], [0], [0], [1], [0, 0, 1, 1], [], []>} : vector<18x576xf32>, vector<576x128xf32>, vector<18x128xf32> -> vector<18x128xf32>
    %209 = vector.extract_strided_slice %157 {offsets = [0, 64], sizes = [18, 32], strides = [1, 1]} : vector<18x384xf32> to vector<18x32xf32>
    %210 = vector.extract_strided_slice %157 {offsets = [0, 256], sizes = [18, 32], strides = [1, 1]} : vector<18x384xf32> to vector<18x32xf32>
    %211 = tpu.concatenate %209, %210 in 1 : vector<18x32xf32>, vector<18x32xf32> -> vector<18x64xf32>
    %cst_103 = arith.constant dense<0.000000e+00> : vector<18x576xf32>
    %212 = tpu.matmul %211, %162, %cst_103 {dimension_numbers = #tpu.dot_dimension_numbers<[1], [0], [0], [1], [0, 0, 1, 1], [], []>} : vector<18x64xf32>, vector<64x576xf32>, vector<18x576xf32> -> vector<18x576xf32>
    %213 = arith.mulf %212, %161 : vector<18x576xf32>
    %c0_104 = arith.constant 0 : index
    %c2 = arith.constant 2 : index
    %c0_105 = arith.constant 0 : index
    %c0_106 = arith.constant 0 : index
    %214 = vector.load %arg16[%c0_104, %c2, %c0_105, %c0_106] : memref<1x6x576x128xf32, #tpu.memory_space<vmem>>, vector<1x1x576x128xf32>
    %215 = vector.shape_cast %214 : vector<1x1x576x128xf32> to vector<576x128xf32>
    %cst_107 = arith.constant dense<0.000000e+00> : vector<18x128xf32>
    %216 = tpu.matmul %213, %215, %cst_107 {dimension_numbers = #tpu.dot_dimension_numbers<[1], [0], [0], [1], [0, 0, 1, 1], [], []>} : vector<18x576xf32>, vector<576x128xf32>, vector<18x128xf32> -> vector<18x128xf32>
    %217 = vector.extract_strided_slice %157 {offsets = [0, 96], sizes = [18, 32], strides = [1, 1]} : vector<18x384xf32> to vector<18x32xf32>
    %218 = vector.extract_strided_slice %157 {offsets = [0, 288], sizes = [18, 32], strides = [1, 1]} : vector<18x384xf32> to vector<18x32xf32>
    %219 = tpu.concatenate %217, %218 in 1 : vector<18x32xf32>, vector<18x32xf32> -> vector<18x64xf32>
    %cst_108 = arith.constant dense<0.000000e+00> : vector<18x576xf32>
    %220 = tpu.matmul %219, %162, %cst_108 {dimension_numbers = #tpu.dot_dimension_numbers<[1], [0], [0], [1], [0, 0, 1, 1], [], []>} : vector<18x64xf32>, vector<64x576xf32>, vector<18x576xf32> -> vector<18x576xf32>
    %221 = arith.mulf %220, %161 : vector<18x576xf32>
    %c0_109 = arith.constant 0 : index
    %c3 = arith.constant 3 : index
    %c0_110 = arith.constant 0 : index
    %c0_111 = arith.constant 0 : index
    %222 = vector.load %arg16[%c0_109, %c3, %c0_110, %c0_111] : memref<1x6x576x128xf32, #tpu.memory_space<vmem>>, vector<1x1x576x128xf32>
    %223 = vector.shape_cast %222 : vector<1x1x576x128xf32> to vector<576x128xf32>
    %cst_112 = arith.constant dense<0.000000e+00> : vector<18x128xf32>
    %224 = tpu.matmul %221, %223, %cst_112 {dimension_numbers = #tpu.dot_dimension_numbers<[1], [0], [0], [1], [0, 0, 1, 1], [], []>} : vector<18x576xf32>, vector<576x128xf32>, vector<18x128xf32> -> vector<18x128xf32>
    %225 = vector.extract_strided_slice %157 {offsets = [0, 128], sizes = [18, 32], strides = [1, 1]} : vector<18x384xf32> to vector<18x32xf32>
    %226 = vector.extract_strided_slice %157 {offsets = [0, 320], sizes = [18, 32], strides = [1, 1]} : vector<18x384xf32> to vector<18x32xf32>
    %227 = tpu.concatenate %225, %226 in 1 : vector<18x32xf32>, vector<18x32xf32> -> vector<18x64xf32>
    %cst_113 = arith.constant dense<0.000000e+00> : vector<18x576xf32>
    %228 = tpu.matmul %227, %162, %cst_113 {dimension_numbers = #tpu.dot_dimension_numbers<[1], [0], [0], [1], [0, 0, 1, 1], [], []>} : vector<18x64xf32>, vector<64x576xf32>, vector<18x576xf32> -> vector<18x576xf32>
    %229 = arith.mulf %228, %161 : vector<18x576xf32>
    %c0_114 = arith.constant 0 : index
    %c4 = arith.constant 4 : index
    %c0_115 = arith.constant 0 : index
    %c0_116 = arith.constant 0 : index
    %230 = vector.load %arg16[%c0_114, %c4, %c0_115, %c0_116] : memref<1x6x576x128xf32, #tpu.memory_space<vmem>>, vector<1x1x576x128xf32>
    %231 = vector.shape_cast %230 : vector<1x1x576x128xf32> to vector<576x128xf32>
    %cst_117 = arith.constant dense<0.000000e+00> : vector<18x128xf32>
    %232 = tpu.matmul %229, %231, %cst_117 {dimension_numbers = #tpu.dot_dimension_numbers<[1], [0], [0], [1], [0, 0, 1, 1], [], []>} : vector<18x576xf32>, vector<576x128xf32>, vector<18x128xf32> -> vector<18x128xf32>
    %233 = vector.extract_strided_slice %157 {offsets = [0, 160], sizes = [18, 32], strides = [1, 1]} : vector<18x384xf32> to vector<18x32xf32>
    %234 = vector.extract_strided_slice %157 {offsets = [0, 352], sizes = [18, 32], strides = [1, 1]} : vector<18x384xf32> to vector<18x32xf32>
    %235 = tpu.concatenate %233, %234 in 1 : vector<18x32xf32>, vector<18x32xf32> -> vector<18x64xf32>
    %cst_118 = arith.constant dense<0.000000e+00> : vector<18x576xf32>
    %236 = tpu.matmul %235, %162, %cst_118 {dimension_numbers = #tpu.dot_dimension_numbers<[1], [0], [0], [1], [0, 0, 1, 1], [], []>} : vector<18x64xf32>, vector<64x576xf32>, vector<18x576xf32> -> vector<18x576xf32>
    %237 = arith.mulf %236, %161 : vector<18x576xf32>
    %c0_119 = arith.constant 0 : index
    %c5 = arith.constant 5 : index
    %c0_120 = arith.constant 0 : index
    %c0_121 = arith.constant 0 : index
    %238 = vector.load %arg16[%c0_119, %c5, %c0_120, %c0_121] : memref<1x6x576x128xf32, #tpu.memory_space<vmem>>, vector<1x1x576x128xf32>
    %239 = vector.shape_cast %238 : vector<1x1x576x128xf32> to vector<576x128xf32>
    %cst_122 = arith.constant dense<0.000000e+00> : vector<18x128xf32>
    %240 = tpu.matmul %237, %239, %cst_122 {dimension_numbers = #tpu.dot_dimension_numbers<[1], [0], [0], [1], [0, 0, 1, 1], [], []>} : vector<18x576xf32>, vector<576x128xf32>, vector<18x128xf32> -> vector<18x128xf32>
    %241 = tpu.concatenate %200, %208, %216, %224, %232, %240 in 1 : vector<18x128xf32>, vector<18x128xf32>, vector<18x128xf32>, vector<18x128xf32>, vector<18x128xf32>, vector<18x128xf32> -> vector<18x768xf32>
    %cst_123 = arith.constant dense<0.000000e+00> : vector<2x768xf32>
    %242 = tpu.matmul %158, %241, %cst_123 {dimension_numbers = #tpu.dot_dimension_numbers<[1], [0], [0], [1], [0, 0, 1, 1], [], []>} : vector<2x18xf32>, vector<18x768xf32>, vector<2x768xf32> -> vector<2x768xf32>
    %243 = arith.addf %192, %242 : vector<2x768xf32>
    %cst_124 = arith.constant 0.000000e+00 : f32
    %244 = vector.broadcast %cst_124 : f32 to vector<2x768xf32>
    %245 = arith.maximumf %243, %244 : vector<2x768xf32>
    %c0_125 = arith.constant 0 : index
    %c0_126 = arith.constant 0 : index
    %c0_127 = arith.constant 0 : index
    %246 = vector.load %arg17[%c0_125, %c0_126, %c0_127] : memref<1x768x384xf32, #tpu.memory_space<vmem>>, vector<1x768x384xf32>
    %247 = vector.shape_cast %246 : vector<1x768x384xf32> to vector<768x384xf32>
    %cst_128 = arith.constant dense<0.000000e+00> : vector<2x384xf32>
    %248 = tpu.matmul %245, %247, %cst_128 {dimension_numbers = #tpu.dot_dimension_numbers<[1], [0], [0], [1], [0, 0, 1, 1], [], []>} : vector<2x768xf32>, vector<768x384xf32>, vector<2x384xf32> -> vector<2x384xf32>
    %c0_129 = arith.constant 0 : index
    %c0_130 = arith.constant 0 : index
    %c0_131 = arith.constant 0 : index
    %249 = vector.load %arg18[%c0_129, %c0_130, %c0_131] : memref<1x1x384xf32, #tpu.memory_space<vmem>>, vector<1x1x384xf32>
    %250 = vector.shape_cast %249 : vector<1x1x384xf32> to vector<1x384xf32>
    %251 = vector.broadcast %250 : vector<1x384xf32> to vector<2x384xf32>
    %252 = arith.addf %248, %251 : vector<2x384xf32>
    %cst_132 = arith.constant 0.000000e+00 : f32
    %253 = vector.broadcast %cst_132 : f32 to vector<2x384xf32>
    %254 = arith.maximumf %252, %253 : vector<2x384xf32>
    %c0_133 = arith.constant 0 : index
    %c0_134 = arith.constant 0 : index
    %c0_135 = arith.constant 0 : index
    %255 = vector.load %arg19[%c0_133, %c0_134, %c0_135] : memref<1x384x128xf32, #tpu.memory_space<vmem>>, vector<1x384x128xf32>
    %256 = vector.shape_cast %255 : vector<1x384x128xf32> to vector<384x128xf32>
    %cst_136 = arith.constant dense<0.000000e+00> : vector<2x128xf32>
    %257 = tpu.matmul %254, %256, %cst_136 {dimension_numbers = #tpu.dot_dimension_numbers<[1], [0], [0], [1], [0, 0, 1, 1], [], []>} : vector<2x384xf32>, vector<384x128xf32>, vector<2x128xf32> -> vector<2x128xf32>
    %c0_137 = arith.constant 0 : index
    %c0_138 = arith.constant 0 : index
    %c0_139 = arith.constant 0 : index
    %258 = vector.load %arg20[%c0_137, %c0_138, %c0_139] : memref<1x1x128xf32, #tpu.memory_space<vmem>>, vector<1x1x128xf32>
    %259 = vector.shape_cast %258 : vector<1x1x128xf32> to vector<1x128xf32>
    %260 = vector.broadcast %259 : vector<1x128xf32> to vector<2x128xf32>
    %261 = arith.addf %257, %260 : vector<2x128xf32>
    %cst_140 = arith.constant 5.000000e-01 : f32
    %262 = vector.broadcast %cst_140 : f32 to vector<2x128xf32>
    %263 = arith.mulf %262, %261 : vector<2x128xf32>
    %264 = math.tanh %263 : vector<2x128xf32>
    %cst_141 = arith.constant 1.000000e+00 : f32
    %265 = vector.broadcast %cst_141 : f32 to vector<2x128xf32>
    %266 = arith.addf %264, %265 : vector<2x128xf32>
    %cst_142 = arith.constant 5.000000e-01 : f32
    %267 = vector.broadcast %cst_142 : f32 to vector<2x128xf32>
    %268 = arith.mulf %267, %266 : vector<2x128xf32>
    %c0_143 = arith.constant 0 : index
    %c0_144 = arith.constant 0 : index
    %c0_145 = arith.constant 0 : index
    %269 = vector.load %arg21[%c0_143, %c0_144, %c0_145] : memref<1x2x128xf32, #tpu.memory_space<vmem>>, vector<1x2x128xf32>
    %270 = vector.shape_cast %269 : vector<1x2x128xf32> to vector<2x128xf32>
    %271 = vector.shape_cast %268 : vector<2x128xf32> to vector<1x2x128xf32>
    tpu.vector_store %arg21[%c0_143, %c0_144, %c0_145], %271 {strides = array<i32>} : memref<1x2x128xf32, #tpu.memory_space<vmem>>, vector<1x2x128xf32>,
    %c0_146 = arith.constant 0 : index
    %c0_147 = arith.constant 0 : index
    %c0_148 = arith.constant 0 : index
    %272 = vector.load %arg22[%c0_146, %c0_147, %c0_148] : memref<1x18x128xf32, #tpu.memory_space<vmem>>, vector<1x18x128xf32>
    %273 = vector.shape_cast %272 : vector<1x18x128xf32> to vector<18x128xf32>
    %274 = vector.shape_cast %182 : vector<18x128xf32> to vector<1x18x128xf32>
    tpu.vector_store %arg22[%c0_146, %c0_147, %c0_148], %274 {strides = array<i32>} : memref<1x18x128xf32, #tpu.memory_space<vmem>>, vector<1x18x128xf32>,
    return
  }
  func.func @transform_0(%arg0: i32) -> (i32, i32, i32) {
    %c0_i32 = arith.constant 0 : i32
    %c0_i32_0 = arith.constant 0 : i32
    %c0_i32_1 = arith.constant 0 : i32
    %c0_i32_2 = arith.constant 0 : i32
    return %c0_i32, %c0_i32_0, %c0_i32_1 : i32, i32, i32
  }
  func.func @transform_1(%arg0: i32) -> (i32, i32) {
    %c0_i32 = arith.constant 0 : i32
    %c0_i32_0 = arith.constant 0 : i32
    %c0_i32_1 = arith.constant 0 : i32
    return %c0_i32, %c0_i32_0 : i32, i32
  }
  func.func @transform_2(%arg0: i32) -> (i32, i32) {
    %c0_i32 = arith.constant 0 : i32
    %c0_i32_0 = arith.constant 0 : i32
    %c0_i32_1 = arith.constant 0 : i32
    return %c0_i32, %c0_i32_0 : i32, i32
  }
  func.func @transform_3(%arg0: i32) -> (i32, i32) {
    %c0_i32 = arith.constant 0 : i32
    %c0_i32_0 = arith.constant 0 : i32
    %c0_i32_1 = arith.constant 0 : i32
    return %c0_i32, %c0_i32_0 : i32, i32
  }
  func.func @transform_4(%arg0: i32) -> (i32, i32) {
    %c0_i32 = arith.constant 0 : i32
    %c0_i32_0 = arith.constant 0 : i32
    %c0_i32_1 = arith.constant 0 : i32
    return %c0_i32, %c0_i32_0 : i32, i32
  }
  func.func @transform_5(%arg0: i32) -> (i32, i32) {
    %c0_i32 = arith.constant 0 : i32
    %c0_i32_0 = arith.constant 0 : i32
    %c0_i32_1 = arith.constant 0 : i32
    return %c0_i32, %c0_i32_0 : i32, i32
  }
  func.func @transform_6(%arg0: i32) -> (i32, i32, i32) {
    %c0_i32 = arith.constant 0 : i32
    %c0_i32_0 = arith.constant 0 : i32
    %c0_i32_1 = arith.constant 0 : i32
    return %arg0, %c0_i32, %c0_i32_0 : i32, i32, i32
  }
  func.func @transform_7(%arg0: i32) -> (i32, i32, i32) {
    %c0_i32 = arith.constant 0 : i32
    %c0_i32_0 = arith.constant 0 : i32
    %c0_i32_1 = arith.constant 0 : i32
    return %arg0, %c0_i32, %c0_i32_0 : i32, i32, i32
  }
  func.func @transform_8(%arg0: i32) -> (i32, i32, i32) {
    %c0_i32 = arith.constant 0 : i32
    %c0_i32_0 = arith.constant 0 : i32
    %c0_i32_1 = arith.constant 0 : i32
    return %arg0, %c0_i32, %c0_i32_0 : i32, i32, i32
  }
  func.func @transform_9(%arg0: i32) -> (i32, i32, i32) {
    %c0_i32 = arith.constant 0 : i32
    %c0_i32_0 = arith.constant 0 : i32
    %c0_i32_1 = arith.constant 0 : i32
    return %arg0, %c0_i32, %c0_i32_0 : i32, i32, i32
  }
  func.func @transform_10(%arg0: i32) -> (i32, i32, i32) {
    %c0_i32 = arith.constant 0 : i32
    %c0_i32_0 = arith.constant 0 : i32
    %c0_i32_1 = arith.constant 0 : i32
    return %arg0, %c0_i32, %c0_i32_0 : i32, i32, i32
  }
  func.func @transform_11(%arg0: i32) -> (i32, i32, i32) {
    %c0_i32 = arith.constant 0 : i32
    %c0_i32_0 = arith.constant 0 : i32
    %c0_i32_1 = arith.constant 0 : i32
    return %arg0, %c0_i32, %c0_i32_0 : i32, i32, i32
  }
  func.func @transform_12(%arg0: i32) -> (i32, i32, i32) {
    %c0_i32 = arith.constant 0 : i32
    %c0_i32_0 = arith.constant 0 : i32
    %c0_i32_1 = arith.constant 0 : i32
    return %arg0, %c0_i32, %c0_i32_0 : i32, i32, i32
  }
  func.func @transform_13(%arg0: i32) -> (i32, i32, i32) {
    %c0_i32 = arith.constant 0 : i32
    %c0_i32_0 = arith.constant 0 : i32
    %c0_i32_1 = arith.constant 0 : i32
    return %arg0, %c0_i32, %c0_i32_0 : i32, i32, i32
  }
  func.func @transform_14(%arg0: i32) -> (i32, i32, i32) {
    %c0_i32 = arith.constant 0 : i32
    %c0_i32_0 = arith.constant 0 : i32
    %c0_i32_1 = arith.constant 0 : i32
    return %arg0, %c0_i32, %c0_i32_0 : i32, i32, i32
  }
  func.func @transform_15(%arg0: i32) -> (i32, i32, i32, i32) {
    %c0_i32 = arith.constant 0 : i32
    %c0_i32_0 = arith.constant 0 : i32
    %c0_i32_1 = arith.constant 0 : i32
    %c0_i32_2 = arith.constant 0 : i32
    return %arg0, %c0_i32, %c0_i32_0, %c0_i32_1 : i32, i32, i32, i32
  }
  func.func @transform_16(%arg0: i32) -> (i32, i32, i32) {
    %c0_i32 = arith.constant 0 : i32
    %c0_i32_0 = arith.constant 0 : i32
    %c0_i32_1 = arith.constant 0 : i32
    return %arg0, %c0_i32, %c0_i32_0 : i32, i32, i32
  }
  func.func @transform_17(%arg0: i32) -> (i32, i32, i32) {
    %c0_i32 = arith.constant 0 : i32
    %c0_i32_0 = arith.constant 0 : i32
    %c0_i32_1 = arith.constant 0 : i32
    return %arg0, %c0_i32, %c0_i32_0 : i32, i32, i32
  }
  func.func @transform_18(%arg0: i32) -> (i32, i32, i32) {
    %c0_i32 = arith.constant 0 : i32
    %c0_i32_0 = arith.constant 0 : i32
    %c0_i32_1 = arith.constant 0 : i32
    return %arg0, %c0_i32, %c0_i32_0 : i32, i32, i32
  }
  func.func @transform_19(%arg0: i32) -> (i32, i32, i32) {
    %c0_i32 = arith.constant 0 : i32
    %c0_i32_0 = arith.constant 0 : i32
    %c0_i32_1 = arith.constant 0 : i32
    return %arg0, %c0_i32, %c0_i32_0 : i32, i32, i32
  }
  func.func @transform_20(%arg0: i32) -> (i32, i32, i32) {
    %c0_i32 = arith.constant 0 : i32
    %c0_i32_0 = arith.constant 0 : i32
    %c0_i32_1 = arith.constant 0 : i32
    return %arg0, %c0_i32, %c0_i32_0 : i32, i32, i32
  }
  func.func @transform_21(%arg0: i32) -> (i32, i32, i32) {
    %c0_i32 = arith.constant 0 : i32
    %c0_i32_0 = arith.constant 0 : i32
    %c0_i32_1 = arith.constant 0 : i32
    return %arg0, %c0_i32, %c0_i32_0 : i32, i32, i32
  }
}

</mosaic_0001>

<bundles_post_ra>
// kernel: tile.19
= control target key start
LH: loop header
LB: loop body
LE: loop exit
PB: predicated region body
PF: predicated region fallthrough
CT: control target
= control target key end

     0   :  { %s214_s28 = smov 3  ;;  %s216_s29 = smov 12  ;;  %vm66_vm0 = vcmask 1043458   ;;  %vm71_vm1 = vcmask 1045508   ;;  %vm73_vm2 = vcmask 523264   ;;  %vm116_vm3 = vcmask 1047558   ;;  %s266_s0 = inlined_call_operand.vmem [shape: f32[6,2,192], index: 0, kind: input, shape index: {}]   ;;  %s267_s1 = inlined_call_operand.vmem [shape: f32[6,384], index: 1, kind: output, shape index: {}]  }
   0x1   :  { %v154_v0 = vld [vmem:[%s266_s0 + $0x14] sm:$0x3]  ;;  %v155_v1 = vld [vmem:[%s266_s0 + $0x12] sm:$0x3]  ;;  %v156_v2 = vld [vmem:[%s266_s0 + $0x10] sm:$0x3] }
   0x2   :  { %13 = vst [vmem:[#allocation0 + $0x50] sm:$0x3] %v154_v0  ;;  %18 = vst [vmem:[#allocation0 + $0x48] sm:$0x3] %v155_v1  ;;  %v157_v3 = vld [vmem:[%s266_s0 + $0xe] sm:$0x3] }
   0x3   :  { %23 = vst [vmem:[#allocation0 + $0x40] sm:$0x3] %v156_v2  ;;  %v158_v4 = vld [vmem:[%s266_s0 + $0xc] sm:$0x3]  ;;  %v159_v5 = vld [vmem:[%s266_s0 + $0xa] sm:$0x3] }
   0x4   :  { %28 = vst [vmem:[#allocation0 + $0x38] sm:$0x3] %v157_v3  ;;  %33 = vst [vmem:[#allocation0 + $0x30] sm:$0x3] %v158_v4  ;;  %v160_v6 = vld [vmem:[%s266_s0 + $0x8] sm:$0x3] }
   0x5   :  { %38 = vst [vmem:[#allocation0 + $0x28] sm:$0x3] %v159_v5  ;;  %v161_v7 = vld [vmem:[%s266_s0 + $0x6] sm:$0x3]  ;;  %v162_v8 = vld [vmem:[%s266_s0 + $0x4] sm:$0x3] }
   0x6   :  { %43 = vst [vmem:[#allocation0 + $0x20] sm:$0x3] %v160_v6  ;;  %48 = vst [vmem:[#allocation0 + $0x18] sm:$0x3] %v161_v7  ;;  %v163_v9 = vld [vmem:[%s266_s0 + $0x2] sm:$0x3] }
   0x7   :  { %53 = vst [vmem:[#allocation0 + $0x10] sm:$0x3] %v162_v8  ;;  %v58_v10 = vld [vmem:[%s266_s0] sm:$0x3]  ;;  %57 = vst [vmem:[#allocation0 + $0x8] sm:$0x3] %v163_v9 }
   0x8   :  { %59 = vst [vmem:[#allocation0] sm:$0x3] %v58_v10  ;;  %s218_s30 = smov 48  ;;  %s220_s2 = smov 3  ;;  %v153_v11 = vld [vmem:[%s266_s0 + $0x16] sm:$0x3] }
   0x9   :  { %s222_s3 = smov 12  ;;  %s224_s4 = smov 48  ;;  %8 = vst [vmem:[#allocation0 + $0x58] sm:$0x3] %v153_v11  ;;  %vm125_vm4 = vcmask 1048064  }
   0xa   :  { %s88_s0 = smov 3  ;;  %s91_s7 = smov 12 }
   0xb   :  { %s96_s8 = smov 48  ;;  %s101_s9 = smov 3 }
   0xc   :  { %s104_s10 = smov 12  ;;  %s109_s11 = smov 48 }
   0xd   :  { %s114_s12 = smov 192  ;;  %s131_s13 = smov 3 }
   0xe   :  { %s134_s14 = smov 12  ;;  %v115_v21 = vld [vmem:[#allocation0 - $0x57] ss:$16 sm:%s114_s12]   ;;  %s170_s17 = smov 64  }
   0xf   :  { %v89_v12 = vld [vmem:[#allocation0 + $0x1] ss:$16 sm:%s88_s0]   ;;  %v77_v27 = vld [vmem:[#allocation0] ss:$16 sm:%s220_s2]  }
  0x10   :  { %v92_v13 = vld [vmem:[#allocation0 + $0x1] ss:$16 sm:%s91_s7]   ;;  %v62_v22 = vld [vmem:[#allocation0 + $0x8] ss:$16 sm:%s214_s28]   ;;  %v79_v28 = vld [vmem:[#allocation0] ss:$16 sm:%s222_s3]  }
  0x11   :  { %v97_v14 = vld [vmem:[#allocation0 + $0x1] ss:$16 sm:%s96_s8]   ;;  %v94_v15 = vsel %vm66_vm0, %v92_v13, %v89_v12  ;;  %v65_v23 = vld [vmem:[#allocation0 + $0x8] ss:$16 sm:%s216_s29]   ;;  %v81_v31 = vsel %vm66_vm0, %v79_v28, %v77_v27  ;;  %v83_v32 = vld [vmem:[#allocation0] ss:$16 sm:%s224_s4]  }
  0x12   :  { %v102_v16 = vld [vmem:[#allocation0 + $0x1] ss:$16 sm:%s101_s9]   ;;  %v99_v19 = vsel %vm71_vm1, %v97_v14, %v94_v15  ;;  %v67_v25 = vsel %vm66_vm0, %v65_v23, %v62_v22  ;;  %v70_v26 = vld [vmem:[#allocation0 + $0x8] ss:$16 sm:%s218_s30]   ;;  %v132_v33 = vld [vmem:[#allocation0 + $0x29] ss:$16 sm:%s131_s13]   ;;  %v85_v36 = vsel %vm71_vm1, %v83_v32, %v81_v31 }
  0x13   :  { %v105_v17 = vld [vmem:[#allocation0 + $0x1] ss:$16 sm:%s104_s10]   ;;  %v72_v30 = vsel %vm71_vm1, %v70_v26, %v67_v25  ;;  %v135_v34 = vld [vmem:[#allocation0 + $0x29] ss:$16 sm:%s134_s14]   ;;  %86 = vst [vmem:[%s267_s1] sm:$0x3f] %v85_v36  }
  0x14   :  { %v110_v18 = vld [vmem:[#allocation0 + $0x1] ss:$16 sm:%s109_s11]   ;;  %v107_v20 = vsel %vm66_vm0, %v105_v17, %v102_v16  ;;  %164 = vst.msk [vmem:[%s267_s1 + $0x8] sm:$0x3f] %vm73_vm2, %v72_v30   ;;  %v137_v37 = vsel %vm66_vm0, %v135_v34, %v132_v33 }
  0x15   :  { %v112_v24 = vsel %vm71_vm1, %v110_v18, %v107_v20 }
  0x16   :  { %v117_v29 = vsel %vm116_vm3, %v115_v21, %v112_v24 }
  0x17   :  { %v119_v35 = vsel %vm73_vm2, %v117_v29, %v99_v19 }
  0x18   :  { %120 = vrot.lane.b32.xlu0 %v119_v35, %s170_s17 }
  0x1c   :  { %138 = vrot.lane.b32.xlu0 %v137_v37, %s170_s17 }
  0x8a   :  { %v121_v38 = vpop.permute.xlu0 %120  }
  0x8b   :  { %165 = vst.msk [vmem:[%s267_s1 + $0x10] sm:$0x3f] %vm73_vm2, %v121_v38  }
  0x8c   :  { %166 = vst.msk [vmem:[%s267_s1 + $0x8] sm:$0x3f] %vm125_vm4, %v121_v38   ;;  %167 = vst.msk [vmem:[%s267_s1 + $0xa] sm:$0xc0] %vm125_vm4, %v121_v38  }
  0x8e   :  { %v139_v39 = vpop.permute.xlu0 %138  }
  0x8f   :  { %168 = vst.msk [vmem:[%s267_s1 + $0x12] sm:$0xf] %vm125_vm4, %v139_v39  }

// kernel: ml_model4_forward.1
= control target key start
LH: loop header
LB: loop body
LE: loop exit
PB: predicated region body
PF: predicated region fallthrough
CT: control target
= control target key end

     0   :  { %v21558_v3 = vmov 0.0   ;;  %vm157_vm0 = vcmask 130048   ;;  %s14142_s30 = smov 64   ;;  %vm1385_vm1 = vcmask 523264   ;;  %vm2705_vm2 = vcmask 1040384   ;;  %s14144_s27 = smov 96   ;;  %s21523_s6 = inlined_call_operand.vmem [shape: f32[1,16,1536], index: 6, kind: input, shape index: {}]   ;;  %s21524_s0 = inlined_call_operand.vmem [shape: f32[2,9,16], index: 0, kind: input, shape index: {}]   ;;  %s21525_s8 = inlined_call_operand.vmem [shape: f32[1,192,768], index: 8, kind: input, shape index: {}]   ;;  %s21526_s9 = inlined_call_operand.vmem [shape: f32[1,192,768], index: 9, kind: input, shape index: {}]   ;;  %s21527_s7 = inlined_call_operand.vmem [shape: f32[1,1,1536], index: 7, kind: input, shape index: {}]   ;;  %s21528_s10 = inlined_call_operand.vmem [shape: f32[1,384,384], index: 10, kind: input, shape index: {}]   ;;  %s21529_s12 = inlined_call_operand.vmem [shape: f32[1,384,128], index: 12, kind: input, shape index: {}]   ;;  %s21530_s11 = inlined_call_operand.vmem [shape: f32[1,1,384], index: 11, kind: input, shape index: {}]   ;;  %s21531_s1 = inlined_call_operand.vmem [shape: f32[2,18], index: 1, kind: input, shape index: {}]   ;;  %s21532_s3 = inlined_call_operand.vmem [shape: f32[128,384], index: 3, kind: input, shape index: {}]   ;;  %s21533_s2 = inlined_call_operand.vmem [shape: f32[18,2], index: 2, kind: input, shape index: {}]   ;;  %s21534_s21 = inlined_call_operand.vmem [shape: f32[1,18,128], index: 21, kind: output, shape index: {1}]   ;;  %s21535_s13 = inlined_call_operand.vmem [shape: f32[1,384,768], index: 13, kind: input, shape index: {}]   ;;  %s21536_s5 = inlined_call_operand.vmem [shape: f32[64,576], index: 5, kind: input, shape index: {}]   ;;  %s21537_s15 = inlined_call_operand.vmem [shape: f32[1,6,576,128], index: 15, kind: input, shape index: {}]   ;;  %s21538_s4 = inlined_call_operand.vmem [shape: f32[18,576], index: 4, kind: input, shape index: {}]   ;;  %s21539_s16 = inlined_call_operand.vmem [shape: f32[1,768,384], index: 16, kind: input, shape index: {}]   ;;  %s21540_s14 = inlined_call_operand.vmem [shape: f32[1,1,768], index: 14, kind: input, shape index: {}]   ;;  %s21541_s18 = inlined_call_operand.vmem [shape: f32[1,384,128], index: 18, kind: input, shape index: {}]   ;;  %s21542_s17 = inlined_call_operand.vmem [shape: f32[1,1,384], index: 17, kind: input, shape index: {}]   ;;  %s21543_s19 = inlined_call_operand.vmem [shape: f32[1,1,128], index: 19, kind: input, shape index: {}]   ;;  %s21544_s20 = inlined_call_operand.vmem [shape: f32[1,2,128], index: 20, kind: output, shape index: {0}]  }
   0x1   :  { %21655 = sst [smem:[#allocation91_spill]] %s21523_s6  ;;  %228 = vmatprep.mubr.f32.mxu0 %v21558_v3  ;;  %305 = vmatprep.mubr.f32.mxu1 %v21558_v3  ;;  %vm14145_vm3 = vmmov 0   ;;  %vm3535_vm4 = vcmask 1041408   ;;  %vm3554_vm5 = vcmask 146432   ;;  %vm3632_vm6 = vcmask 15360  }
   0x2   :  { %21656 = sst [smem:[#allocation92_spill]] %s21524_s0  ;;  %s21661_s26 = sld [smem:[#allocation91_spill]]  ;;  %vm4807_vm7 = vcmask 261120  }
   0x3   :  { %21657 = sst [smem:[#allocation93_spill]] %s21525_s8  ;;  %s21662_s28 = sld [smem:[#allocation92_spill]] }
   0x4   :  { %21658 = sst [smem:[#allocation94_spill]] %s21526_s9  ;;  %s21663_s29 = sld [smem:[#allocation93_spill]] }
   0x5   :  { %21659 = sst [smem:[#allocation95_spill]] %s21527_s7  ;;  %s21664_s6 = sld [smem:[#allocation94_spill]] }
   0x6   :  { %21660 = sst [smem:[#allocation96_spill]] %s21528_s10 }
   0x8   :  { %v68_v0 = vld [vmem:[%s21661_s26 + $0x8] sm:$0xff]  ;;  %v70_v2 = vld [vmem:[%s21661_s26 + $0x18] sm:$0xff]  ;;  %v67_v6 = vld [vmem:[%s21661_s26] sm:$0xff] }
   0x9   :  { %v80_v1 = vld [vmem:[%s21661_s26 + $0x68] sm:$0xff]  ;;  %v82_v5 = vld [vmem:[%s21661_s26 + $0x78] sm:$0xff]  ;;  %v79_v7 = vld [vmem:[%s21661_s26 + $0x60] sm:$0xff] }
   0xa   :  { %v11538_v4 = vpack.c.bf16 %v80_v1, %v68_v0  ;;  %v11542_v8 = vpack.c.bf16 %v82_v5, %v70_v2  ;;  %v14277_v9 = vpack.c.bf16 %v79_v7, %v67_v6  ;;  %v69_v10 = vld [vmem:[%s21661_s26 + $0x10] sm:$0xff]  ;;  %v93_v13 = vld [vmem:[%s21662_s28] sm:$0xff]  ;;  %v72_v14 = vld [vmem:[%s21661_s26 + $0x28] sm:$0xff] }
   0xb   :  { %v81_v11 = vld [vmem:[%s21661_s26 + $0x70] sm:$0xff]  ;;  %v84_v15 = vld [vmem:[%s21661_s26 + $0x88] sm:$0xff]  ;;  %v74_v17 = vld [vmem:[%s21661_s26 + $0x38] sm:$0xff] }
   0xc   :  { %11539 = vmatprep.subr.bf16.mxu0 %v11538_v4  ;;  %v11544_v12 = vpack.c.bf16 %v81_v11, %v69_v10  ;;  %11543 = vmatprep.subr.bf16.mxu1 %v11542_v8  ;;  %v11546_v16 = vpack.c.bf16 %v84_v15, %v72_v14  ;;  %v86_v18 = vld [vmem:[%s21661_s26 + $0x98] sm:$0xff]  ;;  %v71_v19 = vld [vmem:[%s21661_s26 + $0x20] sm:$0xff]  ;;  %v73_v22 = vld [vmem:[%s21661_s26 + $0x30] sm:$0xff] }
   0xd   :  { %11541 = vmatpush1.bf16.msra.mxu0 %v14277_v9  ;;  %v11550_v20 = vpack.c.bf16 %v86_v18, %v74_v17  ;;  %v83_v21 = vld [vmem:[%s21661_s26 + $0x80] sm:$0xff]  ;;  %v85_v23 = vld [vmem:[%s21661_s26 + $0x90] sm:$0xff]  ;;  %v76_v26 = vld [vmem:[%s21661_s26 + $0x48] sm:$0xff] }
   0xe   :  { %11545 = vmatpush1.bf16.msra.mxu1 %v11544_v12  ;;  %11547 = vmatprep.subr.bf16.mxu0 %v11546_v16  ;;  %v11548_v24 = vpack.c.bf16 %v83_v21, %v71_v19  ;;  %v11552_v25 = vpack.c.bf16 %v85_v23, %v73_v22  ;;  %v88_v27 = vld [vmem:[%s21661_s26 + $0xa8] sm:$0xff]  ;;  %v78_v28 = vld [vmem:[%s21661_s26 + $0x58] sm:$0xff]  ;;  %v75_v33 = vld [vmem:[%s21661_s26 + $0x40] sm:$0xff] }
   0xf   :  { %11551 = vmatprep.subr.bf16.mxu1 %v11550_v20  ;;  %v11554_v29 = vpack.c.bf16 %v88_v27, %v76_v26  ;;  %v90_v30 = vld [vmem:[%s21661_s26 + $0xb8] sm:$0xff]  ;;  %v94_v31 = vld [vmem:[%s21662_s28 + $0x8] sm:$0x1]  ;;  %v87_v34 = vld [vmem:[%s21661_s26 + $0xa0] sm:$0xff] }
  0x10   :  { %9628 = vmatmul.mubr.msk.f32.vlgmr.msra.gmra.mrb[0].mxu0 %vm157_vm0, %v93_v13  ;;  %v11558_v32 = vpack.c.bf16 %v90_v30, %v78_v28  ;;  %v77_v35 = vld [vmem:[%s21661_s26 + $0x50] sm:$0xff]  ;;  %v11556_v37 = vpack.c.bf16 %v87_v34, %v75_v33  ;;  %v14374_v40 = vld [vmem:[%s21662_s28 + $0x18] sm:$0x1]  ;;  %v1098_v41 = vld [vmem:[%s21663_s29 + $0x8] sm:$0xff] }
  0x11   :  { %9630 = vmatmul.mubr.msk.f32.vlgmr.msra.gmra.mrb[0].mxu1 %vm157_vm0, %v93_v13  ;;  %234 = vmatprep.mubr.f32.mxu0 %v21558_v3  ;;  %v89_v36 = vld [vmem:[%s21661_s26 + $0xb0] sm:$0xff]  ;;  %v1104_v42 = vld [vmem:[%s21663_s29 + $0x38] sm:$0xff]  ;;  %v1106_v44 = vld [vmem:[%s21663_s29 + $0x48] sm:$0xff]  ;;  %s21848_s26 = sld [smem:[#allocation96_spill]] }
  0x12   :  { %311 = vmatprep.mubr.f32.mxu1 %v21558_v3  ;;  %11549 = vmatpush1.bf16.msra.mxu0 %v11548_v24  ;;  %v11560_v38 = vpack.c.bf16 %v89_v36, %v77_v35  ;;  %v9640_v39 = vld [vmem:[%s21662_s28 + $0x10] sm:$0xff]  ;;  %v1100_v43 = vld [vmem:[%s21663_s29 + $0x18] sm:$0xff]  ;;  %v14395_v45 = vpack.c.bf16 %v1104_v42, %v1098_v41  ;;  %v1097_v47 = vld [vmem:[%s21663_s29] sm:$0xff]  ;;  %s21760_s28 = sld [smem:[#allocation95_spill]] }
  0x13   :  { %11553 = vmatpush1.bf16.msra.mxu1 %v11552_v25  ;;  %11555 = vmatprep.subr.bf16.mxu0 %v11554_v29  ;;  %v14398_v46 = vpack.c.bf16 %v1106_v44, %v1100_v43  ;;  %v1103_v48 = vld [vmem:[%s21663_s29 + $0x30] sm:$0xff]  ;;  %v1105_v50 = vld [vmem:[%s21663_s29 + $0x40] sm:$0xff]  ;;  %v1110_v51 = vld [vmem:[%s21663_s29 + $0x68] sm:$0xff] }
  0x14   :  { %9629 = vmatmul.mubr.msk.f32.gmra.mrb[2].mxu0 %vm157_vm0, %v94_v31  ;;  %11559 = vmatprep.subr.bf16.mxu1 %v11558_v32  ;;  %v1099_v49 = vld [vmem:[%s21663_s29 + $0x10] sm:$0xff]  ;;  %v1116_v52 = vld [vmem:[%s21663_s29 + $0x98] sm:$0xff]  ;;  %v1118_v54 = vld [vmem:[%s21663_s29 + $0xa8] sm:$0xff]  ;;  %v14434_v55 = vpack.c.bf16 %v1103_v48, %v1097_v47 }
  0x15   :  { %9631 = vmatmul.mubr.msk.f32.gmra.mrb[2].mxu1 %vm157_vm0, %v94_v31  ;;  %382 = vmatprep.mubr.f32.mxu0 %v21558_v3  ;;  %v1112_v53 = vld [vmem:[%s21663_s29 + $0x78] sm:$0xff]  ;;  %v14437_v56 = vpack.c.bf16 %v1105_v50, %v1099_v49  ;;  %v14439_v57 = vpack.c.bf16 %v1116_v52, %v1110_v51  ;;  %v1109_v58 = vld [vmem:[%s21663_s29 + $0x60] sm:$0xff]  ;;  %v1115_v59 = vld [vmem:[%s21663_s29 + $0x90] sm:$0xff] }
  0x16   :  { %459 = vmatprep.mubr.f32.mxu1 %v21558_v3  ;;  %v1111_v60 = vld [vmem:[%s21663_s29 + $0x70] sm:$0xff]  ;;  %v14450_v61 = vpack.c.bf16 %v1118_v54, %v1112_v53  ;;  %v1117_v62 = vld [vmem:[%s21663_s29 + $0xa0] sm:$0xff]  ;;  %v1122_v63 = vld [vmem:[%s21663_s29 + $0xc8] sm:$0xff] }
  0x17   :  { %v1128_v0 = vld [vmem:[%s21663_s29 + $0xf8] sm:$0xff]  ;;  %v1130_v2 = vld [vmem:[%s21663_s29 + $0x108] sm:$0xff]  ;;  %v14474_v5 = vpack.c.bf16 %v1117_v62, %v1111_v60  ;;  %v1121_v7 = vld [vmem:[%s21663_s29 + $0xc0] sm:$0xff] }
  0x18   :  { %9632 = vmatmul.mubr.msk.f32.vlgmr.msra.gmra.mrb[4].mxu0 %vm157_vm0, %v93_v13  ;;  %v1124_v1 = vld [vmem:[%s21663_s29 + $0xd8] sm:$0xff]  ;;  %v14476_v6 = vpack.c.bf16 %v1128_v0, %v1122_v63  ;;  %v1129_v11 = vld [vmem:[%s21663_s29 + $0x100] sm:$0xff]  ;;  %v1142_v15 = vld [vmem:[%s21663_s29 + $0x168] sm:$0xff] }
  0x19   :  { %9634 = vmatmul.mubr.msk.f32.vlgmr.msra.gmra.mrb[4].mxu1 %vm157_vm0, %v93_v13  ;;  %388 = vmatprep.mubr.f32.mxu0 %v21558_v3  ;;  %v14488_v10 = vpack.c.bf16 %v1130_v2, %v1124_v1  ;;  %v1136_v14 = vld [vmem:[%s21663_s29 + $0x138] sm:$0xff]  ;;  %v1133_v19 = vld [vmem:[%s21663_s29 + $0x120] sm:$0xff]  ;;  %v1135_v21 = vld [vmem:[%s21663_s29 + $0x130] sm:$0xff] }
  0x1a   :  { %465 = vmatprep.mubr.f32.mxu1 %v21558_v3  ;;  %11557 = vmatpush1.bf16.msra.mxu0 %v11556_v37  ;;  %v14530_v22 = vpack.c.bf16 %v1142_v15, %v1136_v14  ;;  %v1141_v23 = vld [vmem:[%s21663_s29 + $0x160] sm:$0xff]  ;;  %v1148_v26 = vld [vmem:[%s21663_s29 + $0x198] sm:$0xff]  ;;  %v1154_v27 = vld [vmem:[%s21663_s29 + $0x1c8] sm:$0xff] }
  0x1b   :  { %11561 = vmatpush1.bf16.msra.mxu1 %v11560_v38  ;;  %11563 = vmatprep.subr.bf16.mxu0 %v11538_v4  ;;  %v14470_v4 = vpack.c.bf16 %v1115_v59, %v1109_v58  ;;  %v1147_v33 = vld [vmem:[%s21663_s29 + $0x190] sm:$0xff]  ;;  %v14568_v34 = vpack.c.bf16 %v1154_v27, %v1148_v26  ;;  %v1153_v35 = vld [vmem:[%s21663_s29 + $0x1c0] sm:$0xff]  ;;  %v1158_v36 = vld [vmem:[%s21663_s29 + $0x1e8] sm:$0xff] }
  0x1c   :  { %9633 = vmatmul.mubr.msk.f32.gmra.mrb[6].mxu0 %vm157_vm0, %v94_v31  ;;  %11567 = vmatprep.subr.bf16.mxu1 %v11542_v8  ;;  %v1127_v8 = vld [vmem:[%s21663_s29 + $0xf0] sm:$0xff]  ;;  %v14590_v41 = vpack.c.bf16 %v1153_v35, %v1147_v33  ;;  %v1157_v43 = vld [vmem:[%s21663_s29 + $0x1e0] sm:$0xff]  ;;  %v1170_v50 = vld [vmem:[%s21663_s29 + $0x248] sm:$0xff] }
  0x1d   :  { %9635 = vmatmul.mubr.msk.f32.gmra.mrb[6].mxu1 %vm157_vm0, %v94_v31  ;;  %536 = vmatprep.mubr.f32.mxu0 %v21558_v3  ;;  %v1163_v44 = vld [vmem:[%s21663_s29 + $0x210] sm:$0xff]  ;;  %v1165_v49 = vld [vmem:[%s21663_s29 + $0x220] sm:$0xff]  ;;  %v1176_v51 = vld [vmem:[%s21663_s29 + $0x278] sm:$0xff] }
  0x1e   :  { %613 = vmatprep.mubr.f32.mxu1 %v21558_v3  ;;  %v1159_v47 = vld [vmem:[%s21663_s29 + $0x1f0] sm:$0xff]  ;;  %v1172_v52 = vld [vmem:[%s21663_s29 + $0x258] sm:$0xff]  ;;  %v1178_v53 = vld [vmem:[%s21663_s29 + $0x288] sm:$0xff]  ;;  %v14622_v54 = vpack.c.bf16 %v1163_v44, %v1157_v43  ;;  %v14628_v59 = vpack.c.bf16 %v1176_v51, %v1170_v50 }
  0x1f   :  { %v14626_v58 = vpack.c.bf16 %v1165_v49, %v1159_v47  ;;  %v1169_v60 = vld [vmem:[%s21663_s29 + $0x240] sm:$0xff]  ;;  %v1175_v62 = vld [vmem:[%s21663_s29 + $0x270] sm:$0xff]  ;;  %v14640_v0 = vpack.c.bf16 %v1178_v53, %v1172_v52  ;;  %v1182_v2 = vld [vmem:[%s21663_s29 + $0x2a8] sm:$0xff] }
  0x20   :  { %9636 = vmatmul.mubr.msk.f32.vlgmr.msra.gmra.mrb[8].mxu0 %vm157_vm0, %v93_v13  ;;  %v1171_v63 = vld [vmem:[%s21663_s29 + $0x250] sm:$0xff]  ;;  %v1177_v1 = vld [vmem:[%s21663_s29 + $0x280] sm:$0xff]  ;;  %v1202_v26 = vld [vmem:[%s21663_s29 + $0x348] sm:$0xff] }
  0x21   :  { %9638 = vmatmul.mubr.msk.f32.vlgmr.msra.gmra.mrb[8].mxu1 %vm157_vm0, %v93_v13  ;;  %542 = vmatprep.mubr.f32.mxu0 %v21558_v3  ;;  %v1140_v13 = vld [vmem:[%s21663_s29 + $0x158] sm:$0xff]  ;;  %v1181_v14 = vld [vmem:[%s21663_s29 + $0x2a0] sm:$0xff]  ;;  %v1187_v15 = vld [vmem:[%s21663_s29 + $0x2d0] sm:$0xff] }
  0x22   :  { %619 = vmatprep.mubr.f32.mxu1 %v21558_v3  ;;  %11565 = vmatpush1.bf16.msra.mxu0 %v14277_v9  ;;  %v1123_v9 = vld [vmem:[%s21663_s29 + $0xd0] sm:$0xff]  ;;  %v14694_v27 = vpack.c.bf16 %v1187_v15, %v1181_v14  ;;  %v1193_v33 = vld [vmem:[%s21663_s29 + $0x300] sm:$0xff]  ;;  %v1212_v43 = vld [vmem:[%s21663_s29 + $0x398] sm:$0xff] }
  0x23   :  { %11569 = vmatpush1.bf16.msra.mxu1 %v11544_v12  ;;  %11571 = vmatprep.subr.bf16.mxu0 %v11546_v16  ;;  %v1134_v12 = vld [vmem:[%s21663_s29 + $0x128] sm:$0xff]  ;;  %v14510_v16 = vpack.c.bf16 %v1127_v8, %v1121_v7  ;;  %v14516_v17 = vpack.c.bf16 %v1129_v11, %v1123_v9  ;;  %v1188_v7 = vld [vmem:[%s21663_s29 + $0x2d8] sm:$0xff]  ;;  %v14658_v11 = vpack.c.bf16 %v1175_v62, %v1169_v60  ;;  %v1199_v35 = vld [vmem:[%s21663_s29 + $0x330] sm:$0xff] }
  0x24   :  { %9637 = vmatmul.mubr.msk.f32.gmra.mrb[10].mxu0 %vm157_vm0, %v94_v31  ;;  %11575 = vmatprep.subr.bf16.mxu1 %v11550_v20  ;;  %v14518_v18 = vpack.c.bf16 %v1140_v13, %v1134_v12  ;;  %v1139_v20 = vld [vmem:[%s21663_s29 + $0x150] sm:$0xff]  ;;  %v1184_v8 = vld [vmem:[%s21663_s29 + $0x2b8] sm:$0xff]  ;;  %v1190_v9 = vld [vmem:[%s21663_s29 + $0x2e8] sm:$0xff]  ;;  %v14662_v12 = vpack.c.bf16 %v1177_v1, %v1171_v63  ;;  %v14664_v13 = vpack.c.bf16 %v1188_v7, %v1182_v2 }
  0x25   :  { %9639 = vmatmul.mubr.msk.f32.gmra.mrb[10].mxu1 %vm157_vm0, %v94_v31  ;;  %699 = vmatprep.mubr.f32.mxu0 %v21558_v3  ;;  %v14550_v28 = vpack.c.bf16 %v1139_v20, %v1133_v19  ;;  %v1145_v31 = vld [vmem:[%s21663_s29 + $0x180] sm:$0xff]  ;;  %v1183_v19 = vld [vmem:[%s21663_s29 + $0x2b0] sm:$0xff]  ;;  %v14676_v20 = vpack.c.bf16 %v1190_v9, %v1184_v8  ;;  %v1208_v44 = vld [vmem:[%s21663_s29 + $0x378] sm:$0xff]  ;;  %v14730_v49 = vpack.c.bf16 %v1199_v35, %v1193_v33 }
  0x26   :  { %776 = vmatprep.mubr.f32.mxu1 %v21558_v3  ;;  %v1214_v47 = vld [vmem:[%s21663_s29 + $0x3a8] sm:$0xff]  ;;  %v1205_v52 = vld [vmem:[%s21663_s29 + $0x360] sm:$0xff]  ;;  %v1211_v53 = vld [vmem:[%s21663_s29 + $0x390] sm:$0xff] }
  0x27   :  { %v1207_v60 = vld [vmem:[%s21663_s29 + $0x370] sm:$0xff]  ;;  %v14748_v62 = vpack.c.bf16 %v1214_v47, %v1208_v44  ;;  %v1213_v63 = vld [vmem:[%s21663_s29 + $0x3a0] sm:$0xff]  ;;  %v1218_v1 = vld [vmem:[%s21663_s29 + $0x3c8] sm:$0xff]  ;;  %v14766_v9 = vpack.c.bf16 %v1211_v53, %v1205_v52 }
  0x28   :  { %9642 = vmatmul.mubr.msk.f32.vlgmr.msra.gmra.mrb[12].mxu0 %vm157_vm0, %v9640_v39  ;;  %v1224_v2 = vld [vmem:[%s21663_s29 + $0x3f8] sm:$0xff]  ;;  %v1226_v8 = vld [vmem:[%s21663_s29 + $0x408] sm:$0xff]  ;;  %v14770_v14 = vpack.c.bf16 %v1213_v63, %v1207_v60  ;;  %v1229_v44 = vld [vmem:[%s21663_s29 + $0x420] sm:$0xff] }
  0x29   :  { %9644 = vmatmul.mubr.msk.f32.vlgmr.msra.gmra.mrb[12].mxu1 %vm157_vm0, %v9640_v39  ;;  %705 = vmatprep.mubr.f32.mxu0 %v21558_v3  ;;  %v1220_v7 = vld [vmem:[%s21663_s29 + $0x3d8] sm:$0xff]  ;;  %v14772_v15 = vpack.c.bf16 %v1224_v2, %v1218_v1  ;;  %v1235_v47 = vld [vmem:[%s21663_s29 + $0x450] sm:$0xff]  ;;  %v1237_v60 = vld [vmem:[%s21663_s29 + $0x460] sm:$0xff] }
  0x2a   :  { %782 = vmatprep.mubr.f32.mxu1 %v21558_v3  ;;  %11573 = vmatpush1.bf16.msra.mxu0 %v11548_v24  ;;  %v1146_v24 = vld [vmem:[%s21663_s29 + $0x188] sm:$0xff]  ;;  %v1236_v33 = vld [vmem:[%s21663_s29 + $0x458] sm:$0xff]  ;;  %v1231_v52 = vld [vmem:[%s21663_s29 + $0x430] sm:$0xff] }
  0x2b   :  { %11577 = vmatpush1.bf16.msra.mxu1 %v11552_v25  ;;  %11579 = vmatprep.subr.bf16.mxu0 %v11554_v29  ;;  %v1152_v25 = vld [vmem:[%s21663_s29 + $0x1b8] sm:$0xff]  ;;  %v14554_v29 = vpack.c.bf16 %v1141_v23, %v1135_v21  ;;  %v1189_v21 = vld [vmem:[%s21663_s29 + $0x2e0] sm:$0xff]  ;;  %v1194_v23 = vld [vmem:[%s21663_s29 + $0x308] sm:$0xff] }
  0x2c   :  { %9643 = vmatmul.mubr.msk.f32.gmra.mrb[14].mxu0 %vm157_vm0, %v14374_v40  ;;  %11583 = vmatprep.subr.bf16.mxu1 %v11558_v32  ;;  %v14556_v30 = vpack.c.bf16 %v1152_v25, %v1146_v24  ;;  %v1151_v32 = vld [vmem:[%s21663_s29 + $0x1b0] sm:$0xff]  ;;  %v1200_v24 = vld [vmem:[%s21663_s29 + $0x338] sm:$0xff]  ;;  %v1102_v63 = vld [vmem:[%s21663_s29 + $0x28] sm:$0xff] }
  0x2d   :  { %9645 = vmatmul.mubr.msk.f32.gmra.mrb[14].mxu1 %vm157_vm0, %v14374_v40  ;;  %853 = vmatprep.mubr.f32.mxu0 %v21558_v3  ;;  %v1196_v25 = vld [vmem:[%s21663_s29 + $0x318] sm:$0xff]  ;;  %v1242_v2 = vld [vmem:[%s21664_s6 + $0x8] sm:$0xff] }
  0x2e   :  { %930 = vmatprep.mubr.f32.mxu1 %v21558_v3  ;;  %v1232_v35 = vld [vmem:[%s21663_s29 + $0x438] sm:$0xff] }
  0x2f   :  { %v1108_v1 = vld [vmem:[%s21663_s29 + $0x58] sm:$0xff] }
  0x30   :  { %9646 = vmatmul.mubr.msk.f32.vlgmr.msra.gmra.mrb[16].mxu0 %vm157_vm0, %v9640_v39 }
  0x31   :  { %9648 = vmatmul.mubr.msk.f32.vlgmr.msra.gmra.mrb[16].mxu1 %vm157_vm0, %v9640_v39  ;;  %859 = vmatprep.mubr.f32.mxu0 %v21558_v3 }
  0x32   :  { %936 = vmatprep.mubr.f32.mxu1 %v21558_v3  ;;  %11581 = vmatpush1.bf16.msra.mxu0 %v11556_v37  ;;  %v1164_v37 = vld [vmem:[%s21663_s29 + $0x218] sm:$0xff] }
  0x33   :  { %11585 = vmatpush1.bf16.msra.mxu1 %v11560_v38  ;;  %11587 = vmatprep.subr.bf16.mxu0 %v14395_v45  ;;  %v1160_v38 = vld [vmem:[%s21663_s29 + $0x1f8] sm:$0xff]  ;;  %v14592_v42 = vpack.c.bf16 %v1164_v37, %v1158_v36  ;;  %v1195_v36 = vld [vmem:[%s21663_s29 + $0x310] sm:$0xff]  ;;  %v14712_v37 = vpack.c.bf16 %v1202_v26, %v1196_v25  ;;  %v1225_v25 = vld [vmem:[%s21663_s29 + $0x400] sm:$0xff] }
  0x34   :  { %9647 = vmatmul.mubr.msk.f32.gmra.mrb[18].mxu0 %vm157_vm0, %v14374_v40  ;;  %11635 = vmatprep.subr.bf16.mxu1 %v14398_v46  ;;  %v1230_v26 = vld [vmem:[%s21663_s29 + $0x428] sm:$0xff] }
  0x35   :  { %9649 = vmatmul.mubr.msk.f32.gmra.mrb[18].mxu1 %vm157_vm0, %v14374_v40  ;;  %1007 = vmatprep.mubr.f32.mxu0 %v21558_v3 }
  0x36   :  { %1084 = vmatprep.mubr.f32.mxu1 %v21558_v3 }
  0x38   :  { %9650 = vmatmul.mubr.msk.f32.vlgmr.msra.gmra.mrb[20].mxu0 %vm157_vm0, %v9640_v39 }
  0x39   :  { %9652 = vmatmul.mubr.msk.f32.vlgmr.msra.gmra.mrb[20].mxu1 %vm157_vm0, %v9640_v39  ;;  %11589 = vmatpush1.bf16.msra.mxu0 %v14434_v55  ;;  %v1166_v39 = vld [vmem:[%s21663_s29 + $0x228] sm:$0xff] }
  0x3a   :  { %11637 = vmatpush1.bf16.msra.mxu1 %v14437_v56  ;;  %11591 = vmatprep.subr.bf16.mxu0 %v14439_v57  ;;  %v14604_v48 = vpack.c.bf16 %v1166_v39, %v1160_v38  ;;  %v1201_v38 = vld [vmem:[%s21663_s29 + $0x340] sm:$0xff]  ;;  %v1206_v39 = vld [vmem:[%s21663_s29 + $0x368] sm:$0xff] }
  0x3b   :  { %11639 = vmatprep.subr.bf16.mxu1 %v14450_v61  ;;  %1013 = vmatprep.mubr.f32.mxu0 %v21558_v3  ;;  %v14734_v50 = vpack.c.bf16 %v1201_v38, %v1195_v36  ;;  %v14736_v51 = vpack.c.bf16 %v1212_v43, %v1206_v39  ;;  %v1238_v36 = vld [vmem:[%s21663_s29 + $0x468] sm:$0xff]  ;;  %v14808_v43 = vpack.c.bf16 %v1236_v33, %v1230_v26  ;;  %v1241_v33 = vld [vmem:[%s21664_s6] sm:$0xff] }
  0x3c   :  { %1090 = vmatprep.mubr.f32.mxu1 %v21558_v3  ;;  %9651 = vmatmul.mubr.msk.f32.gmra.mrb[22].mxu0 %vm157_vm0, %v14374_v40  ;;  %v14820_v53 = vpack.c.bf16 %v1238_v36, %v1232_v35  ;;  %v1247_v35 = vld [vmem:[%s21664_s6 + $0x30] sm:$0xff]  ;;  %v1114_v36 = vld [vmem:[%s21663_s29 + $0x88] sm:$0xff] }
  0x3d   :  { %11593 = vmatpush1.bf16.msra.mxu0 %v14470_v4  ;;  %9653 = vmatmul.mubr.msk.f32.gmra.mrb[22].mxu1 %vm157_vm0, %v14374_v40  ;;  %v14586_v40 = vpack.c.bf16 %v1151_v32, %v1145_v31  ;;  %v14698_v31 = vpack.c.bf16 %v1189_v21, %v1183_v19  ;;  %v14700_v32 = vpack.c.bf16 %v1200_v24, %v1194_v23  ;;  %v1217_v19 = vld [vmem:[%s21663_s29 + $0x3c0] sm:$0xff]  ;;  %v1223_v21 = vld [vmem:[%s21663_s29 + $0x3f0] sm:$0xff] }
  0x3e   :  { %11641 = vmatpush1.bf16.msra.mxu1 %v14474_v5  ;;  %11595 = vmatprep.subr.bf16.mxu0 %v14476_v6  ;;  %v1219_v23 = vld [vmem:[%s21663_s29 + $0x3d0] sm:$0xff]  ;;  %v14784_v24 = vpack.c.bf16 %v1226_v8, %v1220_v7  ;;  %v14802_v38 = vpack.c.bf16 %v1223_v21, %v1217_v19  ;;  %v1248_v7 = vld [vmem:[%s21664_s6 + $0x38] sm:$0xff]  ;;  %v14838_v8 = vpack.c.bf16 %v1235_v47, %v1229_v44 }
  0x3f   :  { %11643 = vmatprep.subr.bf16.mxu1 %v14488_v10  ;;  %1453 = vmatprep.mubr.f32.mxu0 %v21558_v3  ;;  %v14806_v39 = vpack.c.bf16 %v1225_v25, %v1219_v23  ;;  %v14842_v19 = vpack.c.bf16 %v1237_v60, %v1231_v52  ;;  %v14844_v21 = vpack.c.bf16 %v1108_v1, %v1102_v63  ;;  %v1101_v23 = vld [vmem:[%s21663_s29 + $0x20] sm:$0xff]  ;;  %v1107_v25 = vld [vmem:[%s21663_s29 + $0x50] sm:$0xff]  ;;  %v1120_v44 = vld [vmem:[%s21663_s29 + $0xb8] sm:$0xff] }
  0x40   :  { %1530 = vmatprep.mubr.f32.mxu1 %v21558_v3  ;;  %21665 = vst [vmem:[#allocation2_spill] sm:$0xff] %v14838_v8  ;;  %v14853_v26 = vpack.c.bf16 %v1248_v7, %v1242_v2  ;;  %v14868_v47 = vpack.c.bf16 %v1107_v25, %v1101_v23  ;;  %v1254_v52 = vld [vmem:[%s21664_s6 + $0x68] sm:$0xff]  ;;  %v1260_v60 = vld [vmem:[%s21664_s6 + $0x98] sm:$0xff]  ;;  %v14878_v63 = vpack.c.bf16 %v1247_v35, %v1241_v33  ;;  %v1113_v1 = vld [vmem:[%s21663_s29 + $0x80] sm:$0xff] }
  0x41   :  { %11597 = vmatpush1.bf16.msra.mxu0 %v14510_v16  ;;  %21666 = vst [vmem:[#allocation3_spill] sm:$0xff] %v14842_v19  ;;  %21667 = vst [vmem:[#allocation4_spill] sm:$0xff] %v14844_v21  ;;  %v1119_v2 = vld [vmem:[%s21663_s29 + $0xb0] sm:$0xff]  ;;  %v1253_v7 = vld [vmem:[%s21664_s6 + $0x60] sm:$0xff]  ;;  %v14890_v23 = vpack.c.bf16 %v1120_v44, %v1114_v36 }
  0x42   :  { %11645 = vmatpush1.bf16.msra.mxu1 %v14516_v17  ;;  %11599 = vmatprep.subr.bf16.mxu0 %v14518_v18  ;;  %21668 = vst [vmem:[#allocation5_spill] sm:$0xff] %v14853_v26  ;;  %21669 = vst [vmem:[#allocation6_spill] sm:$0xff] %v14868_v47  ;;  %v1259_v25 = vld [vmem:[%s21664_s6 + $0x90] sm:$0xff]  ;;  %v1126_v33 = vld [vmem:[%s21663_s29 + $0xe8] sm:$0xff] }
  0x43   :  { %11647 = vmatprep.subr.bf16.mxu1 %v14530_v22  ;;  %21670 = vst [vmem:[#allocation7_spill] sm:$0xff] %v14878_v63  ;;  %21671 = vst [vmem:[#allocation8_spill] sm:$0xff] %v14890_v23  ;;  %v1132_v35 = vld [vmem:[%s21663_s29 + $0x118] sm:$0xff]  ;;  %v1266_v36 = vld [vmem:[%s21664_s6 + $0xc8] sm:$0xff] }
  0x44   :  { %v1272_v44 = vld [vmem:[%s21664_s6 + $0xf8] sm:$0xff] }
  0x45   :  { %11601 = vmatpush1.bf16.msra.mxu0 %v14550_v28 }
  0x46   :  { %11649 = vmatpush1.bf16.msra.mxu1 %v14554_v29  ;;  %11603 = vmatprep.subr.bf16.mxu0 %v14556_v30 }
  0x47   :  { %11651 = vmatprep.subr.bf16.mxu1 %v14568_v34 }
  0x49   :  { %11605 = vmatpush1.bf16.msra.mxu0 %v14586_v40 }
  0x4a   :  { %11653 = vmatpush1.bf16.msra.mxu1 %v14590_v41  ;;  %11607 = vmatprep.subr.bf16.mxu0 %v14592_v42 }
  0x4b   :  { %11655 = vmatprep.subr.bf16.mxu1 %v14604_v48 }
  0x4d   :  { %11609 = vmatpush1.bf16.msra.mxu0 %v14622_v54 }
  0x4e   :  { %11657 = vmatpush1.bf16.msra.mxu1 %v14626_v58  ;;  %11611 = vmatprep.subr.bf16.mxu0 %v14628_v59 }
  0x4f   :  { %11659 = vmatprep.subr.bf16.mxu1 %v14640_v0 }
  0x51   :  { %11613 = vmatpush1.bf16.msra.mxu0 %v14658_v11 }
  0x52   :  { %11661 = vmatpush1.bf16.msra.mxu1 %v14662_v12  ;;  %11615 = vmatprep.subr.bf16.mxu0 %v14664_v13 }
  0x53   :  { %11663 = vmatprep.subr.bf16.mxu1 %v14676_v20 }
  0x55   :  { %11617 = vmatpush1.bf16.msra.mxu0 %v14694_v27 }
  0x56   :  { %11665 = vmatpush1.bf16.msra.mxu1 %v14698_v31  ;;  %11619 = vmatprep.subr.bf16.mxu0 %v14700_v32 }
  0x57   :  { %11667 = vmatprep.subr.bf16.mxu1 %v14712_v37 }
  0x59   :  { %11621 = vmatpush1.bf16.msra.mxu0 %v14730_v49 }
  0x5a   :  { %11669 = vmatpush1.bf16.msra.mxu1 %v14734_v50  ;;  %11623 = vmatprep.subr.bf16.mxu0 %v14736_v51 }
  0x5b   :  { %11671 = vmatprep.subr.bf16.mxu1 %v14748_v62 }
  0x5d   :  { %11625 = vmatpush1.bf16.msra.mxu0 %v14766_v9 }
  0x5e   :  { %11673 = vmatpush1.bf16.msra.mxu1 %v14770_v14  ;;  %11627 = vmatprep.subr.bf16.mxu0 %v14772_v15 }
  0x5f   :  { %11675 = vmatprep.subr.bf16.mxu1 %v14784_v24 }
  0x61   :  { %11629 = vmatpush1.bf16.msra.mxu0 %v14802_v38 }
  0x62   :  { %11677 = vmatpush1.bf16.msra.mxu1 %v14806_v39  ;;  %11631 = vmatprep.subr.bf16.mxu0 %v14808_v43 }
  0x63   :  { %11679 = vmatprep.subr.bf16.mxu1 %v14820_v53 }
  0x65   :  { %11633 = vmatpush1.bf16.msra.mxu0 %v14838_v8  ;;  %v1131_v8 = vld [vmem:[%s21663_s29 + $0x110] sm:$0xff] }
  0x66   :  { %11681 = vmatpush1.bf16.msra.mxu1 %v14842_v19  ;;  %11683 = vmatprep.subr.bf16.mxu0 %v14844_v21  ;;  %v14902_v21 = vpack.c.bf16 %v1260_v60, %v1254_v52  ;;  %v14916_v52 = vpack.c.bf16 %v1259_v25, %v1253_v7  ;;  %v14918_v60 = vpack.c.bf16 %v1132_v35, %v1126_v33  ;;  %v1125_v19 = vld [vmem:[%s21663_s29 + $0xe0] sm:$0xff]  ;;  %v1271_v7 = vld [vmem:[%s21664_s6 + $0xf0] sm:$0xff]  ;;  %v1138_v25 = vld [vmem:[%s21663_s29 + $0x148] sm:$0xff] }
  0x67   :  { %11731 = vmatprep.subr.bf16.mxu1 %v14853_v26  ;;  %v14912_v26 = vpack.c.bf16 %v1119_v2, %v1113_v1  ;;  %v1265_v1 = vld [vmem:[%s21664_s6 + $0xc0] sm:$0xff]  ;;  %v14931_v2 = vpack.c.bf16 %v1272_v44, %v1266_v36  ;;  %v1144_v33 = vld [vmem:[%s21663_s29 + $0x178] sm:$0xff]  ;;  %v1278_v35 = vld [vmem:[%s21664_s6 + $0x128] sm:$0xff]  ;;  %v14952_v44 = vpack.c.bf16 %v1131_v8, %v1125_v19 }
  0x68   :  { %1454 = vmatmul.mubr.f32.vlgmr.msra.gmra.mrb[0].mxu0 %v21558_v3  ;;  %21672 = vst [vmem:[#allocation9_spill] sm:$0xff] %v14902_v21  ;;  %21674 = vst [vmem:[#allocation11_spill] sm:$0xff] %v14916_v52  ;;  %v1284_v36 = vld [vmem:[%s21664_s6 + $0x158] sm:$0xff]  ;;  %v1277_v8 = vld [vmem:[%s21664_s6 + $0x120] sm:$0xff] }
  0x69   :  { %1531 = vmatmul.mubr.f32.vlgmr.msra.gmra.mrb[0].mxu1 %v21558_v3  ;;  %11685 = vmatpush1.bf16.msra.mxu0 %v14868_v47  ;;  %21673 = vst [vmem:[#allocation10_spill] sm:$0xff] %v14912_v26  ;;  %21675 = vst [vmem:[#allocation12_spill] sm:$0xff] %v14918_v60  ;;  %v14970_v19 = vpack.c.bf16 %v1284_v36, %v1278_v35  ;;  %v1296_v35 = vld [vmem:[%s21664_s6 + $0x1b8] sm:$0xff]  ;;  %v1155_v47 = vld [vmem:[%s21663_s29 + $0x1d0] sm:$0xff] }
  0x6a   :  { %11733 = vmatpush1.bf16.msra.mxu1 %v14878_v63  ;;  %1459 = vmatprep.mubr.f32.mxu0 %v21558_v3  ;;  %21676 = vst [vmem:[#allocation13_spill] sm:$0xff] %v14931_v2  ;;  %21677 = vst [vmem:[#allocation14_spill] sm:$0xff] %v14952_v44  ;;  %v1137_v63 = vld [vmem:[%s21663_s29 + $0x140] sm:$0xff] }
  0x6b   :  { %1536 = vmatprep.mubr.f32.mxu1 %v21558_v3  ;;  %11687 = vmatprep.subr.bf16.mxu0 %v14890_v23  ;;  %v14956_v23 = vpack.c.bf16 %v1271_v7, %v1265_v1  ;;  %21680 = vst [vmem:[#allocation17_spill] sm:$0xff] %v14970_v19  ;;  %v1283_v1 = vld [vmem:[%s21664_s6 + $0x150] sm:$0xff]  ;;  %v1150_v7 = vld [vmem:[%s21663_s29 + $0x1a8] sm:$0xff] }
  0x6c   :  { %1460 = vmatmul.mubr.f32.gmra.mrb[2].mxu0 %v21558_v3  ;;  %11735 = vmatprep.subr.bf16.mxu1 %v14902_v21  ;;  %v14958_v21 = vpack.c.bf16 %v1144_v33, %v1138_v25  ;;  %v1156_v25 = vld [vmem:[%s21663_s29 + $0x1d8] sm:$0xff]  ;;  %v21681_v33 = vmov 0.0  }
  0x6d   :  { %1537 = vmatmul.mubr.f32.gmra.mrb[2].mxu1 %v21558_v3  ;;  %11689 = vmatpush1.bf16.msra.mxu0 %v14912_v26  ;;  %21678 = vst [vmem:[#allocation15_spill] sm:$0xff] %v14956_v23  ;;  %v1143_v3 = vld [vmem:[%s21663_s29 + $0x170] sm:$0xff]  ;;  %v1149_v26 = vld [vmem:[%s21663_s29 + $0x1a0] sm:$0xff] }
  0x6e   :  { %11737 = vmatpush1.bf16.msra.mxu1 %v14916_v52  ;;  %11691 = vmatprep.subr.bf16.mxu0 %v14918_v60  ;;  %21679 = vst [vmem:[#allocation16_spill] sm:$0xff] %v14958_v21  ;;  %v14990_v36 = vpack.c.bf16 %v1143_v3, %v1137_v63  ;;  %v14994_v60 = vpack.c.bf16 %v1283_v1, %v1277_v8  ;;  %v1289_v3 = vld [vmem:[%s21664_s6 + $0x180] sm:$0xff]  ;;  %v1295_v8 = vld [vmem:[%s21664_s6 + $0x1b0] sm:$0xff]  ;;  %v1162_v1 = vld [vmem:[%s21663_s29 + $0x208] sm:$0xff] }
  0x6f   :  { %11739 = vmatprep.subr.bf16.mxu1 %v14931_v2  ;;  %1607 = vmatprep.mubr.f32.mxu0 %v21681_v33  ;;  %v1290_v2 = vld [vmem:[%s21664_s6 + $0x188] sm:$0xff]  ;;  %v14996_v52 = vpack.c.bf16 %v1156_v25, %v1150_v7  ;;  %v1168_v7 = vld [vmem:[%s21663_s29 + $0x238] sm:$0xff] }
  0x70   :  { %1684 = vmatprep.mubr.f32.mxu1 %v21681_v33  ;;  %21682 = vst [vmem:[#allocation18_spill] sm:$0xff] %v14990_v36  ;;  %21683 = vst [vmem:[#allocation19_spill] sm:$0xff] %v14994_v60  ;;  %v15008_v63 = vpack.c.bf16 %v1296_v35, %v1290_v2  ;;  %v1302_v25 = vld [vmem:[%s21664_s6 + $0x1e8] sm:$0xff]  ;;  %v1308_v2 = vld [vmem:[%s21664_s6 + $0x218] sm:$0xff]  ;;  %v15026_v35 = vpack.c.bf16 %v1155_v47, %v1149_v26 }
  0x71   :  { %11693 = vmatpush1.bf16.msra.mxu0 %v14952_v44  ;;  %21684 = vst [vmem:[#allocation20_spill] sm:$0xff] %v14996_v52  ;;  %v1167_v44 = vld [vmem:[%s21663_s29 + $0x230] sm:$0xff]  ;;  %v1301_v26 = vld [vmem:[%s21664_s6 + $0x1e0] sm:$0xff]  ;;  %v15044_v47 = vpack.c.bf16 %v1308_v2, %v1302_v25  ;;  %v1320_v25 = vld [vmem:[%s21664_s6 + $0x278] sm:$0xff] }
  0x72   :  { %11741 = vmatpush1.bf16.msra.mxu1 %v14956_v23  ;;  %11695 = vmatprep.subr.bf16.mxu0 %v14958_v21  ;;  %21685 = vst [vmem:[#allocation21_spill] sm:$0xff] %v15008_v63  ;;  %21686 = vst [vmem:[#allocation22_spill] sm:$0xff] %v15026_v35  ;;  %v15032_v21 = vpack.c.bf16 %v1168_v7, %v1162_v1  ;;  %v1161_v23 = vld [vmem:[%s21663_s29 + $0x200] sm:$0xff]  ;;  %v1180_v1 = vld [vmem:[%s21663_s29 + $0x298] sm:$0xff] }
  0x73   :  { %11743 = vmatprep.subr.bf16.mxu1 %v14970_v19  ;;  %v15030_v19 = vpack.c.bf16 %v1295_v8, %v1289_v3  ;;  %21689 = vst [vmem:[#allocation25_spill] sm:$0xff] %v15044_v47  ;;  %v1307_v3 = vld [vmem:[%s21664_s6 + $0x210] sm:$0xff]  ;;  %v1174_v8 = vld [vmem:[%s21663_s29 + $0x268] sm:$0xff]  ;;  %v15062_v2 = vpack.c.bf16 %v1167_v44, %v1161_v23  ;;  %v1313_v23 = vld [vmem:[%s21664_s6 + $0x240] sm:$0xff] }
  0x74   :  { %21688 = vst [vmem:[#allocation24_spill] sm:$0xff] %v15032_v21  ;;  %v1314_v7 = vld [vmem:[%s21664_s6 + $0x248] sm:$0xff] }
  0x75   :  { %11697 = vmatpush1.bf16.msra.mxu0 %v14990_v36  ;;  %21687 = vst [vmem:[#allocation23_spill] sm:$0xff] %v15030_v19  ;;  %21690 = vst [vmem:[#allocation26_spill] sm:$0xff] %v15062_v2  ;;  %v1179_v36 = vld [vmem:[%s21663_s29 + $0x290] sm:$0xff]  ;;  %v15080_v44 = vpack.c.bf16 %v1320_v25, %v1314_v7  ;;  %v1332_v7 = vld [vmem:[%s21664_s6 + $0x2d8] sm:$0xff] }
  0x76   :  { %11745 = vmatpush1.bf16.msra.mxu1 %v14994_v60  ;;  %11699 = vmatprep.subr.bf16.mxu0 %v14996_v52  ;;  %v15068_v60 = vpack.c.bf16 %v1180_v1, %v1174_v8  ;;  %v1173_v52 = vld [vmem:[%s21663_s29 + $0x260] sm:$0xff]  ;;  %v1192_v8 = vld [vmem:[%s21663_s29 + $0x2f8] sm:$0xff]  ;;  %v1326_v1 = vld [vmem:[%s21664_s6 + $0x2a8] sm:$0xff] }
  0x77   :  { %11747 = vmatprep.subr.bf16.mxu1 %v15008_v63  ;;  %v15066_v63 = vpack.c.bf16 %v1307_v3, %v1301_v26  ;;  %21693 = vst [vmem:[#allocation29_spill] sm:$0xff] %v15080_v44  ;;  %v1319_v26 = vld [vmem:[%s21664_s6 + $0x270] sm:$0xff]  ;;  %v1186_v3 = vld [vmem:[%s21663_s29 + $0x2c8] sm:$0xff]  ;;  %v15098_v25 = vpack.c.bf16 %v1179_v36, %v1173_v52  ;;  %v1325_v52 = vld [vmem:[%s21664_s6 + $0x2a0] sm:$0xff]  ;;  %v15116_v36 = vpack.c.bf16 %v1332_v7, %v1326_v1 }
  0x78   :  { %21692 = vst [vmem:[#allocation28_spill] sm:$0xff] %v15068_v60  ;;  %v1344_v1 = vld [vmem:[%s21664_s6 + $0x338] sm:$0xff] }
  0x79   :  { %11701 = vmatpush1.bf16.msra.mxu0 %v15026_v35  ;;  %21691 = vst [vmem:[#allocation27_spill] sm:$0xff] %v15066_v63  ;;  %21694 = vst [vmem:[#allocation30_spill] sm:$0xff] %v15098_v25  ;;  %v1191_v35 = vld [vmem:[%s21663_s29 + $0x2f0] sm:$0xff] }
  0x7a   :  { %11749 = vmatpush1.bf16.msra.mxu1 %v15030_v19  ;;  %11703 = vmatprep.subr.bf16.mxu0 %v15032_v21  ;;  %v15104_v19 = vpack.c.bf16 %v1192_v8, %v1186_v3  ;;  %v1185_v21 = vld [vmem:[%s21663_s29 + $0x2c0] sm:$0xff]  ;;  %21697 = vst [vmem:[#allocation33_spill] sm:$0xff] %v15116_v36  ;;  %v1204_v3 = vld [vmem:[%s21663_s29 + $0x358] sm:$0xff]  ;;  %v1338_v8 = vld [vmem:[%s21664_s6 + $0x308] sm:$0xff] }
  0x7b   :  { %11751 = vmatprep.subr.bf16.mxu1 %v15044_v47  ;;  %v15102_v47 = vpack.c.bf16 %v1319_v26, %v1313_v23  ;;  %v1331_v23 = vld [vmem:[%s21664_s6 + $0x2d0] sm:$0xff]  ;;  %v1198_v26 = vld [vmem:[%s21663_s29 + $0x328] sm:$0xff]  ;;  %v15134_v7 = vpack.c.bf16 %v1191_v35, %v1185_v21  ;;  %v1337_v21 = vld [vmem:[%s21664_s6 + $0x300] sm:$0xff]  ;;  %v15152_v35 = vpack.c.bf16 %v1344_v1, %v1338_v8 }
  0x7c   :  { %21696 = vst [vmem:[#allocation32_spill] sm:$0xff] %v15104_v19  ;;  %v1356_v8 = vld [vmem:[%s21664_s6 + $0x398] sm:$0xff] }
  0x7d   :  { %11705 = vmatpush1.bf16.msra.mxu0 %v15062_v2  ;;  %21695 = vst [vmem:[#allocation31_spill] sm:$0xff] %v15102_v47  ;;  %21698 = vst [vmem:[#allocation34_spill] sm:$0xff] %v15134_v7  ;;  %v1203_v2 = vld [vmem:[%s21663_s29 + $0x350] sm:$0xff] }
  0x7e   :  { %11753 = vmatpush1.bf16.msra.mxu1 %v15066_v63  ;;  %11707 = vmatprep.subr.bf16.mxu0 %v15068_v60  ;;  %v15140_v63 = vpack.c.bf16 %v1204_v3, %v1198_v26  ;;  %v1197_v60 = vld [vmem:[%s21663_s29 + $0x320] sm:$0xff]  ;;  %21701 = vst [vmem:[#allocation37_spill] sm:$0xff] %v15152_v35  ;;  %v1216_v26 = vld [vmem:[%s21663_s29 + $0x3b8] sm:$0xff]  ;;  %v1350_v3 = vld [vmem:[%s21664_s6 + $0x368] sm:$0xff] }
  0x7f   :  { %11755 = vmatprep.subr.bf16.mxu1 %v15080_v44  ;;  %v15138_v44 = vpack.c.bf16 %v1331_v23, %v1325_v52  ;;  %v1343_v52 = vld [vmem:[%s21664_s6 + $0x330] sm:$0xff]  ;;  %v1210_v23 = vld [vmem:[%s21663_s29 + $0x388] sm:$0xff]  ;;  %v15170_v1 = vpack.c.bf16 %v1203_v2, %v1197_v60  ;;  %v1349_v60 = vld [vmem:[%s21664_s6 + $0x360] sm:$0xff]  ;;  %v15188_v2 = vpack.c.bf16 %v1356_v8, %v1350_v3 }
  0x80   :  { %21700 = vst [vmem:[#allocation36_spill] sm:$0xff] %v15140_v63  ;;  %v1368_v3 = vld [vmem:[%s21664_s6 + $0x3f8] sm:$0xff] }
  0x81   :  { %11709 = vmatpush1.bf16.msra.mxu0 %v15098_v25  ;;  %21699 = vst [vmem:[#allocation35_spill] sm:$0xff] %v15138_v44  ;;  %21702 = vst [vmem:[#allocation38_spill] sm:$0xff] %v15170_v1  ;;  %v1215_v25 = vld [vmem:[%s21663_s29 + $0x3b0] sm:$0xff] }
  0x82   :  { %11757 = vmatpush1.bf16.msra.mxu1 %v15102_v47  ;;  %11711 = vmatprep.subr.bf16.mxu0 %v15104_v19  ;;  %v15176_v47 = vpack.c.bf16 %v1216_v26, %v1210_v23  ;;  %v1209_v19 = vld [vmem:[%s21663_s29 + $0x380] sm:$0xff]  ;;  %21705 = vst [vmem:[#allocation41_spill] sm:$0xff] %v15188_v2  ;;  %v1228_v23 = vld [vmem:[%s21663_s29 + $0x418] sm:$0xff]  ;;  %v1362_v26 = vld [vmem:[%s21664_s6 + $0x3c8] sm:$0xff] }
  0x83   :  { %11759 = vmatprep.subr.bf16.mxu1 %v15116_v36  ;;  %v15174_v36 = vpack.c.bf16 %v1343_v52, %v1337_v21  ;;  %v1355_v21 = vld [vmem:[%s21664_s6 + $0x390] sm:$0xff]  ;;  %v1222_v52 = vld [vmem:[%s21663_s29 + $0x3e8] sm:$0xff]  ;;  %v15206_v8 = vpack.c.bf16 %v1215_v25, %v1209_v19  ;;  %v1361_v19 = vld [vmem:[%s21664_s6 + $0x3c0] sm:$0xff]  ;;  %v15224_v25 = vpack.c.bf16 %v1368_v3, %v1362_v26 }
  0x84   :  { %21704 = vst [vmem:[#allocation40_spill] sm:$0xff] %v15176_v47  ;;  %v1380_v26 = vld [vmem:[%s21664_s6 + $0x458] sm:$0xff] }
  0x85   :  { %11713 = vmatpush1.bf16.msra.mxu0 %v15134_v7  ;;  %21703 = vst [vmem:[#allocation39_spill] sm:$0xff] %v15174_v36  ;;  %21706 = vst [vmem:[#allocation42_spill] sm:$0xff] %v15206_v8  ;;  %v1227_v7 = vld [vmem:[%s21663_s29 + $0x410] sm:$0xff] }
  0x86   :  { %11761 = vmatpush1.bf16.msra.mxu1 %v15138_v44  ;;  %11715 = vmatprep.subr.bf16.mxu0 %v15140_v63  ;;  %v15212_v44 = vpack.c.bf16 %v1228_v23, %v1222_v52  ;;  %v1221_v63 = vld [vmem:[%s21663_s29 + $0x3e0] sm:$0xff]  ;;  %21709 = vst [vmem:[#allocation45_spill] sm:$0xff] %v15224_v25  ;;  %v1240_v52 = vld [vmem:[%s21663_s29 + $0x478] sm:$0xff]  ;;  %v1374_v23 = vld [vmem:[%s21664_s6 + $0x428] sm:$0xff] }
  0x87   :  { %11763 = vmatprep.subr.bf16.mxu1 %v15152_v35  ;;  %v15210_v35 = vpack.c.bf16 %v1355_v21, %v1349_v60  ;;  %v1367_v60 = vld [vmem:[%s21664_s6 + $0x3f0] sm:$0xff]  ;;  %v1234_v21 = vld [vmem:[%s21663_s29 + $0x448] sm:$0xff]  ;;  %v15242_v3 = vpack.c.bf16 %v1227_v7, %v1221_v63  ;;  %v1373_v63 = vld [vmem:[%s21664_s6 + $0x420] sm:$0xff]  ;;  %v15260_v7 = vpack.c.bf16 %v1380_v26, %v1374_v23 }
  0x88   :  { %21708 = vst [vmem:[#allocation44_spill] sm:$0xff] %v15212_v44  ;;  %v1252_v23 = vld [vmem:[%s21664_s6 + $0x58] sm:$0xff] }
  0x89   :  { %11717 = vmatpush1.bf16.msra.mxu0 %v15170_v1  ;;  %21707 = vst [vmem:[#allocation43_spill] sm:$0xff] %v15210_v35  ;;  %21710 = vst [vmem:[#allocation46_spill] sm:$0xff] %v15242_v3  ;;  %v1239_v1 = vld [vmem:[%s21663_s29 + $0x470] sm:$0xff] }
  0x8a   :  { %11765 = vmatpush1.bf16.msra.mxu1 %v15174_v36  ;;  %11719 = vmatprep.subr.bf16.mxu0 %v15176_v47  ;;  %v15248_v36 = vpack.c.bf16 %v1240_v52, %v1234_v21  ;;  %v1233_v47 = vld [vmem:[%s21663_s29 + $0x440] sm:$0xff]  ;;  %21713 = vst [vmem:[#allocation49_spill] sm:$0xff] %v15260_v7  ;;  %v1250_v21 = vld [vmem:[%s21664_s6 + $0x48] sm:$0xff] }
  0x8b   :  { %11767 = vmatprep.subr.bf16.mxu1 %v15188_v2  ;;  %v15246_v2 = vpack.c.bf16 %v1367_v60, %v1361_v19  ;;  %v1379_v19 = vld [vmem:[%s21664_s6 + $0x450] sm:$0xff]  ;;  %v1244_v60 = vld [vmem:[%s21664_s6 + $0x18] sm:$0xff]  ;;  %v1246_v52 = vld [vmem:[%s21664_s6 + $0x28] sm:$0xff]  ;;  %v15278_v26 = vpack.c.bf16 %v1239_v1, %v1233_v47 }
  0x8c   :  { %21712 = vst [vmem:[#allocation48_spill] sm:$0xff] %v15248_v36  ;;  %v15293_v47 = vpack.c.bf16 %v1252_v23, %v1246_v52  ;;  %v1245_v1 = vld [vmem:[%s21664_s6 + $0x20] sm:$0xff]  ;;  %v1258_v52 = vld [vmem:[%s21664_s6 + $0x88] sm:$0xff]  ;;  %v1264_v23 = vld [vmem:[%s21664_s6 + $0xb8] sm:$0xff] }
  0x8d   :  { %11721 = vmatpush1.bf16.msra.mxu0 %v15206_v8  ;;  %21711 = vst [vmem:[#allocation47_spill] sm:$0xff] %v15246_v2  ;;  %21714 = vst [vmem:[#allocation50_spill] sm:$0xff] %v15278_v26  ;;  %v1249_v8 = vld [vmem:[%s21664_s6 + $0x40] sm:$0xff] }
  0x8e   :  { %11769 = vmatpush1.bf16.msra.mxu1 %v15210_v35  ;;  %11723 = vmatprep.subr.bf16.mxu0 %v15212_v44  ;;  %v15284_v35 = vpack.c.bf16 %v1250_v21, %v1244_v60  ;;  %v1243_v44 = vld [vmem:[%s21664_s6 + $0x10] sm:$0xff]  ;;  %21717 = vst [vmem:[#allocation53_spill] sm:$0xff] %v15293_v47  ;;  %v1262_v60 = vld [vmem:[%s21664_s6 + $0xa8] sm:$0xff] }
  0x8f   :  { %11771 = vmatprep.subr.bf16.mxu1 %v15224_v25  ;;  %v15282_v25 = vpack.c.bf16 %v1379_v19, %v1373_v63  ;;  %v1251_v63 = vld [vmem:[%s21664_s6 + $0x50] sm:$0xff]  ;;  %v1256_v19 = vld [vmem:[%s21664_s6 + $0x78] sm:$0xff]  ;;  %v15308_v21 = vpack.c.bf16 %v1249_v8, %v1243_v44  ;;  %v1261_v44 = vld [vmem:[%s21664_s6 + $0xa0] sm:$0xff] }
  0x90   :  { %21716 = vst [vmem:[#allocation52_spill] sm:$0xff] %v15284_v35  ;;  %v1257_v8 = vld [vmem:[%s21664_s6 + $0x80] sm:$0xff] }
  0x91   :  { %11725 = vmatpush1.bf16.msra.mxu0 %v15242_v3  ;;  %21715 = vst [vmem:[#allocation51_spill] sm:$0xff] %v15282_v25  ;;  %21718 = vst [vmem:[#allocation54_spill] sm:$0xff] %v15308_v21  ;;  %v1273_v3 = vld [vmem:[%s21664_s6 + $0x100] sm:$0xff] }
  0x92   :  { %11773 = vmatpush1.bf16.msra.mxu1 %v15246_v2  ;;  %11727 = vmatprep.subr.bf16.mxu0 %v15248_v36  ;;  %v15330_v2 = vpack.c.bf16 %v1262_v60, %v1256_v19  ;;  %v1270_v19 = vld [vmem:[%s21664_s6 + $0xe8] sm:$0xff]  ;;  %v1276_v60 = vld [vmem:[%s21664_s6 + $0x118] sm:$0xff]  ;;  %v1267_v36 = vld [vmem:[%s21664_s6 + $0xd0] sm:$0xff] }
  0x93   :  { %11775 = vmatprep.subr.bf16.mxu1 %v15260_v7  ;;  %v15318_v7 = vpack.c.bf16 %v1251_v63, %v1245_v1  ;;  %v1263_v1 = vld [vmem:[%s21664_s6 + $0xb0] sm:$0xff]  ;;  %v1268_v63 = vld [vmem:[%s21664_s6 + $0xd8] sm:$0xff] }
  0x94   :  { %21720 = vst [vmem:[#allocation56_spill] sm:$0xff] %v15330_v2 }
  0x95   :  { %11729 = vmatpush1.bf16.msra.mxu0 %v15278_v26  ;;  %21719 = vst [vmem:[#allocation55_spill] sm:$0xff] %v15318_v7  ;;  %v1255_v26 = vld [vmem:[%s21664_s6 + $0x70] sm:$0xff] }
  0x96   :  { %11777 = vmatpush1.bf16.msra.mxu1 %v15282_v25  ;;  %11779 = vmatprep.subr.bf16.mxu0 %v15284_v35  ;;  %v1274_v25 = vld [vmem:[%s21664_s6 + $0x108] sm:$0xff]  ;;  %v15342_v35 = vpack.c.bf16 %v1264_v23, %v1258_v52  ;;  %v15356_v52 = vpack.c.bf16 %v1263_v1, %v1257_v8  ;;  %v1280_v8 = vld [vmem:[%s21664_s6 + $0x138] sm:$0xff] }
  0x97   :  { %11827 = vmatprep.subr.bf16.mxu1 %v15293_v47  ;;  %v15352_v47 = vpack.c.bf16 %v1261_v44, %v1255_v26  ;;  %v15358_v23 = vpack.c.bf16 %v1274_v25, %v1268_v63  ;;  %v1269_v26 = vld [vmem:[%s21664_s6 + $0xe0] sm:$0xff]  ;;  %v15371_v44 = vpack.c.bf16 %v1276_v60, %v1270_v19  ;;  %v1275_v25 = vld [vmem:[%s21664_s6 + $0x110] sm:$0xff]  ;;  %v1286_v1 = vld [vmem:[%s21664_s6 + $0x168] sm:$0xff]  ;;  %v15392_v60 = vpack.c.bf16 %v1273_v3, %v1267_v36 }
  0x98   :  { %1608 = vmatmul.mubr.f32.vlgmr.msra.gmra.mrb[4].mxu0 %v21681_v33  ;;  %21721 = vst [vmem:[#allocation57_spill] sm:$0xff] %v15342_v35  ;;  %21723 = vst [vmem:[#allocation59_spill] sm:$0xff] %v15356_v52  ;;  %v1282_v63 = vld [vmem:[%s21664_s6 + $0x148] sm:$0xff]  ;;  %v1288_v19 = vld [vmem:[%s21664_s6 + $0x178] sm:$0xff] }
  0x99   :  { %1685 = vmatmul.mubr.f32.vlgmr.msra.gmra.mrb[16].mxu1 %v21681_v33  ;;  %11781 = vmatpush1.bf16.msra.mxu0 %v15308_v21  ;;  %21722 = vst [vmem:[#allocation58_spill] sm:$0xff] %v15352_v47  ;;  %21724 = vst [vmem:[#allocation60_spill] sm:$0xff] %v15358_v23  ;;  %v1285_v21 = vld [vmem:[%s21664_s6 + $0x160] sm:$0xff]  ;;  %v15410_v3 = vpack.c.bf16 %v1288_v19, %v1282_v63  ;;  %v1300_v63 = vld [vmem:[%s21664_s6 + $0x1d8] sm:$0xff] }
  0x9a   :  { %11829 = vmatpush1.bf16.msra.mxu1 %v15318_v7  ;;  %1613 = vmatprep.mubr.f32.mxu0 %v21681_v33  ;;  %21725 = vst [vmem:[#allocation61_spill] sm:$0xff] %v15371_v44  ;;  %21726 = vst [vmem:[#allocation62_spill] sm:$0xff] %v15392_v60  ;;  %v15396_v7 = vpack.c.bf16 %v1275_v25, %v1269_v26  ;;  %v1281_v36 = vld [vmem:[%s21664_s6 + $0x140] sm:$0xff]  ;;  %v1287_v26 = vld [vmem:[%s21664_s6 + $0x170] sm:$0xff] }
  0x9b   :  { %1690 = vmatprep.mubr.f32.mxu1 %v21681_v33  ;;  %11783 = vmatprep.subr.bf16.mxu0 %v15330_v2  ;;  %v1279_v2 = vld [vmem:[%s21664_s6 + $0x130] sm:$0xff]  ;;  %21729 = vst [vmem:[#allocation65_spill] sm:$0xff] %v15410_v3  ;;  %v1292_v25 = vld [vmem:[%s21664_s6 + $0x198] sm:$0xff] }
  0x9c   :  { %1614 = vmatmul.mubr.f32.gmra.mrb[6].mxu0 %v21681_v33  ;;  %11831 = vmatprep.subr.bf16.mxu1 %v15342_v35  ;;  %21727 = vst [vmem:[#allocation63_spill] sm:$0xff] %v15396_v7  ;;  %v15398_v35 = vpack.c.bf16 %v1286_v1, %v1280_v8  ;;  %v1298_v8 = vld [vmem:[%s21664_s6 + $0x1c8] sm:$0xff]  ;;  %v15430_v19 = vpack.c.bf16 %v1285_v21, %v1279_v2  ;;  %v1293_v2 = vld [vmem:[%s21664_s6 + $0x1a0] sm:$0xff] }
  0x9d   :  { %1691 = vmatmul.mubr.f32.gmra.mrb[18].mxu1 %v21681_v33  ;;  %11785 = vmatpush1.bf16.msra.mxu0 %v15352_v47  ;;  %v1294_v1 = vld [vmem:[%s21664_s6 + $0x1a8] sm:$0xff]  ;;  %v1297_v47 = vld [vmem:[%s21664_s6 + $0x1c0] sm:$0xff] }
  0x9e   :  { %11833 = vmatpush1.bf16.msra.mxu1 %v15356_v52  ;;  %11787 = vmatprep.subr.bf16.mxu0 %v15358_v23  ;;  %21728 = vst [vmem:[#allocation64_spill] sm:$0xff] %v15398_v35  ;;  %21730 = vst [vmem:[#allocation66_spill] sm:$0xff] %v15430_v19  ;;  %v15436_v52 = vpack.c.bf16 %v1298_v8, %v1292_v25  ;;  %v1291_v23 = vld [vmem:[%s21664_s6 + $0x190] sm:$0xff]  ;;  %v15448_v21 = vpack.c.bf16 %v1300_v63, %v1294_v1  ;;  %v1310_v25 = vld [vmem:[%s21664_s6 + $0x228] sm:$0xff] }
  0x9f   :  { %11835 = vmatprep.subr.bf16.mxu1 %v15371_v44  ;;  %1761 = vmatprep.mubr.f32.mxu0 %v21681_v33  ;;  %v15434_v44 = vpack.c.bf16 %v1287_v26, %v1281_v36  ;;  %v1299_v36 = vld [vmem:[%s21664_s6 + $0x1d0] sm:$0xff]  ;;  %v1304_v26 = vld [vmem:[%s21664_s6 + $0x1f8] sm:$0xff]  ;;  %v1306_v8 = vld [vmem:[%s21664_s6 + $0x208] sm:$0xff]  ;;  %v15466_v63 = vpack.c.bf16 %v1297_v47, %v1291_v23 }
  0xa0   :  { %1838 = vmatprep.mubr.f32.mxu1 %v21681_v33  ;;  %21732 = vst [vmem:[#allocation68_spill] sm:$0xff] %v15436_v52  ;;  %21733 = vst [vmem:[#allocation69_spill] sm:$0xff] %v15448_v21  ;;  %v1312_v1 = vld [vmem:[%s21664_s6 + $0x238] sm:$0xff]  ;;  %v1305_v47 = vld [vmem:[%s21664_s6 + $0x200] sm:$0xff] }
  0xa1   :  { %11789 = vmatpush1.bf16.msra.mxu0 %v15392_v60  ;;  %21731 = vst [vmem:[#allocation67_spill] sm:$0xff] %v15434_v44  ;;  %21734 = vst [vmem:[#allocation70_spill] sm:$0xff] %v15466_v63  ;;  %v1309_v60 = vld [vmem:[%s21664_s6 + $0x220] sm:$0xff]  ;;  %v15484_v23 = vpack.c.bf16 %v1312_v1, %v1306_v8  ;;  %v1324_v8 = vld [vmem:[%s21664_s6 + $0x298] sm:$0xff] }
  0xa2   :  { %11837 = vmatpush1.bf16.msra.mxu1 %v15396_v7  ;;  %11791 = vmatprep.subr.bf16.mxu0 %v15398_v35  ;;  %v15472_v7 = vpack.c.bf16 %v1310_v25, %v1304_v26  ;;  %v1303_v35 = vld [vmem:[%s21664_s6 + $0x1f0] sm:$0xff]  ;;  %v1322_v26 = vld [vmem:[%s21664_s6 + $0x288] sm:$0xff] }
  0xa3   :  { %11839 = vmatprep.subr.bf16.mxu1 %v15410_v3  ;;  %v15470_v3 = vpack.c.bf16 %v1299_v36, %v1293_v2  ;;  %21737 = vst [vmem:[#allocation73_spill] sm:$0xff] %v15484_v23  ;;  %v1311_v2 = vld [vmem:[%s21664_s6 + $0x230] sm:$0xff]  ;;  %v1316_v36 = vld [vmem:[%s21664_s6 + $0x258] sm:$0xff]  ;;  %v1318_v25 = vld [vmem:[%s21664_s6 + $0x268] sm:$0xff]  ;;  %v15502_v1 = vpack.c.bf16 %v1309_v60, %v1303_v35 }
  0xa4   :  { %21736 = vst [vmem:[#allocation72_spill] sm:$0xff] %v15472_v7  ;;  %v1317_v35 = vld [vmem:[%s21664_s6 + $0x260] sm:$0xff]  ;;  %v15520_v60 = vpack.c.bf16 %v1324_v8, %v1318_v25  ;;  %v1336_v25 = vld [vmem:[%s21664_s6 + $0x2f8] sm:$0xff] }
  0xa5   :  { %11793 = vmatpush1.bf16.msra.mxu0 %v15430_v19  ;;  %21735 = vst [vmem:[#allocation71_spill] sm:$0xff] %v15470_v3  ;;  %21738 = vst [vmem:[#allocation74_spill] sm:$0xff] %v15502_v1  ;;  %v1321_v19 = vld [vmem:[%s21664_s6 + $0x280] sm:$0xff] }
  0xa6   :  { %11841 = vmatpush1.bf16.msra.mxu1 %v15434_v44  ;;  %11795 = vmatprep.subr.bf16.mxu0 %v15436_v52  ;;  %v15508_v44 = vpack.c.bf16 %v1322_v26, %v1316_v36  ;;  %v1315_v52 = vld [vmem:[%s21664_s6 + $0x250] sm:$0xff]  ;;  %21741 = vst [vmem:[#allocation77_spill] sm:$0xff] %v15520_v60  ;;  %v1334_v36 = vld [vmem:[%s21664_s6 + $0x2e8] sm:$0xff] }
  0xa7   :  { %11843 = vmatprep.subr.bf16.mxu1 %v15448_v21  ;;  %v15506_v21 = vpack.c.bf16 %v1311_v2, %v1305_v47  ;;  %v1323_v47 = vld [vmem:[%s21664_s6 + $0x290] sm:$0xff]  ;;  %v1328_v2 = vld [vmem:[%s21664_s6 + $0x2b8] sm:$0xff]  ;;  %v1330_v26 = vld [vmem:[%s21664_s6 + $0x2c8] sm:$0xff]  ;;  %v15538_v8 = vpack.c.bf16 %v1321_v19, %v1315_v52 }
  0xa8   :  { %21740 = vst [vmem:[#allocation76_spill] sm:$0xff] %v15508_v44  ;;  %v1329_v52 = vld [vmem:[%s21664_s6 + $0x2c0] sm:$0xff]  ;;  %v15556_v19 = vpack.c.bf16 %v1336_v25, %v1330_v26  ;;  %v1348_v26 = vld [vmem:[%s21664_s6 + $0x358] sm:$0xff] }
  0xa9   :  { %11797 = vmatpush1.bf16.msra.mxu0 %v15466_v63  ;;  %21739 = vst [vmem:[#allocation75_spill] sm:$0xff] %v15506_v21  ;;  %21742 = vst [vmem:[#allocation78_spill] sm:$0xff] %v15538_v8  ;;  %v1333_v63 = vld [vmem:[%s21664_s6 + $0x2e0] sm:$0xff] }
  0xaa   :  { %11845 = vmatpush1.bf16.msra.mxu1 %v15470_v3  ;;  %11799 = vmatprep.subr.bf16.mxu0 %v15472_v7  ;;  %v15544_v3 = vpack.c.bf16 %v1334_v36, %v1328_v2  ;;  %v1327_v7 = vld [vmem:[%s21664_s6 + $0x2b0] sm:$0xff]  ;;  %21745 = vst [vmem:[#allocation81_spill] sm:$0xff] %v15556_v19  ;;  %v1346_v2 = vld [vmem:[%s21664_s6 + $0x348] sm:$0xff] }
  0xab   :  { %11847 = vmatprep.subr.bf16.mxu1 %v15484_v23  ;;  %v15542_v23 = vpack.c.bf16 %v1323_v47, %v1317_v35  ;;  %v1335_v35 = vld [vmem:[%s21664_s6 + $0x2f0] sm:$0xff]  ;;  %v1340_v47 = vld [vmem:[%s21664_s6 + $0x318] sm:$0xff]  ;;  %v1342_v36 = vld [vmem:[%s21664_s6 + $0x328] sm:$0xff]  ;;  %v15574_v25 = vpack.c.bf16 %v1333_v63, %v1327_v7 }
  0xac   :  { %21744 = vst [vmem:[#allocation80_spill] sm:$0xff] %v15544_v3  ;;  %v1341_v7 = vld [vmem:[%s21664_s6 + $0x320] sm:$0xff]  ;;  %v15592_v63 = vpack.c.bf16 %v1348_v26, %v1342_v36  ;;  %v1360_v36 = vld [vmem:[%s21664_s6 + $0x3b8] sm:$0xff] }
  0xad   :  { %11801 = vmatpush1.bf16.msra.mxu0 %v15502_v1  ;;  %21743 = vst [vmem:[#allocation79_spill] sm:$0xff] %v15542_v23  ;;  %21746 = vst [vmem:[#allocation82_spill] sm:$0xff] %v15574_v25  ;;  %v1345_v1 = vld [vmem:[%s21664_s6 + $0x340] sm:$0xff] }
  0xae   :  { %11849 = vmatpush1.bf16.msra.mxu1 %v15506_v21  ;;  %11803 = vmatprep.subr.bf16.mxu0 %v15508_v44  ;;  %v15580_v21 = vpack.c.bf16 %v1346_v2, %v1340_v47  ;;  %v1339_v44 = vld [vmem:[%s21664_s6 + $0x310] sm:$0xff]  ;;  %21749 = vst [vmem:[#allocation85_spill] sm:$0xff] %v15592_v63  ;;  %v1358_v47 = vld [vmem:[%s21664_s6 + $0x3a8] sm:$0xff] }
  0xaf   :  { %11851 = vmatprep.subr.bf16.mxu1 %v15520_v60  ;;  %v15578_v60 = vpack.c.bf16 %v1335_v35, %v1329_v52  ;;  %v1347_v52 = vld [vmem:[%s21664_s6 + $0x350] sm:$0xff]  ;;  %v1352_v35 = vld [vmem:[%s21664_s6 + $0x378] sm:$0xff]  ;;  %v1354_v2 = vld [vmem:[%s21664_s6 + $0x388] sm:$0xff]  ;;  %v15610_v26 = vpack.c.bf16 %v1345_v1, %v1339_v44 }
  0xb0   :  { %21748 = vst [vmem:[#allocation84_spill] sm:$0xff] %v15580_v21  ;;  %v1353_v44 = vld [vmem:[%s21664_s6 + $0x380] sm:$0xff]  ;;  %v15628_v1 = vpack.c.bf16 %v1360_v36, %v1354_v2  ;;  %v1372_v2 = vld [vmem:[%s21664_s6 + $0x418] sm:$0xff] }
  0xb1   :  { %11805 = vmatpush1.bf16.msra.mxu0 %v15538_v8  ;;  %21747 = vst [vmem:[#allocation83_spill] sm:$0xff] %v15578_v60  ;;  %21750 = vst [vmem:[#allocation86_spill] sm:$0xff] %v15610_v26  ;;  %v1357_v8 = vld [vmem:[%s21664_s6 + $0x3a0] sm:$0xff] }
  0xb2   :  { %11853 = vmatpush1.bf16.msra.mxu1 %v15542_v23  ;;  %11807 = vmatprep.subr.bf16.mxu0 %v15544_v3  ;;  %v15616_v23 = vpack.c.bf16 %v1358_v47, %v1352_v35  ;;  %v1351_v3 = vld [vmem:[%s21664_s6 + $0x370] sm:$0xff]  ;;  %21753 = vst [vmem:[#allocation89_spill] sm:$0xff] %v15628_v1  ;;  %v1370_v35 = vld [vmem:[%s21664_s6 + $0x408] sm:$0xff] }
  0xb3   :  { %11855 = vmatprep.subr.bf16.mxu1 %v15556_v19  ;;  %v15614_v19 = vpack.c.bf16 %v1347_v52, %v1341_v7  ;;  %v1359_v7 = vld [vmem:[%s21664_s6 + $0x3b0] sm:$0xff]  ;;  %v1364_v52 = vld [vmem:[%s21664_s6 + $0x3d8] sm:$0xff]  ;;  %v1366_v47 = vld [vmem:[%s21664_s6 + $0x3e8] sm:$0xff]  ;;  %v15646_v36 = vpack.c.bf16 %v1357_v8, %v1351_v3 }
  0xb4   :  { %21752 = vst [vmem:[#allocation88_spill] sm:$0xff] %v15616_v23  ;;  %v1365_v3 = vld [vmem:[%s21664_s6 + $0x3e0] sm:$0xff]  ;;  %v15664_v8 = vpack.c.bf16 %v1372_v2, %v1366_v47  ;;  %v1384_v47 = vld [vmem:[%s21664_s6 + $0x478] sm:$0xff] }
  0xb5   :  { %11809 = vmatpush1.bf16.msra.mxu0 %v15574_v25  ;;  %21751 = vst [vmem:[#allocation87_spill] sm:$0xff] %v15614_v19  ;;  %v1369_v25 = vld [vmem:[%s21664_s6 + $0x400] sm:$0xff] }
  0xb6   :  { %11857 = vmatpush1.bf16.msra.mxu1 %v15578_v60  ;;  %11811 = vmatprep.subr.bf16.mxu0 %v15580_v21  ;;  %v15652_v60 = vpack.c.bf16 %v1370_v35, %v1364_v52  ;;  %v1363_v21 = vld [vmem:[%s21664_s6 + $0x3d0] sm:$0xff]  ;;  %v1382_v52 = vld [vmem:[%s21664_s6 + $0x468] sm:$0xff] }
  0xb7   :  { %11859 = vmatprep.subr.bf16.mxu1 %v15592_v63  ;;  %v15650_v63 = vpack.c.bf16 %v1359_v7, %v1353_v44  ;;  %v1371_v44 = vld [vmem:[%s21664_s6 + $0x410] sm:$0xff]  ;;  %v1376_v7 = vld [vmem:[%s21664_s6 + $0x438] sm:$0xff]  ;;  %v1378_v35 = vld [vmem:[%s21664_s6 + $0x448] sm:$0xff]  ;;  %v15682_v2 = vpack.c.bf16 %v1369_v25, %v1363_v21 }
  0xb8   :  { %v15697_v21 = vpack.c.bf16 %v1384_v47, %v1378_v35  ;;  %v1377_v25 = vld [vmem:[%s21664_s6 + $0x440] sm:$0xff] }
  0xb9   :  { %11813 = vmatpush1.bf16.msra.mxu0 %v15610_v26  ;;  %v1381_v26 = vld [vmem:[%s21664_s6 + $0x460] sm:$0xff] }
  0xba   :  { %11861 = vmatpush1.bf16.msra.mxu1 %v15614_v19  ;;  %11815 = vmatprep.subr.bf16.mxu0 %v15616_v23  ;;  %v15688_v19 = vpack.c.bf16 %v1382_v52, %v1376_v7  ;;  %v1375_v23 = vld [vmem:[%s21664_s6 + $0x430] sm:$0xff] }
  0xbb   :  { %11863 = vmatprep.subr.bf16.mxu1 %v15628_v1  ;;  %v15686_v1 = vpack.c.bf16 %v1371_v44, %v1365_v3  ;;  %v1383_v3 = vld [vmem:[%s21664_s6 + $0x470] sm:$0xff]  ;;  %v15706_v44 = vpack.c.bf16 %v1381_v26, %v1375_v23 }
  0xbc   :  { %v15710_v7 = vpack.c.bf16 %v1383_v3, %v1377_v25 }
  0xbd   :  { %11817 = vmatpush1.bf16.msra.mxu0 %v15646_v36 }
  0xbe   :  { %11865 = vmatpush1.bf16.msra.mxu1 %v15650_v63  ;;  %11819 = vmatprep.subr.bf16.mxu0 %v15652_v60 }
  0xbf   :  { %11867 = vmatprep.subr.bf16.mxu1 %v15664_v8 }
  0xc1   :  { %11821 = vmatpush1.bf16.msra.mxu0 %v15682_v2 }
  0xc2   :  { %11869 = vmatpush1.bf16.msra.mxu1 %v15686_v1  ;;  %11823 = vmatprep.subr.bf16.mxu0 %v15688_v19 }
  0xc3   :  { %11871 = vmatprep.subr.bf16.mxu1 %v15697_v21 }
  0xc5   :  { %11825 = vmatpush1.bf16.msra.mxu0 %v15706_v44 }
  0xc6   :  { %11873 = vmatpush1.bf16.msra.mxu1 %v15710_v7  ;;  %11875 = vmatprep.subr.bf16.mxu0 %v14395_v45  ;;  %v21754_v45 = vld [vmem:[#allocation2_spill] sm:$0xff] }
  0xc7   :  { %11923 = vmatprep.subr.bf16.mxu1 %v14398_v46  ;;  %v21755_v46 = vld [vmem:[#allocation3_spill] sm:$0xff] }
  0xc8   :  { %1762 = vmatmul.mubr.f32.vlgmr.msra.gmra.mrb[20].mxu0 %v21681_v33 }
  0xc9   :  { %1839 = vmatmul.mubr.f32.vlgmr.msra.gmra.mrb[20].mxu1 %v21681_v33  ;;  %1767 = vmatprep.mubr.f32.mxu0 %v21681_v33 }
  0xca   :  { %1844 = vmatprep.mubr.f32.mxu1 %v21681_v33  ;;  %11877 = vmatpush1.bf16.msra.mxu0 %v14434_v55  ;;  %v21756_v55 = vld [vmem:[#allocation4_spill] sm:$0xff] }
  0xcb   :  { %11925 = vmatpush1.bf16.msra.mxu1 %v14437_v56  ;;  %11879 = vmatprep.subr.bf16.mxu0 %v14439_v57  ;;  %v21757_v56 = vld [vmem:[#allocation5_spill] sm:$0xff]  ;;  %v97_v57 = vlaneseq }
  0xcc   :  { %1768 = vmatmul.mubr.f32.gmra.mrb[22].mxu0 %v21681_v33  ;;  %11927 = vmatprep.subr.bf16.mxu1 %v14450_v61 }
  0xcd   :  { %1845 = vmatmul.mubr.f32.gmra.mrb[22].mxu1 %v21681_v33  ;;  %v15771_v61 = vshrl.u32 %v97_v57, 7 }
  0xce   :  { %11881 = vmatpush1.bf16.msra.mxu0 %v14470_v4 }
  0xcf   :  { %11929 = vmatpush1.bf16.msra.mxu1 %v14474_v5  ;;  %11883 = vmatprep.subr.bf16.mxu0 %v14476_v6  ;;  %21758 = vst [vmem:[#allocation2_spill] sm:$0xff] %v15771_v61  ;;  %v15774_v4 = vsub.s32 0, %v15771_v61  ;;  %v15779_v5 = vld [vmem:[%s21760_s28] sm:$0xff]  ;;  %v15782_v6 = vsub.s32 3, %v15771_v61 }
  0xd0   :  { %11931 = vmatprep.subr.bf16.mxu1 %v14488_v10 }
  0xd1   :  { %21759 = vst [vmem:[#allocation3_spill] sm:$0xff] %v15774_v4  ;;  %21761 = vst [vmem:[#allocation4_spill] sm:$0xff] %v15782_v6  ;;  %v15786_v10 = vrot.slane %v15779_v5, %v15774_v4 }
  0xd2   :  { %11885 = vmatpush1.bf16.msra.mxu0 %v14510_v16 }
  0xd3   :  { %11933 = vmatpush1.bf16.msra.mxu1 %v14516_v17  ;;  %11887 = vmatprep.subr.bf16.mxu0 %v14518_v18  ;;  %v15790_v17 = vrot.slane %v15779_v5, %v15782_v6 }
  0xd4   :  { %11935 = vmatprep.subr.bf16.mxu1 %v14530_v22 }
  0xd6   :  { %11889 = vmatpush1.bf16.msra.mxu0 %v14550_v28 }
  0xd7   :  { %11937 = vmatpush1.bf16.msra.mxu1 %v14554_v29  ;;  %11891 = vmatprep.subr.bf16.mxu0 %v14556_v30 }
  0xd8   :  { %11939 = vmatprep.subr.bf16.mxu1 %v14568_v34 }
  0xda   :  { %11893 = vmatpush1.bf16.msra.mxu0 %v14586_v40 }
  0xdb   :  { %11941 = vmatpush1.bf16.msra.mxu1 %v14590_v41  ;;  %11895 = vmatprep.subr.bf16.mxu0 %v14592_v42 }
  0xdc   :  { %11943 = vmatprep.subr.bf16.mxu1 %v14604_v48 }
  0xde   :  { %11897 = vmatpush1.bf16.msra.mxu0 %v14622_v54 }
  0xdf   :  { %11945 = vmatpush1.bf16.msra.mxu1 %v14626_v58  ;;  %11899 = vmatprep.subr.bf16.mxu0 %v14628_v59 }
  0xe0   :  { %11947 = vmatprep.subr.bf16.mxu1 %v14640_v0 }
  0xe2   :  { %11901 = vmatpush1.bf16.msra.mxu0 %v14658_v11 }
  0xe3   :  { %11949 = vmatpush1.bf16.msra.mxu1 %v14662_v12  ;;  %11903 = vmatprep.subr.bf16.mxu0 %v14664_v13 }
  0xe4   :  { %11951 = vmatprep.subr.bf16.mxu1 %v14676_v20 }
  0xe6   :  { %11905 = vmatpush1.bf16.msra.mxu0 %v14694_v27 }
  0xe7   :  { %11953 = vmatpush1.bf16.msra.mxu1 %v14698_v31  ;;  %11907 = vmatprep.subr.bf16.mxu0 %v14700_v32 }
  0xe8   :  { %11955 = vmatprep.subr.bf16.mxu1 %v14712_v37 }
  0xea   :  { %11909 = vmatpush1.bf16.msra.mxu0 %v14730_v49 }
  0xeb   :  { %11957 = vmatpush1.bf16.msra.mxu1 %v14734_v50  ;;  %11911 = vmatprep.subr.bf16.mxu0 %v14736_v51  ;;  %v15803_v50 = vsub.s32 1, %v15771_v61 }
  0xec   :  { %11959 = vmatprep.subr.bf16.mxu1 %v14748_v62 }
  0xed   :  { %21762 = vst [vmem:[#allocation5_spill] sm:$0xff] %v15803_v50  ;;  %v15807_v51 = vrot.slane %v15779_v5, %v15803_v50 }
  0xee   :  { %11913 = vmatpush1.bf16.msra.mxu0 %v14766_v9 }
  0xef   :  { %11961 = vmatpush1.bf16.msra.mxu1 %v14770_v14  ;;  %11915 = vmatprep.subr.bf16.mxu0 %v14772_v15  ;;  %v21642_v15 = vsub.s32 4, %v15771_v61 }
  0xf0   :  { %11963 = vmatprep.subr.bf16.mxu1 %v14784_v24 }
  0xf2   :  { %11917 = vmatpush1.bf16.msra.mxu0 %v14802_v38  ;;  %v15815_v38 = vrot.slane %v15779_v5, %v21642_v15 }
  0xf3   :  { %11965 = vmatpush1.bf16.msra.mxu1 %v14806_v39  ;;  %11919 = vmatprep.subr.bf16.mxu0 %v14808_v43 }
  0xf4   :  { %11967 = vmatprep.subr.bf16.mxu1 %v14820_v53 }
  0xf6   :  { %11921 = vmatpush1.bf16.msra.mxu0 %v21754_v45 }
  0xf7   :  { %11969 = vmatpush1.bf16.msra.mxu1 %v21755_v46  ;;  %11971 = vmatprep.subr.bf16.mxu0 %v21756_v55 }
  0xf8   :  { %12019 = vmatprep.subr.bf16.mxu1 %v21757_v56 }
 0x13b   :  { %v1455_v16 = vpop.f32.mrb[0].mxu0 }
 0x13c   :  { %v13800_v18 = vadd.f32 %v1455_v16, %v15786_v10  ;;  %v15793_v22 = vpop.f32.mrb[0].mxu1  ;;  %v1457_v28 = vpop.f32.mrb[1].mxu0 }
 0x13d   :  { %v1534_v29 = vpop.f32.mrb[1].mxu1  ;;  %v13801_v62 = vadd.f32 %v1457_v28, %v15807_v51 }
 0x13e   :  { %v1851_v30 = vmul.f32 0.5, %v13800_v18  ;;  %v13805_v34 = vadd.f32 %v1534_v29, %v15790_v17 }
 0x13f   :  { %v1461_v40 = vpop.f32.mrb[2].mxu0  ;;  %v1852_v9 = vmul.f32 0.5, %v13801_v62 }
 0x140   :  { %13938 = vtanh.f32 %v1851_v30  ;;  %v13802_v41 = vadd.f32 %v1461_v40, %v15786_v10  ;;  %v15797_v42 = vpop.f32.mrb[2].mxu1  ;;  %v1463_v48 = vpop.f32.mrb[3].mxu0  ;;  %v123_v40 = vsub.s32 6, %v15771_v61 }
 0x141   :  { %v1540_v54 = vpop.f32.mrb[3].mxu1  ;;  %13940 = vtanh.f32 %v13805_v34  ;;  %v13803_v14 = vadd.f32 %v1463_v48, %v15807_v51  ;;  %v127_v34 = vsub.s32 7, %v15771_v61 }
 0x142   :  { %v1853_v58 = vmul.f32 0.5, %v13802_v41  ;;  %v13807_v59 = vadd.f32 %v1540_v54, %v15790_v17  ;;  %v15843_v48 = vrot.slane %v15779_v5, %v123_v40 }
 0x143   :  { %v1854_v24 = vmul.f32 0.5, %v13803_v14  ;;  %v15840_v41 = vrot.slane %v15779_v5, %v127_v34 }
 0x144   :  { %13942 = vtanh.f32 %v1853_v58 }
 0x145   :  { %13944 = vtanh.f32 %v13807_v59 }
 0x146   :  { %13946 = vtanh.f32 %v1852_v9 }
 0x147   :  { %13948 = vtanh.f32 %v1854_v24 }
 0x14a   :  { %v13939_v0 = vpop.eup %13938 }
 0x14b   :  { %v1859_v11 = vadd.f32 1.0, %v13939_v0  ;;  %v13941_v12 = vpop.eup %13940 }
 0x14d   :  { %v1863_v13 = vmul.f32 0.5, %v1859_v11 }
 0x14e   :  { %v13943_v20 = vpop.eup %13942 }
 0x14f   :  { %v1899_v27 = vmul.f32 %v13941_v12, %v1863_v13  ;;  %v1861_v31 = vadd.f32 1.0, %v13943_v20  ;;  %v13945_v37 = vpop.eup %13944  ;;  %v15852_v13 = vld [vmem:[%s21760_s28 + $0x8] sm:$0xf]  ;;  %v15855_v20 = vsub.s32 2, %v15771_v61 }
 0x150   :  { %v13947_v35 = vpop.eup %13946 }
 0x151   :  { %1907 = vrot.lane.b32.xlu0 %v1899_v27, %s14142_s30  ;;  %v1865_v32 = vmul.f32 0.5, %v1861_v31  ;;  %v1860_v46 = vadd.f32 1.0, %v13947_v35  ;;  %v13949_v55 = vpop.eup %13948  ;;  %21763 = vst [vmem:[#allocation90_spill] sm:$0xff] %v15855_v20  ;;  %v15859_v31 = vrot.slane %v15852_v13, %v15855_v20 }
 0x152   :  { %v1862_v16 = vadd.f32 1.0, %v13949_v55 }
 0x153   :  { %v1901_v49 = vmul.f32 %v13945_v37, %v1865_v32  ;;  %v15829_v56 = vmul.f32 0.5, %v1860_v46  ;;  %v15863_v37 = vrot.slane %v15852_v13, %v15803_v50 }
 0x154   :  { %v15833_v28 = vmul.f32 0.5, %v1862_v16 }
 0x155   :  { %1911 = vrot.lane.b32.xlu1 %v1901_v49, %s14142_s30 }
 0x16b   :  { %v1609_v39 = vpop.f32.mrb[4].mxu0 }
 0x16c   :  { %v15818_v43 = vadd.f32 %v1609_v39, %v15815_v38  ;;  %v1686_v53 = vpop.f32.mrb[16].mxu1  ;;  %v15820_v23 = vpop.f32.mrb[5].mxu0 }
 0x16d   :  { %v1688_v26 = vpop.f32.mrb[17].mxu1  ;;  %v13836_v58 = vadd.f32 %v1686_v53, %v15843_v48 }
 0x16e   :  { %13950 = vtanh.f32 %v15818_v43  ;;  %v13837_v54 = vadd.f32 %v1688_v26, %v15840_v41 }
 0x16f   :  { %v1615_v52 = vpop.f32.mrb[6].mxu0  ;;  %v1933_v11 = vmul.f32 0.5, %v13836_v58 }
 0x170   :  { %v15824_v47 = vadd.f32 %v1615_v52, %v15815_v38  ;;  %v1692_v25 = vpop.f32.mrb[18].mxu1  ;;  %v15826_v3 = vpop.f32.mrb[7].mxu0  ;;  %v1934_v59 = vmul.f32 0.5, %v13837_v54 }
 0x171   :  { %v1694_v45 = vpop.f32.mrb[19].mxu1  ;;  %v13838_v12 = vadd.f32 %v1692_v25, %v15843_v48 }
 0x172   :  { %13952 = vtanh.f32 %v15824_v47  ;;  %v13839_v0 = vadd.f32 %v1694_v45, %v15840_v41 }
 0x173   :  { %13954 = vtanh.f32 %v1934_v59  ;;  %v1935_v32 = vmul.f32 0.5, %v13838_v12 }
 0x174   :  { %v1936_v27 = vmul.f32 0.5, %v13839_v0  ;;  %13956 = vtanh.f32 %v1933_v11 }
 0x176   :  { %13958 = vtanh.f32 %v1936_v27 }
 0x177   :  { %13960 = vtanh.f32 %v1935_v32 }
 0x178   :  { %v13951_v57 = vpop.eup %13950 }
 0x179   :  { %v1900_v18 = vmul.f32 %v13951_v57, %v15829_v56 }
 0x17b   :  { %1909 = vrot.lane.b32.xlu0 %v1900_v18, %s14142_s30 }
 0x17c   :  { %v13953_v29 = vpop.eup %13952 }
 0x17d   :  { %v1902_v30 = vmul.f32 %v13953_v29, %v15833_v28  ;;  %v13955_v35 = vpop.eup %13954 }
 0x17e   :  { %v13957_v55 = vpop.eup %13956  ;;  %v1942_v57 = vadd.f32 1.0, %v13955_v35 }
 0x17f   :  { %1913 = vrot.lane.b32.xlu1 %v1902_v30, %s14142_s30  ;;  %v1941_v18 = vadd.f32 1.0, %v13957_v55  ;;  %v1881_v55 = vmul.f32 0.5, %v15824_v47 }
 0x180   :  { %v13959_v16 = vpop.eup %13958  ;;  %v15883_v30 = vmul.f32 0.5, %v1942_v57 }
 0x181   :  { %v13961_v29 = vpop.eup %13960  ;;  %v1944_v40 = vadd.f32 1.0, %v13959_v16  ;;  %v1945_v58 = vmul.f32 0.5, %v1941_v18  ;;  %v1897_v18 = vmul.f32 0.0, %v15833_v28 }
 0x182   :  { %v1943_v0 = vadd.f32 1.0, %v13961_v29 }
 0x183   :  { %v15888_v12 = vmul.f32 0.5, %v1944_v40 }
 0x184   :  { %v1947_v32 = vmul.f32 0.5, %v1943_v0 }
 0x19b   :  { %v15865_v49 = vpop.f32.mrb[20].mxu0 }
 0x19c   :  { %v1840_v62 = vpop.f32.mrb[20].mxu1  ;;  %v1765_v9 = vpop.f32.mrb[21].mxu0 }
 0x19d   :  { %v15868_v14 = vadd.f32 %v1840_v62, %v15859_v31  ;;  %v15870_v24 = vpop.f32.mrb[21].mxu1  ;;  %v13841_v39 = vadd.f32 %v1765_v9, %v15863_v37 }
 0x19f   :  { %13962 = vtanh.f32 %v15868_v14  ;;  %v15874_v53 = vpop.f32.mrb[22].mxu0 }
 0x1a0   :  { %v1846_v26 = vpop.f32.mrb[22].mxu1  ;;  %v1771_v52 = vpop.f32.mrb[23].mxu0  ;;  %13964 = vtanh.f32 %v13841_v39 }
 0x1a1   :  { %v15877_v25 = vadd.f32 %v1846_v26, %v15859_v31  ;;  %v15879_v45 = vpop.f32.mrb[23].mxu1  ;;  %v13843_v46 = vadd.f32 %v1771_v52, %v15863_v37  ;;  %v1879_v26 = vmul.f32 0.5, %v15818_v43  ;;  %v1895_v52 = vmul.f32 0.0, %v15829_v56 }
 0x1a3   :  { %13966 = vtanh.f32 %v15877_v25 }
 0x1a4   :  { %13968 = vtanh.f32 %v13843_v46 }
 0x1a5   :  { %13970 = vtanh.f32 %v1879_v26 }
 0x1a9   :  { %v13963_v34 = vpop.eup %13962 }
 0x1aa   :  { %v15886_v54 = vmul.f32 %v13963_v34, %v15883_v30  ;;  %v13965_v59 = vpop.eup %13964  ;;  %v15902_v34 = vrot.slane %v15779_v5, %v15855_v20 }
 0x1ab   :  { %v1981_v11 = vmul.f32 %v13965_v59, %v1945_v58 }
 0x1ac   :  { %v13804_v58 = vadd.f32 %v15793_v22, %v15902_v34 }
 0x1ad   :  { %v13967_v27 = vpop.eup %13966 }
 0x1ae   :  { %v15891_v62 = vmul.f32 %v13967_v27, %v15888_v12  ;;  %v13969_v9 = vpop.eup %13968  ;;  %v1867_v0 = vmul.f32 0.5, %v13804_v58  ;;  %v13806_v27 = vadd.f32 %v15797_v42, %v15902_v34 }
 0x1af   :  { %v1983_v39 = vmul.f32 %v13969_v9, %v1947_v32  ;;  %v13971_v57 = vpop.eup %13970  ;;  %v21641_v32 = vsub.s32 5, %v15771_v61 }
 0x1b0   :  { %v1887_v29 = vadd.f32 1.0, %v13971_v57  ;;  %v1868_v26 = vmul.f32 0.5, %v13806_v27 }
 0x1b2   :  { %v1891_v56 = vmul.f32 0.5, %v1887_v29 }
 0x1c3   :  { %v1908_v35 = vpop.permute.xlu0 %1907 }
 0x1c4   :  { %v15895_v46 = vadd.f32 %v1908_v35, %v1895_v52  ;;  %v15918_v52 = vrot.slane %v15779_v5, %v21641_v32  ;;  %v5116_v32 = vld [vmem:[%s21537_s15 + $0x118] sm:$0xff] }
 0x1c6   :  { %13972 = vtanh.f32 %v15895_v46 }
 0x1c7   :  { %v1912_v16 = vpop.permute.xlu1 %1911  ;;  %13974 = vtanh.f32 %v1881_v55 }
 0x1c8   :  { %v15904_v43 = vadd.f32 %v1912_v16, %v1897_v18 }
 0x1ca   :  { %13976 = vtanh.f32 %v15904_v43 }
 0x1cb   :  { %13978 = vtanh.f32 %v1867_v0 }
 0x1cc   :  { %13980 = vtanh.f32 %v1868_v26 }
 0x1d0   :  { %v13973_v40 = vpop.eup %13972 }
 0x1d1   :  { %v1929_v47 = vmul.f32 %v13973_v40, %v1891_v56  ;;  %v13975_v59 = vpop.eup %13974  ;;  %v13811_v40 = vadd.f32 %v15826_v3, %v15918_v52 }
 0x1d2   :  { %v1889_v28 = vadd.f32 1.0, %v13975_v59 }
 0x1d3   :  { %2019 = vrot.lane.b32.xlu0 %v1929_v47, %s14142_s30 }
 0x1d4   :  { %v13977_v9 = vpop.eup %13976  ;;  %v1893_v22 = vmul.f32 0.5, %v1889_v28  ;;  %v1882_v28 = vmul.f32 0.5, %v13811_v40 }
 0x1d5   :  { %v13979_v42 = vpop.eup %13978 }
 0x1d6   :  { %v1931_v55 = vmul.f32 %v13977_v9, %v1893_v22  ;;  %v1871_v57 = vadd.f32 1.0, %v13979_v42 }
 0x1d7   :  { %1989 = vrot.lane.b32.xlu0 %v1981_v11, %s14142_s30  ;;  %v13809_v11 = vadd.f32 %v15820_v23, %v15918_v52 }
 0x1d8   :  { %v1873_v29 = vmul.f32 0.5, %v1871_v57 }
 0x1d9   :  { %v1880_v18 = vmul.f32 0.5, %v13809_v11 }
 0x1da   :  { %v1896_v5 = vmul.f32 0.0, %v1873_v29 }
 0x1db   :  { %1993 = vrot.lane.b32.xlu0 %v1983_v39, %s14142_s30  ;;  %13982 = vtanh.f32 %v1880_v18  ;;  %v13981_v39 = vpop.eup %13980 }
 0x1dc   :  { %v1872_v56 = vadd.f32 1.0, %v13981_v39  ;;  %v1961_v39 = vmul.f32 0.5, %v15868_v14 }
 0x1de   :  { %v1874_v0 = vmul.f32 0.5, %v1872_v56  ;;  %v1963_v56 = vmul.f32 0.5, %v15877_v25  ;;  %v15951_v25 = vrot.slane %v15852_v13, %v15774_v4 }
 0x1df   :  { %2023 = vrot.lane.b32.xlu0 %v1931_v55, %s14142_s30 }
 0x1e0   :  { %v1898_v22 = vmul.f32 0.0, %v1874_v0 }
 0x1e5   :  { %v13983_v23 = vpop.eup %13982 }
 0x1e6   :  { %v1888_v26 = vadd.f32 1.0, %v13983_v23 }
 0x1e8   :  { %v1892_v3 = vmul.f32 0.5, %v1888_v26 }
 0x1ed   :  { %v1910_v58 = vpop.permute.xlu0 %1909 }
 0x1ee   :  { %v1915_v47 = vsel %vm1385_vm1, %v1908_v35, %v1910_v58 }
 0x1ef   :  { %v15926_v59 = vadd.f32 %v1915_v47, %v1896_v5  ;;  %v1977_v5 = vmul.f32 0.0, %v15883_v30 }
 0x1f1   :  { %13984 = vtanh.f32 %v15926_v59  ;;  %v1914_v27 = vpop.permute.xlu1 %1913 }
 0x1f2   :  { %v1916_v9 = vsel %vm1385_vm1, %v1912_v16, %v1914_v27  ;;  %13986 = vtanh.f32 %v1882_v28 }
 0x1f3   :  { %v15930_v55 = vadd.f32 %v1916_v9, %v1898_v22  ;;  %v13840_v22 = vadd.f32 %v15865_v49, %v15951_v25  ;;  %v15967_v49 = vrot.slane %v15852_v13, %v15782_v6 }
 0x1f5   :  { %13988 = vtanh.f32 %v15930_v55 }
 0x1f6   :  { %13990 = vtanh.f32 %v1961_v39 }
 0x1f7   :  { %13992 = vtanh.f32 %v1963_v56 }
 0x1fb   :  { %v13985_v11 = vpop.eup %13984 }
 0x1fc   :  { %v1930_v35 = vmul.f32 %v13985_v11, %v1892_v3  ;;  %v13987_v42 = vpop.eup %13986  ;;  %v1949_v11 = vmul.f32 0.5, %v13840_v22 }
 0x1fd   :  { %v1890_v57 = vadd.f32 1.0, %v13987_v42 }
 0x1fe   :  { %2021 = vrot.lane.b32.xlu1 %v1930_v35, %s14142_s30  ;;  %v13842_v35 = vadd.f32 %v15874_v53, %v15951_v25  ;;  %v13847_v53 = vadd.f32 %v15879_v45, %v15967_v49  ;;  %v21765_v45 = vld [vmem:[#allocation7_spill] sm:$0xff] }
 0x1ff   :  { %v13989_v18 = vpop.eup %13988  ;;  %v1894_v29 = vmul.f32 0.5, %v1890_v57 }
 0x200   :  { %v13991_v0 = vpop.eup %13990  ;;  %v1950_v57 = vmul.f32 0.5, %v13842_v35 }
 0x201   :  { %v1932_v16 = vmul.f32 %v13989_v18, %v1894_v29  ;;  %v1969_v14 = vadd.f32 1.0, %v13991_v0  ;;  %v13993_v23 = vpop.eup %13992  ;;  %v13845_v18 = vadd.f32 %v15870_v24, %v15967_v49  ;;  %v1964_v0 = vmul.f32 0.5, %v13847_v53  ;;  %v21764_v24 = vld [vmem:[#allocation6_spill] sm:$0xff] }
 0x202   :  { %1991 = vrot.lane.b32.xlu1 %v15886_v54, %s14142_s30  ;;  %v1979_v54 = vmul.f32 0.0, %v15888_v12  ;;  %v1971_v30 = vadd.f32 1.0, %v13993_v23 }
 0x203   :  { %v1973_v27 = vmul.f32 0.5, %v1969_v14  ;;  %v1962_v39 = vmul.f32 0.5, %v13845_v18  ;;  %v21770_v18 = vld [vmem:[#allocation12_spill] sm:$0xff] }
 0x204   :  { %v1975_v12 = vmul.f32 0.5, %v1971_v30 }
 0x206   :  { %1995 = vrot.lane.b32.xlu1 %v15891_v62, %s14142_s30 }
 0x20a   :  { %2025 = vrot.lane.b32.xlu1 %v1932_v16, %s14142_s30 }
 0x245   :  { %v2020_v40 = vpop.permute.xlu0 %2019 }
 0x249   :  { %v1990_v58 = vpop.permute.xlu0 %1989 }
 0x24a   :  { %v15942_v47 = vadd.f32 %v1990_v58, %v1977_v5 }
 0x24c   :  { %13994 = vtanh.f32 %v15942_v47 }
 0x24d   :  { %v1994_v62 = vpop.permute.xlu0 %1993 }
 0x24e   :  { %v15946_v28 = vadd.f32 %v1994_v62, %v1979_v54 }
 0x250   :  { %13996 = vtanh.f32 %v15946_v28 }
 0x251   :  { %13998 = vtanh.f32 %v1949_v11  ;;  %v21769_v11 = vld [vmem:[#allocation11_spill] sm:$0xff] }
 0x252   :  { %14000 = vtanh.f32 %v1950_v57 }
 0x253   :  { %14002 = vtanh.f32 %v1962_v39 }
 0x254   :  { %14004 = vtanh.f32 %v1964_v0  ;;  %v21774_v0 = vld [vmem:[#allocation16_spill] sm:$0xff] }
 0x256   :  { %v13995_v9 = vpop.eup %13994 }
 0x257   :  { %v15955_v26 = vmul.f32 %v13995_v9, %v1973_v27  ;;  %v21767_v9 = vld [vmem:[#allocation9_spill] sm:$0xff] }
 0x259   :  { %2270 = vrot.lane.b32.xlu0 %v15955_v26, %s14142_s30 }
 0x25a   :  { %v13997_v3 = vpop.eup %13996 }
 0x25b   :  { %v15961_v42 = vmul.f32 %v13997_v3, %v1975_v12  ;;  %v13999_v29 = vpop.eup %13998  ;;  %v21768_v3 = vld [vmem:[#allocation10_spill] sm:$0xff] }
 0x25c   :  { %v1953_v16 = vadd.f32 1.0, %v13999_v29  ;;  %v14001_v56 = vpop.eup %14000  ;;  %v21771_v29 = vld [vmem:[#allocation13_spill] sm:$0xff] }
 0x25d   :  { %2274 = vrot.lane.b32.xlu0 %v15961_v42, %s14142_s30  ;;  %v1954_v54 = vadd.f32 1.0, %v14001_v56  ;;  %v14003_v39 = vpop.eup %14002  ;;  %v21773_v56 = vld [vmem:[#allocation15_spill] sm:$0xff] }
 0x25e   :  { %v1955_v5 = vmul.f32 0.5, %v1953_v16 }
 0x25f   :  { %v1956_v23 = vmul.f32 0.5, %v1954_v54 }
 0x260   :  { %v1978_v30 = vmul.f32 0.0, %v1955_v5  ;;  %v2024_v5 = vpop.permute.xlu0 %2023 }
 0x261   :  { %v1980_v35 = vmul.f32 0.0, %v1956_v23  ;;  %v14005_v23 = vpop.eup %14004 }
 0x270   :  { %v15973_v14 = vpop.permute.xlu1 %2021 }
 0x271   :  { %v15977_v13 = vsel %vm1385_vm1, %v2020_v40, %v15973_v14  ;;  %9654 = vmatprep.mubr.msk.f32.mxu0 %vm1385_vm1, %v15973_v14  ;;  %9656 = vmatprep.mubr.msk.f32.mxu1 %vm1385_vm1, %v15973_v14  ;;  %v21766_v40 = vld [vmem:[#allocation8_spill] sm:$0xff] }
 0x272   :  { %2100 = vmatmul.mubr.f32.vlgmr.msra.gmra.mrb[12].mxu0 %v15977_v13  ;;  %2177 = vmatmul.mubr.f32.vlgmr.msra.gmra.mrb[12].mxu1 %v15977_v13 }
 0x273   :  { %11973 = vmatpush1.bf16.msra.mxu0 %v21764_v24  ;;  %12021 = vmatpush1.bf16.msra.mxu1 %v21765_v45  ;;  %v21775_v24 = vld [vmem:[#allocation17_spill] sm:$0xff]  ;;  %v1970_v45 = vadd.f32 1.0, %v14003_v39 }
 0x274   :  { %v1992_v27 = vpop.permute.xlu1 %1991  ;;  %11975 = vmatprep.subr.bf16.mxu0 %v21766_v40  ;;  %12023 = vmatprep.subr.bf16.mxu1 %v21767_v9  ;;  %v21778_v40 = vld [vmem:[#allocation19_spill] sm:$0xff]  ;;  %v21783_v39 = vld [vmem:[#allocation25_spill] sm:$0xff] }
 0x275   :  { %v1997_v22 = vsel %vm1385_vm1, %v1990_v58, %v1992_v27  ;;  %v21772_v58 = vld [vmem:[#allocation14_spill] sm:$0xff]  ;;  %v21777_v27 = vld [vmem:[#allocation20_spill] sm:$0xff]  ;;  %v1974_v9 = vmul.f32 0.5, %v1970_v45 }
 0x276   :  { %v15990_v12 = vadd.f32 %v1997_v22, %v1978_v30  ;;  %v21776_v30 = vld [vmem:[#allocation18_spill] sm:$0xff]  ;;  %v1972_v22 = vadd.f32 1.0, %v14005_v23 }
 0x277   :  { %11977 = vmatpush1.bf16.msra.mxu0 %v21768_v3  ;;  %12025 = vmatpush1.bf16.msra.mxu1 %v21769_v11  ;;  %v21779_v3 = vld [vmem:[#allocation21_spill] sm:$0xff] }
 0x278   :  { %14006 = vtanh.f32 %v15990_v12  ;;  %v1996_v57 = vpop.permute.xlu1 %1995  ;;  %11979 = vmatprep.subr.bf16.mxu0 %v21770_v18  ;;  %12027 = vmatprep.subr.bf16.mxu1 %v21771_v29  ;;  %v21781_v18 = vld [vmem:[#allocation24_spill] sm:$0xff]  ;;  %v21782_v29 = vld [vmem:[#allocation23_spill] sm:$0xff] }
 0x279   :  { %v1998_v16 = vsel %vm1385_vm1, %v1994_v62, %v1996_v57 }
 0x27a   :  { %v15998_v53 = vadd.f32 %v1998_v16, %v1980_v35  ;;  %v21780_v35 = vld [vmem:[#allocation22_spill] sm:$0xff]  ;;  %v1976_v16 = vmul.f32 0.5, %v1972_v22  ;;  %v21790_v22 = vld [vmem:[#allocation31_spill] sm:$0xff] }
 0x27b   :  { %11981 = vmatpush1.bf16.msra.mxu0 %v21772_v58  ;;  %12029 = vmatpush1.bf16.msra.mxu1 %v21773_v56  ;;  %v21784_v56 = vld [vmem:[#allocation26_spill] sm:$0xff] }
 0x27c   :  { %14008 = vtanh.f32 %v15998_v53  ;;  %v16003_v54 = vpop.permute.xlu1 %2025  ;;  %11983 = vmatprep.subr.bf16.mxu0 %v21774_v0  ;;  %12031 = vmatprep.subr.bf16.mxu1 %v21775_v24  ;;  %v21785_v0 = vld [vmem:[#allocation28_spill] sm:$0xff]  ;;  %v21786_v24 = vld [vmem:[#allocation27_spill] sm:$0xff] }
 0x27d   :  { %9655 = vmatprep.mubr.msk.f32.mxu0 %vm1385_vm1, %v16003_v54  ;;  %9657 = vmatprep.mubr.msk.f32.mxu1 %vm1385_vm1, %v16003_v54  ;;  %v16013_v62 = vsel %vm1385_vm1, %v2024_v5, %v16003_v54 }
 0x27e   :  { %2106 = vmatmul.mubr.f32.gmra.mrb[14].mxu0 %v16013_v62  ;;  %2183 = vmatmul.mubr.f32.gmra.mrb[14].mxu1 %v16013_v62 }
 0x27f   :  { %11985 = vmatpush1.bf16.msra.mxu0 %v21776_v30  ;;  %9658 = vmatprep.mubr.msk.f32.mxu0 %vm1385_vm1, %v15973_v14  ;;  %v21787_v30 = vld [vmem:[#allocation29_spill] sm:$0xff] }
 0x280   :  { %11987 = vmatprep.subr.bf16.mxu0 %v21777_v27  ;;  %12033 = vmatpush1.bf16.msra.mxu1 %v21778_v40  ;;  %v21788_v40 = vld [vmem:[#allocation30_spill] sm:$0xff] }
 0x281   :  { %12035 = vmatprep.subr.bf16.mxu1 %v21779_v3  ;;  %v21791_v3 = vld [vmem:[#allocation33_spill] sm:$0xff] }
 0x282   :  { %v14007_v11 = vpop.eup %14006 }
 0x283   :  { %11989 = vmatpush1.bf16.msra.mxu0 %v21780_v35  ;;  %v16024_v57 = vmul.f32 %v14007_v11, %v1974_v9  ;;  %v21789_v9 = vld [vmem:[#allocation32_spill] sm:$0xff]  ;;  %v21792_v11 = vld [vmem:[#allocation34_spill] sm:$0xff] }
 0x284   :  { %11991 = vmatprep.subr.bf16.mxu0 %v21781_v18  ;;  %12037 = vmatpush1.bf16.msra.mxu1 %v21782_v29  ;;  %v21793_v35 = vld [vmem:[#allocation36_spill] sm:$0xff]  ;;  %v21794_v18 = vld [vmem:[#allocation35_spill] sm:$0xff]  ;;  %v21795_v29 = vld [vmem:[#allocation37_spill] sm:$0xff] }
 0x285   :  { %2272 = vrot.lane.b32.xlu1 %v16024_v57, %s14142_s30  ;;  %12039 = vmatprep.subr.bf16.mxu1 %v21783_v39  ;;  %v2708_v45 = vrot.slane %v16024_v57, 7  ;;  %v21797_v39 = vld [vmem:[#allocation40_spill] sm:$0xff]  ;;  %v3359_v57 = vld [vmem:[%s21529_s12 + $0x100] sm:$0xff] }
 0x286   :  { %v14009_v58 = vpop.eup %14008 }
 0x287   :  { %11993 = vmatpush1.bf16.msra.mxu0 %v21784_v56  ;;  %v2014_v5 = vmul.f32 %v14009_v58, %v1976_v16  ;;  %v21796_v16 = vld [vmem:[#allocation38_spill] sm:$0xff]  ;;  %v21798_v58 = vld [vmem:[#allocation39_spill] sm:$0xff]  ;;  %v21799_v56 = vld [vmem:[#allocation41_spill] sm:$0xff] }
 0x288   :  { %11995 = vmatprep.subr.bf16.mxu0 %v21785_v0  ;;  %12041 = vmatpush1.bf16.msra.mxu1 %v21786_v24  ;;  %v21801_v0 = vld [vmem:[#allocation44_spill] sm:$0xff]  ;;  %v21802_v24 = vld [vmem:[#allocation43_spill] sm:$0xff] }
 0x289   :  { %2276 = vrot.lane.b32.xlu1 %v2014_v5, %s14142_s30  ;;  %v2713_v23 = vrot.slane %v2014_v5, 7  ;;  %12043 = vmatprep.subr.bf16.mxu1 %v21787_v30  ;;  %v21800_v5 = vld [vmem:[#allocation42_spill] sm:$0xff] }
 0x28a   :  { %v21804_v30 = vld [vmem:[#allocation46_spill] sm:$0xff] }
 0x28b   :  { %v16040_v27 = vsel %vm2705_vm2, %v2708_v45, %v2713_v23  ;;  %11997 = vmatpush1.bf16.msra.mxu0 %v21788_v40  ;;  %v21803_v23 = vld [vmem:[#allocation45_spill] sm:$0xff]  ;;  %v21805_v40 = vld [vmem:[#allocation48_spill] sm:$0xff] }
 0x28c   :  { %11999 = vmatprep.subr.bf16.mxu0 %v21789_v9  ;;  %12045 = vmatpush1.bf16.msra.mxu1 %v21790_v22  ;;  %v21806_v9 = vld [vmem:[#allocation47_spill] sm:$0xff]  ;;  %v21807_v22 = vld [vmem:[#allocation49_spill] sm:$0xff] }
 0x28d   :  { %12047 = vmatprep.subr.bf16.mxu1 %v21791_v3  ;;  %v21808_v3 = vld [vmem:[#allocation50_spill] sm:$0xff] }
 0x28f   :  { %12001 = vmatpush1.bf16.msra.mxu0 %v21792_v11  ;;  %v21809_v11 = vld [vmem:[#allocation52_spill] sm:$0xff] }
 0x290   :  { %12003 = vmatprep.subr.bf16.mxu0 %v21793_v35  ;;  %12049 = vmatpush1.bf16.msra.mxu1 %v21794_v18  ;;  %v21810_v35 = vld [vmem:[#allocation51_spill] sm:$0xff]  ;;  %v21811_v18 = vld [vmem:[#allocation53_spill] sm:$0xff] }
 0x291   :  { %12051 = vmatprep.subr.bf16.mxu1 %v21795_v29  ;;  %v21812_v29 = vld [vmem:[#allocation54_spill] sm:$0xff] }
 0x293   :  { %12005 = vmatpush1.bf16.msra.mxu0 %v21796_v16  ;;  %v21813_v16 = vld [vmem:[#allocation56_spill] sm:$0xff] }
 0x294   :  { %12007 = vmatprep.subr.bf16.mxu0 %v21797_v39  ;;  %12053 = vmatpush1.bf16.msra.mxu1 %v21798_v58  ;;  %v21814_v39 = vld [vmem:[#allocation58_spill] sm:$0xff]  ;;  %v21815_v58 = vld [vmem:[#allocation60_spill] sm:$0xff] }
 0x295   :  { %12055 = vmatprep.subr.bf16.mxu1 %v21799_v56  ;;  %v21816_v56 = vld [vmem:[#allocation62_spill] sm:$0xff] }
 0x297   :  { %12009 = vmatpush1.bf16.msra.mxu0 %v21800_v5  ;;  %v21817_v5 = vld [vmem:[#allocation64_spill] sm:$0xff] }
 0x298   :  { %12011 = vmatprep.subr.bf16.mxu0 %v21801_v0  ;;  %12057 = vmatpush1.bf16.msra.mxu1 %v21802_v24  ;;  %v21818_v0 = vld [vmem:[#allocation66_spill] sm:$0xff]  ;;  %v21819_v24 = vld [vmem:[#allocation68_spill] sm:$0xff] }
 0x299   :  { %12059 = vmatprep.subr.bf16.mxu1 %v21803_v23  ;;  %v21820_v23 = vld [vmem:[#allocation70_spill] sm:$0xff] }
 0x29b   :  { %12013 = vmatpush1.bf16.msra.mxu0 %v21804_v30  ;;  %v21821_v30 = vld [vmem:[#allocation72_spill] sm:$0xff] }
 0x29c   :  { %12015 = vmatprep.subr.bf16.mxu0 %v21805_v40  ;;  %12061 = vmatpush1.bf16.msra.mxu1 %v21806_v9  ;;  %v21822_v40 = vld [vmem:[#allocation74_spill] sm:$0xff]  ;;  %v21823_v9 = vld [vmem:[#allocation76_spill] sm:$0xff] }
 0x29d   :  { %12063 = vmatprep.subr.bf16.mxu1 %v21807_v22  ;;  %v21824_v22 = vld [vmem:[#allocation78_spill] sm:$0xff] }
 0x29f   :  { %12017 = vmatpush1.bf16.msra.mxu0 %v21808_v3  ;;  %v21825_v3 = vld [vmem:[#allocation80_spill] sm:$0xff] }
 0x2a0   :  { %12067 = vmatprep.subr.bf16.mxu0 %v21809_v11  ;;  %12065 = vmatpush1.bf16.msra.mxu1 %v21810_v35  ;;  %v21826_v11 = vld [vmem:[#allocation82_spill] sm:$0xff]  ;;  %v21827_v35 = vld [vmem:[#allocation84_spill] sm:$0xff] }
 0x2a1   :  { %12115 = vmatprep.subr.bf16.mxu1 %v21811_v18  ;;  %v21828_v18 = vld [vmem:[#allocation86_spill] sm:$0xff] }
 0x2a2   :  { %2254 = vmatmul.mubr.f32.vlgmr.msra.gmra.mrb[16].mxu0 %v15977_v13 }
 0x2a3   :  { %9659 = vmatprep.mubr.msk.f32.mxu0 %vm1385_vm1, %v16003_v54  ;;  %12069 = vmatpush1.bf16.msra.mxu0 %v21812_v29  ;;  %v21829_v29 = vld [vmem:[#allocation88_spill] sm:$0xff] }
 0x2a4   :  { %12071 = vmatprep.subr.bf16.mxu0 %v21813_v16 }
 0x2a6   :  { %2260 = vmatmul.mubr.f32.gmra.mrb[18].mxu0 %v16013_v62 }
 0x2a7   :  { %12073 = vmatpush1.bf16.msra.mxu0 %v21814_v39 }
 0x2a8   :  { %12075 = vmatprep.subr.bf16.mxu0 %v21815_v58 }
 0x2ab   :  { %12077 = vmatpush1.bf16.msra.mxu0 %v21816_v56  ;;  %v21830_v56 = vld [vmem:[#allocation55_spill] sm:$0xff] }
 0x2ac   :  { %12079 = vmatprep.subr.bf16.mxu0 %v21817_v5  ;;  %v21831_v5 = vld [vmem:[#allocation57_spill] sm:$0xff] }
 0x2af   :  { %12081 = vmatpush1.bf16.msra.mxu0 %v21818_v0  ;;  %v21834_v0 = vld [vmem:[#allocation63_spill] sm:$0xff] }
 0x2b0   :  { %12083 = vmatprep.subr.bf16.mxu0 %v21819_v24  ;;  %v21835_v24 = vld [vmem:[#allocation65_spill] sm:$0xff] }
 0x2b3   :  { %12085 = vmatpush1.bf16.msra.mxu0 %v21820_v23  ;;  %v21836_v23 = vld [vmem:[#allocation67_spill] sm:$0xff] }
 0x2b4   :  { %12087 = vmatprep.subr.bf16.mxu0 %v21821_v30  ;;  %v21837_v30 = vld [vmem:[#allocation69_spill] sm:$0xff] }
 0x2b7   :  { %12089 = vmatpush1.bf16.msra.mxu0 %v21822_v40  ;;  %v21838_v40 = vld [vmem:[#allocation71_spill] sm:$0xff] }
 0x2b8   :  { %12091 = vmatprep.subr.bf16.mxu0 %v21823_v9  ;;  %v21839_v9 = vld [vmem:[#allocation73_spill] sm:$0xff] }
 0x2bb   :  { %12093 = vmatpush1.bf16.msra.mxu0 %v21824_v22  ;;  %v21840_v22 = vld [vmem:[#allocation75_spill] sm:$0xff] }
 0x2bc   :  { %12095 = vmatprep.subr.bf16.mxu0 %v21825_v3  ;;  %v21841_v3 = vld [vmem:[#allocation77_spill] sm:$0xff] }
 0x2bf   :  { %12097 = vmatpush1.bf16.msra.mxu0 %v21826_v11  ;;  %v21842_v11 = vld [vmem:[#allocation79_spill] sm:$0xff] }
 0x2c0   :  { %12099 = vmatprep.subr.bf16.mxu0 %v21827_v35  ;;  %v21843_v35 = vld [vmem:[#allocation81_spill] sm:$0xff] }
 0x2c3   :  { %12101 = vmatpush1.bf16.msra.mxu0 %v21828_v18  ;;  %v21844_v18 = vld [vmem:[#allocation83_spill] sm:$0xff] }
 0x2c4   :  { %12103 = vmatprep.subr.bf16.mxu0 %v21829_v29  ;;  %v21845_v29 = vld [vmem:[#allocation85_spill] sm:$0xff] }
 0x2c7   :  { %12105 = vmatpush1.bf16.msra.mxu0 %v15646_v36 }
 0x2c8   :  { %12107 = vmatprep.subr.bf16.mxu0 %v15652_v60 }
 0x2cb   :  { %12109 = vmatpush1.bf16.msra.mxu0 %v15682_v2  ;;  %v2271_v16 = vpop.permute.xlu0 %2270  ;;  %v21832_v2 = vld [vmem:[#allocation59_spill] sm:$0xff] }
 0x2cc   :  { %12111 = vmatprep.subr.bf16.mxu0 %v15688_v19 }
 0x2cf   :  { %12113 = vmatpush1.bf16.msra.mxu0 %v15706_v44  ;;  %v2275_v36 = vpop.permute.xlu0 %2274  ;;  %v21833_v44 = vld [vmem:[#allocation61_spill] sm:$0xff] }
 0x2f7   :  { %v2273_v39 = vpop.permute.xlu1 %2272 }
 0x2f8   :  { %9660 = vmatprep.mubr.msk.f32.mxu1 %vm1385_vm1, %v2273_v39  ;;  %9662 = vmatprep.mubr.msk.f32.mxu0 %vm1385_vm1, %v2273_v39  ;;  %v2278_v58 = vsel %vm1385_vm1, %v2271_v16, %v2273_v39  ;;  %v21846_v16 = vld [vmem:[#allocation87_spill] sm:$0xff] }
 0x2f9   :  { %2351 = vmatmul.mubr.f32.vlgmr.msra.gmra.mrb[4].mxu1 %v2278_v58  ;;  %2428 = vmatmul.mubr.f32.vlgmr.msra.gmra.mrb[8].mxu0 %v2278_v58 }
 0x2fa   :  { %12117 = vmatpush1.bf16.msra.mxu1 %v21830_v56 }
 0x2fb   :  { %v2277_v60 = vpop.permute.xlu1 %2276  ;;  %12119 = vmatprep.subr.bf16.mxu1 %v21831_v5 }
 0x2fc   :  { %9661 = vmatprep.mubr.msk.f32.mxu1 %vm1385_vm1, %v2277_v60  ;;  %9663 = vmatprep.mubr.msk.f32.mxu0 %vm1385_vm1, %v2277_v60  ;;  %v2279_v19 = vsel %vm1385_vm1, %v2275_v36, %v2277_v60 }
 0x2fd   :  { %2357 = vmatmul.mubr.f32.gmra.mrb[6].mxu1 %v2279_v19  ;;  %2434 = vmatmul.mubr.f32.gmra.mrb[10].mxu0 %v2279_v19 }
 0x2fe   :  { %12121 = vmatpush1.bf16.msra.mxu1 %v21832_v2  ;;  %9664 = vmatprep.mubr.msk.f32.mxu1 %vm1385_vm1, %v2273_v39  ;;  %v21847_v39 = vld [vmem:[#allocation89_spill] sm:$0xff] }
 0x2ff   :  { %12123 = vmatprep.subr.bf16.mxu1 %v21833_v44 }
 0x302   :  { %12125 = vmatpush1.bf16.msra.mxu1 %v21834_v0 }
 0x303   :  { %12127 = vmatprep.subr.bf16.mxu1 %v21835_v24 }
 0x306   :  { %12129 = vmatpush1.bf16.msra.mxu1 %v21836_v23 }
 0x307   :  { %12131 = vmatprep.subr.bf16.mxu1 %v21837_v30 }
 0x30a   :  { %12133 = vmatpush1.bf16.msra.mxu1 %v21838_v40 }
 0x30b   :  { %12135 = vmatprep.subr.bf16.mxu1 %v21839_v9 }
 0x30e   :  { %12137 = vmatpush1.bf16.msra.mxu1 %v21840_v22 }
 0x30f   :  { %12139 = vmatprep.subr.bf16.mxu1 %v21841_v3 }
 0x312   :  { %12141 = vmatpush1.bf16.msra.mxu1 %v21842_v11 }
 0x313   :  { %12143 = vmatprep.subr.bf16.mxu1 %v21843_v35 }
 0x316   :  { %12145 = vmatpush1.bf16.msra.mxu1 %v21844_v18 }
 0x317   :  { %12147 = vmatprep.subr.bf16.mxu1 %v21845_v29 }
 0x31a   :  { %12149 = vmatpush1.bf16.msra.mxu1 %v21846_v16 }
 0x31b   :  { %12151 = vmatprep.subr.bf16.mxu1 %v21847_v39 }
 0x31e   :  { %12153 = vmatpush1.bf16.msra.mxu1 %v15650_v63 }
 0x31f   :  { %12155 = vmatprep.subr.bf16.mxu1 %v15664_v8 }
 0x322   :  { %12157 = vmatpush1.bf16.msra.mxu1 %v15686_v1 }
 0x323   :  { %12159 = vmatprep.subr.bf16.mxu1 %v15697_v21 }
 0x326   :  { %12161 = vmatpush1.bf16.msra.mxu1 %v15710_v7 }
 0x329   :  { %2505 = vmatmul.mubr.f32.vlgmr.msra.gmra.mrb[8].mxu1 %v2278_v58 }
 0x32a   :  { %9665 = vmatprep.mubr.msk.f32.mxu1 %vm1385_vm1, %v2277_v60 }
 0x32d   :  { %2511 = vmatmul.mubr.f32.gmra.mrb[10].mxu1 %v2279_v19 }
 0x345   :  { %v2101_v56 = vpop.f32.mrb[12].mxu0  ;;  %v16124_v36 = vpop.f32.mrb[12].mxu1 }
 0x346   :  { %v13824_v5 = vadd.f32 %v2101_v56, %v15786_v10  ;;  %v2103_v2 = vpop.f32.mrb[13].mxu0  ;;  %v2180_v44 = vpop.f32.mrb[13].mxu1 }
 0x347   :  { %v13829_v8 = vadd.f32 %v2180_v44, %v15790_v17 }
 0x348   :  { %v2517_v63 = vmul.f32 0.5, %v13824_v5 }
 0x34a   :  { %14010 = vtanh.f32 %v2517_v63 }
 0x34b   :  { %14012 = vtanh.f32 %v13829_v8 }
 0x351   :  { %v2107_v1 = vpop.f32.mrb[14].mxu0  ;;  %v16128_v21 = vpop.f32.mrb[14].mxu1 }
 0x352   :  { %v13826_v7 = vadd.f32 %v2107_v1, %v15786_v10  ;;  %v2109_v58 = vpop.f32.mrb[15].mxu0  ;;  %v2186_v60 = vpop.f32.mrb[15].mxu1  ;;  %v13825_v10 = vadd.f32 %v2103_v2, %v15807_v51 }
 0x353   :  { %v13831_v23 = vadd.f32 %v2186_v60, %v15790_v17  ;;  %v13827_v16 = vadd.f32 %v2109_v58, %v15807_v51 }
 0x354   :  { %v14011_v19 = vpop.eup %14010  ;;  %v2519_v0 = vmul.f32 0.5, %v13826_v7  ;;  %v2518_v29 = vmul.f32 0.5, %v13825_v10  ;;  %v2837_v10 = vld [vmem:[%s21848_s26 + $0x30] sm:$0xff] }
 0x355   :  { %v2525_v24 = vadd.f32 1.0, %v14011_v19  ;;  %v14013_v40 = vpop.eup %14012  ;;  %v2520_v17 = vmul.f32 0.5, %v13827_v16  ;;  %v2844_v16 = vld [vmem:[%s21848_s26 + $0x68] sm:$0xff] }
 0x356   :  { %14014 = vtanh.f32 %v2519_v0 }
 0x357   :  { %v2529_v30 = vmul.f32 0.5, %v2525_v24  ;;  %14016 = vtanh.f32 %v13831_v23  ;;  %v2832_v23 = vld [vmem:[%s21848_s26 + $0x8] sm:$0xff] }
 0x358   :  { %14018 = vtanh.f32 %v2518_v29  ;;  %v2840_v29 = vld [vmem:[%s21848_s26 + $0x48] sm:$0xff] }
 0x359   :  { %v2565_v9 = vmul.f32 %v14013_v40, %v2529_v30  ;;  %14020 = vtanh.f32 %v2520_v17  ;;  %v2835_v30 = vld [vmem:[%s21848_s26 + $0x20] sm:$0xff] }
 0x35a   :  { %v2831_v40 = vld [vmem:[%s21848_s26] sm:$0xff] }
 0x35b   :  { %2573 = vrot.lane.b32.xlu0 %v2565_v9, %s14142_s30  ;;  %v12162_v9 = vpack.c.bf16 %v2835_v30, %v2832_v23  ;;  %v2847_v17 = vld [vmem:[%s21848_s26 + $0x80] sm:$0xff]  ;;  %v2856_v23 = vld [vmem:[%s21848_s26 + $0xc8] sm:$0xff] }
 0x35c   :  { %v2859_v30 = vld [vmem:[%s21848_s26 + $0xe0] sm:$0xff] }
 0x35d   :  { %12163 = vmatprep.subr.bf16.mxu0 %v12162_v9  ;;  %v2884_v9 = vld [vmem:[%s21848_s26 + $0x1a8] sm:$0xff] }
 0x360   :  { %v14015_v22 = vpop.eup %14014 }
 0x361   :  { %v2527_v3 = vadd.f32 1.0, %v14015_v22  ;;  %v14017_v35 = vpop.eup %14016  ;;  %v2834_v22 = vld [vmem:[%s21848_s26 + $0x18] sm:$0xff] }
 0x362   :  { %v14019_v63 = vpop.eup %14018 }
 0x363   :  { %v2531_v11 = vmul.f32 0.5, %v2527_v3  ;;  %v2526_v51 = vadd.f32 1.0, %v14019_v63  ;;  %v14021_v1 = vpop.eup %14020  ;;  %v2838_v3 = vld [vmem:[%s21848_s26 + $0x38] sm:$0xff]  ;;  %v2843_v63 = vld [vmem:[%s21848_s26 + $0x60] sm:$0xff] }
 0x364   :  { %v2528_v58 = vadd.f32 1.0, %v14021_v1  ;;  %v2850_v1 = vld [vmem:[%s21848_s26 + $0x98] sm:$0xff] }
 0x365   :  { %v2567_v18 = vmul.f32 %v14017_v35, %v2531_v11  ;;  %v16148_v7 = vmul.f32 0.5, %v2526_v51  ;;  %v2841_v11 = vld [vmem:[%s21848_s26 + $0x50] sm:$0xff]  ;;  %v12164_v35 = vpack.c.bf16 %v2834_v22, %v2831_v40  ;;  %v2846_v51 = vld [vmem:[%s21848_s26 + $0x78] sm:$0xff] }
 0x366   :  { %v16151_v0 = vmul.f32 0.5, %v2528_v58  ;;  %v2853_v58 = vld [vmem:[%s21848_s26 + $0xb0] sm:$0xff] }
 0x367   :  { %2577 = vrot.lane.b32.xlu0 %v2567_v18, %s14142_s30  ;;  %v12166_v18 = vpack.c.bf16 %v2841_v11, %v2838_v3  ;;  %12165 = vmatpush1.bf16.msra.mxu0 %v12164_v35  ;;  %v2881_v40 = vld [vmem:[%s21848_s26 + $0x190] sm:$0xff]  ;;  %v2855_v3 = vld [vmem:[%s21848_s26 + $0xc0] sm:$0xff] }
 0x368   :  { %v12258_v11 = vpack.c.bf16 %v2884_v9, %v2881_v40  ;;  %v2833_v35 = vld [vmem:[%s21848_s26 + $0x10] sm:$0xff]  ;;  %v2868_v40 = vld [vmem:[%s21848_s26 + $0x128] sm:$0xff] }
 0x369   :  { %12167 = vmatprep.subr.bf16.mxu0 %v12166_v18  ;;  %v12178_v18 = vpack.c.bf16 %v2859_v30, %v2856_v23  ;;  %v2864_v30 = vld [vmem:[%s21848_s26 + $0x108] sm:$0xff] }
 0x36a   :  { %12259 = vmatprep.subr.bf16.mxu1 %v12258_v11  ;;  %v2896_v9 = vld [vmem:[%s21848_s26 + $0x208] sm:$0xff]  ;;  %v2845_v11 = vld [vmem:[%s21848_s26 + $0x70] sm:$0xff] }
 0x375   :  { %v2255_v39 = vpop.f32.mrb[16].mxu0 }
 0x376   :  { %v16137_v56 = vadd.f32 %v2255_v39, %v15815_v38  ;;  %v16139_v5 = vpop.f32.mrb[17].mxu0  ;;  %v12168_v39 = vpack.c.bf16 %v2840_v29, %v2837_v10  ;;  %v2858_v10 = vld [vmem:[%s21848_s26 + $0xd8] sm:$0xff] }
 0x377   :  { %v2862_v29 = vld [vmem:[%s21848_s26 + $0xf8] sm:$0xff] }
 0x378   :  { %14022 = vtanh.f32 %v16137_v56  ;;  %12169 = vmatpush1.bf16.msra.mxu0 %v12168_v39 }
 0x379   :  { %v2261_v44 = vpop.f32.mrb[18].mxu0 }
 0x37a   :  { %v16143_v8 = vadd.f32 %v2261_v44, %v15815_v38  ;;  %v16145_v2 = vpop.f32.mrb[19].mxu0  ;;  %v12170_v44 = vpack.c.bf16 %v2847_v17, %v2844_v16  ;;  %v2836_v16 = vld [vmem:[%s21848_s26 + $0x28] sm:$0xff]  ;;  %v2865_v17 = vld [vmem:[%s21848_s26 + $0x110] sm:$0xff] }
 0x37b   :  { %v12260_v39 = vpack.c.bf16 %v2836_v16, %v2833_v35  ;;  %v12182_v23 = vpack.c.bf16 %v2865_v17, %v2862_v29  ;;  %v2848_v35 = vld [vmem:[%s21848_s26 + $0x88] sm:$0xff]  ;;  %v2867_v16 = vld [vmem:[%s21848_s26 + $0x120] sm:$0xff] }
 0x37c   :  { %14024 = vtanh.f32 %v16143_v8  ;;  %12171 = vmatprep.subr.bf16.mxu0 %v12170_v44  ;;  %v2887_v44 = vld [vmem:[%s21848_s26 + $0x1c0] sm:$0xff]  ;;  %v12268_v17 = vpack.c.bf16 %v2848_v35, %v2845_v11  ;;  %v2882_v35 = vld [vmem:[%s21848_s26 + $0x198] sm:$0xff] }
 0x37d   :  { %12261 = vmatpush3.bf16.msra.mxu1 %v12260_v39  ;;  %v2879_v11 = vld [vmem:[%s21848_s26 + $0x180] sm:$0xff] }
 0x382   :  { %v14023_v60 = vpop.eup %14022 }
 0x383   :  { %v2566_v19 = vmul.f32 %v14023_v60, %v16148_v7  ;;  %v12172_v60 = vpack.c.bf16 %v2846_v51, %v2843_v63  ;;  %v2890_v63 = vld [vmem:[%s21848_s26 + $0x1d8] sm:$0xff] }
 0x384   :  { %v12262_v51 = vpack.c.bf16 %v2890_v63, %v2887_v44  ;;  %v2870_v44 = vld [vmem:[%s21848_s26 + $0x138] sm:$0xff] }
 0x385   :  { %2575 = vrot.lane.b32.xlu1 %v2566_v19, %s14142_s30  ;;  %v12174_v19 = vpack.c.bf16 %v2853_v58, %v2850_v1  ;;  %12173 = vmatpush1.bf16.msra.mxu0 %v12172_v60  ;;  %v2839_v1 = vld [vmem:[%s21848_s26 + $0x40] sm:$0xff]  ;;  %v2842_v58 = vld [vmem:[%s21848_s26 + $0x58] sm:$0xff]  ;;  %v12180_v60 = vpack.c.bf16 %v2858_v10, %v2855_v3 }
 0x386   :  { %v14025_v24 = vpop.eup %14024  ;;  %12263 = vmatprep.subr.bf16.mxu1 %v12262_v51  ;;  %v2902_v10 = vld [vmem:[%s21848_s26 + $0x238] sm:$0xff]  ;;  %v2851_v51 = vld [vmem:[%s21848_s26 + $0xa0] sm:$0xff] }
 0x387   :  { %v2568_v38 = vmul.f32 %v14025_v24, %v16151_v0  ;;  %v2849_v24 = vld [vmem:[%s21848_s26 + $0x90] sm:$0xff]  ;;  %12175 = vmatprep.subr.bf16.mxu0 %v12174_v19 }
 0x388   :  { %v2861_v19 = vld [vmem:[%s21848_s26 + $0xf0] sm:$0xff] }
 0x389   :  { %2579 = vrot.lane.b32.xlu1 %v2568_v38, %s14142_s30  ;;  %v2852_v38 = vld [vmem:[%s21848_s26 + $0xa8] sm:$0xff]  ;;  %v12184_v29 = vpack.c.bf16 %v2864_v30, %v2861_v19  ;;  %v12188_v19 = vpack.c.bf16 %v2870_v44, %v2867_v16 }
 0x38a   :  { %v12176_v22 = vpack.c.bf16 %v2852_v38, %v2849_v24  ;;  %v12264_v24 = vpack.c.bf16 %v2842_v58, %v2839_v1  ;;  %v2893_v38 = vld [vmem:[%s21848_s26 + $0x1f0] sm:$0xff]  ;;  %v2854_v1 = vld [vmem:[%s21848_s26 + $0xb8] sm:$0xff]  ;;  %v2876_v30 = vld [vmem:[%s21848_s26 + $0x168] sm:$0xff] }
 0x38b   :  { %v12266_v3 = vpack.c.bf16 %v2896_v9, %v2893_v38  ;;  %v2874_v58 = vld [vmem:[%s21848_s26 + $0x158] sm:$0xff]  ;;  %v2883_v9 = vld [vmem:[%s21848_s26 + $0x1a0] sm:$0xff]  ;;  %v2892_v44 = vld [vmem:[%s21848_s26 + $0x1e8] sm:$0xff] }
 0x38c   :  { %12177 = vmatpush1.bf16.msra.mxu0 %v12176_v22  ;;  %v2871_v22 = vld [vmem:[%s21848_s26 + $0x140] sm:$0xff]  ;;  %12265 = vmatpush3.bf16.msra.mxu1 %v12264_v24  ;;  %v12272_v24 = vpack.c.bf16 %v2854_v1, %v2851_v51 }
 0x38d   :  { %12179 = vmatprep.subr.bf16.mxu0 %v12178_v18  ;;  %v2899_v18 = vld [vmem:[%s21848_s26 + $0x220] sm:$0xff]  ;;  %v12186_v39 = vpack.c.bf16 %v2871_v22, %v2868_v40  ;;  %12267 = vmatprep.subr.bf16.mxu1 %v12266_v3  ;;  %v2880_v40 = vld [vmem:[%s21848_s26 + $0x188] sm:$0xff] }
 0x38e   :  { %v12270_v63 = vpack.c.bf16 %v2902_v10, %v2899_v18  ;;  %v12194_v3 = vpack.c.bf16 %v2883_v9, %v2880_v40  ;;  %v2886_v18 = vld [vmem:[%s21848_s26 + $0x1b8] sm:$0xff]  ;;  %v2889_v10 = vld [vmem:[%s21848_s26 + $0x1d0] sm:$0xff]  ;;  %v2900_v40 = vld [vmem:[%s21848_s26 + $0x228] sm:$0xff] }
 0x38f   :  { %v12198_v16 = vpack.c.bf16 %v2889_v10, %v2886_v18 }
 0x390   :  { %12181 = vmatpush1.bf16.msra.mxu0 %v12180_v60  ;;  %v2877_v60 = vld [vmem:[%s21848_s26 + $0x170] sm:$0xff]  ;;  %12269 = vmatpush3.bf16.msra.mxu1 %v12268_v17 }
 0x391   :  { %12183 = vmatprep.subr.bf16.mxu0 %v12182_v23  ;;  %v12190_v38 = vpack.c.bf16 %v2877_v60, %v2874_v58  ;;  %v2873_v23 = vld [vmem:[%s21848_s26 + $0x150] sm:$0xff]  ;;  %12271 = vmatprep.subr.bf16.mxu1 %v12270_v63  ;;  %v2895_v63 = vld [vmem:[%s21848_s26 + $0x200] sm:$0xff]  ;;  %v2894_v60 = vld [vmem:[%s21848_s26 + $0x1f8] sm:$0xff] }
 0x392   :  { %v12192_v22 = vpack.c.bf16 %v2876_v30, %v2873_v23  ;;  %v2885_v17 = vld [vmem:[%s21848_s26 + $0x1b0] sm:$0xff]  ;;  %v12202_v1 = vpack.c.bf16 %v2895_v63, %v2892_v44  ;;  %v2891_v58 = vld [vmem:[%s21848_s26 + $0x1e0] sm:$0xff] }
 0x393   :  { %v2897_v30 = vld [vmem:[%s21848_s26 + $0x210] sm:$0xff] }
 0x394   :  { %12185 = vmatpush1.bf16.msra.mxu0 %v12184_v29  ;;  %12273 = vmatpush3.bf16.msra.mxu1 %v12272_v24  ;;  %v12196_v29 = vpack.c.bf16 %v2882_v35, %v2879_v11  ;;  %v2901_v24 = vld [vmem:[%s21848_s26 + $0x230] sm:$0xff]  ;;  %v12208_v9 = vpack.c.bf16 %v2900_v40, %v2897_v30  ;;  %v2903_v30 = vld [vmem:[%s21848_s26 + $0x240] sm:$0xff]  ;;  %v2906_v40 = vld [vmem:[%s21848_s26 + $0x258] sm:$0xff] }
 0x395   :  { %12187 = vmatprep.subr.bf16.mxu0 %v12186_v39  ;;  %v2888_v39 = vld [vmem:[%s21848_s26 + $0x1c8] sm:$0xff] }
 0x396   :  { %v12200_v51 = vpack.c.bf16 %v2888_v39, %v2885_v17 }
 0x398   :  { %12189 = vmatpush1.bf16.msra.mxu0 %v12188_v19  ;;  %v2898_v19 = vld [vmem:[%s21848_s26 + $0x218] sm:$0xff] }
 0x399   :  { %12191 = vmatprep.subr.bf16.mxu0 %v12190_v38  ;;  %v12204_v38 = vpack.c.bf16 %v2894_v60, %v2891_v58  ;;  %v12206_v23 = vpack.c.bf16 %v2901_v24, %v2898_v19  ;;  %v2904_v19 = vld [vmem:[%s21848_s26 + $0x248] sm:$0xff]  ;;  %v2907_v24 = vld [vmem:[%s21848_s26 + $0x260] sm:$0xff] }
 0x39c   :  { %12193 = vmatpush1.bf16.msra.mxu0 %v12192_v22  ;;  %v2545_v22 = vmul.f32 0.5, %v16137_v56 }
 0x39d   :  { %12195 = vmatprep.subr.bf16.mxu0 %v12194_v3 }
 0x39e   :  { %14026 = vtanh.f32 %v2545_v22 }
 0x3a0   :  { %12197 = vmatpush1.bf16.msra.mxu0 %v12196_v29  ;;  %v2547_v29 = vmul.f32 0.5, %v16143_v8 }
 0x3a1   :  { %12199 = vmatprep.subr.bf16.mxu0 %v12198_v16  ;;  %v2561_v16 = vmul.f32 %v16148_v7, %v15895_v46 }
 0x3a4   :  { %12201 = vmatpush1.bf16.msra.mxu0 %v12200_v51 }
 0x3a5   :  { %12203 = vmatprep.subr.bf16.mxu0 %v12202_v1 }
 0x3a8   :  { %12205 = vmatpush1.bf16.msra.mxu0 %v12204_v38  ;;  %v14027_v7 = vpop.eup %14026  ;;  %v2563_v38 = vmul.f32 %v16151_v0, %v15904_v43  ;;  %v2857_v43 = vld [vmem:[%s21848_s26 + $0xd0] sm:$0xff]  ;;  %v2860_v0 = vld [vmem:[%s21848_s26 + $0xe8] sm:$0xff] }
 0x3a9   :  { %12207 = vmatprep.subr.bf16.mxu0 %v12206_v23  ;;  %v12210_v23 = vpack.c.bf16 %v2907_v24, %v2904_v19 }
 0x3ac   :  { %12209 = vmatpush1.bf16.msra.mxu0 %v12208_v9  ;;  %v2553_v9 = vadd.f32 1.0, %v14027_v7  ;;  %v2912_v7 = vld [vmem:[%s21848_s26 + $0x288] sm:$0xff] }
 0x3ad   :  { %12211 = vmatprep.subr.bf16.mxu0 %v12210_v23  ;;  %v2863_v23 = vld [vmem:[%s21848_s26 + $0x100] sm:$0xff] }
 0x3ae   :  { %v2557_v24 = vmul.f32 0.5, %v2553_v9 }
 0x3cc   :  { %v2352_v3 = vpop.f32.mrb[4].mxu1  ;;  %v16349_v11 = vpop.f32.mrb[8].mxu0 }
 0x3cd   :  { %v13812_v35 = vadd.f32 %v2352_v3, %v15843_v48  ;;  %v16352_v18 = vpop.f32.mrb[5].mxu1  ;;  %v2431_v10 = vpop.f32.mrb[9].mxu0 }
 0x3ce   :  { %v16357_v17 = vpop.permute.xlu0 %2573  ;;  %v13817_v56 = vadd.f32 %v2431_v10, %v15863_v37  ;;  %v13828_v10 = vadd.f32 %v16124_v36, %v15902_v34 }
 0x3cf   :  { %v2599_v39 = vmul.f32 0.5, %v13812_v35  ;;  %v2587_v44 = vadd.f32 %v16357_v17, %v2561_v16  ;;  %v12212_v35 = vpack.c.bf16 %v2906_v40, %v2903_v30  ;;  %v12276_v16 = vpack.c.bf16 %v2860_v0, %v2857_v43  ;;  %v2916_v30 = vld [vmem:[%s21848_s26 + $0x2a8] sm:$0xff]  ;;  %v2919_v0 = vld [vmem:[%s21848_s26 + $0x2c0] sm:$0xff] }
 0x3d0   :  { %v2358_v63 = vpop.f32.mrb[6].mxu1  ;;  %v16361_v51 = vpop.f32.mrb[10].mxu0 }
 0x3d1   :  { %14028 = vtanh.f32 %v2599_v39  ;;  %v13814_v1 = vadd.f32 %v2358_v63, %v15843_v48  ;;  %v16364_v58 = vpop.f32.mrb[7].mxu1  ;;  %v2437_v60 = vpop.f32.mrb[11].mxu0  ;;  %v2905_v48 = vld [vmem:[%s21848_s26 + $0x250] sm:$0xff]  ;;  %12213 = vmatpush1.bf16.msra.mxu0 %v12212_v35  ;;  %v2911_v63 = vld [vmem:[%s21848_s26 + $0x280] sm:$0xff]  ;;  %v13830_v35 = vadd.f32 %v16128_v21, %v15902_v34  ;;  %v12218_v34 = vpack.c.bf16 %v2919_v0, %v2916_v30 }
 0x3d2   :  { %14030 = vtanh.f32 %v2547_v29  ;;  %v13819_v46 = vadd.f32 %v2437_v60, %v15863_v37  ;;  %v2908_v37 = vld [vmem:[%s21848_s26 + $0x268] sm:$0xff]  ;;  %v2921_v30 = vld [vmem:[%s21848_s26 + $0x2d0] sm:$0xff]  ;;  %v2875_v0 = vld [vmem:[%s21848_s26 + $0x160] sm:$0xff] }
 0x3d3   :  { %14032 = vtanh.f32 %v13817_v56  ;;  %v2601_v8 = vmul.f32 0.5, %v13814_v1  ;;  %v12274_v3 = vpack.c.bf16 %v2908_v37, %v2905_v48  ;;  %v2910_v56 = vld [vmem:[%s21848_s26 + $0x278] sm:$0xff] }
 0x3d4   :  { %14034 = vtanh.f32 %v2587_v44  ;;  %v2913_v44 = vld [vmem:[%s21848_s26 + $0x290] sm:$0xff]  ;;  %v2866_v37 = vld [vmem:[%s21848_s26 + $0x118] sm:$0xff] }
 0x3d5   :  { %14036 = vtanh.f32 %v2601_v8  ;;  %12275 = vmatprep.subr.bf16.mxu1 %v12274_v3  ;;  %v12214_v60 = vpack.c.bf16 %v2913_v44, %v2910_v56  ;;  %v2914_v8 = vld [vmem:[%s21848_s26 + $0x298] sm:$0xff]  ;;  %v2533_v3 = vmul.f32 0.5, %v13828_v10  ;;  %v12280_v43 = vpack.c.bf16 %v2866_v37, %v2863_v23  ;;  %v2915_v56 = vld [vmem:[%s21848_s26 + $0x2a0] sm:$0xff] }
 0x3d6   :  { %14038 = vtanh.f32 %v13819_v46  ;;  %12277 = vmatpush3.bf16.msra.mxu1 %v12276_v16  ;;  %v2909_v46 = vld [vmem:[%s21848_s26 + $0x270] sm:$0xff]  ;;  %v12278_v48 = vpack.c.bf16 %v2914_v8, %v2911_v63  ;;  %v2920_v16 = vld [vmem:[%s21848_s26 + $0x2c8] sm:$0xff]  ;;  %v2918_v44 = vld [vmem:[%s21848_s26 + $0x2b8] sm:$0xff] }
 0x3d7   :  { %12215 = vmatprep.subr.bf16.mxu0 %v12214_v60  ;;  %v2869_v63 = vld [vmem:[%s21848_s26 + $0x130] sm:$0xff]  ;;  %v12220_v8 = vpack.c.bf16 %v2918_v44, %v2915_v56  ;;  %v2926_v37 = vld [vmem:[%s21848_s26 + $0x2f8] sm:$0xff]  ;;  %v2928_v44 = vld [vmem:[%s21848_s26 + $0x308] sm:$0xff] }
 0x3d8   :  { %12279 = vmatprep.subr.bf16.mxu1 %v12278_v48 }
 0x3d9   :  { %v16387_v22 = vpop.permute.xlu0 %2577 }
 0x3da   :  { %v2589_v29 = vadd.f32 %v16387_v22, %v2563_v38  ;;  %v12216_v38 = vpack.c.bf16 %v2912_v7, %v2909_v46  ;;  %12281 = vmatpush3.bf16.msra.mxu1 %v12280_v43  ;;  %v2872_v46 = vld [vmem:[%s21848_s26 + $0x148] sm:$0xff]  ;;  %v2922_v7 = vld [vmem:[%s21848_s26 + $0x2d8] sm:$0xff] }
 0x3db   :  { %v14029_v39 = vpop.eup %14028  ;;  %v2924_v43 = vld [vmem:[%s21848_s26 + $0x2e8] sm:$0xff] }
 0x3dc   :  { %v14031_v36 = vpop.eup %14030  ;;  %v2607_v1 = vadd.f32 1.0, %v14029_v39  ;;  %14040 = vtanh.f32 %v2589_v29  ;;  %v2917_v29 = vld [vmem:[%s21848_s26 + $0x2b0] sm:$0xff]  ;;  %12217 = vmatpush1.bf16.msra.mxu0 %v12216_v38  ;;  %v12284_v38 = vpack.c.bf16 %v2872_v46, %v2869_v63  ;;  %v2931_v63 = vld [vmem:[%s21848_s26 + $0x320] sm:$0xff] }
 0x3dd   :  { %v14033_v19 = vpop.eup %14032  ;;  %v12282_v21 = vpack.c.bf16 %v2920_v16, %v2917_v29  ;;  %v2555_v48 = vadd.f32 1.0, %v14031_v36  ;;  %12219 = vmatprep.subr.bf16.mxu0 %v12218_v34  ;;  %14042 = vtanh.f32 %v2533_v3  ;;  %v2878_v29 = vld [vmem:[%s21848_s26 + $0x178] sm:$0xff]  ;;  %v12224_v3 = vpack.c.bf16 %v2924_v43, %v2921_v30 }
 0x3de   :  { %v14035_v40 = vpop.eup %14034  ;;  %v2611_v9 = vmul.f32 0.5, %v2607_v1 }
 0x3df   :  { %v14037_v39 = vpop.eup %14036  ;;  %v16436_v10 = vmul.f32 %v14035_v40, %v2557_v24  ;;  %v2925_v24 = vld [vmem:[%s21848_s26 + $0x2f0] sm:$0xff]  ;;  %12283 = vmatprep.subr.bf16.mxu1 %v12282_v21  ;;  %v2534_v40 = vmul.f32 0.5, %v13830_v35  ;;  %v2559_v34 = vmul.f32 0.5, %v2555_v48  ;;  %v13835_v48 = vadd.f32 %v16145_v2, %v15918_v52 }
 0x3e0   :  { %v2609_v1 = vadd.f32 1.0, %v14037_v39  ;;  %v2647_v60 = vmul.f32 %v14033_v19, %v2611_v9  ;;  %v12222_v23 = vpack.c.bf16 %v2925_v24, %v2922_v7  ;;  %v2923_v19 = vld [vmem:[%s21848_s26 + $0x2e0] sm:$0xff]  ;;  %v14039_v16 = vpop.eup %14038  ;;  %12221 = vmatpush1.bf16.msra.mxu0 %v12220_v8  ;;  %12285 = vmatpush3.bf16.msra.mxu1 %v12284_v38  ;;  %v12288_v39 = vpack.c.bf16 %v2878_v29, %v2875_v0 }
 0x3e1   :  { %v12286_v36 = vpack.c.bf16 %v2926_v37, %v2923_v19  ;;  %14044 = vtanh.f32 %v2534_v40  ;;  %v13833_v8 = vadd.f32 %v16139_v5, %v15918_v52  ;;  %v13815_v19 = vadd.f32 %v16364_v58, %v15840_v41 }
 0x3e2   :  { %v2613_v9 = vmul.f32 0.5, %v2609_v1  ;;  %2655 = vrot.lane.b32.xlu0 %v2647_v60, %s14142_s30  ;;  %12223 = vmatprep.subr.bf16.mxu0 %v12222_v23  ;;  %v12226_v1 = vpack.c.bf16 %v2931_v63, %v2928_v44  ;;  %v21643_v60 = vmov 0.0|0.0   ;;  %v13813_v23 = vadd.f32 %v16352_v18, %v15840_v41 }
 0x3e3   :  { %12287 = vmatprep.subr.bf16.mxu1 %v12286_v36  ;;  %v2546_v24 = vmul.f32 0.5, %v13833_v8  ;;  %v2548_v40 = vmul.f32 0.5, %v13835_v48  ;;  %v2602_v36 = vmul.f32 0.5, %v13815_v19 }
 0x3e4   :  { %v2649_v35 = vmul.f32 %v14039_v16, %v2613_v9  ;;  %12225 = vmatpush1.bf16.msra.mxu0 %v12224_v3  ;;  %12289 = vmatpush3.bf16.msra.mxu1 %v12288_v39  ;;  %v2600_v9 = vmul.f32 0.5, %v13813_v23 }
 0x3e5   :  { %12290 = vmatprep.subr.bf16.mxu1 %v21643_v60  ;;  %12227 = vmatprep.subr.bf16.mxu0 %v12226_v1  ;;  %14046 = vtanh.f32 %v2546_v24 }
 0x3e6   :  { %v14041_v21 = vpop.eup %14040  ;;  %2659 = vrot.lane.b32.xlu1 %v2649_v35, %s14142_s30  ;;  %14048 = vtanh.f32 %v2548_v40 }
 0x3e7   :  { %v16476_v56 = vmul.f32 %v14041_v21, %v2559_v34  ;;  %v14043_v46 = vpop.eup %14042  ;;  %14050 = vtanh.f32 %v2600_v9 }
 0x3e8   :  { %v2537_v7 = vadd.f32 1.0, %v14043_v46  ;;  %14052 = vtanh.f32 %v2602_v36 }
 0x3ea   :  { %v2539_v37 = vmul.f32 0.5, %v2537_v7 }
 0x3eb   :  { %v14045_v38 = vpop.eup %14044 }
 0x3ec   :  { %v2538_v30 = vadd.f32 1.0, %v14045_v38  ;;  %v2562_v43 = vmul.f32 %v2539_v37, %v15926_v59 }
 0x3ee   :  { %v2540_v5 = vmul.f32 0.5, %v2538_v30 }
 0x3ef   :  { %v14047_v16 = vpop.eup %14046 }
 0x3f0   :  { %v2564_v41 = vmul.f32 %v2540_v5, %v15930_v55  ;;  %v2554_v39 = vadd.f32 1.0, %v14047_v16  ;;  %v14049_v34 = vpop.eup %14048 }
 0x3f1   :  { %v14051_v55 = vpop.eup %14050  ;;  %v2556_v1 = vadd.f32 1.0, %v14049_v34  ;;  %v2937_v34 = vld [vmem:[%s21848_s26 + $0x350] sm:$0xff] }
 0x3f2   :  { %v14053_v63 = vpop.eup %14052  ;;  %v2608_v46 = vadd.f32 1.0, %v14051_v55 }
 0x3f3   :  { %v2560_v24 = vmul.f32 0.5, %v2556_v1  ;;  %v2610_v48 = vadd.f32 1.0, %v14053_v63 }
 0x3f4   :  { %v2612_v23 = vmul.f32 0.5, %v2608_v46 }
 0x3f5   :  { %v2614_v40 = vmul.f32 0.5, %v2610_v48 }
 0x3f7   :  { %v2576_v0 = vpop.permute.xlu1 %2575 }
 0x3f8   :  { %v2581_v52 = vsel %vm1385_vm1, %v16357_v17, %v2576_v0 }
 0x3f9   :  { %v2588_v2 = vadd.f32 %v2581_v52, %v2562_v43  ;;  %v2643_v43 = vmul.f32 %v2612_v23, %v15942_v47  ;;  %v2927_v47 = vld [vmem:[%s21848_s26 + $0x300] sm:$0xff] }
 0x3fb   :  { %14054 = vtanh.f32 %v2588_v2  ;;  %v2580_v18 = vpop.permute.xlu1 %2579  ;;  %v2645_v2 = vmul.f32 %v2614_v40, %v15946_v28  ;;  %v2929_v28 = vld [vmem:[%s21848_s26 + $0x310] sm:$0xff] }
 0x3fc   :  { %v2582_v58 = vsel %vm1385_vm1, %v16387_v22, %v2580_v18  ;;  %v2506_v29 = vpop.f32.mrb[8].mxu1  ;;  %v2558_v22 = vmul.f32 0.5, %v2554_v39  ;;  %v2932_v39 = vld [vmem:[%s21848_s26 + $0x328] sm:$0xff] }
 0x3fd   :  { %v2590_v3 = vadd.f32 %v2582_v58, %v2564_v41  ;;  %v13820_v35 = vadd.f32 %v2506_v29, %v15859_v31  ;;  %v16500_v59 = vpop.f32.mrb[9].mxu1 }
 0x3ff   :  { %14056 = vtanh.f32 %v2590_v3  ;;  %v2627_v36 = vmul.f32 0.5, %v13820_v35  ;;  %v2930_v3 = vld [vmem:[%s21848_s26 + $0x318] sm:$0xff] }
 0x400   :  { %14058 = vtanh.f32 %v13820_v35  ;;  %v2512_v17 = vpop.f32.mrb[10].mxu1  ;;  %v12228_v63 = vpack.c.bf16 %v2930_v3, %v2927_v47  ;;  %v2950_v47 = vld [vmem:[%s21848_s26 + $0x3b8] sm:$0xff]  ;;  %v2952_v3 = vld [vmem:[%s21848_s26 + $0x3c8] sm:$0xff] }
 0x401   :  { %v13822_v21 = vadd.f32 %v2512_v17, %v15859_v31  ;;  %v16503_v44 = vpop.f32.mrb[11].mxu1  ;;  %v2934_v17 = vld [vmem:[%s21848_s26 + $0x338] sm:$0xff] }
 0x402   :  { %v12230_v46 = vpack.c.bf16 %v2937_v34, %v2934_v17  ;;  %v2951_v34 = vld [vmem:[%s21848_s26 + $0x3c0] sm:$0xff] }
 0x403   :  { %14060 = vtanh.f32 %v13822_v21  ;;  %v2629_v5 = vmul.f32 0.5, %v13822_v21  ;;  %v13816_v21 = vadd.f32 %v16349_v11, %v15951_v25  ;;  %v2935_v11 = vld [vmem:[%s21848_s26 + $0x340] sm:$0xff] }
 0x404   :  { %14062 = vtanh.f32 %v2627_v36  ;;  %v2941_v36 = vld [vmem:[%s21848_s26 + $0x370] sm:$0xff] }
 0x405   :  { %v14055_v8 = vpop.eup %14054  ;;  %14064 = vtanh.f32 %v2629_v5 }
 0x406   :  { %v2596_v7 = vmul.f32 %v14055_v8, %v2558_v22  ;;  %v12291_v8 = vpack.c.bf16 %v2932_v39, %v2929_v28  ;;  %v2955_v28 = vld [vmem:[%s21848_s26 + $0x3e0] sm:$0xff] }
 0x407   :  { %v12242_v17 = vpack.c.bf16 %v2955_v28, %v2952_v3  ;;  %v2969_v3 = vld [vmem:[%s21848_s26 + $0x450] sm:$0xff]  ;;  %v2972_v28 = vld [vmem:[%s21848_s26 + $0x468] sm:$0xff] }
 0x409   :  { %v14057_v38 = vpop.eup %14056 }
 0x40a   :  { %v14059_v19 = vpop.eup %14058  ;;  %v2598_v37 = vmul.f32 %v14057_v38, %v2560_v24  ;;  %v2936_v24 = vld [vmem:[%s21848_s26 + $0x348] sm:$0xff]  ;;  %v13818_v38 = vadd.f32 %v16361_v51, %v15951_v25 }
 0x40b   :  { %v2648_v30 = vmul.f32 %v14059_v19, %v2612_v23  ;;  %v2940_v23 = vld [vmem:[%s21848_s26 + $0x368] sm:$0xff]  ;;  %v2943_v19 = vld [vmem:[%s21848_s26 + $0x380] sm:$0xff] }
 0x40c   :  { %v2616_v5 = vmul.f32 0.5, %v13818_v38  ;;  %v2957_v38 = vld [vmem:[%s21848_s26 + $0x3f0] sm:$0xff] }
 0x40d   :  { %v14061_v9 = vpop.eup %14060  ;;  %2657 = vrot.lane.b32.xlu0 %v2648_v30, %s14142_s30 }
 0x40e   :  { %v2650_v31 = vmul.f32 %v14061_v9, %v2614_v40  ;;  %v12234_v40 = vpack.c.bf16 %v2943_v19, %v2940_v23  ;;  %v2939_v9 = vld [vmem:[%s21848_s26 + $0x360] sm:$0xff]  ;;  %v2964_v19 = vld [vmem:[%s21848_s26 + $0x428] sm:$0xff] }
 0x40f   :  { %v2959_v23 = vld [vmem:[%s21848_s26 + $0x400] sm:$0xff] }
 0x410   :  { %2661 = vrot.lane.b32.xlu1 %v2650_v31, %s14142_s30  ;;  %v2942_v31 = vld [vmem:[%s21848_s26 + $0x378] sm:$0xff] }
 0x411   :  { %2691 = vrot.lane.b32.xlu0 %v2596_v7, %s14142_s30  ;;  %v2933_v7 = vld [vmem:[%s21848_s26 + $0x330] sm:$0xff] }
 0x412   :  { %v12232_v51 = vpack.c.bf16 %v2936_v24, %v2933_v7 }
 0x414   :  { %2689 = vrot.lane.b32.xlu1 %v16436_v10, %s14142_s30  ;;  %v14063_v10 = vpop.eup %14062 }
 0x415   :  { %2695 = vrot.lane.b32.xlu0 %v2598_v37, %s14142_s30  ;;  %v14065_v58 = vpop.eup %14064  ;;  %v2615_v37 = vmul.f32 0.5, %v13816_v21  ;;  %v2954_v21 = vld [vmem:[%s21848_s26 + $0x3d8] sm:$0xff] }
 0x416   :  { %v2637_v16 = vadd.f32 1.0, %v14065_v58  ;;  %v2945_v58 = vld [vmem:[%s21848_s26 + $0x390] sm:$0xff]  ;;  %v12244_v7 = vpack.c.bf16 %v2954_v21, %v2951_v34 }
 0x418   :  { %2693 = vrot.lane.b32.xlu1 %v16476_v56, %s14142_s30  ;;  %v2635_v56 = vadd.f32 1.0, %v14063_v10  ;;  %v2641_v22 = vmul.f32 0.5, %v2637_v16  ;;  %v12236_v10 = vpack.c.bf16 %v2942_v31, %v2939_v9  ;;  %v2947_v16 = vld [vmem:[%s21848_s26 + $0x3a0] sm:$0xff] }
 0x419   :  { %v12300_v39 = vpack.c.bf16 %v2950_v47, %v2947_v16 }
 0x41a   :  { %v2639_v29 = vmul.f32 0.5, %v2635_v56 }
 0x454   :  { %v16514_v0 = vpop.permute.xlu0 %2655 }
 0x455   :  { %v2669_v52 = vadd.f32 %v16514_v0, %v2643_v43  ;;  %v2944_v43 = vld [vmem:[%s21848_s26 + $0x388] sm:$0xff] }
 0x457   :  { %14066 = vtanh.f32 %v2669_v52  ;;  %v2946_v52 = vld [vmem:[%s21848_s26 + $0x398] sm:$0xff] }
 0x458   :  { %v16518_v41 = vpop.permute.xlu1 %2659 }
 0x459   :  { %v2671_v18 = vadd.f32 %v16518_v41, %v2645_v2  ;;  %v2949_v2 = vld [vmem:[%s21848_s26 + $0x3b0] sm:$0xff] }
 0x45a   :  { %v12238_v56 = vpack.c.bf16 %v2949_v2, %v2946_v52  ;;  %v2966_v52 = vld [vmem:[%s21848_s26 + $0x438] sm:$0xff] }
 0x45b   :  { %14068 = vtanh.f32 %v2671_v18  ;;  %v12297_v18 = vpack.c.bf16 %v2944_v43, %v2941_v36  ;;  %v2963_v43 = vld [vmem:[%s21848_s26 + $0x420] sm:$0xff]  ;;  %v2970_v2 = vld [vmem:[%s21848_s26 + $0x458] sm:$0xff] }
 0x45c   :  { %14070 = vtanh.f32 %v2615_v37  ;;  %v2967_v37 = vld [vmem:[%s21848_s26 + $0x440] sm:$0xff] }
 0x45d   :  { %14072 = vtanh.f32 %v2616_v5  ;;  %v12250_v5 = vpack.c.bf16 %v2967_v37, %v2964_v19 }
 0x461   :  { %v14067_v35 = vpop.eup %14066 }
 0x462   :  { %v2677_v55 = vmul.f32 %v14067_v35, %v2639_v29  ;;  %v2948_v29 = vld [vmem:[%s21848_s26 + $0x3a8] sm:$0xff] }
 0x463   :  { %v12240_v35 = vpack.c.bf16 %v2948_v29, %v2945_v58  ;;  %v12252_v29 = vpack.c.bf16 %v2966_v52, %v2963_v43 }
 0x464   :  { %v16543_v1 = vsel %vm1385_vm1, %v15973_v14, %v2677_v55  ;;  %v2938_v14 = vld [vmem:[%s21848_s26 + $0x358] sm:$0xff]  ;;  %v2953_v55 = vld [vmem:[%s21848_s26 + $0x3d0] sm:$0xff] }
 0x465   :  { %v14069_v48 = vpop.eup %14068  ;;  %4798 = vrot.lane.b32.xlu0 %v16543_v1, %s14144_s27  ;;  %3056 = vmatprep.mubr.f32.mxu0 %v16543_v1  ;;  %v12294_v30 = vpack.c.bf16 %v2938_v14, %v2935_v11  ;;  %v2960_v14 = vld [vmem:[%s21848_s26 + $0x408] sm:$0xff] }
 0x466   :  { %3222 = vmatprep.mubr.f32.mxu1 %v16543_v1  ;;  %3057 = vmatmul.mubr.f32.vlgmr.msra.gmra.mrb[24].mxu0 %v15977_v13  ;;  %v16570_v25 = vmul.f32 %v14069_v48, %v2641_v22  ;;  %v2958_v22 = vld [vmem:[%s21848_s26 + $0x3f8] sm:$0xff]  ;;  %v14071_v24 = vpop.eup %14070  ;;  %v12248_v31 = vpack.c.bf16 %v2960_v14, %v2957_v38 }
 0x467   :  { %3223 = vmatmul.mubr.f32.vlgmr.msra.gmra.mrb[24].mxu1 %v15977_v13  ;;  %12229 = vmatpush1.bf16.msra.mxu0 %v12228_v63  ;;  %v2956_v63 = vld [vmem:[%s21848_s26 + $0x3e8] sm:$0xff] }
 0x468   :  { %12292 = vmatpush3.bf16.msra.mxu1 %v12291_v8  ;;  %12231 = vmatprep.subr.bf16.mxu0 %v12230_v46  ;;  %v2961_v8 = vld [vmem:[%s21848_s26 + $0x410] sm:$0xff]  ;;  %v13821_v46 = vadd.f32 %v16500_v59, %v15967_v49  ;;  %v12303_v11 = vpack.c.bf16 %v2956_v63, %v2953_v55  ;;  %v2962_v59 = vld [vmem:[%s21848_s26 + $0x418] sm:$0xff]  ;;  %v12256_v55 = vpack.c.bf16 %v2972_v28, %v2969_v3 }
 0x469   :  { %12293 = vmatprep.subr.bf16.mxu1 %v21643_v60  ;;  %v12246_v48 = vpack.c.bf16 %v2961_v8, %v2958_v22  ;;  %v12306_v36 = vpack.c.bf16 %v2962_v59, %v2959_v23  ;;  %v3361_v3 = vld [vmem:[%s21529_s12 + $0x110] sm:$0xff]  ;;  %v3362_v28 = vld [vmem:[%s21529_s12 + $0x118] sm:$0xff] }
 0x46a   :  { %v2628_v9 = vmul.f32 0.5, %v13821_v46 }
 0x46b   :  { %12233 = vmatpush1.bf16.msra.mxu0 %v12232_v51  ;;  %v13823_v51 = vadd.f32 %v16503_v44, %v15967_v49  ;;  %v2965_v49 = vld [vmem:[%s21848_s26 + $0x430] sm:$0xff]  ;;  %v2968_v44 = vld [vmem:[%s21848_s26 + $0x448] sm:$0xff] }
 0x46c   :  { %12295 = vmatpush3.bf16.msra.mxu1 %v12294_v30  ;;  %12235 = vmatprep.subr.bf16.mxu0 %v12234_v40  ;;  %v14073_v30 = vpop.eup %14072  ;;  %v2619_v40 = vadd.f32 1.0, %v14071_v24  ;;  %14074 = vtanh.f32 %v2628_v9  ;;  %v12309_v16 = vpack.c.bf16 %v2968_v44, %v2965_v49 }
 0x46d   :  { %12296 = vmatprep.subr.bf16.mxu1 %v21643_v60 }
 0x46e   :  { %v2621_v58 = vmul.f32 0.5, %v2619_v40 }
 0x46f   :  { %12237 = vmatpush1.bf16.msra.mxu0 %v12236_v10  ;;  %v2973_v10 = vld [vmem:[%s21848_s26 + $0x470] sm:$0xff] }
 0x470   :  { %12298 = vmatpush3.bf16.msra.mxu1 %v12297_v18  ;;  %12239 = vmatprep.subr.bf16.mxu0 %v12238_v56  ;;  %v2620_v18 = vadd.f32 1.0, %v14073_v30  ;;  %v2630_v56 = vmul.f32 0.5, %v13823_v51  ;;  %v12254_v47 = vpack.c.bf16 %v2973_v10, %v2970_v2  ;;  %v2644_v34 = vmul.f32 %v2621_v58, %v15990_v12  ;;  %v3343_v10 = vld [vmem:[%s21529_s12 + $0x80] sm:$0xff] }
 0x471   :  { %12299 = vmatprep.subr.bf16.mxu1 %v21643_v60  ;;  %v3327_v58 = vld [vmem:[%s21529_s12] sm:$0xff] }
 0x472   :  { %14076 = vtanh.f32 %v2630_v56  ;;  %v3344_v56 = vld [vmem:[%s21529_s12 + $0x88] sm:$0xff] }
 0x473   :  { %12241 = vmatpush1.bf16.msra.mxu0 %v12240_v35  ;;  %v2971_v35 = vld [vmem:[%s21848_s26 + $0x460] sm:$0xff] }
 0x474   :  { %12301 = vmatpush3.bf16.msra.mxu1 %v12300_v39  ;;  %12243 = vmatprep.subr.bf16.mxu0 %v12242_v17  ;;  %v2974_v39 = vld [vmem:[%s21848_s26 + $0x478] sm:$0xff]  ;;  %v2622_v17 = vmul.f32 0.5, %v2620_v18  ;;  %s14146_s26 = smov 32  }
 0x475   :  { %12302 = vmatprep.subr.bf16.mxu1 %v21643_v60  ;;  %v12312_v22 = vpack.c.bf16 %v2974_v39, %v2971_v35  ;;  %v3345_v35 = vld [vmem:[%s21529_s12 + $0x90] sm:$0xff]  ;;  %v12350_v39 = vpack.c.bf16 %v3362_v28, %v3361_v3  ;;  %v3372_v3 = vld [vmem:[%s21529_s12 + $0x168] sm:$0xff] }
 0x476   :  { %v2646_v46 = vmul.f32 %v2622_v17, %v15998_v53  ;;  %v2684_v53 = vsel %vm1385_vm1, %v16003_v54, %v16570_v25  ;;  %v3346_v17 = vld [vmem:[%s21529_s12 + $0x98] sm:$0xff] }
 0x477   :  { %12245 = vmatpush1.bf16.msra.mxu0 %v12244_v7 }
 0x478   :  { %12304 = vmatpush3.bf16.msra.mxu1 %v12303_v11  ;;  %12247 = vmatprep.subr.bf16.mxu0 %v12246_v48 }
 0x479   :  { %12305 = vmatprep.subr.bf16.mxu1 %v21643_v60 }
 0x47b   :  { %12249 = vmatpush1.bf16.msra.mxu0 %v12248_v31 }
 0x47c   :  { %12307 = vmatpush3.bf16.msra.mxu1 %v12306_v36  ;;  %12251 = vmatprep.subr.bf16.mxu0 %v12250_v5 }
 0x47d   :  { %12308 = vmatprep.subr.bf16.mxu1 %v21643_v60 }
 0x47f   :  { %v2658_v21 = vpop.permute.xlu0 %2657  ;;  %12253 = vmatpush1.bf16.msra.mxu0 %v12252_v29  ;;  %v3328_v29 = vld [vmem:[%s21529_s12 + $0x8] sm:$0xff] }
 0x480   :  { %v2663_v63 = vsel %vm1385_vm1, %v16514_v0, %v2658_v21  ;;  %12310 = vmatpush3.bf16.msra.mxu1 %v12309_v16  ;;  %12255 = vmatprep.subr.bf16.mxu0 %v12254_v47  ;;  %v14075_v0 = vpop.eup %14074  ;;  %v12314_v16 = vpack.c.bf16 %v3344_v56, %v3343_v10  ;;  %v12316_v47 = vpack.c.bf16 %v3328_v29, %v3327_v58  ;;  %v3330_v21 = vld [vmem:[%s21529_s12 + $0x18] sm:$0xff]  ;;  %v3353_v10 = vld [vmem:[%s21529_s12 + $0xd0] sm:$0xff] }
 0x481   :  { %v2670_v8 = vadd.f32 %v2663_v63, %v2644_v34  ;;  %12311 = vmatprep.subr.bf16.mxu1 %v21643_v60  ;;  %v14077_v19 = vpop.eup %14076  ;;  %v2636_v37 = vadd.f32 1.0, %v14075_v0  ;;  %v3329_v34 = vld [vmem:[%s21529_s12 + $0x10] sm:$0xff]  ;;  %v3363_v63 = vld [vmem:[%s21529_s12 + $0x120] sm:$0xff]  ;;  %v3338_v29 = vld [vmem:[%s21529_s12 + $0x58] sm:$0xff] }
 0x482   :  { %v2662_v7 = vpop.permute.xlu1 %2661  ;;  %v2638_v40 = vadd.f32 1.0, %v14077_v19  ;;  %v3337_v58 = vld [vmem:[%s21529_s12 + $0x50] sm:$0xff] }
 0x483   :  { %14078 = vtanh.f32 %v2670_v8  ;;  %v2664_v24 = vsel %vm1385_vm1, %v16518_v41, %v2662_v7  ;;  %v2692_v12 = vpop.permute.xlu0 %2691  ;;  %12257 = vmatpush1.bf16.msra.mxu0 %v12256_v55  ;;  %v12318_v55 = vpack.c.bf16 %v3346_v17, %v3345_v35  ;;  %v12320_v8 = vpack.c.bf16 %v3330_v21, %v3329_v34  ;;  %v3347_v7 = vld [vmem:[%s21529_s12 + $0xa0] sm:$0xff]  ;;  %v3340_v21 = vld [vmem:[%s21529_s12 + $0x68] sm:$0xff] }
 0x484   :  { %v2672_v11 = vadd.f32 %v2664_v24, %v2646_v46  ;;  %v2701_v48 = vsel %vm1385_vm1, %v2692_v12, %v15955_v26  ;;  %12313 = vmatpush3.bf16.msra.mxu1 %v12312_v22  ;;  %12346 = vmatprep.subr.bf16.mxu0 %v21643_v60  ;;  %v2642_v52 = vmul.f32 0.5, %v2638_v40  ;;  %v3364_v22 = vld [vmem:[%s21529_s12 + $0x128] sm:$0xff]  ;;  %v3355_v35 = vld [vmem:[%s21529_s12 + $0xe0] sm:$0xff] }
 0x485   :  { %v2707_v38 = vrot.slane %v2701_v48, 7  ;;  %12315 = vmatprep.subr.bf16.mxu1 %v12314_v16  ;;  %v12353_v46 = vpack.c.bf16 %v3364_v22, %v3363_v63  ;;  %v3348_v24 = vld [vmem:[%s21529_s12 + $0xa8] sm:$0xff]  ;;  %v12336_v16 = vpack.c.bf16 %v3338_v29, %v3337_v58  ;;  %v3339_v34 = vld [vmem:[%s21529_s12 + $0x60] sm:$0xff]  ;;  %v3373_v63 = vld [vmem:[%s21529_s12 + $0x170] sm:$0xff] }
 0x486   :  { %14080 = vtanh.f32 %v2672_v11  ;;  %v2690_v14 = vpop.permute.xlu1 %2689  ;;  %v3331_v11 = vld [vmem:[%s21529_s12 + $0x20] sm:$0xff]  ;;  %v3332_v48 = vld [vmem:[%s21529_s12 + $0x28] sm:$0xff]  ;;  %v3374_v22 = vld [vmem:[%s21529_s12 + $0x178] sm:$0xff] }
 0x487   :  { %v16699_v23 = vsel %vm2705_vm2, %v2684_v53, %v2707_v38  ;;  %v2697_v41 = vsel %vm1385_vm1, %v2690_v14, %v2692_v12  ;;  %v2696_v59 = vpop.permute.xlu0 %2695  ;;  %v12322_v12 = vpack.c.bf16 %v3348_v24, %v3347_v7  ;;  %v12324_v0 = vpack.c.bf16 %v3332_v48, %v3331_v11  ;;  %v3366_v53 = vld [vmem:[%s21529_s12 + $0x138] sm:$0xff] }
 0x488   :  { %v2706_v26 = vrot.slane %v2697_v41, 7  ;;  %v2702_v51 = vsel %vm1385_vm1, %v2696_v59, %v15961_v42  ;;  %4800 = vrot.lane.b32.xlu1 %v16699_v23, %s14144_s27  ;;  %3062 = vmatprep.mubr.f32.mxu0 %v16699_v23  ;;  %v2640_v42 = vmul.f32 0.5, %v2636_v37  ;;  %v3349_v41 = vld [vmem:[%s21529_s12 + $0xb0] sm:$0xff]  ;;  %v3358_v7 = vld [vmem:[%s21529_s12 + $0xf8] sm:$0xff] }
 0x489   :  { %v2711_v30 = vrot.slane %v2702_v51, 7  ;;  %3227 = vmatprep.mubr.f32.mxu1 %v16699_v23  ;;  %v3333_v37 = vld [vmem:[%s21529_s12 + $0x30] sm:$0xff]  ;;  %v3342_v11 = vld [vmem:[%s21529_s12 + $0x78] sm:$0xff] }
 0x48a   :  { %v16710_v54 = vsel %vm2705_vm2, %v16013_v62, %v2706_v26  ;;  %v2694_v25 = vpop.permute.xlu1 %2693 }
 0x48b   :  { %v16713_v9 = vsel %vm2705_vm2, %v2707_v38, %v2711_v30  ;;  %v2698_v31 = vsel %vm1385_vm1, %v2694_v25, %v2696_v59  ;;  %3063 = vmatmul.mubr.f32.gmra.mrb[26].mxu0 %v16710_v54  ;;  %3228 = vmatmul.mubr.f32.gmra.mrb[26].mxu1 %v16710_v54  ;;  %v3365_v38 = vld [vmem:[%s21529_s12 + $0x130] sm:$0xff]  ;;  %v3350_v59 = vld [vmem:[%s21529_s12 + $0xb8] sm:$0xff]  ;;  %v3367_v30 = vld [vmem:[%s21529_s12 + $0x140] sm:$0xff] }
 0x48c   :  { %v2709_v36 = vrot.slane %v2698_v31, 7  ;;  %5403 = vrot.lane.b32.xlu1 %v15977_v13, %s14144_s27  ;;  %4802 = vrot.lane.b32.xlu0 %v16713_v9, %s14144_s27  ;;  %v12356_v14 = vpack.c.bf16 %v3366_v53, %v3365_v38  ;;  %v12326_v19 = vpack.c.bf16 %v3350_v59, %v3349_v41  ;;  %v3368_v25 = vld [vmem:[%s21529_s12 + $0x148] sm:$0xff]  ;;  %v3351_v31 = vld [vmem:[%s21529_s12 + $0xc0] sm:$0xff] }
 0x48d   :  { %v14079_v62 = vpop.eup %14078  ;;  %3068 = vmatprep.mubr.f32.mxu0 %v16713_v9  ;;  %3232 = vmatprep.mubr.f32.mxu1 %v16713_v9  ;;  %v12359_v40 = vpack.c.bf16 %v3368_v25, %v3367_v30  ;;  %v2975_v41 = vld [vmem:[%s21530_s11] sm:$0x7] }
 0x48e   :  { %v16724_v5 = vmul.f32 %v14079_v62, %v2640_v42  ;;  %v16727_v43 = vsel %vm2705_vm2, %v2706_v26, %v2709_v36  ;;  %v3334_v26 = vld [vmem:[%s21529_s12 + $0x38] sm:$0xff]  ;;  %v3352_v42 = vld [vmem:[%s21529_s12 + $0xc8] sm:$0xff]  ;;  %v3335_v62 = vld [vmem:[%s21529_s12 + $0x40] sm:$0xff]  ;;  %v2980_v25 = vrot.slane %v2975_v41, %v15774_v4 }
 0x48f   :  { %3069 = vmatmul.mubr.f32.gmra.mrb[28].mxu0 %v16727_v43  ;;  %3233 = vmatmul.mubr.f32.gmra.mrb[28].mxu1 %v16727_v43  ;;  %v12328_v51 = vpack.c.bf16 %v3334_v26, %v3333_v37  ;;  %v12330_v36 = vpack.c.bf16 %v3352_v42, %v3351_v31  ;;  %v2988_v37 = vrot.slane %v2975_v41, %v15855_v20  ;;  %v5117_v20 = vld [vmem:[%s21537_s15 + $0x120] sm:$0xff]  ;;  %v5120_v4 = vld [vmem:[%s21537_s15 + $0x138] sm:$0xff] }
 0x490   :  { %v14081_v49 = vpop.eup %14080  ;;  %5405 = vrot.lane.b32.xlu1 %v16710_v54, %s14144_s27  ;;  %5412 = vrot.lane.b32.xlu0 %v16543_v1, %s14142_s30 }
 0x491   :  { %v2680_v44 = vmul.f32 %v14081_v49, %v2642_v52  ;;  %3139 = vmatprep.mubr.f32.mxu0 %v21681_v33  ;;  %11083 = vmatprep.mubr.msk.f32.mxu1 %vm14145_vm3, %v21681_v33  ;;  %v3336_v52 = vld [vmem:[%s21529_s12 + $0x48] sm:$0xff] }
 0x492   :  { %v12332_v49 = vpack.c.bf16 %v3336_v52, %v3335_v62 }
 0x493   :  { %3140 = vmatmul.mubr.f32.vlgmr.msra.gmra.mrb[24].mxu0 %v16724_v5  ;;  %11084 = vmatmul.mubr.f32.vlgmr.msra.gmra.mrb[30].mxu1 %v16724_v5  ;;  %v16743_v2 = vsel %vm2705_vm2, %v2680_v44, %v2708_v45  ;;  %v3360_v45 = vld [vmem:[%s21529_s12 + $0x108] sm:$0xff]  ;;  %v3369_v44 = vld [vmem:[%s21529_s12 + $0x150] sm:$0xff] }
 0x494   :  { %5414 = vrot.lane.b32.xlu0 %v16699_v23, %s14142_s30  ;;  %5407 = vrot.lane.b32.xlu1 %v16727_v43, %s14144_s27  ;;  %v12347_v18 = vpack.c.bf16 %v3360_v45, %v3359_v57  ;;  %v3370_v57 = vld [vmem:[%s21529_s12 + $0x158] sm:$0xff] }
 0x495   :  { %3145 = vmatprep.mubr.f32.mxu0 %v21681_v33  ;;  %11086 = vmatprep.mubr.msk.f32.mxu1 %vm14145_vm3, %v21681_v33  ;;  %v12362_v45 = vpack.c.bf16 %v3370_v57, %v3369_v44 }
 0x496   :  { %12348 = vmatpush3.bf16.msra.mxu0 %v12347_v18  ;;  %12317 = vmatpush3.bf16.msra.mxu1 %v12316_v47  ;;  %v3354_v18 = vld [vmem:[%s21529_s12 + $0xd8] sm:$0xff]  ;;  %v3371_v47 = vld [vmem:[%s21529_s12 + $0x160] sm:$0xff] }
 0x497   :  { %3146 = vmatmul.mubr.f32.gmra.mrb[26].mxu0 %v16743_v2  ;;  %11087 = vmatmul.mubr.f32.gmra.mrb[32].mxu1 %v16743_v2  ;;  %v12334_v56 = vpack.c.bf16 %v3354_v18, %v3353_v10  ;;  %v12365_v28 = vpack.c.bf16 %v3372_v3, %v3371_v47 }
 0x498   :  { %5416 = vrot.lane.b32.xlu0 %v16713_v9, %s14142_s30  ;;  %6016 = vrot.lane.b32.xlu1 %v15977_v13, %s14142_s30 }
 0x499   :  { %3151 = vmatprep.mubr.f32.mxu0 %v21681_v33  ;;  %11089 = vmatprep.mubr.msk.f32.mxu1 %vm14145_vm3, %v21681_v33 }
 0x49a   :  { %12349 = vmatprep.subr.bf16.mxu0 %v21643_v60  ;;  %12319 = vmatprep.subr.bf16.mxu1 %v12318_v55  ;;  %v12340_v55 = vpack.c.bf16 %v3340_v21, %v3339_v34 }
 0x49b   :  { %3152 = vmatmul.mubr.f32.gmra.mrb[28].mxu0 %v16040_v27  ;;  %11090 = vmatmul.mubr.f32.gmra.mrb[34].mxu1 %v16040_v27 }
 0x49c   :  { %6027 = vrot.lane.b32.xlu0 %v16724_v5, %s14146_s26  ;;  %6018 = vrot.lane.b32.xlu1 %v16710_v54, %s14142_s30 }
 0x49d   :  { %11124 = vmatprep.mubr.msk.f32.mxu0 %vm14145_vm3, %v21681_v33  ;;  %12351 = vmatpush3.bf16.msra.mxu0 %v12350_v39  ;;  %v3356_v39 = vld [vmem:[%s21529_s12 + $0xe8] sm:$0xff] }
 0x49e   :  { %12352 = vmatprep.subr.bf16.mxu0 %v21643_v60  ;;  %12321 = vmatpush3.bf16.msra.mxu1 %v12320_v8  ;;  %v12338_v17 = vpack.c.bf16 %v3356_v39, %v3355_v35  ;;  %v12368_v8 = vpack.c.bf16 %v3374_v22, %v3373_v63 }
 0x49f   :  { %12323 = vmatprep.subr.bf16.mxu1 %v12322_v12  ;;  %v3341_v12 = vld [vmem:[%s21529_s12 + $0x70] sm:$0xff] }
 0x4a0   :  { %6029 = vrot.lane.b32.xlu0 %v16743_v2, %s14146_s26  ;;  %6020 = vrot.lane.b32.xlu1 %v16727_v43, %s14142_s30  ;;  %v12344_v48 = vpack.c.bf16 %v3342_v11, %v3341_v12 }
 0x4a1   :  { %12354 = vmatpush3.bf16.msra.mxu0 %v12353_v46  ;;  %v3357_v46 = vld [vmem:[%s21529_s12 + $0xf0] sm:$0xff] }
 0x4a2   :  { %12355 = vmatprep.subr.bf16.mxu0 %v21643_v60  ;;  %12325 = vmatpush3.bf16.msra.mxu1 %v12324_v0  ;;  %v12342_v24 = vpack.c.bf16 %v3358_v7, %v3357_v46 }
 0x4a3   :  { %12327 = vmatprep.subr.bf16.mxu1 %v12326_v19 }
 0x4a4   :  { %6031 = vrot.lane.b32.xlu0 %v16040_v27, %s14146_s26  ;;  %6631 = vrot.lane.b32.xlu1 %v15977_v13, %s14146_s26 }
 0x4a5   :  { %12357 = vmatpush3.bf16.msra.mxu0 %v12356_v14 }
 0x4a6   :  { %12358 = vmatprep.subr.bf16.mxu0 %v21643_v60  ;;  %12329 = vmatpush3.bf16.msra.mxu1 %v12328_v51 }
 0x4a7   :  { %12331 = vmatprep.subr.bf16.mxu1 %v12330_v36 }
 0x4a8   :  { %6633 = vrot.lane.b32.xlu0 %v16710_v54, %s14146_s26  ;;  %6635 = vrot.lane.b32.xlu1 %v16727_v43, %s14146_s26 }
 0x4a9   :  { %12360 = vmatpush3.bf16.msra.mxu0 %v12359_v40  ;;  %v2984_v40 = vrot.slane %v2975_v41, %v15803_v50  ;;  %v5119_v50 = vld [vmem:[%s21537_s15 + $0x130] sm:$0xff] }
 0x4aa   :  { %12361 = vmatprep.subr.bf16.mxu0 %v21643_v60  ;;  %12333 = vmatpush3.bf16.msra.mxu1 %v12332_v49 }
 0x4ab   :  { %12335 = vmatprep.subr.bf16.mxu1 %v12334_v56 }
 0x4ac   :  { %7235 = vrot.lane.b32.xlu0 %v16724_v5, %s14144_s27  ;;  %7237 = vrot.lane.b32.xlu1 %v16743_v2, %s14144_s27 }
 0x4ad   :  { %12363 = vmatpush3.bf16.msra.mxu0 %v12362_v45 }
 0x4ae   :  { %12364 = vmatprep.subr.bf16.mxu0 %v21643_v60  ;;  %12337 = vmatpush3.bf16.msra.mxu1 %v12336_v16 }
 0x4af   :  { %12339 = vmatprep.subr.bf16.mxu1 %v12338_v17 }
 0x4b0   :  { %7239 = vrot.lane.b32.xlu0 %v16040_v27, %s14144_s27  ;;  %7839 = vrot.lane.b32.xlu1 %v16724_v5, %s14142_s30 }
 0x4b1   :  { %12366 = vmatpush3.bf16.msra.mxu0 %v12365_v28 }
 0x4b2   :  { %12367 = vmatprep.subr.bf16.mxu0 %v21643_v60  ;;  %12341 = vmatpush3.bf16.msra.mxu1 %v12340_v55 }
 0x4b3   :  { %12343 = vmatprep.subr.bf16.mxu1 %v12342_v24 }
 0x4b4   :  { %7841 = vrot.lane.b32.xlu0 %v16743_v2, %s14142_s30  ;;  %7843 = vrot.lane.b32.xlu1 %v16040_v27, %s14142_s30 }
 0x4b5   :  { %12369 = vmatpush3.bf16.msra.mxu0 %v12368_v8 }
 0x4b6   :  { %12405 = vmatprep.subr.bf16.mxu0 %v21643_v60  ;;  %12345 = vmatpush3.bf16.msra.mxu1 %v12344_v48 }
 0x4b7   :  { %12370 = vmatprep.subr.bf16.mxu1 %v21643_v60 }
 0x53a   :  { %v10151_v0 = vpop.f32.mrb[24].mxu1 }
 0x53b   :  { %v10152_v38 = vpop.f32.mrb[25].mxu1 }
 0x53c   :  { %v10153_v53 = vadd.f32 %v10152_v38, %v10151_v0 }
 0x53e   :  { %v3225_v31 = vadd.f32 %v10153_v53, %v2988_v37 }
 0x55e   :  { %v10154_v14 = vpop.f32.mrb[26].mxu1 }
 0x55f   :  { %v10155_v59 = vpop.f32.mrb[27].mxu1 }
 0x560   :  { %v10156_v19 = vadd.f32 %v10155_v59, %v10154_v14 }
 0x562   :  { %v10157_v26 = vpop.f32.mrb[28].mxu1  ;;  %v3230_v45 = vadd.f32 %v10156_v19, %v2988_v37 }
 0x563   :  { %v10158_v51 = vpop.f32.mrb[29].mxu1 }
 0x564   :  { %v10159_v30 = vadd.f32 %v10158_v51, %v10157_v26 }
 0x566   :  { %v3141_v42 = vpop.f32.mrb[24].mxu0  ;;  %v3304_v36 = vpop.f32.mrb[30].mxu1  ;;  %v3235_v3 = vadd.f32 %v10159_v30, %v2988_v37 }
 0x567   :  { %v3305_v62 = vadd.f32 %v3304_v36, %v3225_v31  ;;  %v3143_v52 = vpop.f32.mrb[25].mxu0  ;;  %v11085_v49 = vpop.f32.mrb[31].mxu1  ;;  %v13848_v44 = vadd.f32 %v3141_v42, %v2980_v25 }
 0x568   :  { %v13849_v57 = vadd.f32 %v3143_v52, %v2984_v40 }
 0x569   :  { %14082 = vtanh.f32 %v3305_v62 }
 0x56a   :  { %v3147_v10 = vpop.f32.mrb[26].mxu0  ;;  %v3309_v18 = vpop.f32.mrb[32].mxu1  ;;  %14084 = vtanh.f32 %v13849_v57 }
 0x56b   :  { %v3310_v56 = vadd.f32 %v3309_v18, %v3230_v45  ;;  %v3149_v58 = vpop.f32.mrb[27].mxu0  ;;  %v11088_v29 = vpop.f32.mrb[33].mxu1  ;;  %14086 = vtanh.f32 %v13848_v44  ;;  %v13850_v16 = vadd.f32 %v3147_v10, %v2980_v25 }
 0x56c   :  { %v13851_v47 = vadd.f32 %v3149_v58, %v2984_v40 }
 0x56d   :  { %14088 = vtanh.f32 %v3310_v56 }
 0x56e   :  { %v3153_v28 = vpop.f32.mrb[28].mxu0  ;;  %v3314_v35 = vpop.f32.mrb[34].mxu1  ;;  %14090 = vtanh.f32 %v13851_v47 }
 0x56f   :  { %v3315_v39 = vadd.f32 %v3314_v35, %v3235_v3  ;;  %v3155_v17 = vpop.f32.mrb[29].mxu0  ;;  %v11091_v34 = vpop.f32.mrb[35].mxu1  ;;  %14092 = vtanh.f32 %v13850_v16  ;;  %v13852_v21 = vadd.f32 %v3153_v28, %v2980_v25 }
 0x570   :  { %v13853_v55 = vadd.f32 %v3155_v17, %v2984_v40 }
 0x571   :  { %14094 = vtanh.f32 %v3315_v39 }
 0x572   :  { %14096 = vtanh.f32 %v13853_v55  ;;  %v16965_v55 = vld [vmem:[%s21531_s1] sm:$0x3] }
 0x573   :  { %v14083_v63 = vpop.eup %14082  ;;  %14098 = vtanh.f32 %v13852_v21 }
 0x574   :  { %v14085_v22 = vpop.eup %14084  ;;  %11125 = vmatmul.mubr.f32.vlgmr.msra.gmra.mrb[30].mxu0 %v14083_v63 }
 0x575   :  { %v14087_v8 = vpop.eup %14086  ;;  %3439 = vmatprep.mubr.f32.mxu1 %v14085_v22  ;;  %11127 = vmatprep.mubr.msk.f32.mxu0 %vm14145_vm3, %v21681_v33  ;;  %v2730_v22 = vld [vmem:[%s21532_s3 + $0x10] sm:$0xff] }
 0x576   :  { %3440 = vmatmul.mubr.f32.vlgmr.msra.gmra.mrb[36].mxu1 %v14087_v8  ;;  %v2733_v8 = vld [vmem:[%s21532_s3 + $0x28] sm:$0xff] }
 0x577   :  { %v14089_v46 = vpop.eup %14088 }
 0x578   :  { %v14091_v7 = vpop.eup %14090  ;;  %11128 = vmatmul.mubr.f32.gmra.mrb[32].mxu0 %v14089_v46  ;;  %v12406_v46 = vpack.c.bf16 %v2733_v8, %v2730_v22  ;;  %v2743_v22 = vld [vmem:[%s21532_s3 + $0x78] sm:$0xff] }
 0x579   :  { %v14093_v24 = vpop.eup %14092  ;;  %3444 = vmatprep.mubr.f32.mxu1 %v14091_v7  ;;  %11130 = vmatprep.mubr.msk.f32.mxu0 %vm14145_vm3, %v21681_v33  ;;  %v2736_v7 = vld [vmem:[%s21532_s3 + $0x40] sm:$0xff]  ;;  %v2747_v8 = vld [vmem:[%s21532_s3 + $0x98] sm:$0xff] }
 0x57a   :  { %3445 = vmatmul.mubr.f32.gmra.mrb[38].mxu1 %v14093_v24  ;;  %v2739_v24 = vld [vmem:[%s21532_s3 + $0x58] sm:$0xff]  ;;  %12407 = vmatpush3.bf16.msra.mxu0 %v12406_v46  ;;  %v2750_v46 = vld [vmem:[%s21532_s3 + $0xb0] sm:$0xff] }
 0x57b   :  { %v14095_v12 = vpop.eup %14094  ;;  %12408 = vmatprep.subr.bf16.mxu0 %v21643_v60 }
 0x57c   :  { %v14097_v11 = vpop.eup %14096  ;;  %11131 = vmatmul.mubr.f32.gmra.mrb[34].mxu0 %v14095_v12  ;;  %v12409_v12 = vpack.c.bf16 %v2739_v24, %v2736_v7  ;;  %v2727_v7 = vld [vmem:[%s21533_s2 + $0x10] sm:$0x3] }
 0x57d   :  { %v14099_v48 = vpop.eup %14098  ;;  %3449 = vmatprep.mubr.f32.mxu1 %v14097_v11  ;;  %11185 = vmatprep.mubr.msk.f32.mxu0 %vm14145_vm3, %v21681_v33  ;;  %v2742_v11 = vld [vmem:[%s21532_s3 + $0x70] sm:$0xff] }
 0x57e   :  { %3450 = vmatmul.mubr.f32.gmra.mrb[40].mxu1 %v14099_v48  ;;  %v2745_v48 = vld [vmem:[%s21532_s3 + $0x88] sm:$0xff]  ;;  %12410 = vmatpush3.bf16.msra.mxu0 %v12409_v12  ;;  %v12385_v12 = vpack.c.bf16 %v2750_v46, %v2747_v8  ;;  %v4057_v46 = vld [vmem:[%s21535_s13 + $0x38] sm:$0xff] }
 0x57f   :  { %11139 = vmatprep.mubr.msk.f32.mxu1 %vm14145_vm3, %v21681_v33  ;;  %12411 = vmatprep.subr.bf16.mxu0 %v21643_v60 }
 0x647   :  { %v3521_v0 = vpop.f32.mrb[30].mxu0 }
 0x648   :  { %v11126_v38 = vpop.f32.mrb[31].mxu0 }
 0x649   :  { %v10211_v53 = vpop.f32.mrb[36].mxu1  ;;  %v2748_v38 = vld [vmem:[%s21532_s3 + $0xa0] sm:$0xff] }
 0x64a   :  { %v10212_v14 = vpop.f32.mrb[37].mxu1 }
 0x64b   :  { %v10213_v41 = vadd.f32 %v10212_v14, %v10211_v53  ;;  %v3526_v59 = vpop.f32.mrb[32].mxu0  ;;  %v2751_v53 = vld [vmem:[%s21532_s3 + $0xb8] sm:$0xff] }
 0x64c   :  { %v11129_v19 = vpop.f32.mrb[33].mxu0  ;;  %v12415_v14 = vpack.c.bf16 %v2751_v53, %v2748_v38  ;;  %v2756_v38 = vld [vmem:[%s21532_s3 + $0xe0] sm:$0xff] }
 0x64d   :  { %v3522_v37 = vadd.f32 %v10213_v41, %v3521_v0  ;;  %v10214_v26 = vpop.f32.mrb[38].mxu1  ;;  %v12412_v0 = vpack.c.bf16 %v2745_v48, %v2742_v11  ;;  %v2754_v41 = vld [vmem:[%s21532_s3 + $0xd0] sm:$0xff]  ;;  %v2749_v48 = vld [vmem:[%s21532_s3 + $0xa8] sm:$0xff] }
 0x64e   :  { %v10215_v51 = vpop.f32.mrb[39].mxu1  ;;  %v2746_v11 = vld [vmem:[%s21532_s3 + $0x90] sm:$0xff] }
 0x64f   :  { %v10216_v30 = vadd.f32 %v10215_v51, %v10214_v26  ;;  %v3531_v25 = vpop.f32.mrb[34].mxu0  ;;  %12413 = vmatpush3.bf16.msra.mxu0 %v12412_v0  ;;  %v2763_v26 = vld [vmem:[%s21532_s3 + $0x118] sm:$0xff]  ;;  %v2753_v0 = vld [vmem:[%s21532_s3 + $0xc8] sm:$0xff]  ;;  %v12387_v53 = vpack.c.bf16 %v2749_v48, %v2746_v11 }
 0x650   :  { %v11132_v40 = vpop.f32.mrb[35].mxu0  ;;  %12414 = vmatprep.subr.bf16.mxu0 %v21643_v60  ;;  %v4063_v11 = vld [vmem:[%s21535_s13 + $0x68] sm:$0xff]  ;;  %v4069_v48 = vld [vmem:[%s21535_s13 + $0x98] sm:$0xff] }
 0x651   :  { %v3527_v31 = vadd.f32 %v10216_v30, %v3526_v59  ;;  %v10217_v42 = vpop.f32.mrb[40].mxu1  ;;  %v2757_v59 = vld [vmem:[%s21532_s3 + $0xe8] sm:$0xff]  ;;  %v2766_v30 = vld [vmem:[%s21532_s3 + $0x130] sm:$0xff] }
 0x652   :  { %v10218_v36 = vpop.f32.mrb[41].mxu1  ;;  %v12418_v19 = vpack.c.bf16 %v2757_v59, %v2754_v41  ;;  %v2752_v41 = vld [vmem:[%s21532_s3 + $0xc0] sm:$0xff]  ;;  %v2755_v59 = vld [vmem:[%s21532_s3 + $0xd8] sm:$0xff] }
 0x653   :  { %v3537_v62 = vmax.f32 %v3522_v37, %v3527_v31  ;;  %v10219_v52 = vadd.f32 %v10218_v36, %v10217_v42  ;;  %12416 = vmatpush3.bf16.msra.mxu0 %v12415_v14  ;;  %v2729_v36 = vld [vmem:[%s21532_s3 + $0x8] sm:$0xff]  ;;  %v12389_v14 = vpack.c.bf16 %v2756_v38, %v2753_v0  ;;  %v12440_v0 = vpack.c.bf16 %v4069_v48, %v4063_v11  ;;  %v4062_v38 = vld [vmem:[%s21535_s13 + $0x60] sm:$0xff]  ;;  %v4152_v48 = vld [vmem:[%s21535_s13 + $0x330] sm:$0xff] }
 0x654   :  { %12417 = vmatprep.subr.bf16.mxu0 %v21643_v60  ;;  %v4146_v11 = vld [vmem:[%s21535_s13 + $0x300] sm:$0xff] }
 0x655   :  { %v3532_v49 = vadd.f32 %v10219_v52, %v3531_v25  ;;  %v2769_v25 = vld [vmem:[%s21532_s3 + $0x148] sm:$0xff]  ;;  %v2728_v52 = vld [vmem:[%s21532_s3] sm:$0xff] }
 0x656   :  { %v12424_v40 = vpack.c.bf16 %v2769_v25, %v2766_v30  ;;  %v2758_v30 = vld [vmem:[%s21532_s3 + $0xf0] sm:$0xff]  ;;  %v2761_v25 = vld [vmem:[%s21532_s3 + $0x108] sm:$0xff] }
 0x657   :  { %v3536_v44 = vsel %vm3535_vm4, %v3532_v49, -inf  ;;  %12419 = vmatpush3.bf16.msra.mxu0 %v12418_v19  ;;  %v2759_v19 = vld [vmem:[%s21532_s3 + $0xf8] sm:$0xff] }
 0x658   :  { %v3538_v57 = vmax.f32 %v3537_v62, %v3536_v44  ;;  %12420 = vmatprep.subr.bf16.mxu0 %v21643_v60  ;;  %v2732_v62 = vld [vmem:[%s21532_s3 + $0x20] sm:$0xff]  ;;  %v2735_v44 = vld [vmem:[%s21532_s3 + $0x38] sm:$0xff] }
 0x65a   :  { %v3539_v45 = vrot.slane %v3538_v57, 4 }
 0x65c   :  { %v3540_v10 = vmax.f32 %v3538_v57, %v3539_v45  ;;  %v2738_v57 = vld [vmem:[%s21532_s3 + $0x50] sm:$0xff]  ;;  %v12373_v45 = vpack.c.bf16 %v2732_v62, %v2729_v36  ;;  %v2764_v62 = vld [vmem:[%s21532_s3 + $0x120] sm:$0xff] }
 0x65e   :  { %v3541_v18 = vrot.slane %v3540_v10, 2 }
 0x660   :  { %v3542_v56 = vmax.f32 %v3540_v10, %v3541_v18  ;;  %v2725_v10 = vld [vmem:[%s21533_s2] sm:$0xff] }
 0x662   :  { %v3543_v58 = vrot.slane %v3542_v56, 1 }
 0x664   :  { %v3544_v29 = vmax.f32 %v3542_v56, %v3543_v58  ;;  %v12377_v58 = vpack.c.bf16 %v2738_v57, %v2735_v44  ;;  %v2774_v44 = vld [vmem:[%s21532_s3 + $0x170] sm:$0xff] }
 0x666   :  { %v3545_v16 = vsub.f32 %v3522_v37, %v3544_v29  ;;  %v3546_v47 = vsub.f32 %v3527_v31, %v3544_v29  ;;  %v3547_v3 = vsub.f32 %v3532_v49, %v3544_v29  ;;  %v2760_v37 = vld [vmem:[%s21532_s3 + $0x100] sm:$0xff]  ;;  %v2731_v49 = vld [vmem:[%s21532_s3 + $0x18] sm:$0xff]  ;;  %v2734_v29 = vld [vmem:[%s21532_s3 + $0x30] sm:$0xff] }
 0x667   :  { %v12421_v51 = vpack.c.bf16 %v2763_v26, %v2760_v37  ;;  %v12375_v18 = vpack.c.bf16 %v2731_v49, %v2728_v52  ;;  %v2762_v37 = vld [vmem:[%s21532_s3 + $0x110] sm:$0xff]  ;;  %v12391_v26 = vpack.c.bf16 %v2755_v59, %v2752_v41  ;;  %v2767_v52 = vld [vmem:[%s21532_s3 + $0x138] sm:$0xff]  ;;  %v4075_v41 = vld [vmem:[%s21535_s13 + $0xc8] sm:$0xff] }
 0x668   :  { %v3548_v28 = vmul.f32 1.442695, %v3545_v16  ;;  %v3550_v35 = vmul.f32 1.442695, %v3546_v47  ;;  %v3552_v39 = vmul.f32 1.442695, %v3547_v3  ;;  %v12399_v57 = vpack.c.bf16 %v2767_v52, %v2764_v62 }
 0x669   :  { %12422 = vmatpush3.bf16.msra.mxu0 %v12421_v51  ;;  %v2737_v16 = vld [vmem:[%s21532_s3 + $0x48] sm:$0xff]  ;;  %v2744_v3 = vld [vmem:[%s21532_s3 + $0x80] sm:$0xff]  ;;  %v12393_v51 = vpack.c.bf16 %v2762_v37, %v2759_v19  ;;  %v2771_v49 = vld [vmem:[%s21532_s3 + $0x158] sm:$0xff] }
 0x66a   :  { %14100 = vpow2.f32 %v3548_v28  ;;  %12423 = vmatprep.subr.bf16.mxu0 %v21643_v60  ;;  %v2741_v47 = vld [vmem:[%s21532_s3 + $0x68] sm:$0xff]  ;;  %v4081_v59 = vld [vmem:[%s21535_s13 + $0xf8] sm:$0xff]  ;;  %v4074_v37 = vld [vmem:[%s21535_s13 + $0xc0] sm:$0xff] }
 0x66b   :  { %14102 = vpow2.f32 %v3550_v35  ;;  %v2726_v28 = vld [vmem:[%s21533_s2 + $0x8] sm:$0xff]  ;;  %v12379_v35 = vpack.c.bf16 %v2737_v16, %v2734_v29  ;;  %v2775_v29 = vld [vmem:[%s21532_s3 + $0x178] sm:$0xff]  ;;  %v12444_v19 = vpack.c.bf16 %v4081_v59, %v4075_v41  ;;  %v4158_v41 = vld [vmem:[%s21535_s13 + $0x360] sm:$0xff] }
 0x66c   :  { %14104 = vpow2.f32 %v3552_v39  ;;  %v12381_v39 = vpack.c.bf16 %v2744_v3, %v2741_v47  ;;  %v4099_v62 = vld [vmem:[%s21535_s13 + $0x188] sm:$0xff]  ;;  %v4105_v52 = vld [vmem:[%s21535_s13 + $0x1b8] sm:$0xff]  ;;  %v4164_v59 = vld [vmem:[%s21535_s13 + $0x390] sm:$0xff] }
 0x66d   :  { %12425 = vmatpush3.bf16.msra.mxu0 %v12424_v40  ;;  %v2765_v40 = vld [vmem:[%s21532_s3 + $0x128] sm:$0xff] }
 0x66e   :  { %12426 = vmatprep.subr.bf16.mxu0 %v21643_v60 }
 0x674   :  { %v16955_v17 = vpop.eup %14100 }
 0x675   :  { %v16957_v34 = vpop.eup %14102 }
 0x676   :  { %v12371_v21 = vpack.c.bf16 %v16957_v34, %v16955_v17  ;;  %v16967_v63 = vpop.eup %14104 }
 0x678   :  { %12372 = vmatpush3.bf16.msra.mxu1 %v12371_v21  ;;  %v2740_v21 = vld [vmem:[%s21532_s3 + $0x60] sm:$0xff] }
 0x679   :  { %11137 = vmatprep.subr.mxu1 %v21681_v33  ;;  %v12383_v24 = vpack.c.bf16 %v2743_v22, %v2740_v21 }
 0x67c   :  { %11138 = vmatpush3.msk.msra.mxu1 %vm3535_vm4, %v16967_v63 }
 0x67d   :  { %11140 = vmatmul.mubr.msk.f32.vlgmr.msra.gmra.mrb[42].mxu1 %vm3554_vm5, %v16965_v55  ;;  %11142 = vmatprep.subr.mxu1 %v21681_v33 }
 0x67e   :  { %11144 = vmatprep.mubr.msk.f32.mxu1 %vm14145_vm3, %v21681_v33 }
 0x750   :  { %v3627_v31 = vpop.f32.mrb[42].mxu1 }
 0x751   :  { %14106 = vrcp.f32 %v3627_v31  ;;  %v11141_v42 = vpop.f32.mrb[43].mxu1  ;;  %v2768_v31 = vld [vmem:[%s21532_s3 + $0x140] sm:$0xff] }
 0x752   :  { %v12395_v42 = vpack.c.bf16 %v2761_v25, %v2758_v30  ;;  %v12397_v36 = vpack.c.bf16 %v2768_v31, %v2765_v40  ;;  %v4087_v30 = vld [vmem:[%s21535_s13 + $0x128] sm:$0xff]  ;;  %v4093_v25 = vld [vmem:[%s21535_s13 + $0x158] sm:$0xff]  ;;  %v4086_v31 = vld [vmem:[%s21535_s13 + $0x120] sm:$0xff] }
 0x753   :  { %v12448_v40 = vpack.c.bf16 %v4093_v25, %v4087_v30  ;;  %v4170_v30 = vld [vmem:[%s21535_s13 + $0x3c0] sm:$0xff]  ;;  %v4176_v25 = vld [vmem:[%s21535_s13 + $0x3f0] sm:$0xff] }
 0x75b   :  { %v14107_v56 = vpop.eup %14106 }
 0x75c   :  { %11143 = vmatpush3.msk.msra.mxu1 %vm3535_vm4, %v14107_v56  ;;  %v2772_v56 = vld [vmem:[%s21532_s3 + $0x160] sm:$0xff] }
 0x75d   :  { %11145 = vmatmul.mubr.msk.f32.vlgmr.msra.gmra.mrb[44].mxu1 %vm3632_vm6, %v2725_v10  ;;  %12374 = vmatprep.subr.bf16.mxu1 %v12373_v45  ;;  %v12401_v45 = vpack.c.bf16 %v2774_v44, %v2771_v49  ;;  %v2770_v10 = vld [vmem:[%s21532_s3 + $0x150] sm:$0xff]  ;;  %v12427_v16 = vpack.c.bf16 %v2775_v29, %v2772_v56  ;;  %v12452_v49 = vpack.c.bf16 %v4105_v52, %v4099_v62  ;;  %v4098_v44 = vld [vmem:[%s21535_s13 + $0x180] sm:$0xff] }
 0x75e   :  { %11147 = vmatprep.mubr.msk.f32.mxu1 %vm14145_vm3, %v21681_v33  ;;  %12376 = vmatpush1.bf16.msra.mxu1 %v12375_v18  ;;  %v2773_v18 = vld [vmem:[%s21532_s3 + $0x168] sm:$0xff]  ;;  %v4116_v29 = vld [vmem:[%s21535_s13 + $0x210] sm:$0xff]  ;;  %v4182_v62 = vld [vmem:[%s21535_s13 + $0x420] sm:$0xff] }
 0x75f   :  { %12378 = vmatprep.subr.bf16.mxu1 %v12377_v58  ;;  %v12403_v58 = vpack.c.bf16 %v2773_v18, %v2770_v10  ;;  %12428 = vmatpush3.bf16.msra.mxu0 %v12427_v16  ;;  %v4111_v10 = vld [vmem:[%s21535_s13 + $0x1e8] sm:$0xff]  ;;  %v4117_v18 = vld [vmem:[%s21535_s13 + $0x218] sm:$0xff]  ;;  %v4188_v52 = vld [vmem:[%s21535_s13 + $0x450] sm:$0xff] }
 0x760   :  { %v12456_v56 = vpack.c.bf16 %v4117_v18, %v4111_v10  ;;  %v4194_v10 = vld [vmem:[%s21535_s13 + $0x480] sm:$0xff]  ;;  %v4200_v18 = vld [vmem:[%s21535_s13 + $0x4b0] sm:$0xff] }
 0x761   :  { %11148 = vmatmul.mubr.msk.f32.gmra.mrb[46].mxu1 %vm3632_vm6, %v2726_v28 }
 0x762   :  { %11150 = vmatprep.mubr.msk.f32.mxu1 %vm14145_vm3, %v21681_v33  ;;  %12380 = vmatpush1.bf16.msra.mxu1 %v12379_v35 }
 0x763   :  { %12382 = vmatprep.subr.bf16.mxu1 %v12381_v39 }
 0x765   :  { %11151 = vmatmul.mubr.msk.f32.gmra.mrb[48].mxu1 %vm3632_vm6, %v2727_v7 }
 0x766   :  { %12384 = vmatpush1.bf16.msra.mxu1 %v12383_v24  ;;  %3792 = vmatprep.mubr.f32.mxu1 %v21681_v33  ;;  %v4056_v24 = vld [vmem:[%s21535_s13 + $0x30] sm:$0xff] }
 0x767   :  { %12386 = vmatprep.subr.bf16.mxu1 %v12385_v12 }
 0x76a   :  { %12388 = vmatpush1.bf16.msra.mxu1 %v12387_v53  ;;  %v4068_v53 = vld [vmem:[%s21535_s13 + $0x90] sm:$0xff] }
 0x76b   :  { %12390 = vmatprep.subr.bf16.mxu1 %v12389_v14  ;;  %v12442_v14 = vpack.c.bf16 %v4068_v53, %v4062_v38  ;;  %v4159_v38 = vld [vmem:[%s21535_s13 + $0x368] sm:$0xff]  ;;  %v4165_v53 = vld [vmem:[%s21535_s13 + $0x398] sm:$0xff] }
 0x76e   :  { %12392 = vmatpush1.bf16.msra.mxu1 %v12391_v26  ;;  %v4080_v26 = vld [vmem:[%s21535_s13 + $0xf0] sm:$0xff] }
 0x76f   :  { %12394 = vmatprep.subr.bf16.mxu1 %v12393_v51  ;;  %v12446_v51 = vpack.c.bf16 %v4080_v26, %v4074_v37  ;;  %v4171_v37 = vld [vmem:[%s21535_s13 + $0x3c8] sm:$0xff]  ;;  %v4177_v26 = vld [vmem:[%s21535_s13 + $0x3f8] sm:$0xff] }
 0x772   :  { %12396 = vmatpush1.bf16.msra.mxu1 %v12395_v42  ;;  %v4092_v42 = vld [vmem:[%s21535_s13 + $0x150] sm:$0xff] }
 0x773   :  { %12398 = vmatprep.subr.bf16.mxu1 %v12397_v36  ;;  %v12450_v36 = vpack.c.bf16 %v4092_v42, %v4086_v31  ;;  %v4183_v31 = vld [vmem:[%s21535_s13 + $0x428] sm:$0xff]  ;;  %v4189_v42 = vld [vmem:[%s21535_s13 + $0x458] sm:$0xff] }
 0x776   :  { %12400 = vmatpush1.bf16.msra.mxu1 %v12399_v57  ;;  %v4104_v57 = vld [vmem:[%s21535_s13 + $0x1b0] sm:$0xff] }
 0x777   :  { %12402 = vmatprep.subr.bf16.mxu1 %v12401_v45  ;;  %v12454_v45 = vpack.c.bf16 %v4104_v57, %v4098_v44  ;;  %v4195_v44 = vld [vmem:[%s21535_s13 + $0x488] sm:$0xff]  ;;  %v4201_v57 = vld [vmem:[%s21535_s13 + $0x4b8] sm:$0xff] }
 0x77a   :  { %12404 = vmatpush1.bf16.msra.mxu1 %v12403_v58  ;;  %v4110_v58 = vld [vmem:[%s21535_s13 + $0x1e0] sm:$0xff] }
 0x77b   :  { %v12458_v16 = vpack.c.bf16 %v4116_v29, %v4110_v58  ;;  %v4207_v58 = vld [vmem:[%s21535_s13 + $0x4e8] sm:$0xff]  ;;  %v4213_v29 = vld [vmem:[%s21535_s13 + $0x518] sm:$0xff] }
 0x830   :  { %v3711_v47 = vpop.f32.mrb[44].mxu1 }
 0x831   :  { %v3725_v3 = vmul.f32 %v16955_v17, %v3711_v47  ;;  %v11146_v28 = vpop.f32.mrb[45].mxu1  ;;  %v4123_v47 = vld [vmem:[%s21535_s13 + $0x248] sm:$0xff] }
 0x833   :  { %9617 = vst [vmem:[%s21534_s21] sm:$0xff] %v3725_v3  ;;  %3793 = vmatmul.mubr.f32.vlgmr.msra.gmra.mrb[50].mxu1 %v3725_v3  ;;  %11186 = vmatmul.mubr.f32.vlgmr.msra.gmra.mrb[36].mxu0 %v3725_v3  ;;  %v4129_v3 = vld [vmem:[%s21535_s13 + $0x278] sm:$0xff] }
 0x834   :  { %v3716_v35 = vpop.f32.mrb[46].mxu1  ;;  %3798 = vmatprep.mubr.f32.mxu1 %v21681_v33  ;;  %11188 = vmatprep.mubr.msk.f32.mxu0 %vm14145_vm3, %v21681_v33  ;;  %v12460_v28 = vpack.c.bf16 %v4129_v3, %v4123_v47  ;;  %v4206_v47 = vld [vmem:[%s21535_s13 + $0x4e0] sm:$0xff]  ;;  %v4212_v3 = vld [vmem:[%s21535_s13 + $0x510] sm:$0xff] }
 0x835   :  { %v3726_v39 = vmul.f32 %v16957_v34, %v3716_v35  ;;  %v11149_v21 = vpop.f32.mrb[47].mxu1  ;;  %v4051_v34 = vld [vmem:[%s21535_s13 + $0x8] sm:$0xff]  ;;  %v4122_v35 = vld [vmem:[%s21535_s13 + $0x240] sm:$0xff] }
 0x836   :  { %v12436_v7 = vpack.c.bf16 %v4057_v46, %v4051_v34  ;;  %v4134_v34 = vld [vmem:[%s21535_s13 + $0x2a0] sm:$0xff]  ;;  %v4140_v46 = vld [vmem:[%s21535_s13 + $0x2d0] sm:$0xff] }
 0x837   :  { %9618 = vst [vmem:[%s21534_s21 + $0x8] sm:$0xff] %v3726_v39  ;;  %3799 = vmatmul.mubr.f32.gmra.mrb[52].mxu1 %v3726_v39  ;;  %11189 = vmatmul.mubr.f32.gmra.mrb[38].mxu0 %v3726_v39  ;;  %v4128_v39 = vld [vmem:[%s21535_s13 + $0x270] sm:$0xff] }
 0x838   :  { %v3721_v17 = vpop.f32.mrb[48].mxu1  ;;  %3804 = vmatprep.mubr.f32.mxu1 %v21681_v33  ;;  %11191 = vmatprep.mubr.msk.f32.mxu0 %vm14145_vm3, %v21681_v33  ;;  %v12462_v21 = vpack.c.bf16 %v4128_v39, %v4122_v35  ;;  %v4219_v35 = vld [vmem:[%s21535_s13 + $0x548] sm:$0xff]  ;;  %v4225_v39 = vld [vmem:[%s21535_s13 + $0x578] sm:$0xff] }
 0x839   :  { %v3727_v22 = vmul.f32 %v16967_v63, %v3721_v17  ;;  %v11152_v8 = vpop.f32.mrb[49].mxu1  ;;  %v4050_v63 = vld [vmem:[%s21535_s13] sm:$0xff]  ;;  %12437 = vmatprep.subr.bf16.mxu0 %v12436_v7  ;;  %v4135_v17 = vld [vmem:[%s21535_s13 + $0x2a8] sm:$0xff]  ;;  %v12466_v7 = vpack.c.bf16 %v4140_v46, %v4134_v34  ;;  %v4237_v46 = vld [vmem:[%s21535_s13 + $0x5d8] sm:$0xff] }
 0x83a   :  { %v12438_v12 = vpack.c.bf16 %v4056_v24, %v4050_v63  ;;  %v4147_v63 = vld [vmem:[%s21535_s13 + $0x308] sm:$0xff]  ;;  %v4153_v24 = vld [vmem:[%s21535_s13 + $0x338] sm:$0xff] }
 0x83b   :  { %9619 = vst [vmem:[%s21534_s21 + $0x10] sm:$0x3] %v3727_v22  ;;  %3805 = vmatmul.mubr.f32.gmra.mrb[54].mxu1 %v3727_v22  ;;  %11192 = vmatmul.mubr.f32.gmra.mrb[40].mxu0 %v3727_v22  ;;  %v4141_v22 = vld [vmem:[%s21535_s13 + $0x2d8] sm:$0xff]  ;;  %v4231_v34 = vld [vmem:[%s21535_s13 + $0x5a8] sm:$0xff] }
 0x83c   :  { %3973 = vmatprep.mubr.f32.mxu1 %v21681_v33  ;;  %12439 = vmatpush1.bf16.msra.mxu0 %v12438_v12  ;;  %v12464_v8 = vpack.c.bf16 %v4141_v22, %v4135_v17  ;;  %v12468_v12 = vpack.c.bf16 %v4153_v24, %v4147_v63  ;;  %v4218_v17 = vld [vmem:[%s21535_s13 + $0x540] sm:$0xff]  ;;  %v4224_v22 = vld [vmem:[%s21535_s13 + $0x570] sm:$0xff] }
 0x83d   :  { %12441 = vmatprep.subr.bf16.mxu0 %v12440_v0  ;;  %v12470_v0 = vpack.c.bf16 %v4152_v48, %v4146_v11  ;;  %v4230_v63 = vld [vmem:[%s21535_s13 + $0x5a0] sm:$0xff]  ;;  %v4236_v24 = vld [vmem:[%s21535_s13 + $0x5d0] sm:$0xff] }
 0x840   :  { %12443 = vmatpush1.bf16.msra.mxu0 %v12442_v14  ;;  %v12472_v14 = vpack.c.bf16 %v4165_v53, %v4159_v38 }
 0x841   :  { %12445 = vmatprep.subr.bf16.mxu0 %v12444_v19  ;;  %v12474_v19 = vpack.c.bf16 %v4164_v59, %v4158_v41 }
 0x844   :  { %12447 = vmatpush1.bf16.msra.mxu0 %v12446_v51  ;;  %v12476_v51 = vpack.c.bf16 %v4177_v26, %v4171_v37 }
 0x845   :  { %12449 = vmatprep.subr.bf16.mxu0 %v12448_v40  ;;  %v12478_v40 = vpack.c.bf16 %v4176_v25, %v4170_v30 }
 0x848   :  { %12451 = vmatpush1.bf16.msra.mxu0 %v12450_v36  ;;  %v12480_v36 = vpack.c.bf16 %v4189_v42, %v4183_v31 }
 0x849   :  { %12453 = vmatprep.subr.bf16.mxu0 %v12452_v49  ;;  %v12482_v49 = vpack.c.bf16 %v4188_v52, %v4182_v62 }
 0x84c   :  { %12455 = vmatpush1.bf16.msra.mxu0 %v12454_v45  ;;  %v12484_v45 = vpack.c.bf16 %v4201_v57, %v4195_v44 }
 0x84d   :  { %12457 = vmatprep.subr.bf16.mxu0 %v12456_v56  ;;  %v12486_v56 = vpack.c.bf16 %v4200_v18, %v4194_v10  ;;  %v4059_v10 = vld [vmem:[%s21535_s13 + $0x48] sm:$0xff]  ;;  %v4052_v18 = vld [vmem:[%s21535_s13 + $0x10] sm:$0xff] }
 0x850   :  { %12459 = vmatpush1.bf16.msra.mxu0 %v12458_v16  ;;  %v12488_v16 = vpack.c.bf16 %v4213_v29, %v4207_v58  ;;  %v4065_v58 = vld [vmem:[%s21535_s13 + $0x78] sm:$0xff]  ;;  %v4071_v29 = vld [vmem:[%s21535_s13 + $0xa8] sm:$0xff] }
 0x851   :  { %12461 = vmatprep.subr.bf16.mxu0 %v12460_v28  ;;  %v12490_v28 = vpack.c.bf16 %v4212_v3, %v4206_v47 }
 0x854   :  { %12463 = vmatpush1.bf16.msra.mxu0 %v12462_v21  ;;  %v12492_v21 = vpack.c.bf16 %v4225_v39, %v4219_v35  ;;  %v4064_v35 = vld [vmem:[%s21535_s13 + $0x70] sm:$0xff]  ;;  %v4070_v39 = vld [vmem:[%s21535_s13 + $0xa0] sm:$0xff] }
 0x855   :  { %12465 = vmatprep.subr.bf16.mxu0 %v12464_v8  ;;  %v12494_v8 = vpack.c.bf16 %v4224_v22, %v4218_v17  ;;  %v4083_v17 = vld [vmem:[%s21535_s13 + $0x108] sm:$0xff]  ;;  %v12538_v22 = vpack.c.bf16 %v4070_v39, %v4064_v35 }
 0x858   :  { %12467 = vmatpush1.bf16.msra.mxu0 %v12466_v7  ;;  %v12496_v7 = vpack.c.bf16 %v4237_v46, %v4231_v34  ;;  %v4076_v34 = vld [vmem:[%s21535_s13 + $0xd0] sm:$0xff]  ;;  %v4082_v46 = vld [vmem:[%s21535_s13 + $0x100] sm:$0xff] }
 0x859   :  { %12469 = vmatprep.subr.bf16.mxu0 %v12468_v12  ;;  %v12498_v12 = vpack.c.bf16 %v4236_v24, %v4230_v63  ;;  %v12542_v63 = vpack.c.bf16 %v4082_v46, %v4076_v34 }
 0x85c   :  { %12471 = vmatpush1.bf16.msra.mxu0 %v12470_v0 }
 0x85d   :  { %12473 = vmatprep.subr.bf16.mxu0 %v12472_v14 }
 0x860   :  { %12475 = vmatpush1.bf16.msra.mxu0 %v12474_v19 }
 0x861   :  { %12477 = vmatprep.subr.bf16.mxu0 %v12476_v51 }
 0x864   :  { %12479 = vmatpush1.bf16.msra.mxu0 %v12478_v40 }
 0x865   :  { %12481 = vmatprep.subr.bf16.mxu0 %v12480_v36 }
 0x868   :  { %12483 = vmatpush1.bf16.msra.mxu0 %v12482_v49 }
 0x869   :  { %12485 = vmatprep.subr.bf16.mxu0 %v12484_v45  ;;  %v4053_v45 = vld [vmem:[%s21535_s13 + $0x18] sm:$0xff] }
 0x86c   :  { %12487 = vmatpush1.bf16.msra.mxu0 %v12486_v56  ;;  %v4058_v56 = vld [vmem:[%s21535_s13 + $0x40] sm:$0xff] }
 0x86d   :  { %12489 = vmatprep.subr.bf16.mxu0 %v12488_v16  ;;  %v12532_v16 = vpack.c.bf16 %v4059_v10, %v4053_v45  ;;  %v12534_v3 = vpack.c.bf16 %v4058_v56, %v4052_v18  ;;  %v4136_v45 = vld [vmem:[%s21535_s13 + $0x2b0] sm:$0xff]  ;;  %v4142_v10 = vld [vmem:[%s21535_s13 + $0x2e0] sm:$0xff]  ;;  %v4149_v18 = vld [vmem:[%s21535_s13 + $0x318] sm:$0xff] }
 0x86e   :  { %v4155_v56 = vld [vmem:[%s21535_s13 + $0x348] sm:$0xff] }
 0x870   :  { %12491 = vmatpush1.bf16.msra.mxu0 %v12490_v28  ;;  %v12536_v28 = vpack.c.bf16 %v4071_v29, %v4065_v58  ;;  %v12562_v58 = vpack.c.bf16 %v4142_v10, %v4136_v45  ;;  %v12564_v29 = vpack.c.bf16 %v4155_v56, %v4149_v18  ;;  %v4232_v18 = vld [vmem:[%s21535_s13 + $0x5b0] sm:$0xff]  ;;  %v4238_v56 = vld [vmem:[%s21535_s13 + $0x5e0] sm:$0xff] }
 0x871   :  { %12493 = vmatprep.subr.bf16.mxu0 %v12492_v21  ;;  %v4077_v21 = vld [vmem:[%s21535_s13 + $0xd8] sm:$0xff] }
 0x874   :  { %12495 = vmatpush1.bf16.msra.mxu0 %v12494_v8  ;;  %v12540_v8 = vpack.c.bf16 %v4083_v17, %v4077_v21  ;;  %v4160_v21 = vld [vmem:[%s21535_s13 + $0x370] sm:$0xff]  ;;  %v4166_v17 = vld [vmem:[%s21535_s13 + $0x3a0] sm:$0xff] }
 0x875   :  { %12497 = vmatprep.subr.bf16.mxu0 %v12496_v7  ;;  %v4089_v7 = vld [vmem:[%s21535_s13 + $0x138] sm:$0xff]  ;;  %v12570_v34 = vpack.c.bf16 %v4166_v17, %v4160_v21  ;;  %v4248_v21 = vld [vmem:[%s21535_s13 + $0x630] sm:$0xff] }
 0x876   :  { %v4244_v17 = vld [vmem:[%s21535_s13 + $0x610] sm:$0xff] }
 0x878   :  { %12499 = vmatpush1.bf16.msra.mxu0 %v12498_v12  ;;  %v4088_v12 = vld [vmem:[%s21535_s13 + $0x130] sm:$0xff] }
 0x906   :  { %v3794_v11 = vpop.f32.mrb[50].mxu1  ;;  %v3877_v48 = vpop.f32.mrb[36].mxu0 }
 0x907   :  { %v3796_v0 = vpop.f32.mrb[51].mxu1  ;;  %v11187_v38 = vpop.f32.mrb[37].mxu0  ;;  %v3891_v41 = vmul.f32 %v3794_v11, %v15977_v13  ;;  %v3893_v59 = vmul.f32 %v3877_v48, %v16724_v5  ;;  %v4094_v11 = vld [vmem:[%s21535_s13 + $0x160] sm:$0xff]  ;;  %v4101_v48 = vld [vmem:[%s21535_s13 + $0x198] sm:$0xff] }
 0x908   :  { %v3892_v30 = vmul.f32 %v3796_v0, %v16543_v1  ;;  %v4107_v0 = vld [vmem:[%s21535_s13 + $0x1c8] sm:$0xff]  ;;  %v12546_v38 = vpack.c.bf16 %v4094_v11, %v4088_v12 }
 0x90a   :  { %v3800_v53 = vpop.f32.mrb[52].mxu1  ;;  %v3882_v14 = vpop.f32.mrb[38].mxu0 }
 0x90b   :  { %v3894_v19 = vmul.f32 %v3800_v53, %v16710_v54  ;;  %v3896_v37 = vmul.f32 %v3882_v14, %v16743_v2  ;;  %v3802_v26 = vpop.f32.mrb[53].mxu1  ;;  %v11190_v51 = vpop.f32.mrb[39].mxu0  ;;  %v12548_v53 = vpack.c.bf16 %v4107_v0, %v4101_v48  ;;  %v4100_v14 = vld [vmem:[%s21535_s13 + $0x190] sm:$0xff]  ;;  %v4190_v0 = vld [vmem:[%s21535_s13 + $0x460] sm:$0xff] }
 0x90c   :  { %v3895_v25 = vmul.f32 %v3802_v26, %v16699_v23  ;;  %v4112_v51 = vld [vmem:[%s21535_s13 + $0x1f0] sm:$0xff] }
 0x90d   :  { %v12431_v40 = vpack.c.bf16 %v3894_v19, %v3891_v41  ;;  %v12434_v31 = vpack.c.bf16 %v3896_v37, %v3893_v59  ;;  %v4106_v41 = vld [vmem:[%s21535_s13 + $0x1c0] sm:$0xff]  ;;  %v4113_v59 = vld [vmem:[%s21535_s13 + $0x1f8] sm:$0xff]  ;;  %v4119_v19 = vld [vmem:[%s21535_s13 + $0x228] sm:$0xff] }
 0x90e   :  { %v12429_v42 = vpack.c.bf16 %v3895_v25, %v3892_v30  ;;  %v3806_v36 = vpop.f32.mrb[54].mxu1  ;;  %v3887_v62 = vpop.f32.mrb[40].mxu0  ;;  %v12550_v37 = vpack.c.bf16 %v4106_v41, %v4100_v14  ;;  %v12552_v26 = vpack.c.bf16 %v4119_v19, %v4113_v59  ;;  %v4118_v30 = vld [vmem:[%s21535_s13 + $0x220] sm:$0xff]  ;;  %v4125_v25 = vld [vmem:[%s21535_s13 + $0x258] sm:$0xff]  ;;  %v4184_v48 = vld [vmem:[%s21535_s13 + $0x430] sm:$0xff] }
 0x90f   :  { %v3808_v52 = vpop.f32.mrb[55].mxu1  ;;  %v11193_v49 = vpop.f32.mrb[41].mxu0  ;;  %v3897_v57 = vmul.f32 %v3806_v36, %v16727_v43  ;;  %v3899_v47 = vmul.f32 %v3887_v62, %v16040_v27  ;;  %v4124_v36 = vld [vmem:[%s21535_s13 + $0x250] sm:$0xff]  ;;  %v4130_v62 = vld [vmem:[%s21535_s13 + $0x280] sm:$0xff]  ;;  %v12578_v14 = vpack.c.bf16 %v4190_v0, %v4184_v48 }
 0x910   :  { %v3898_v44 = vmul.f32 %v3808_v52, %v16713_v9  ;;  %12430 = vmatprep.subr.bf16.mxu1 %v12429_v42  ;;  %v4137_v52 = vld [vmem:[%s21535_s13 + $0x2b8] sm:$0xff]  ;;  %v4143_v49 = vld [vmem:[%s21535_s13 + $0x2e8] sm:$0xff]  ;;  %v4196_v59 = vld [vmem:[%s21535_s13 + $0x490] sm:$0xff] }
 0x911   :  { %12432 = vmatpush1.bf16.msra.mxu1 %v12431_v40  ;;  %v4131_v40 = vld [vmem:[%s21535_s13 + $0x288] sm:$0xff]  ;;  %v4202_v19 = vld [vmem:[%s21535_s13 + $0x4c0] sm:$0xff] }
 0x912   :  { %9672 = vmatprep.subr.msk.mxu1 %vm3535_vm4, %v3898_v44  ;;  %v12556_v42 = vpack.c.bf16 %v4131_v40, %v4125_v25  ;;  %v12558_v44 = vpack.c.bf16 %v4130_v62, %v4124_v36  ;;  %v4208_v25 = vld [vmem:[%s21535_s13 + $0x4f0] sm:$0xff]  ;;  %v4214_v40 = vld [vmem:[%s21535_s13 + $0x520] sm:$0xff] }
 0x913   :  { %v12586_v36 = vpack.c.bf16 %v4214_v40, %v4208_v25  ;;  %v4272_v25 = vld [vmem:[%s21535_s13 + $0x6f0] sm:$0xff] }
 0x915   :  { %9673 = vmatpush1.msk.msra.mxu1 %vm3535_vm4, %v3897_v57  ;;  %v12560_v57 = vpack.c.bf16 %v4143_v49, %v4137_v52  ;;  %v4220_v52 = vld [vmem:[%s21535_s13 + $0x550] sm:$0xff]  ;;  %v4226_v49 = vld [vmem:[%s21535_s13 + $0x580] sm:$0xff] }
 0x916   :  { %9674 = vmatmul.mubr.msk.f32.vlgmr.msra.gmra.mrb[56].mxu1 %vm3554_vm5, %v16965_v55  ;;  %12433 = vmatprep.subr.bf16.mxu1 %v21643_v60  ;;  %v12590_v45 = vpack.c.bf16 %v4226_v49, %v4220_v52  ;;  %v4285_v52 = vld [vmem:[%s21535_s13 + $0x758] sm:$0xff] }
 0x917   :  { %12435 = vmatpush3.bf16.msra.mxu1 %v12434_v31  ;;  %11200 = vmatprep.mubr.msk.f32.mxu1 %vm14145_vm3, %v21681_v33  ;;  %v12554_v31 = vpack.c.bf16 %v4118_v30, %v4112_v51  ;;  %v12582_v51 = vpack.c.bf16 %v4202_v19, %v4196_v59  ;;  %v4273_v59 = vld [vmem:[%s21535_s13 + $0x6f8] sm:$0xff] }
 0x918   :  { %11198 = vmatprep.subr.mxu1 %v21681_v33  ;;  %v4269_v19 = vld [vmem:[%s21535_s13 + $0x6d8] sm:$0xff] }
 0x919   :  { %v4281_v49 = vld [vmem:[%s21535_s13 + $0x738] sm:$0xff] }
 0x91b   :  { %11199 = vmatpush3.msk.msra.mxu1 %vm3535_vm4, %v3899_v47  ;;  %v4154_v47 = vld [vmem:[%s21535_s13 + $0x340] sm:$0xff] }
 0x91c   :  { %11201 = vmatmul.mubr.msk.f32.vlgmr.msra.gmra.mrb[58].mxu1 %vm3554_vm5, %v16965_v55  ;;  %12533 = vmatprep.subr.bf16.mxu1 %v12532_v16  ;;  %v4095_v55 = vld [vmem:[%s21535_s13 + $0x168] sm:$0xff]  ;;  %v4148_v16 = vld [vmem:[%s21535_s13 + $0x310] sm:$0xff] }
 0x91d   :  { %12535 = vmatpush1.bf16.msra.mxu1 %v12534_v3  ;;  %v12544_v24 = vpack.c.bf16 %v4095_v55, %v4089_v7  ;;  %v4161_v3 = vld [vmem:[%s21535_s13 + $0x378] sm:$0xff]  ;;  %v12566_v35 = vpack.c.bf16 %v4154_v47, %v4148_v16  ;;  %v4172_v7 = vld [vmem:[%s21535_s13 + $0x3d0] sm:$0xff]  ;;  %v4178_v55 = vld [vmem:[%s21535_s13 + $0x400] sm:$0xff] }
 0x91e   :  { %12537 = vmatprep.subr.bf16.mxu1 %v12536_v28  ;;  %v4167_v28 = vld [vmem:[%s21535_s13 + $0x3a8] sm:$0xff]  ;;  %v12574_v12 = vpack.c.bf16 %v4178_v55, %v4172_v7  ;;  %v4249_v16 = vld [vmem:[%s21535_s13 + $0x638] sm:$0xff] }
 0x91f   :  { %v12568_v39 = vpack.c.bf16 %v4167_v28, %v4161_v3  ;;  %v4245_v47 = vld [vmem:[%s21535_s13 + $0x618] sm:$0xff]  ;;  %v4251_v28 = vld [vmem:[%s21535_s13 + $0x648] sm:$0xff] }
 0x920   :  { %v4263_v7 = vld [vmem:[%s21535_s13 + $0x6a8] sm:$0xff] }
 0x921   :  { %12539 = vmatpush1.bf16.msra.mxu1 %v12538_v22  ;;  %v4173_v22 = vld [vmem:[%s21535_s13 + $0x3d8] sm:$0xff] }
 0x922   :  { %12541 = vmatprep.subr.bf16.mxu1 %v12540_v8  ;;  %v4179_v8 = vld [vmem:[%s21535_s13 + $0x408] sm:$0xff] }
 0x923   :  { %v12572_v46 = vpack.c.bf16 %v4179_v8, %v4173_v22  ;;  %v4250_v22 = vld [vmem:[%s21535_s13 + $0x640] sm:$0xff]  ;;  %v4255_v8 = vld [vmem:[%s21535_s13 + $0x668] sm:$0xff] }
 0x925   :  { %12543 = vmatpush1.bf16.msra.mxu1 %v12542_v63  ;;  %v4185_v63 = vld [vmem:[%s21535_s13 + $0x438] sm:$0xff] }
 0x926   :  { %12545 = vmatprep.subr.bf16.mxu1 %v12544_v24  ;;  %v4191_v24 = vld [vmem:[%s21535_s13 + $0x468] sm:$0xff] }
 0x927   :  { %v12576_v11 = vpack.c.bf16 %v4191_v24, %v4185_v63  ;;  %v12598_v24 = vpack.c.bf16 %v4250_v22, %v4244_v17 }
 0x929   :  { %12547 = vmatpush1.bf16.msra.mxu1 %v12546_v38  ;;  %v4197_v38 = vld [vmem:[%s21535_s13 + $0x498] sm:$0xff] }
 0x92a   :  { %12549 = vmatprep.subr.bf16.mxu1 %v12548_v53  ;;  %v4203_v53 = vld [vmem:[%s21535_s13 + $0x4c8] sm:$0xff] }
 0x92b   :  { %v12580_v41 = vpack.c.bf16 %v4203_v53, %v4197_v38  ;;  %v4256_v53 = vld [vmem:[%s21535_s13 + $0x670] sm:$0xff] }
 0x92d   :  { %12551 = vmatpush1.bf16.msra.mxu1 %v12550_v37  ;;  %v4209_v37 = vld [vmem:[%s21535_s13 + $0x4f8] sm:$0xff] }
 0x92e   :  { %12553 = vmatprep.subr.bf16.mxu1 %v12552_v26  ;;  %v4215_v26 = vld [vmem:[%s21535_s13 + $0x528] sm:$0xff] }
 0x92f   :  { %v12584_v30 = vpack.c.bf16 %v4215_v26, %v4209_v37  ;;  %v4275_v37 = vld [vmem:[%s21535_s13 + $0x708] sm:$0xff] }
 0x931   :  { %12555 = vmatpush1.bf16.msra.mxu1 %v12554_v31  ;;  %v4221_v31 = vld [vmem:[%s21535_s13 + $0x558] sm:$0xff] }
 0x932   :  { %12557 = vmatprep.subr.bf16.mxu1 %v12556_v42  ;;  %v4227_v42 = vld [vmem:[%s21535_s13 + $0x588] sm:$0xff] }
 0x933   :  { %v12588_v62 = vpack.c.bf16 %v4227_v42, %v4221_v31  ;;  %v12604_v31 = vpack.c.bf16 %v4275_v37, %v4269_v19  ;;  %v4268_v42 = vld [vmem:[%s21535_s13 + $0x6d0] sm:$0xff] }
 0x935   :  { %12559 = vmatpush1.bf16.msra.mxu1 %v12558_v44  ;;  %v4233_v44 = vld [vmem:[%s21535_s13 + $0x5b8] sm:$0xff] }
 0x936   :  { %12561 = vmatprep.subr.bf16.mxu1 %v12560_v57  ;;  %v4239_v57 = vld [vmem:[%s21535_s13 + $0x5e8] sm:$0xff] }
 0x937   :  { %v12592_v10 = vpack.c.bf16 %v4239_v57, %v4233_v44  ;;  %v4287_v44 = vld [vmem:[%s21535_s13 + $0x768] sm:$0xff] }
 0x939   :  { %12563 = vmatpush1.bf16.msra.mxu1 %v12562_v58  ;;  %v12594_v58 = vpack.c.bf16 %v4238_v56, %v4232_v18  ;;  %v4278_v56 = vld [vmem:[%s21535_s13 + $0x720] sm:$0xff] }
 0x93a   :  { %12565 = vmatprep.subr.bf16.mxu1 %v12564_v29  ;;  %v4243_v29 = vld [vmem:[%s21535_s13 + $0x608] sm:$0xff] }
 0x93b   :  { %v12500_v3 = vpack.c.bf16 %v4249_v16, %v4243_v29  ;;  %v12608_v16 = vpack.c.bf16 %v4287_v44, %v4281_v49 }
 0x93d   :  { %12567 = vmatpush1.bf16.msra.mxu1 %v12566_v35  ;;  %v12596_v35 = vpack.c.bf16 %v4251_v28, %v4245_v47  ;;  %12501 = vmatprep.subr.bf16.mxu0 %v12500_v3  ;;  %v4280_v47 = vld [vmem:[%s21535_s13 + $0x730] sm:$0xff]  ;;  %v4286_v3 = vld [vmem:[%s21535_s13 + $0x760] sm:$0xff]  ;;  %v4291_v28 = vld [vmem:[%s21535_s13 + $0x788] sm:$0xff] }
 0x93e   :  { %12569 = vmatprep.subr.bf16.mxu1 %v12568_v39  ;;  %v4242_v39 = vld [vmem:[%s21535_s13 + $0x600] sm:$0xff]  ;;  %v12610_v22 = vpack.c.bf16 %v4286_v3, %v4280_v47 }
 0x93f   :  { %v12502_v63 = vpack.c.bf16 %v4248_v21, %v4242_v39  ;;  %v4293_v39 = vld [vmem:[%s21535_s13 + $0x798] sm:$0xff]  ;;  %v4299_v21 = vld [vmem:[%s21535_s13 + $0x7c8] sm:$0xff]  ;;  %v4326_v3 = vld [vmem:[%s21535_s13 + $0x8a0] sm:$0xff] }
 0x941   :  { %12571 = vmatpush1.bf16.msra.mxu1 %v12570_v34  ;;  %v4261_v34 = vld [vmem:[%s21535_s13 + $0x698] sm:$0xff] }
 0x942   :  { %12573 = vmatprep.subr.bf16.mxu1 %v12572_v46  ;;  %v4257_v46 = vld [vmem:[%s21535_s13 + $0x678] sm:$0xff]  ;;  %v12504_v0 = vpack.c.bf16 %v4261_v34, %v4255_v8  ;;  %v4290_v8 = vld [vmem:[%s21535_s13 + $0x780] sm:$0xff]  ;;  %v4296_v34 = vld [vmem:[%s21535_s13 + $0x7b0] sm:$0xff] }
 0x943   :  { %v12600_v38 = vpack.c.bf16 %v4263_v7, %v4257_v46  ;;  %v12612_v7 = vpack.c.bf16 %v4299_v21, %v4293_v39  ;;  %v4328_v21 = vld [vmem:[%s21535_s13 + $0x8b0] sm:$0xff] }
 0x945   :  { %12575 = vmatpush1.bf16.msra.mxu1 %v12574_v12  ;;  %v4254_v12 = vld [vmem:[%s21535_s13 + $0x660] sm:$0xff] }
 0x946   :  { %12577 = vmatprep.subr.bf16.mxu1 %v12576_v11  ;;  %v4260_v11 = vld [vmem:[%s21535_s13 + $0x690] sm:$0xff] }
 0x947   :  { %v12506_v26 = vpack.c.bf16 %v4260_v11, %v4254_v12  ;;  %v4303_v12 = vld [vmem:[%s21535_s13 + $0x7e8] sm:$0xff]  ;;  %v4309_v11 = vld [vmem:[%s21535_s13 + $0x818] sm:$0xff] }
 0x948   :  { %v12520_v19 = vpack.c.bf16 %v4309_v11, %v4303_v12  ;;  %v4054_v11 = vld [vmem:[%s21535_s13 + $0x20] sm:$0xff] }
 0x949   :  { %12579 = vmatpush1.bf16.msra.mxu1 %v12578_v14  ;;  %v4262_v14 = vld [vmem:[%s21535_s13 + $0x6a0] sm:$0xff] }
 0x94a   :  { %12581 = vmatprep.subr.bf16.mxu1 %v12580_v41  ;;  %v4267_v41 = vld [vmem:[%s21535_s13 + $0x6c8] sm:$0xff] }
 0x94b   :  { %v12508_v40 = vpack.c.bf16 %v4273_v59, %v4267_v41  ;;  %v4302_v41 = vld [vmem:[%s21535_s13 + $0x7e0] sm:$0xff]  ;;  %v4308_v59 = vld [vmem:[%s21535_s13 + $0x810] sm:$0xff] }
 0x94d   :  { %12583 = vmatpush1.bf16.msra.mxu1 %v12582_v51  ;;  %v12602_v51 = vpack.c.bf16 %v4262_v14, %v4256_v53  ;;  %v12518_v53 = vpack.c.bf16 %v4296_v34, %v4290_v8  ;;  %v4061_v8 = vld [vmem:[%s21535_s13 + $0x58] sm:$0xff] }
 0x94e   :  { %12585 = vmatprep.subr.bf16.mxu1 %v12584_v30  ;;  %v4266_v30 = vld [vmem:[%s21535_s13 + $0x6c0] sm:$0xff]  ;;  %v2794_v34 = vld [vmem:[%s21536_s5 + $0x18] sm:$0xff] }
 0x951   :  { %12587 = vmatpush1.bf16.msra.mxu1 %v12586_v36  ;;  %v4274_v36 = vld [vmem:[%s21535_s13 + $0x700] sm:$0xff] }
 0x952   :  { %12589 = vmatprep.subr.bf16.mxu1 %v12588_v62  ;;  %v4279_v62 = vld [vmem:[%s21535_s13 + $0x728] sm:$0xff]  ;;  %v12606_v18 = vpack.c.bf16 %v4274_v36, %v4268_v42  ;;  %v12522_v42 = vpack.c.bf16 %v4308_v59, %v4302_v41  ;;  %v4073_v41 = vld [vmem:[%s21535_s13 + $0xb8] sm:$0xff] }
 0x953   :  { %v12512_v29 = vpack.c.bf16 %v4285_v52, %v4279_v62  ;;  %v4314_v62 = vld [vmem:[%s21535_s13 + $0x840] sm:$0xff]  ;;  %v4320_v52 = vld [vmem:[%s21535_s13 + $0x870] sm:$0xff]  ;;  %v2804_v59 = vld [vmem:[%s21536_s5 + $0x68] sm:$0xff] }
 0x955   :  { %12591 = vmatpush1.bf16.msra.mxu1 %v12590_v45 }
 0x956   :  { %12593 = vmatprep.subr.bf16.mxu1 %v12592_v10  ;;  %v12510_v10 = vpack.c.bf16 %v4272_v25, %v4266_v30  ;;  %v4315_v30 = vld [vmem:[%s21535_s13 + $0x848] sm:$0xff]  ;;  %v4321_v25 = vld [vmem:[%s21535_s13 + $0x878] sm:$0xff] }
 0x957   :  { %v12524_v49 = vpack.c.bf16 %v4321_v25, %v4315_v30  ;;  %v4066_v30 = vld [vmem:[%s21535_s13 + $0x80] sm:$0xff]  ;;  %v4072_v25 = vld [vmem:[%s21535_s13 + $0xb0] sm:$0xff] }
 0x959   :  { %12595 = vmatpush1.bf16.msra.mxu1 %v12594_v58  ;;  %v4284_v58 = vld [vmem:[%s21535_s13 + $0x750] sm:$0xff] }
 0x95a   :  { %12597 = vmatprep.subr.bf16.mxu1 %v12596_v35  ;;  %v4297_v35 = vld [vmem:[%s21535_s13 + $0x7b8] sm:$0xff]  ;;  %v12514_v17 = vpack.c.bf16 %v4284_v58, %v4278_v56 }
 0x95b   :  { %v12516_v46 = vpack.c.bf16 %v4297_v35, %v4291_v28  ;;  %v4333_v56 = vld [vmem:[%s21535_s13 + $0x8d8] sm:$0xff]  ;;  %v4332_v28 = vld [vmem:[%s21535_s13 + $0x8d0] sm:$0xff] }
 0x95c   :  { %v4329_v58 = vld [vmem:[%s21535_s13 + $0x8b8] sm:$0xff] }
 0x9e9   :  { %v17604_v55 = vpop.f32.mrb[56].mxu1 }
 0x9ea   :  { %v17612_v48 = vpop.f32.mrb[57].mxu1 }
 0x9eb   :  { %4434 = vmatprep.mubr.f32.mxu0 %v17612_v48  ;;  %4576 = vmatprep.mubr.f32.mxu1 %v17612_v48 }
 0x9ec   :  { %4435 = vmatmul.mubr.f32.vlgmr.msra.gmra.mrb[42].mxu0 %v17604_v55  ;;  %4577 = vmatmul.mubr.f32.vlgmr.msra.gmra.mrb[60].mxu1 %v17604_v55 }
 0x9ed   :  { %12503 = vmatpush1.bf16.msra.mxu0 %v12502_v63  ;;  %12599 = vmatpush1.bf16.msra.mxu1 %v12598_v24  ;;  %v4292_v63 = vld [vmem:[%s21535_s13 + $0x790] sm:$0xff]  ;;  %v4298_v24 = vld [vmem:[%s21535_s13 + $0x7c0] sm:$0xff] }
 0x9ee   :  { %12505 = vmatprep.subr.bf16.mxu0 %v12504_v0  ;;  %12601 = vmatprep.subr.bf16.mxu1 %v12600_v38  ;;  %v4305_v0 = vld [vmem:[%s21535_s13 + $0x7f8] sm:$0xff]  ;;  %v4311_v38 = vld [vmem:[%s21535_s13 + $0x828] sm:$0xff]  ;;  %v12614_v14 = vpack.c.bf16 %v4298_v24, %v4292_v63 }
 0x9ef   :  { %v17660_v57 = vpop.f32.mrb[58].mxu1  ;;  %4505 = vmatprep.mubr.f32.mxu0 %v21681_v33  ;;  %4647 = vmatprep.mubr.f32.mxu1 %v21681_v33  ;;  %v12616_v37 = vpack.c.bf16 %v4311_v38, %v4305_v0  ;;  %v4060_v0 = vld [vmem:[%s21535_s13 + $0x50] sm:$0xff] }
 0x9f0   :  { %v11202_v45 = vpop.f32.mrb[59].mxu1  ;;  %v2793_v38 = vld [vmem:[%s21536_s5 + $0x10] sm:$0xff] }
 0x9f1   :  { %12507 = vmatpush1.bf16.msra.mxu0 %v12506_v26  ;;  %12603 = vmatpush1.bf16.msra.mxu1 %v12602_v51  ;;  %v4304_v26 = vld [vmem:[%s21535_s13 + $0x7f0] sm:$0xff]  ;;  %v4310_v51 = vld [vmem:[%s21535_s13 + $0x820] sm:$0xff] }
 0x9f2   :  { %12509 = vmatprep.subr.bf16.mxu0 %v12508_v40  ;;  %12605 = vmatprep.subr.bf16.mxu1 %v12604_v31  ;;  %v4317_v40 = vld [vmem:[%s21535_s13 + $0x858] sm:$0xff]  ;;  %v4323_v31 = vld [vmem:[%s21535_s13 + $0x888] sm:$0xff]  ;;  %v12618_v36 = vpack.c.bf16 %v4310_v51, %v4304_v26  ;;  %v4316_v45 = vld [vmem:[%s21535_s13 + $0x850] sm:$0xff] }
 0x9f3   :  { %v12620_v44 = vpack.c.bf16 %v4323_v31, %v4317_v40  ;;  %v2803_v40 = vld [vmem:[%s21536_s5 + $0x60] sm:$0xff] }
 0x9f5   :  { %12511 = vmatpush1.bf16.msra.mxu0 %v12510_v10  ;;  %12607 = vmatpush1.bf16.msra.mxu1 %v12606_v18  ;;  %v4322_v10 = vld [vmem:[%s21535_s13 + $0x880] sm:$0xff]  ;;  %v4327_v18 = vld [vmem:[%s21535_s13 + $0x8a8] sm:$0xff] }
 0x9f6   :  { %12513 = vmatprep.subr.bf16.mxu0 %v12512_v29  ;;  %12609 = vmatprep.subr.bf16.mxu1 %v12608_v16  ;;  %v4335_v29 = vld [vmem:[%s21535_s13 + $0x8e8] sm:$0xff]  ;;  %v12526_v16 = vpack.c.bf16 %v4320_v52, %v4314_v62  ;;  %v12622_v47 = vpack.c.bf16 %v4322_v10, %v4316_v45  ;;  %v12528_v35 = vpack.c.bf16 %v4333_v56, %v4327_v18  ;;  %v4085_v62 = vld [vmem:[%s21535_s13 + $0x118] sm:$0xff]  ;;  %v4078_v18 = vld [vmem:[%s21535_s13 + $0xe0] sm:$0xff] }
 0x9f7   :  { %v12624_v39 = vpack.c.bf16 %v4335_v29, %v4329_v58  ;;  %v2814_v52 = vld [vmem:[%s21536_s5 + $0xb8] sm:$0xff]  ;;  %v4084_v56 = vld [vmem:[%s21535_s13 + $0x110] sm:$0xff] }
 0x9f8   :  { %v2813_v58 = vld [vmem:[%s21536_s5 + $0xb0] sm:$0xff]  ;;  %v2818_v29 = vld [vmem:[%s21536_s5 + $0xd8] sm:$0xff] }
 0x9f9   :  { %12515 = vmatpush1.bf16.msra.mxu0 %v12514_v17  ;;  %12611 = vmatpush1.bf16.msra.mxu1 %v12610_v22  ;;  %v4334_v17 = vld [vmem:[%s21535_s13 + $0x8e0] sm:$0xff]  ;;  %v4055_v22 = vld [vmem:[%s21535_s13 + $0x28] sm:$0xff] }
 0x9fa   :  { %12517 = vmatprep.subr.bf16.mxu0 %v12516_v46  ;;  %12613 = vmatprep.subr.bf16.mxu1 %v12612_v7  ;;  %v2799_v46 = vld [vmem:[%s21536_s5 + $0x40] sm:$0xff]  ;;  %v12530_v7 = vpack.c.bf16 %v4332_v28, %v4326_v3  ;;  %v12626_v63 = vpack.c.bf16 %v4334_v17, %v4328_v21  ;;  %v12628_v24 = vpack.c.bf16 %v4061_v8, %v4055_v22  ;;  %v2824_v3 = vld [vmem:[%s21536_s5 + $0x108] sm:$0xff]  ;;  %v2829_v28 = vld [vmem:[%s21536_s5 + $0x130] sm:$0xff] }
 0x9fb   :  { %v17784_v12 = vpack.c.bf16 %v2799_v46, %v2794_v34  ;;  %v4090_v17 = vld [vmem:[%s21535_s13 + $0x140] sm:$0xff]  ;;  %v4096_v22 = vld [vmem:[%s21535_s13 + $0x170] sm:$0xff]  ;;  %v17886_v34 = vpack.c.bf16 %v2829_v28, %v2824_v3  ;;  %v2828_v46 = vld [vmem:[%s21536_s5 + $0x128] sm:$0xff] }
 0x9fc   :  { %v2823_v8 = vld [vmem:[%s21536_s5 + $0x100] sm:$0xff]  ;;  %v4139_v3 = vld [vmem:[%s21535_s13 + $0x2c8] sm:$0xff]  ;;  %v4145_v28 = vld [vmem:[%s21535_s13 + $0x2f8] sm:$0xff] }
 0x9fd   :  { %12519 = vmatpush1.bf16.msra.mxu0 %v12518_v53  ;;  %12615 = vmatpush1.bf16.msra.mxu1 %v12614_v14  ;;  %v2798_v53 = vld [vmem:[%s21536_s5 + $0x38] sm:$0xff]  ;;  %v4067_v14 = vld [vmem:[%s21535_s13 + $0x88] sm:$0xff] }
 0x9fe   :  { %12521 = vmatprep.subr.bf16.mxu0 %v12520_v19  ;;  %12617 = vmatprep.subr.bf16.mxu1 %v12616_v37  ;;  %v2809_v19 = vld [vmem:[%s21536_s5 + $0x90] sm:$0xff]  ;;  %v12630_v37 = vpack.c.bf16 %v4060_v0, %v4054_v11  ;;  %v17811_v26 = vpack.c.bf16 %v2798_v53, %v2793_v38  ;;  %v12632_v51 = vpack.c.bf16 %v4073_v41, %v4067_v14  ;;  %v4102_v38 = vld [vmem:[%s21535_s13 + $0x1a0] sm:$0xff]  ;;  %v2800_v41 = vld [vmem:[%s21536_s5 + $0x48] sm:$0xff] }
 0x9ff   :  { %v17822_v31 = vpack.c.bf16 %v2809_v19, %v2804_v59  ;;  %v17898_v11 = vpack.c.bf16 %v2828_v46, %v2823_v8  ;;  %v4108_v53 = vld [vmem:[%s21535_s13 + $0x1d0] sm:$0xff]  ;;  %v2795_v14 = vld [vmem:[%s21536_s5 + $0x20] sm:$0xff]  ;;  %v4115_v59 = vld [vmem:[%s21535_s13 + $0x208] sm:$0xff]  ;;  %v12656_v8 = vpack.c.bf16 %v4145_v28, %v4139_v3 }
 0xa00   :  { %v4121_v19 = vld [vmem:[%s21535_s13 + $0x238] sm:$0xff]  ;;  %v4138_v46 = vld [vmem:[%s21535_s13 + $0x2c0] sm:$0xff] }
 0xa01   :  { %12523 = vmatpush1.bf16.msra.mxu0 %v12522_v42  ;;  %12619 = vmatpush1.bf16.msra.mxu1 %v12618_v36  ;;  %v2808_v42 = vld [vmem:[%s21536_s5 + $0x88] sm:$0xff]  ;;  %v4186_v28 = vld [vmem:[%s21535_s13 + $0x440] sm:$0xff] }
 0xa02   :  { %12525 = vmatprep.subr.bf16.mxu0 %v12524_v49  ;;  %12621 = vmatprep.subr.bf16.mxu1 %v12620_v44  ;;  %v4079_v36 = vld [vmem:[%s21535_s13 + $0xe8] sm:$0xff]  ;;  %v2819_v49 = vld [vmem:[%s21536_s5 + $0xe0] sm:$0xff]  ;;  %v12634_v44 = vpack.c.bf16 %v4072_v25, %v4066_v30  ;;  %v17843_v45 = vpack.c.bf16 %v2808_v42, %v2803_v40  ;;  %v17922_v30 = vpack.c.bf16 %v2800_v41, %v2795_v14  ;;  %v4120_v40 = vld [vmem:[%s21535_s13 + $0x230] sm:$0xff] }
 0xa03   :  { %v12636_v10 = vpack.c.bf16 %v4085_v62, %v4079_v36  ;;  %v4114_v25 = vld [vmem:[%s21535_s13 + $0x200] sm:$0xff]  ;;  %v12648_v42 = vpack.c.bf16 %v4121_v19, %v4115_v59  ;;  %v2805_v36 = vld [vmem:[%s21536_s5 + $0x70] sm:$0xff]  ;;  %v2810_v62 = vld [vmem:[%s21536_s5 + $0x98] sm:$0xff] }
 0xa04   :  { %v4150_v59 = vld [vmem:[%s21535_s13 + $0x320] sm:$0xff]  ;;  %v4163_v19 = vld [vmem:[%s21535_s13 + $0x388] sm:$0xff] }
 0xa05   :  { %12527 = vmatpush1.bf16.msra.mxu0 %v12526_v16  ;;  %12623 = vmatpush1.bf16.msra.mxu1 %v12622_v47  ;;  %v4091_v16 = vld [vmem:[%s21535_s13 + $0x148] sm:$0xff]  ;;  %v4097_v47 = vld [vmem:[%s21535_s13 + $0x178] sm:$0xff] }
 0xa06   :  { %12529 = vmatprep.subr.bf16.mxu0 %v12528_v35  ;;  %12625 = vmatprep.subr.bf16.mxu1 %v12624_v39  ;;  %v12638_v35 = vpack.c.bf16 %v4084_v56, %v4078_v18  ;;  %v17874_v39 = vpack.c.bf16 %v2818_v29, %v2813_v58  ;;  %v12640_v21 = vpack.c.bf16 %v4097_v47, %v4091_v16  ;;  %v4126_v56 = vld [vmem:[%s21535_s13 + $0x260] sm:$0xff]  ;;  %v4132_v58 = vld [vmem:[%s21535_s13 + $0x290] sm:$0xff]  ;;  %v2820_v47 = vld [vmem:[%s21536_s5 + $0xe8] sm:$0xff] }
 0xa07   :  { %v12650_v18 = vpack.c.bf16 %v4120_v40, %v4114_v25  ;;  %v2815_v29 = vld [vmem:[%s21536_s5 + $0xc0] sm:$0xff] }
 0xa09   :  { %12531 = vmatpush1.bf16.msra.mxu0 %v12530_v7  ;;  %12627 = vmatpush1.bf16.msra.mxu1 %v12626_v63  ;;  %v4103_v7 = vld [vmem:[%s21535_s13 + $0x1a8] sm:$0xff]  ;;  %v4109_v63 = vld [vmem:[%s21535_s13 + $0x1d8] sm:$0xff] }
 0xa0a   :  { %12629 = vmatprep.subr.bf16.mxu0 %v12628_v24  ;;  %12741 = vmatprep.subr.bf16.mxu1 %v17784_v12  ;;  %v12642_v24 = vpack.c.bf16 %v4096_v22, %v4090_v17  ;;  %v12644_v0 = vpack.c.bf16 %v4109_v63, %v4103_v7  ;;  %v12654_v17 = vpack.c.bf16 %v4132_v58, %v4126_v56  ;;  %v2825_v7 = vld [vmem:[%s21536_s5 + $0x110] sm:$0xff]  ;;  %v2830_v63 = vld [vmem:[%s21536_s5 + $0x138] sm:$0xff]  ;;  %v4174_v56 = vld [vmem:[%s21535_s13 + $0x3e0] sm:$0xff] }
 0xa0b   :  { %v17986_v22 = vpack.c.bf16 %v2820_v47, %v2815_v29  ;;  %v18015_v14 = vpack.c.bf16 %v2830_v63, %v2825_v7  ;;  %v4180_v58 = vld [vmem:[%s21535_s13 + $0x410] sm:$0xff]  ;;  %v4187_v29 = vld [vmem:[%s21535_s13 + $0x448] sm:$0xff]  ;;  %v4198_v63 = vld [vmem:[%s21535_s13 + $0x4a0] sm:$0xff] }
 0xa0c   :  { %4506 = vmatmul.mubr.f32.vlgmr.msra.gmra.mrb[42].mxu0 %v17660_v57  ;;  %4648 = vmatmul.mubr.f32.vlgmr.msra.gmra.mrb[60].mxu1 %v17660_v57  ;;  %v12670_v47 = vpack.c.bf16 %v4180_v58, %v4174_v56  ;;  %v4234_v58 = vld [vmem:[%s21535_s13 + $0x5c0] sm:$0xff] }
 0xa0d   :  { %12631 = vmatpush1.bf16.msra.mxu0 %v12630_v37  ;;  %4718 = vmatprep.mubr.f32.mxu0 %v17612_v48  ;;  %v17855_v48 = vpack.c.bf16 %v2819_v49, %v2814_v52  ;;  %v17919_v37 = vpop.permute.xlu0 %4798  ;;  %v4127_v49 = vld [vmem:[%s21535_s13 + $0x268] sm:$0xff] }
 0xa0e   :  { %12743 = vmatpush1.bf16.msra.mxu1 %v17811_v26  ;;  %12633 = vmatprep.subr.bf16.mxu0 %v12632_v51  ;;  %v12646_v51 = vpack.c.bf16 %v4108_v53, %v4102_v38  ;;  %v17940_v52 = vsel %vm4807_vm7, %v15977_v13, %v17919_v37  ;;  %v17954_v13 = vpack.c.bf16 %v2810_v62, %v2805_v36  ;;  %v4168_v36 = vld [vmem:[%s21535_s13 + $0x3b0] sm:$0xff]  ;;  %v4175_v62 = vld [vmem:[%s21535_s13 + $0x3e8] sm:$0xff] }
 0xa0f   :  { %12745 = vmatprep.subr.bf16.mxu1 %v17822_v31  ;;  %4967 = vmatprep.mubr.f32.mxu1 %v21681_v33 }
 0xa11   :  { %12635 = vmatpush1.bf16.msra.mxu0 %v12634_v44  ;;  %v4133_v44 = vld [vmem:[%s21535_s13 + $0x298] sm:$0xff] }
 0xa12   :  { %12747 = vmatpush1.bf16.msra.mxu1 %v17843_v45  ;;  %12637 = vmatprep.subr.bf16.mxu0 %v12636_v10  ;;  %v17948_v10 = vpop.permute.xlu1 %4800  ;;  %v12652_v16 = vpack.c.bf16 %v4133_v44, %v4127_v49  ;;  %v4181_v49 = vld [vmem:[%s21535_s13 + $0x418] sm:$0xff] }
 0xa13   :  { %12749 = vmatprep.subr.bf16.mxu1 %v17855_v48 }
 0xa15   :  { %12639 = vmatpush1.bf16.msra.mxu0 %v12638_v35  ;;  %v17978_v35 = vsel %vm4807_vm7, %v16710_v54, %v17948_v10  ;;  %v4144_v54 = vld [vmem:[%s21535_s13 + $0x2f0] sm:$0xff] }
 0xa16   :  { %12751 = vmatpush1.bf16.msra.mxu1 %v17874_v39  ;;  %12641 = vmatprep.subr.bf16.mxu0 %v12640_v21  ;;  %v17980_v21 = vpop.permute.xlu0 %4802  ;;  %v12658_v53 = vpack.c.bf16 %v4144_v54, %v4138_v46  ;;  %v4205_v46 = vld [vmem:[%s21535_s13 + $0x4d8] sm:$0xff] }
 0xa17   :  { %12753 = vmatprep.subr.bf16.mxu1 %v17886_v34  ;;  %21849 = vst [vmem:[#allocation6_spill] sm:$0xff] %v17980_v21  ;;  %v18010_v38 = vsel %vm4807_vm7, %v16727_v43, %v17980_v21  ;;  %v4156_v43 = vld [vmem:[%s21535_s13 + $0x350] sm:$0xff] }
 0xa18   :  { %v12662_v25 = vpack.c.bf16 %v4156_v43, %v4150_v59  ;;  %v4210_v43 = vld [vmem:[%s21535_s13 + $0x500] sm:$0xff] }
 0xa19   :  { %12643 = vmatpush1.bf16.msra.mxu0 %v12642_v24  ;;  %v4151_v24 = vld [vmem:[%s21535_s13 + $0x328] sm:$0xff] }
 0xa1a   :  { %12755 = vmatpush1.bf16.msra.mxu1 %v17898_v11  ;;  %12645 = vmatprep.subr.bf16.mxu0 %v12644_v0  ;;  %v4157_v0 = vld [vmem:[%s21535_s13 + $0x358] sm:$0xff] }
 0xa1b   :  { %12756 = vmatprep.subr.bf16.mxu1 %v21643_v60  ;;  %v12660_v41 = vpack.c.bf16 %v4157_v0, %v4151_v24  ;;  %v4204_v24 = vld [vmem:[%s21535_s13 + $0x4d0] sm:$0xff]  ;;  %v4211_v0 = vld [vmem:[%s21535_s13 + $0x508] sm:$0xff] }
 0xa1d   :  { %9680 = vmatmul.mubr.msk.f32.vlgmr.msra.gmra.mrb[62].mxu1 %vm1385_vm1, %v17940_v52  ;;  %12647 = vmatpush1.bf16.msra.mxu0 %v12646_v51  ;;  %v4169_v51 = vld [vmem:[%s21535_s13 + $0x3b8] sm:$0xff] }
 0xa1e   :  { %12758 = vmatpush3.bf16.msra.mxu1 %v17922_v30  ;;  %4973 = vmatprep.mubr.f32.mxu1 %v21681_v33  ;;  %v12664_v40 = vpack.c.bf16 %v4169_v51, %v4163_v19  ;;  %v4216_v19 = vld [vmem:[%s21535_s13 + $0x530] sm:$0xff]  ;;  %v4223_v51 = vld [vmem:[%s21535_s13 + $0x568] sm:$0xff] }
 0xa1f   :  { %12649 = vmatprep.subr.bf16.mxu0 %v12648_v42  ;;  %12759 = vmatprep.subr.bf16.mxu1 %v21643_v60  ;;  %v4162_v42 = vld [vmem:[%s21535_s13 + $0x380] sm:$0xff] }
 0xa20   :  { %v12666_v44 = vpack.c.bf16 %v4168_v36, %v4162_v42  ;;  %v4222_v36 = vld [vmem:[%s21535_s13 + $0x560] sm:$0xff] }
 0xa21   :  { %9681 = vmatmul.mubr.msk.f32.gmra.mrb[64].mxu1 %vm1385_vm1, %v17978_v35  ;;  %12651 = vmatpush1.bf16.msra.mxu0 %v12650_v18  ;;  %v12668_v18 = vpack.c.bf16 %v4181_v49, %v4175_v62  ;;  %v4228_v62 = vld [vmem:[%s21535_s13 + $0x590] sm:$0xff]  ;;  %v4235_v49 = vld [vmem:[%s21535_s13 + $0x5c8] sm:$0xff] }
 0xa22   :  { %12761 = vmatpush3.bf16.msra.mxu1 %v17954_v13  ;;  %4979 = vmatprep.mubr.f32.mxu1 %v21681_v33 }
 0xa23   :  { %12653 = vmatprep.subr.bf16.mxu0 %v12652_v16  ;;  %12762 = vmatprep.subr.bf16.mxu1 %v21643_v60  ;;  %v4193_v16 = vld [vmem:[%s21535_s13 + $0x478] sm:$0xff] }
 0xa24   :  { %v12672_v3 = vpack.c.bf16 %v4193_v16, %v4187_v29  ;;  %v4240_v29 = vld [vmem:[%s21535_s13 + $0x5f0] sm:$0xff]  ;;  %v4247_v16 = vld [vmem:[%s21535_s13 + $0x628] sm:$0xff] }
 0xa25   :  { %9682 = vmatmul.mubr.msk.f32.gmra.mrb[66].mxu1 %vm1385_vm1, %v18010_v38  ;;  %12655 = vmatpush1.bf16.msra.mxu0 %v12654_v17  ;;  %v4192_v17 = vld [vmem:[%s21535_s13 + $0x470] sm:$0xff] }
 0xa26   :  { %12764 = vmatpush3.bf16.msra.mxu1 %v17986_v22  ;;  %12657 = vmatprep.subr.bf16.mxu0 %v12656_v8  ;;  %v4199_v8 = vld [vmem:[%s21535_s13 + $0x4a8] sm:$0xff]  ;;  %v12674_v54 = vpack.c.bf16 %v4192_v17, %v4186_v28  ;;  %v4246_v17 = vld [vmem:[%s21535_s13 + $0x620] sm:$0xff] }
 0xa27   :  { %12765 = vmatprep.subr.bf16.mxu1 %v21643_v60  ;;  %11219 = vmatprep.mubr.msk.f32.mxu1 %vm14145_vm3, %v21681_v33  ;;  %v12676_v7 = vpack.c.bf16 %v4205_v46, %v4199_v8  ;;  %v4252_v8 = vld [vmem:[%s21535_s13 + $0x650] sm:$0xff]  ;;  %v4259_v46 = vld [vmem:[%s21535_s13 + $0x688] sm:$0xff] }
 0xa29   :  { %12659 = vmatpush1.bf16.msra.mxu0 %v12658_v53  ;;  %v4217_v53 = vld [vmem:[%s21535_s13 + $0x538] sm:$0xff] }
 0xa2a   :  { %12767 = vmatpush3.bf16.msra.mxu1 %v18015_v14  ;;  %12661 = vmatprep.subr.bf16.mxu0 %v12660_v41  ;;  %v12678_v41 = vpack.c.bf16 %v4204_v24, %v4198_v63  ;;  %v12680_v59 = vpack.c.bf16 %v4217_v53, %v4211_v0  ;;  %v4258_v24 = vld [vmem:[%s21535_s13 + $0x680] sm:$0xff]  ;;  %v4264_v0 = vld [vmem:[%s21535_s13 + $0x6b0] sm:$0xff]  ;;  %v4271_v53 = vld [vmem:[%s21535_s13 + $0x6e8] sm:$0xff] }
 0xa2d   :  { %11220 = vmatmul.mubr.msk.f32.vlgmr.msra.gmra.mrb[68].mxu1 %vm1385_vm1, %v17940_v52  ;;  %12663 = vmatpush1.bf16.msra.mxu0 %v12662_v25  ;;  %v4229_v25 = vld [vmem:[%s21535_s13 + $0x598] sm:$0xff] }
 0xa2e   :  { %11222 = vmatprep.mubr.msk.f32.mxu1 %vm14145_vm3, %v21681_v33  ;;  %12665 = vmatprep.subr.bf16.mxu0 %v12664_v40  ;;  %v12682_v40 = vpack.c.bf16 %v4216_v19, %v4210_v43  ;;  %v12684_v42 = vpack.c.bf16 %v4229_v25, %v4223_v51  ;;  %v4270_v19 = vld [vmem:[%s21535_s13 + $0x6e0] sm:$0xff]  ;;  %v4276_v51 = vld [vmem:[%s21535_s13 + $0x710] sm:$0xff]  ;;  %v4283_v25 = vld [vmem:[%s21535_s13 + $0x748] sm:$0xff] }
 0xa31   :  { %11223 = vmatmul.mubr.msk.f32.gmra.mrb[70].mxu1 %vm1385_vm1, %v17978_v35  ;;  %12667 = vmatpush1.bf16.msra.mxu0 %v12666_v44  ;;  %v4241_v44 = vld [vmem:[%s21535_s13 + $0x5f8] sm:$0xff] }
 0xa32   :  { %11225 = vmatprep.mubr.msk.f32.mxu1 %vm14145_vm3, %v21681_v33  ;;  %12669 = vmatprep.subr.bf16.mxu0 %v12668_v18  ;;  %v12686_v18 = vpack.c.bf16 %v4228_v62, %v4222_v36  ;;  %v12688_v56 = vpack.c.bf16 %v4241_v44, %v4235_v49  ;;  %v4282_v36 = vld [vmem:[%s21535_s13 + $0x740] sm:$0xff]  ;;  %v4288_v62 = vld [vmem:[%s21535_s13 + $0x770] sm:$0xff]  ;;  %v4295_v49 = vld [vmem:[%s21535_s13 + $0x7a8] sm:$0xff] }
 0xa33   :  { %v4301_v44 = vld [vmem:[%s21535_s13 + $0x7d8] sm:$0xff] }
 0xa35   :  { %11226 = vmatmul.mubr.msk.f32.gmra.mrb[72].mxu1 %vm1385_vm1, %v18010_v38  ;;  %12671 = vmatpush1.bf16.msra.mxu0 %v12670_v47  ;;  %v4253_v47 = vld [vmem:[%s21535_s13 + $0x658] sm:$0xff] }
 0xa36   :  { %12673 = vmatprep.subr.bf16.mxu0 %v12672_v3  ;;  %v12690_v3 = vpack.c.bf16 %v4240_v29, %v4234_v58  ;;  %v12692_v28 = vpack.c.bf16 %v4253_v47, %v4247_v16  ;;  %v4294_v58 = vld [vmem:[%s21535_s13 + $0x7a0] sm:$0xff]  ;;  %v4300_v29 = vld [vmem:[%s21535_s13 + $0x7d0] sm:$0xff]  ;;  %v4307_v16 = vld [vmem:[%s21535_s13 + $0x808] sm:$0xff] }
 0xa37   :  { %v4313_v47 = vld [vmem:[%s21535_s13 + $0x838] sm:$0xff] }
 0xa39   :  { %12675 = vmatpush1.bf16.msra.mxu0 %v12674_v54  ;;  %v4265_v54 = vld [vmem:[%s21535_s13 + $0x6b8] sm:$0xff] }
 0xa3a   :  { %12677 = vmatprep.subr.bf16.mxu0 %v12676_v7  ;;  %v12694_v7 = vpack.c.bf16 %v4252_v8, %v4246_v17  ;;  %v12696_v63 = vpack.c.bf16 %v4265_v54, %v4259_v46  ;;  %v4306_v17 = vld [vmem:[%s21535_s13 + $0x800] sm:$0xff]  ;;  %v4312_v8 = vld [vmem:[%s21535_s13 + $0x830] sm:$0xff]  ;;  %v4319_v46 = vld [vmem:[%s21535_s13 + $0x868] sm:$0xff] }
 0xa3b   :  { %v4325_v54 = vld [vmem:[%s21535_s13 + $0x898] sm:$0xff] }
 0xa3d   :  { %12679 = vmatpush1.bf16.msra.mxu0 %v12678_v41  ;;  %v4277_v41 = vld [vmem:[%s21535_s13 + $0x718] sm:$0xff] }
 0xa3e   :  { %12681 = vmatprep.subr.bf16.mxu0 %v12680_v59  ;;  %v12698_v59 = vpack.c.bf16 %v4264_v0, %v4258_v24  ;;  %v12700_v43 = vpack.c.bf16 %v4277_v41, %v4271_v53  ;;  %v4318_v24 = vld [vmem:[%s21535_s13 + $0x860] sm:$0xff]  ;;  %v4324_v0 = vld [vmem:[%s21535_s13 + $0x890] sm:$0xff]  ;;  %v4331_v53 = vld [vmem:[%s21535_s13 + $0x8c8] sm:$0xff] }
 0xa3f   :  { %v4337_v41 = vld [vmem:[%s21535_s13 + $0x8f8] sm:$0xff] }
 0xa41   :  { %12683 = vmatpush1.bf16.msra.mxu0 %v12682_v40  ;;  %v12702_v40 = vpack.c.bf16 %v4276_v51, %v4270_v19  ;;  %v4330_v19 = vld [vmem:[%s21535_s13 + $0x8c0] sm:$0xff]  ;;  %v4336_v51 = vld [vmem:[%s21535_s13 + $0x8f0] sm:$0xff] }
 0xa42   :  { %12685 = vmatprep.subr.bf16.mxu0 %v12684_v42 }
 0xa45   :  { %12687 = vmatpush1.bf16.msra.mxu0 %v12686_v18  ;;  %v12706_v18 = vpack.c.bf16 %v4288_v62, %v4282_v36  ;;  %v2791_v36 = vld [vmem:[%s21536_s5] sm:$0xff]  ;;  %v2796_v62 = vld [vmem:[%s21536_s5 + $0x28] sm:$0xff] }
 0xa46   :  { %12689 = vmatprep.subr.bf16.mxu0 %v12688_v56  ;;  %v12708_v56 = vpack.c.bf16 %v4301_v44, %v4295_v49  ;;  %v2802_v49 = vld [vmem:[%s21536_s5 + $0x58] sm:$0xff]  ;;  %v2807_v44 = vld [vmem:[%s21536_s5 + $0x80] sm:$0xff] }
 0xa49   :  { %12691 = vmatpush1.bf16.msra.mxu0 %v12690_v3  ;;  %v12710_v3 = vpack.c.bf16 %v4300_v29, %v4294_v58  ;;  %v2801_v58 = vld [vmem:[%s21536_s5 + $0x50] sm:$0xff]  ;;  %v2806_v29 = vld [vmem:[%s21536_s5 + $0x78] sm:$0xff] }
 0xa4a   :  { %12693 = vmatprep.subr.bf16.mxu0 %v12692_v28  ;;  %v12712_v28 = vpack.c.bf16 %v4313_v47, %v4307_v16  ;;  %v2812_v16 = vld [vmem:[%s21536_s5 + $0xa8] sm:$0xff]  ;;  %v2817_v47 = vld [vmem:[%s21536_s5 + $0xd0] sm:$0xff] }
 0xa4c   :  { %4719 = vmatmul.mubr.f32.vlgmr.msra.gmra.mrb[44].mxu0 %v17604_v55  ;;  %v4289_v55 = vld [vmem:[%s21535_s13 + $0x778] sm:$0xff] }
 0xa4d   :  { %12695 = vmatpush1.bf16.msra.mxu0 %v12694_v7  ;;  %4789 = vmatprep.mubr.f32.mxu0 %v21681_v33  ;;  %v12704_v42 = vpack.c.bf16 %v4289_v55, %v4283_v25  ;;  %v12714_v7 = vpack.c.bf16 %v4312_v8, %v4306_v17  ;;  %v2792_v25 = vld [vmem:[%s21536_s5 + $0x8] sm:$0xff]  ;;  %v2797_v55 = vld [vmem:[%s21536_s5 + $0x30] sm:$0xff]  ;;  %v2811_v17 = vld [vmem:[%s21536_s5 + $0xa0] sm:$0xff] }
 0xa4e   :  { %12697 = vmatprep.subr.bf16.mxu0 %v12696_v63  ;;  %v12716_v63 = vpack.c.bf16 %v4325_v54, %v4319_v46  ;;  %v2816_v8 = vld [vmem:[%s21536_s5 + $0xc8] sm:$0xff]  ;;  %v2827_v46 = vld [vmem:[%s21536_s5 + $0x120] sm:$0xff] }
 0xa4f   :  { %v18277_v54 = vpack.c.bf16 %v2816_v8, %v2811_v17  ;;  %v5083_v8 = vld [vmem:[%s21537_s15 + $0x10] sm:$0xff] }
 0xa51   :  { %12699 = vmatpush1.bf16.msra.mxu0 %v12698_v59  ;;  %v12718_v59 = vpack.c.bf16 %v4324_v0, %v4318_v24  ;;  %v2826_v24 = vld [vmem:[%s21536_s5 + $0x118] sm:$0xff] }
 0xa52   :  { %12701 = vmatprep.subr.bf16.mxu0 %v12700_v43  ;;  %v12720_v43 = vpack.c.bf16 %v4337_v41, %v4331_v53  ;;  %v5145_v53 = vld [vmem:[%s21537_s15 + $0x200] sm:$0xff]  ;;  %v5146_v41 = vld [vmem:[%s21537_s15 + $0x208] sm:$0xff] }
 0xa55   :  { %12703 = vmatpush1.bf16.msra.mxu0 %v12702_v40  ;;  %v12722_v40 = vpack.c.bf16 %v4336_v51, %v4330_v19  ;;  %v5148_v19 = vld [vmem:[%s21537_s15 + $0x218] sm:$0xff] }
 0xa56   :  { %12705 = vmatprep.subr.bf16.mxu0 %v12704_v42  ;;  %v18225_v42 = vpack.c.bf16 %v2797_v55, %v2792_v25  ;;  %v5149_v25 = vld [vmem:[%s21537_s15 + $0x220] sm:$0xff]  ;;  %v5150_v55 = vld [vmem:[%s21537_s15 + $0x228] sm:$0xff] }
 0xa59   :  { %12707 = vmatpush1.bf16.msra.mxu0 %v12706_v18  ;;  %v18239_v18 = vpack.c.bf16 %v2796_v62, %v2791_v36  ;;  %v5152_v36 = vld [vmem:[%s21537_s15 + $0x238] sm:$0xff] }
 0xa5a   :  { %12709 = vmatprep.subr.bf16.mxu0 %v12708_v56  ;;  %v18242_v56 = vpack.c.bf16 %v2807_v44, %v2802_v49  ;;  %v5098_v49 = vld [vmem:[%s21537_s15 + $0x88] sm:$0xff] }
 0xa5d   :  { %12711 = vmatpush1.bf16.msra.mxu0 %v12710_v3  ;;  %v18258_v3 = vpack.c.bf16 %v2806_v29, %v2801_v58  ;;  %v5082_v58 = vld [vmem:[%s21537_s15 + $0x8] sm:$0xff]  ;;  %v5099_v29 = vld [vmem:[%s21537_s15 + $0x90] sm:$0xff] }
 0xa5e   :  { %12713 = vmatprep.subr.bf16.mxu0 %v12712_v28  ;;  %v18262_v28 = vpack.c.bf16 %v2817_v47, %v2812_v16  ;;  %v5100_v16 = vld [vmem:[%s21537_s15 + $0x98] sm:$0xff] }
 0xa5f   :  { %v12772_v17 = vpack.c.bf16 %v5100_v16, %v5099_v29 }
 0xa61   :  { %12715 = vmatpush1.bf16.msra.mxu0 %v12714_v7 }
 0xa62   :  { %12717 = vmatprep.subr.bf16.mxu0 %v12716_v63  ;;  %v2821_v63 = vld [vmem:[%s21536_s5 + $0xf0] sm:$0xff] }
 0xa63   :  { %v18289_v0 = vpack.c.bf16 %v2826_v24, %v2821_v63  ;;  %v5102_v63 = vld [vmem:[%s21537_s15 + $0xa8] sm:$0xff] }
 0xa65   :  { %12719 = vmatpush1.bf16.msra.mxu0 %v12718_v59  ;;  %v12833_v59 = vpack.c.bf16 %v5146_v41, %v5145_v53  ;;  %v5085_v41 = vld [vmem:[%s21537_s15 + $0x20] sm:$0xff] }
 0xa66   :  { %12721 = vmatprep.subr.bf16.mxu0 %v12720_v43  ;;  %v5147_v43 = vld [vmem:[%s21537_s15 + $0x210] sm:$0xff] }
 0xa67   :  { %v12836_v51 = vpack.c.bf16 %v5148_v19, %v5147_v43  ;;  %v5103_v43 = vld [vmem:[%s21537_s15 + $0xb0] sm:$0xff]  ;;  %v5104_v19 = vld [vmem:[%s21537_s15 + $0xb8] sm:$0xff] }
 0xa69   :  { %12723 = vmatpush1.bf16.msra.mxu0 %v12722_v40  ;;  %v5151_v40 = vld [vmem:[%s21537_s15 + $0x230] sm:$0xff] }
 0xa6a   :  { %12725 = vmatprep.subr.bf16.mxu0 %v18225_v42  ;;  %v12842_v62 = vpack.c.bf16 %v5152_v36, %v5151_v40  ;;  %v5105_v40 = vld [vmem:[%s21537_s15 + $0xc0] sm:$0xff]  ;;  %v5106_v36 = vld [vmem:[%s21537_s15 + $0xc8] sm:$0xff] }
 0xa6c   :  { %4790 = vmatmul.mubr.f32.vlgmr.msra.gmra.mrb[44].mxu0 %v17660_v57  ;;  %v2822_v57 = vld [vmem:[%s21536_s5 + $0xf8] sm:$0xff] }
 0xa6d   :  { %12727 = vmatpush1.bf16.msra.mxu0 %v18239_v18  ;;  %4884 = vmatprep.mubr.f32.mxu0 %v21681_v33  ;;  %v18280_v7 = vpack.c.bf16 %v2827_v46, %v2822_v57  ;;  %v5084_v57 = vld [vmem:[%s21537_s15 + $0x18] sm:$0xff]  ;;  %v5101_v46 = vld [vmem:[%s21537_s15 + $0xa0] sm:$0xff] }
 0xa6e   :  { %12729 = vmatprep.subr.bf16.mxu0 %v18242_v56  ;;  %v12774_v24 = vpack.c.bf16 %v5084_v57, %v5083_v8  ;;  %v12776_v53 = vpack.c.bf16 %v5102_v63, %v5101_v46  ;;  %v5109_v8 = vld [vmem:[%s21537_s15 + $0xe0] sm:$0xff]  ;;  %v5110_v57 = vld [vmem:[%s21537_s15 + $0xe8] sm:$0xff] }
 0xa6f   :  { %v12792_v63 = vpack.c.bf16 %v5110_v57, %v5109_v8  ;;  %v18455_v8 = vld [vmem:[%s21538_s4 + $0x48] sm:$0xff] }
 0xa71   :  { %12731 = vmatpush1.bf16.msra.mxu0 %v18258_v3 }
 0xa72   :  { %12733 = vmatprep.subr.bf16.mxu0 %v18262_v28 }
 0xa75   :  { %12735 = vmatpush1.bf16.msra.mxu0 %v18277_v54 }
 0xa76   :  { %12737 = vmatprep.subr.bf16.mxu0 %v18280_v7 }
 0xa79   :  { %12739 = vmatpush1.bf16.msra.mxu0 %v18289_v0 }
 0xa7a   :  { %12832 = vmatprep.subr.bf16.mxu0 %v21643_v60 }
 0xa7c   :  { %9677 = vmatmul.mubr.msk.f32.vlgmr.msra.gmra.mrb[46].mxu0 %vm1385_vm1, %v17940_v52  ;;  %v12839_v52 = vpack.c.bf16 %v5150_v55, %v5149_v25  ;;  %v12780_v25 = vpack.c.bf16 %v5104_v19, %v5103_v43  ;;  %v5087_v55 = vld [vmem:[%s21537_s15 + $0x30] sm:$0xff]  ;;  %v5112_v43 = vld [vmem:[%s21537_s15 + $0xf8] sm:$0xff] }
 0xa7d   :  { %4890 = vmatprep.mubr.f32.mxu0 %v21681_v33  ;;  %12834 = vmatpush3.bf16.msra.mxu0 %v12833_v59  ;;  %v5086_v59 = vld [vmem:[%s21537_s15 + $0x28] sm:$0xff] }
 0xa7e   :  { %12835 = vmatprep.subr.bf16.mxu0 %v21643_v60 }
 0xa80   :  { %9678 = vmatmul.mubr.msk.f32.gmra.mrb[48].mxu0 %vm1385_vm1, %v17978_v35  ;;  %v5097_v35 = vld [vmem:[%s21537_s15 + $0x80] sm:$0xff] }
 0xa81   :  { %4896 = vmatprep.mubr.f32.mxu0 %v21681_v33  ;;  %12837 = vmatpush3.bf16.msra.mxu0 %v12836_v51  ;;  %v12768_v44 = vpack.c.bf16 %v5098_v49, %v5097_v35  ;;  %v12778_v51 = vpack.c.bf16 %v5086_v59, %v5085_v41  ;;  %v12784_v35 = vpack.c.bf16 %v5106_v36, %v5105_v40  ;;  %v5089_v49 = vld [vmem:[%s21537_s15 + $0x40] sm:$0xff]  ;;  %v5111_v59 = vld [vmem:[%s21537_s15 + $0xf0] sm:$0xff]  ;;  %v5130_v40 = vld [vmem:[%s21537_s15 + $0x188] sm:$0xff] }
 0xa82   :  { %12838 = vmatprep.subr.bf16.mxu0 %v21643_v60  ;;  %v12796_v19 = vpack.c.bf16 %v5112_v43, %v5111_v59  ;;  %v5413_v43 = vpop.permute.xlu0 %5412 }
 0xa83   :  { %12769 = vmatprep.subr.bf16.mxu1 %v12768_v44  ;;  %v5107_v44 = vld [vmem:[%s21537_s15 + $0xd0] sm:$0xff] }
 0xa84   :  { %9679 = vmatmul.mubr.msk.f32.gmra.mrb[50].mxu0 %vm1385_vm1, %v18010_v38  ;;  %v5081_v38 = vld [vmem:[%s21537_s15] sm:$0xff] }
 0xa85   :  { %12840 = vmatpush3.bf16.msra.mxu0 %v12839_v52  ;;  %11244 = vmatprep.mubr.msk.f32.mxu0 %vm14145_vm3, %v21681_v33  ;;  %v12770_v47 = vpack.c.bf16 %v5082_v58, %v5081_v38  ;;  %v5088_v52 = vld [vmem:[%s21537_s15 + $0x38] sm:$0xff]  ;;  %v5090_v38 = vld [vmem:[%s21537_s15 + $0x48] sm:$0xff] }
 0xa86   :  { %12841 = vmatprep.subr.bf16.mxu0 %v21643_v60  ;;  %v5108_v58 = vld [vmem:[%s21537_s15 + $0xd8] sm:$0xff]  ;;  %v12786_v29 = vpack.c.bf16 %v5090_v38, %v5089_v49 }
 0xa87   :  { %12771 = vmatpush3.bf16.msra.mxu1 %v12770_v47  ;;  %v12788_v16 = vpack.c.bf16 %v5108_v58, %v5107_v44  ;;  %v5091_v47 = vld [vmem:[%s21537_s15 + $0x50] sm:$0xff] }
 0xa88   :  { %12773 = vmatprep.subr.bf16.mxu1 %v12772_v17  ;;  %v5092_v17 = vld [vmem:[%s21537_s15 + $0x58] sm:$0xff] }
 0xa89   :  { %12843 = vmatpush3.bf16.msra.mxu0 %v12842_v62  ;;  %v12782_v62 = vpack.c.bf16 %v5088_v52, %v5087_v55  ;;  %v12790_v46 = vpack.c.bf16 %v5092_v17, %v5091_v47  ;;  %v5129_v52 = vld [vmem:[%s21537_s15 + $0x180] sm:$0xff] }
 0xa8a   :  { %12845 = vmatprep.subr.bf16.mxu0 %v18225_v42  ;;  %v12800_v36 = vpack.c.bf16 %v5130_v40, %v5129_v52 }
 0xa8b   :  { %12775 = vmatpush3.bf16.msra.mxu1 %v12774_v24  ;;  %v5093_v24 = vld [vmem:[%s21537_s15 + $0x60] sm:$0xff] }
 0xa8c   :  { %12777 = vmatprep.subr.bf16.mxu1 %v12776_v53  ;;  %v5094_v53 = vld [vmem:[%s21537_s15 + $0x68] sm:$0xff] }
 0xa8d   :  { %v12794_v41 = vpack.c.bf16 %v5094_v53, %v5093_v24  ;;  %v18466_v24 = vld [vmem:[%s21538_s4 + $0x70] sm:$0x3] }
 0xa8f   :  { %12779 = vmatpush3.bf16.msra.mxu1 %v12778_v51  ;;  %v5095_v51 = vld [vmem:[%s21537_s15 + $0x70] sm:$0xff] }
 0xa90   :  { %12781 = vmatprep.subr.bf16.mxu1 %v12780_v25  ;;  %v5096_v25 = vld [vmem:[%s21537_s15 + $0x78] sm:$0xff] }
 0xa91   :  { %v12798_v55 = vpack.c.bf16 %v5096_v25, %v5095_v51  ;;  %v5415_v51 = vpop.permute.xlu0 %5414 }
 0xa93   :  { %12783 = vmatpush3.bf16.msra.mxu1 %v12782_v62 }
 0xa94   :  { %12785 = vmatprep.subr.bf16.mxu1 %v12784_v35 }
 0xa95   :  { %v5417_v40 = vpop.permute.xlu0 %5416 }
 0xa97   :  { %12787 = vmatpush3.bf16.msra.mxu1 %v12786_v29  ;;  %v18449_v29 = vld [vmem:[%s21538_s4 + $0x20] sm:$0xff] }
 0xa98   :  { %12789 = vmatprep.subr.bf16.mxu1 %v12788_v16 }
 0xa9b   :  { %12791 = vmatpush3.bf16.msra.mxu1 %v12790_v46 }
 0xa9c   :  { %12793 = vmatprep.subr.bf16.mxu1 %v12792_v63 }
 0xa9f   :  { %12795 = vmatpush3.bf16.msra.mxu1 %v12794_v41 }
 0xaa0   :  { %12797 = vmatprep.subr.bf16.mxu1 %v12796_v19  ;;  %v5404_v19 = vpop.permute.xlu1 %5403 }
 0xaa1   :  { %v18481_v25 = vsel %vm4807_vm7, %v5404_v19, %v5413_v43 }
 0xaa3   :  { %12799 = vmatpush3.bf16.msra.mxu1 %v12798_v55 }
 0xaa4   :  { %12801 = vmatprep.subr.bf16.mxu1 %v12800_v36  ;;  %v5406_v55 = vpop.permute.xlu1 %5405 }
 0xaa5   :  { %v18489_v52 = vsel %vm4807_vm7, %v5406_v55, %v5415_v51  ;;  %v18543_v55 = vld [vmem:[%s21538_s4 + $0x30] sm:$0xff] }
 0xaa8   :  { %v5408_v36 = vpop.permute.xlu1 %5407 }
 0xaf0   :  { %v18434_v62 = vpop.f32.mrb[62].mxu1 }
 0xaf1   :  { %v18436_v35 = vpop.f32.mrb[63].mxu1 }
 0xaf4   :  { %v18438_v49 = vpop.f32.mrb[64].mxu1 }
 0xaf5   :  { %v18440_v38 = vpop.f32.mrb[65].mxu1 }
 0xaf8   :  { %v18442_v44 = vpop.f32.mrb[66].mxu1 }
 0xaf9   :  { %v18444_v58 = vpop.f32.mrb[67].mxu1 }
 0xb00   :  { %v5052_v16 = vpop.f32.mrb[68].mxu1 }
 0xb01   :  { %v5070_v47 = vmul.f32 %v5052_v16, %v18449_v29  ;;  %v11221_v17 = vpop.f32.mrb[69].mxu1  ;;  %v18497_v16 = vsel %vm4807_vm7, %v5408_v36, %v5417_v40  ;;  %v5115_v36 = vld [vmem:[%s21537_s15 + $0x110] sm:$0xff] }
 0xb02   :  { %v5113_v17 = vld [vmem:[%s21537_s15 + $0x100] sm:$0xff]  ;;  %v12806_v15 = vpack.c.bf16 %v5116_v32, %v5115_v36  ;;  %v18578_v32 = vld [vmem:[%s21538_s4 + $0x50] sm:$0x3]  ;;  %v5136_v36 = vld [vmem:[%s21537_s15 + $0x1b8] sm:$0xff] }
 0xb03   :  { %11245 = vmatmul.mubr.msk.f32.vlgmr.msra.gmra.mrb[52].mxu0 %vm1385_vm1, %v5070_v47  ;;  %v18519_v47 = vld [vmem:[%s21538_s4 + $0x8] sm:$0xff] }
 0xb04   :  { %12847 = vmatpush1.bf16.msra.mxu0 %v18239_v18  ;;  %v5057_v57 = vpop.f32.mrb[70].mxu1  ;;  %11247 = vmatprep.mubr.msk.f32.mxu0 %vm14145_vm3, %v21681_v33 }
 0xb05   :  { %v5075_v46 = vmul.f32 %v5057_v57, %v18455_v8  ;;  %v11224_v63 = vpop.f32.mrb[71].mxu1  ;;  %12849 = vmatprep.subr.bf16.mxu0 %v18242_v56  ;;  %v5114_v57 = vld [vmem:[%s21537_s15 + $0x108] sm:$0xff] }
 0xb06   :  { %v12802_v19 = vpack.c.bf16 %v5114_v57, %v5113_v17  ;;  %v18554_v17 = vld [vmem:[%s21538_s4 + $0x28] sm:$0xff] }
 0xb07   :  { %11248 = vmatmul.mubr.msk.f32.gmra.mrb[54].mxu0 %vm1385_vm1, %v5075_v46  ;;  %v18530_v46 = vld [vmem:[%s21538_s4] sm:$0xff] }
 0xb08   :  { %12851 = vmatpush1.bf16.msra.mxu0 %v18258_v3  ;;  %v5062_v53 = vpop.f32.mrb[72].mxu1  ;;  %11250 = vmatprep.mubr.msk.f32.mxu0 %vm14145_vm3, %v21681_v33 }
 0xb09   :  { %v5080_v41 = vmul.f32 %v5062_v53, %v18466_v24  ;;  %v11227_v59 = vpop.f32.mrb[73].mxu1  ;;  %12853 = vmatprep.subr.bf16.mxu0 %v18262_v28  ;;  %v5131_v53 = vld [vmem:[%s21537_s15 + $0x190] sm:$0xff] }
 0xb0b   :  { %11251 = vmatmul.mubr.msk.f32.gmra.mrb[56].mxu0 %vm1385_vm1, %v5080_v41  ;;  %v5132_v41 = vld [vmem:[%s21537_s15 + $0x198] sm:$0xff] }
 0xb0c   :  { %12855 = vmatpush1.bf16.msra.mxu0 %v18277_v54  ;;  %5497 = vmatprep.mubr.f32.mxu0 %v21681_v33  ;;  %v12804_v40 = vpack.c.bf16 %v5132_v41, %v5131_v53  ;;  %v5134_v53 = vld [vmem:[%s21537_s15 + $0x1a8] sm:$0xff] }
 0xb0d   :  { %12857 = vmatprep.subr.bf16.mxu0 %v18280_v7 }
 0xb10   :  { %12859 = vmatpush1.bf16.msra.mxu0 %v18289_v0 }
 0xb11   :  { %12876 = vmatprep.subr.bf16.mxu0 %v21643_v60 }
 0xb13   :  { %9689 = vmatmul.mubr.msk.f32.vlgmr.msra.gmra.mrb[58].mxu0 %vm1385_vm1, %v18481_v25 }
 0xb14   :  { %12878 = vmatpush3.bf16.msra.mxu0 %v17922_v30  ;;  %5503 = vmatprep.mubr.f32.mxu0 %v21681_v33 }
 0xb15   :  { %12879 = vmatprep.subr.bf16.mxu0 %v21643_v60 }
 0xb17   :  { %9690 = vmatmul.mubr.msk.f32.gmra.mrb[60].mxu0 %vm1385_vm1, %v18489_v52 }
 0xb18   :  { %12881 = vmatpush3.bf16.msra.mxu0 %v17954_v13  ;;  %5509 = vmatprep.mubr.f32.mxu0 %v21681_v33 }
 0xb19   :  { %12882 = vmatprep.subr.bf16.mxu0 %v21643_v60 }
 0xb1b   :  { %9691 = vmatmul.mubr.msk.f32.gmra.mrb[62].mxu0 %vm1385_vm1, %v18497_v16 }
 0xb1c   :  { %12884 = vmatpush3.bf16.msra.mxu0 %v17986_v22  ;;  %11269 = vmatprep.mubr.msk.f32.mxu0 %vm14145_vm3, %v21681_v33 }
 0xb1d   :  { %12885 = vmatprep.subr.bf16.mxu0 %v21643_v60 }
 0xb20   :  { %12887 = vmatpush3.bf16.msra.mxu0 %v18015_v14 }
 0xb23   :  { %11270 = vmatmul.mubr.msk.f32.vlgmr.msra.gmra.mrb[64].mxu0 %vm1385_vm1, %v18481_v25 }
 0xb24   :  { %11272 = vmatprep.mubr.msk.f32.mxu0 %vm14145_vm3, %v21681_v33 }
 0xb27   :  { %11273 = vmatmul.mubr.msk.f32.gmra.mrb[66].mxu0 %vm1385_vm1, %v18489_v52 }
 0xb28   :  { %11275 = vmatprep.mubr.msk.f32.mxu0 %vm14145_vm3, %v21681_v33 }
 0xb2b   :  { %11276 = vmatmul.mubr.msk.f32.gmra.mrb[68].mxu0 %vm1385_vm1, %v18497_v16 }
 0xb4f   :  { %v4886_v63 = vpop.f32.mrb[46].mxu0 }
 0xb50   :  { %v4888_v59 = vpop.f32.mrb[47].mxu0  ;;  %v5066_v51 = vmul.f32 %v4886_v63, %v18530_v46  ;;  %v5133_v63 = vld [vmem:[%s21537_s15 + $0x1a0] sm:$0xff] }
 0xb51   :  { %v5067_v43 = vmul.f32 %v4888_v59, %v18519_v47  ;;  %v12808_v61 = vpack.c.bf16 %v5134_v53, %v5133_v63 }
 0xb53   :  { %v4892_v57 = vpop.f32.mrb[48].mxu0  ;;  %5226 = vmatprep.mubr.f32.mxu1 %v5067_v43  ;;  %v18567_v43 = vld [vmem:[%s21538_s4 + $0x58] sm:$0x3] }
 0xb54   :  { %v4894_v41 = vpop.f32.mrb[49].mxu0  ;;  %5227 = vmatmul.mubr.f32.vlgmr.msra.gmra.mrb[74].mxu1 %v5066_v51  ;;  %v5071_v60 = vmul.f32 %v4892_v57, %v18554_v17  ;;  %v5118_v51 = vld [vmem:[%s21537_s15 + $0x128] sm:$0xff]  ;;  %v18589_v57 = vld [vmem:[%s21538_s4 + $0x18] sm:$0xff] }
 0xb55   :  { %v5072_v59 = vmul.f32 %v4894_v41, %v18543_v55  ;;  %12803 = vmatpush3.bf16.msra.mxu1 %v12802_v19  ;;  %v12810_v41 = vpack.c.bf16 %v5118_v51, %v5117_v20  ;;  %v5069_v21 = vmul.f32 %v18436_v35, %v18589_v57  ;;  %v12814_v20 = vpack.c.bf16 %v5120_v4, %v5119_v50  ;;  %v5121_v51 = vld [vmem:[%s21537_s15 + $0x140] sm:$0xff]  ;;  %v5122_v35 = vld [vmem:[%s21537_s15 + $0x148] sm:$0xff]  ;;  %v5123_v50 = vld [vmem:[%s21537_s15 + $0x150] sm:$0xff] }
 0xb56   :  { %12805 = vmatprep.subr.bf16.mxu1 %v12804_v40  ;;  %v5135_v40 = vld [vmem:[%s21537_s15 + $0x1b0] sm:$0xff]  ;;  %v12818_v4 = vpack.c.bf16 %v5122_v35, %v5121_v51 }
 0xb57   :  { %v4898_v19 = vpop.f32.mrb[50].mxu0  ;;  %5231 = vmatprep.mubr.f32.mxu1 %v5072_v59  ;;  %v12812_v6 = vpack.c.bf16 %v5136_v36, %v5135_v40  ;;  %v5140_v40 = vld [vmem:[%s21537_s15 + $0x1d8] sm:$0xff]  ;;  %v5141_v36 = vld [vmem:[%s21537_s15 + $0x1e0] sm:$0xff]  ;;  %v5127_v35 = vld [vmem:[%s21537_s15 + $0x170] sm:$0xff] }
 0xb58   :  { %v4900_v63 = vpop.f32.mrb[51].mxu0  ;;  %5232 = vmatmul.mubr.f32.gmra.mrb[76].mxu1 %v5071_v60  ;;  %v5076_v59 = vmul.f32 %v4898_v19, %v18578_v32  ;;  %v5139_v19 = vld [vmem:[%s21537_s15 + $0x1d0] sm:$0xff] }
 0xb59   :  { %v5077_v53 = vmul.f32 %v4900_v63, %v18567_v43  ;;  %12807 = vmatpush3.bf16.msra.mxu1 %v12806_v15  ;;  %v5137_v15 = vld [vmem:[%s21537_s15 + $0x1c0] sm:$0xff]  ;;  %v5142_v63 = vld [vmem:[%s21537_s15 + $0x1e8] sm:$0xff] }
 0xb5a   :  { %12809 = vmatprep.subr.bf16.mxu1 %v12808_v61  ;;  %v5138_v61 = vld [vmem:[%s21537_s15 + $0x1c8] sm:$0xff] }
 0xb5b   :  { %5236 = vmatprep.mubr.f32.mxu1 %v5077_v53  ;;  %v12816_v60 = vpack.c.bf16 %v5138_v61, %v5137_v15  ;;  %v5126_v15 = vld [vmem:[%s21537_s15 + $0x168] sm:$0xff]  ;;  %v5143_v61 = vld [vmem:[%s21537_s15 + $0x1f0] sm:$0xff] }
 0xb5c   :  { %5237 = vmatmul.mubr.f32.gmra.mrb[78].mxu1 %v5076_v59  ;;  %v5125_v59 = vld [vmem:[%s21537_s15 + $0x160] sm:$0xff] }
 0xb5d   :  { %12811 = vmatpush3.bf16.msra.mxu1 %v12810_v41  ;;  %5306 = vmatprep.mubr.f32.mxu1 %v5069_v21  ;;  %v5124_v21 = vld [vmem:[%s21537_s15 + $0x158] sm:$0xff]  ;;  %v12824_v41 = vpack.c.bf16 %v5142_v63, %v5141_v36  ;;  %v18672_v63 = vld [vmem:[%s21538_s4 + $0x68] sm:$0x3] }
 0xb5e   :  { %12813 = vmatprep.subr.bf16.mxu1 %v12812_v6  ;;  %v12820_v6 = vpack.c.bf16 %v5140_v40, %v5139_v19  ;;  %v12822_v53 = vpack.c.bf16 %v5124_v21, %v5123_v50  ;;  %v5128_v19 = vld [vmem:[%s21537_s15 + $0x178] sm:$0xff] }
 0xb5f   :  { %v12830_v40 = vpack.c.bf16 %v5128_v19, %v5127_v35  ;;  %v18665_v21 = vld [vmem:[%s21538_s4 + $0x38] sm:$0xff]  ;;  %v9700_v35 = vld [vmem:[%s21537_s15 + $0x250] sm:$0xff] }
 0xb60   :  { %v9701_v19 = vld [vmem:[%s21537_s15 + $0x258] sm:$0xff] }
 0xb61   :  { %12815 = vmatpush3.bf16.msra.mxu1 %v12814_v20  ;;  %v5144_v20 = vld [vmem:[%s21537_s15 + $0x1f8] sm:$0xff] }
 0xb62   :  { %12817 = vmatprep.subr.bf16.mxu1 %v12816_v60  ;;  %v12826_v60 = vpack.c.bf16 %v5126_v15, %v5125_v59  ;;  %v12828_v51 = vpack.c.bf16 %v5144_v20, %v5143_v61  ;;  %v9715_v59 = vld [vmem:[%s21537_s15 + $0x2c8] sm:$0xff]  ;;  %v9716_v61 = vld [vmem:[%s21537_s15 + $0x2d0] sm:$0xff]  ;;  %v9717_v20 = vld [vmem:[%s21537_s15 + $0x2d8] sm:$0xff] }
 0xb63   :  { %v9699_v15 = vld [vmem:[%s21537_s15 + $0x248] sm:$0xff] }
 0xb65   :  { %12819 = vmatpush3.bf16.msra.mxu1 %v12818_v4  ;;  %v18652_v4 = vld [vmem:[%s21538_s4 + $0x10] sm:$0xff] }
 0xb66   :  { %12821 = vmatprep.subr.bf16.mxu1 %v12820_v6  ;;  %v18657_v6 = vld [vmem:[%s21538_s4 + $0x40] sm:$0xff]  ;;  %v5068_v50 = vmul.f32 %v18434_v62, %v18652_v4  ;;  %v5073_v62 = vmul.f32 %v18438_v49, %v18665_v21 }
 0xb67   :  { %v5074_v36 = vmul.f32 %v18440_v38, %v18657_v6  ;;  %v5079_v38 = vmul.f32 %v18444_v58, %v18672_v63  ;;  %v9714_v49 = vld [vmem:[%s21537_s15 + $0x2c0] sm:$0xff] }
 0xb68   :  { %v12888_v58 = vpack.c.bf16 %v9715_v59, %v9714_v49  ;;  %v9720_v49 = vld [vmem:[%s21537_s15 + $0x2f0] sm:$0xff] }
 0xb69   :  { %12823 = vmatpush3.bf16.msra.mxu1 %v12822_v53  ;;  %v18681_v53 = vld [vmem:[%s21538_s4 + $0x60] sm:$0x3] }
 0xb6a   :  { %12825 = vmatprep.subr.bf16.mxu1 %v12824_v41  ;;  %v5078_v41 = vmul.f32 %v18442_v44, %v18681_v53  ;;  %v9698_v44 = vld [vmem:[%s21537_s15 + $0x240] sm:$0xff] }
 0xb6d   :  { %12827 = vmatpush3.bf16.msra.mxu1 %v12826_v60  ;;  %v12890_v60 = vpack.c.bf16 %v9699_v15, %v9698_v44  ;;  %v9704_v44 = vld [vmem:[%s21537_s15 + $0x270] sm:$0xff]  ;;  %v9705_v15 = vld [vmem:[%s21537_s15 + $0x278] sm:$0xff] }
 0xb6e   :  { %12829 = vmatprep.subr.bf16.mxu1 %v12828_v51  ;;  %v12892_v51 = vpack.c.bf16 %v9717_v20, %v9716_v61  ;;  %v9722_v61 = vld [vmem:[%s21537_s15 + $0x300] sm:$0xff]  ;;  %v12902_v20 = vpack.c.bf16 %v9705_v15, %v9704_v44  ;;  %v9728_v44 = vld [vmem:[%s21537_s15 + $0x330] sm:$0xff]  ;;  %v9729_v15 = vld [vmem:[%s21537_s15 + $0x338] sm:$0xff] }
 0xb71   :  { %12831 = vmatpush3.bf16.msra.mxu1 %v12830_v40  ;;  %v9718_v40 = vld [vmem:[%s21537_s15 + $0x2e0] sm:$0xff] }
 0xb72   :  { %12861 = vmatprep.subr.bf16.mxu1 %v17784_v12 }
 0xb74   :  { %5307 = vmatmul.mubr.f32.vlgmr.msra.gmra.mrb[80].mxu1 %v5068_v50  ;;  %v9719_v50 = vld [vmem:[%s21537_s15 + $0x2e8] sm:$0xff] }
 0xb75   :  { %5311 = vmatprep.mubr.f32.mxu1 %v5074_v36  ;;  %12863 = vmatpush1.bf16.msra.mxu1 %v17811_v26  ;;  %v12894_v36 = vpack.c.bf16 %v9701_v19, %v9700_v35  ;;  %v9707_v35 = vld [vmem:[%s21537_s15 + $0x288] sm:$0xff]  ;;  %v9724_v19 = vld [vmem:[%s21537_s15 + $0x310] sm:$0xff] }
 0xb76   :  { %12865 = vmatprep.subr.bf16.mxu1 %v17822_v31 }
 0xb78   :  { %5312 = vmatmul.mubr.f32.gmra.mrb[82].mxu1 %v5073_v62  ;;  %v12896_v62 = vpack.c.bf16 %v9719_v50, %v9718_v40 }
 0xb79   :  { %5316 = vmatprep.mubr.f32.mxu1 %v5079_v38  ;;  %12867 = vmatpush1.bf16.msra.mxu1 %v17843_v45  ;;  %v9702_v38 = vld [vmem:[%s21537_s15 + $0x260] sm:$0xff] }
 0xb7a   :  { %12869 = vmatprep.subr.bf16.mxu1 %v17855_v48 }
 0xb7c   :  { %5317 = vmatmul.mubr.f32.gmra.mrb[84].mxu1 %v5078_v41  ;;  %v9703_v41 = vld [vmem:[%s21537_s15 + $0x268] sm:$0xff] }
 0xb7d   :  { %12871 = vmatpush1.bf16.msra.mxu1 %v17874_v39  ;;  %5580 = vmatprep.mubr.f32.mxu1 %v21681_v33  ;;  %v12898_v59 = vpack.c.bf16 %v9703_v41, %v9702_v38  ;;  %v9726_v38 = vld [vmem:[%s21537_s15 + $0x320] sm:$0xff]  ;;  %v9727_v41 = vld [vmem:[%s21537_s15 + $0x328] sm:$0xff] }
 0xb7e   :  { %12873 = vmatprep.subr.bf16.mxu1 %v17886_v34 }
 0xb81   :  { %12875 = vmatpush1.bf16.msra.mxu1 %v17898_v11 }
 0xb82   :  { %12889 = vmatprep.subr.bf16.mxu1 %v12888_v58 }
 0xb84   :  { %9692 = vmatmul.mubr.msk.f32.vlgmr.msra.gmra.mrb[86].mxu1 %vm1385_vm1, %v18481_v25  ;;  %v9721_v25 = vld [vmem:[%s21537_s15 + $0x2f8] sm:$0xff] }
 0xb85   :  { %5586 = vmatprep.mubr.f32.mxu1 %v21681_v33  ;;  %12891 = vmatpush3.bf16.msra.mxu1 %v12890_v60  ;;  %v12900_v58 = vpack.c.bf16 %v9721_v25, %v9720_v49  ;;  %v12912_v25 = vpack.c.bf16 %v9727_v41, %v9726_v38  ;;  %v9749_v38 = vld [vmem:[%s21537_s15 + $0x3d8] sm:$0xff] }
 0xb86   :  { %12893 = vmatprep.subr.bf16.mxu1 %v12892_v51  ;;  %v9706_v51 = vld [vmem:[%s21537_s15 + $0x280] sm:$0xff] }
 0xb87   :  { %v12906_v40 = vpack.c.bf16 %v9707_v35, %v9706_v51  ;;  %v21850_v35 = vmov 0.0|0.0  }
 0xb88   :  { %9693 = vmatmul.mubr.msk.f32.gmra.mrb[88].mxu1 %vm1385_vm1, %v18489_v52  ;;  %v9723_v52 = vld [vmem:[%s21537_s15 + $0x308] sm:$0xff] }
 0xb89   :  { %5592 = vmatprep.mubr.f32.mxu1 %v21681_v33  ;;  %12895 = vmatpush3.bf16.msra.mxu1 %v12894_v36  ;;  %v12904_v60 = vpack.c.bf16 %v9723_v52, %v9722_v61  ;;  %v9708_v36 = vld [vmem:[%s21537_s15 + $0x290] sm:$0xff]  ;;  %v12916_v52 = vpack.c.bf16 %v9729_v15, %v9728_v44  ;;  %v9751_v44 = vld [vmem:[%s21537_s15 + $0x3e8] sm:$0xff] }
 0xb8a   :  { %12897 = vmatprep.subr.bf16.mxu1 %v12896_v62  ;;  %v9709_v62 = vld [vmem:[%s21537_s15 + $0x298] sm:$0xff] }
 0xb8b   :  { %v12910_v49 = vpack.c.bf16 %v9709_v62, %v9708_v36  ;;  %v9731_v36 = vld [vmem:[%s21537_s15 + $0x348] sm:$0xff]  ;;  %v9748_v62 = vld [vmem:[%s21537_s15 + $0x3d0] sm:$0xff] }
 0xb8c   :  { %9694 = vmatmul.mubr.msk.f32.gmra.mrb[90].mxu1 %vm1385_vm1, %v18497_v16  ;;  %v9725_v16 = vld [vmem:[%s21537_s15 + $0x318] sm:$0xff] }
 0xb8d   :  { %12899 = vmatpush3.bf16.msra.mxu1 %v12898_v59  ;;  %v12908_v50 = vpack.c.bf16 %v9725_v16, %v9724_v19  ;;  %v9710_v59 = vld [vmem:[%s21537_s15 + $0x2a0] sm:$0xff]  ;;  %v9747_v16 = vld [vmem:[%s21537_s15 + $0x3c8] sm:$0xff] }
 0xb8e   :  { %12901 = vmatprep.subr.bf16.mxu1 %v12900_v58  ;;  %v9711_v58 = vld [vmem:[%s21537_s15 + $0x2a8] sm:$0xff]  ;;  %v9746_v19 = vld [vmem:[%s21537_s15 + $0x3c0] sm:$0xff] }
 0xb8f   :  { %v12914_v61 = vpack.c.bf16 %v9711_v58, %v9710_v59  ;;  %v9733_v59 = vld [vmem:[%s21537_s15 + $0x358] sm:$0xff]  ;;  %v9750_v58 = vld [vmem:[%s21537_s15 + $0x3e0] sm:$0xff] }
 0xb91   :  { %12903 = vmatpush3.bf16.msra.mxu1 %v12902_v20  ;;  %v9712_v20 = vld [vmem:[%s21537_s15 + $0x2b0] sm:$0xff] }
 0xb92   :  { %12905 = vmatprep.subr.bf16.mxu1 %v12904_v60  ;;  %v9713_v60 = vld [vmem:[%s21537_s15 + $0x2b8] sm:$0xff] }
 0xb93   :  { %v12918_v51 = vpack.c.bf16 %v9713_v60, %v9712_v20  ;;  %v9735_v20 = vld [vmem:[%s21537_s15 + $0x368] sm:$0xff] }
 0xb95   :  { %12907 = vmatpush3.bf16.msra.mxu1 %v12906_v40  ;;  %v9730_v40 = vld [vmem:[%s21537_s15 + $0x340] sm:$0xff] }
 0xb96   :  { %12909 = vmatprep.subr.bf16.mxu1 %v12908_v50  ;;  %v12920_v50 = vpack.c.bf16 %v9747_v16, %v9746_v19  ;;  %v12922_v41 = vpack.c.bf16 %v9731_v36, %v9730_v40  ;;  %v9753_v19 = vld [vmem:[%s21537_s15 + $0x3f8] sm:$0xff]  ;;  %v9736_v40 = vld [vmem:[%s21537_s15 + $0x370] sm:$0xff] }
 0xb98   :  { %12921 = vmatprep.subr.bf16.mxu0 %v12920_v50  ;;  %v9737_v50 = vld [vmem:[%s21537_s15 + $0x378] sm:$0xff] }
 0xb99   :  { %12911 = vmatpush3.bf16.msra.mxu1 %v12910_v49  ;;  %v12924_v49 = vpack.c.bf16 %v9749_v38, %v9748_v62  ;;  %12923 = vmatpush3.bf16.msra.mxu0 %v12922_v41  ;;  %v12934_v36 = vpack.c.bf16 %v9737_v50, %v9736_v40  ;;  %v9754_v62 = vld [vmem:[%s21537_s15 + $0x400] sm:$0xff]  ;;  %v9755_v38 = vld [vmem:[%s21537_s15 + $0x408] sm:$0xff] }
 0xb9a   :  { %12913 = vmatprep.subr.bf16.mxu1 %v12912_v25  ;;  %v9732_v25 = vld [vmem:[%s21537_s15 + $0x350] sm:$0xff]  ;;  %v12936_v41 = vpack.c.bf16 %v9755_v38, %v9754_v62  ;;  %v9743_v40 = vld [vmem:[%s21537_s15 + $0x3a8] sm:$0xff]  ;;  %v9761_v38 = vld [vmem:[%s21537_s15 + $0x438] sm:$0xff] }
 0xb9b   :  { %v12926_v15 = vpack.c.bf16 %v9733_v59, %v9732_v25  ;;  %12925 = vmatprep.subr.bf16.mxu0 %v12924_v49  ;;  %v9738_v49 = vld [vmem:[%s21537_s15 + $0x380] sm:$0xff]  ;;  %v9739_v25 = vld [vmem:[%s21537_s15 + $0x388] sm:$0xff]  ;;  %v9760_v62 = vld [vmem:[%s21537_s15 + $0x430] sm:$0xff] }
 0xb9c   :  { %v12938_v59 = vpack.c.bf16 %v9739_v25, %v9738_v49  ;;  %v12948_v49 = vpack.c.bf16 %v9761_v38, %v9760_v62  ;;  %v9744_v25 = vld [vmem:[%s21537_s15 + $0x3b0] sm:$0xff]  ;;  %v9765_v38 = vld [vmem:[%s21537_s15 + $0x458] sm:$0xff] }
 0xb9d   :  { %12915 = vmatpush3.bf16.msra.mxu1 %v12914_v61  ;;  %v12928_v61 = vpack.c.bf16 %v9751_v44, %v9750_v58  ;;  %12927 = vmatpush3.bf16.msra.mxu0 %v12926_v15  ;;  %v9756_v58 = vld [vmem:[%s21537_s15 + $0x410] sm:$0xff]  ;;  %v9757_v44 = vld [vmem:[%s21537_s15 + $0x418] sm:$0xff] }
 0xb9e   :  { %12917 = vmatprep.subr.bf16.mxu1 %v12916_v52  ;;  %v9734_v52 = vld [vmem:[%s21537_s15 + $0x360] sm:$0xff]  ;;  %v12940_v15 = vpack.c.bf16 %v9757_v44, %v9756_v58  ;;  %v9764_v62 = vld [vmem:[%s21537_s15 + $0x450] sm:$0xff] }
 0xb9f   :  { %v12930_v60 = vpack.c.bf16 %v9735_v20, %v9734_v52  ;;  %12929 = vmatprep.subr.bf16.mxu0 %v12928_v61  ;;  %v9740_v61 = vld [vmem:[%s21537_s15 + $0x390] sm:$0xff]  ;;  %v9741_v52 = vld [vmem:[%s21537_s15 + $0x398] sm:$0xff] }
 0xba0   :  { %v12942_v20 = vpack.c.bf16 %v9741_v52, %v9740_v61 }
 0xba1   :  { %12919 = vmatpush3.bf16.msra.mxu1 %v12918_v51  ;;  %12931 = vmatpush3.bf16.msra.mxu0 %v12930_v60  ;;  %v9752_v51 = vld [vmem:[%s21537_s15 + $0x3f0] sm:$0xff]  ;;  %v9758_v60 = vld [vmem:[%s21537_s15 + $0x420] sm:$0xff] }
 0xba2   :  { %12952 = vmatprep.subr.bf16.mxu1 %v21850_v35  ;;  %v12932_v16 = vpack.c.bf16 %v9753_v19, %v9752_v51  ;;  %v9759_v51 = vld [vmem:[%s21537_s15 + $0x428] sm:$0xff] }
 0xba3   :  { %v12944_v19 = vpack.c.bf16 %v9759_v51, %v9758_v60  ;;  %v9763_v60 = vld [vmem:[%s21537_s15 + $0x448] sm:$0xff] }
 0xba4   :  { %12933 = vmatprep.subr.bf16.mxu0 %v12932_v16  ;;  %v9742_v16 = vld [vmem:[%s21537_s15 + $0x3a0] sm:$0xff] }
 0xba5   :  { %12935 = vmatpush3.bf16.msra.mxu0 %v12934_v36  ;;  %v12946_v50 = vpack.c.bf16 %v9743_v40, %v9742_v16 }
 0xba6   :  { %12937 = vmatprep.subr.bf16.mxu0 %v12936_v41 }
 0xba9   :  { %12939 = vmatpush3.bf16.msra.mxu0 %v12938_v59  ;;  %v9745_v59 = vld [vmem:[%s21537_s15 + $0x3b8] sm:$0xff] }
 0xbaa   :  { %12941 = vmatprep.subr.bf16.mxu0 %v12940_v15  ;;  %v12950_v58 = vpack.c.bf16 %v9745_v59, %v9744_v25  ;;  %v12956_v59 = vpack.c.bf16 %v9765_v38, %v9764_v62 }
 0xbad   :  { %12943 = vmatpush3.bf16.msra.mxu0 %v12942_v20  ;;  %v9762_v20 = vld [vmem:[%s21537_s15 + $0x440] sm:$0xff] }
 0xbae   :  { %12945 = vmatprep.subr.bf16.mxu0 %v12944_v19  ;;  %v12953_v40 = vpack.c.bf16 %v9763_v60, %v9762_v20  ;;  %v9768_v60 = vld [vmem:[%s21537_s15 + $0x470] sm:$0xff] }
 0xbb1   :  { %12947 = vmatpush3.bf16.msra.mxu0 %v12946_v50 }
 0xbb2   :  { %12949 = vmatprep.subr.bf16.mxu0 %v12948_v49 }
 0xbb5   :  { %12951 = vmatpush3.bf16.msra.mxu0 %v12950_v58  ;;  %v9767_v58 = vld [vmem:[%s21537_s15 + $0x468] sm:$0xff] }
 0xbb6   :  { %12965 = vmatprep.subr.bf16.mxu0 %v18225_v42 }
 0xbd6   :  { %v18882_v36 = vpop.f32.mrb[52].mxu0 }
 0xbd7   :  { %v11246_v41 = vpop.f32.mrb[53].mxu0 }
 0xbda   :  { %v18896_v44 = vpop.f32.mrb[54].mxu0 }
 0xbdb   :  { %v11249_v15 = vpop.f32.mrb[55].mxu0 }
 0xbde   :  { %v18899_v61 = vpop.f32.mrb[56].mxu0 }
 0xbdf   :  { %v11252_v52 = vpop.f32.mrb[57].mxu0 }
 0xbe6   :  { %v5499_v51 = vpop.f32.mrb[58].mxu0 }
 0xbe7   :  { %v5501_v19 = vpop.f32.mrb[59].mxu0  ;;  %v5679_v50 = vmul.f32 %v5499_v51, %v18530_v46  ;;  %v9766_v46 = vld [vmem:[%s21537_s15 + $0x460] sm:$0xff]  ;;  %v9769_v51 = vld [vmem:[%s21537_s15 + $0x478] sm:$0xff] }
 0xbe8   :  { %v5680_v16 = vmul.f32 %v5501_v19, %v18519_v47  ;;  %v12959_v20 = vpack.c.bf16 %v9767_v58, %v9766_v46  ;;  %v12962_v19 = vpack.c.bf16 %v9769_v51, %v9768_v60 }
 0xbea   :  { %v5505_v41 = vpop.f32.mrb[60].mxu0  ;;  %5840 = vmatprep.mubr.f32.mxu1 %v5680_v16 }
 0xbeb   :  { %v5507_v49 = vpop.f32.mrb[61].mxu0  ;;  %5841 = vmatmul.mubr.f32.vlgmr.msra.gmra.mrb[92].mxu1 %v5679_v50  ;;  %v5684_v47 = vmul.f32 %v5505_v41, %v18554_v17 }
 0xbec   :  { %v5685_v25 = vmul.f32 %v5507_v49, %v18543_v55  ;;  %12954 = vmatpush3.bf16.msra.mxu1 %v12953_v40  ;;  %v6017_v49 = vpop.permute.xlu1 %6016 }
 0xbed   :  { %12955 = vmatprep.subr.bf16.mxu1 %v21850_v35 }
 0xbee   :  { %v5511_v15 = vpop.f32.mrb[62].mxu0  ;;  %5845 = vmatprep.mubr.f32.mxu1 %v5685_v25 }
 0xbef   :  { %v5513_v52 = vpop.f32.mrb[63].mxu0  ;;  %5846 = vmatmul.mubr.f32.gmra.mrb[94].mxu1 %v5684_v47  ;;  %v5689_v17 = vmul.f32 %v5511_v15, %v18578_v32 }
 0xbf0   :  { %v5690_v55 = vmul.f32 %v5513_v52, %v18567_v43  ;;  %12957 = vmatpush3.bf16.msra.mxu1 %v12956_v59  ;;  %v6019_v59 = vpop.permute.xlu1 %6018 }
 0xbf1   :  { %12958 = vmatprep.subr.bf16.mxu1 %v21850_v35 }
 0xbf2   :  { %5850 = vmatprep.mubr.f32.mxu1 %v5690_v55 }
 0xbf3   :  { %5851 = vmatmul.mubr.f32.gmra.mrb[96].mxu1 %v5689_v17 }
 0xbf4   :  { %12960 = vmatpush3.bf16.msra.mxu1 %v12959_v20  ;;  %11294 = vmatprep.mubr.msk.f32.mxu1 %vm14145_vm3, %v21681_v33  ;;  %v6021_v58 = vpop.permute.xlu1 %6020 }
 0xbf5   :  { %12961 = vmatprep.subr.bf16.mxu1 %v21850_v35 }
 0xbf6   :  { %v5665_v43 = vpop.f32.mrb[64].mxu0 }
 0xbf7   :  { %v5683_v32 = vmul.f32 %v5665_v43, %v18449_v29  ;;  %v11271_v16 = vpop.f32.mrb[65].mxu0 }
 0xbf8   :  { %12963 = vmatpush3.bf16.msra.mxu1 %v12962_v19 }
 0xbf9   :  { %12981 = vmatprep.subr.bf16.mxu1 %v17784_v12 }
 0xbfa   :  { %v5670_v40 = vpop.f32.mrb[66].mxu0 }
 0xbfb   :  { %v5688_v50 = vmul.f32 %v5670_v40, %v18455_v8  ;;  %11295 = vmatmul.mubr.msk.f32.vlgmr.msra.gmra.mrb[98].mxu1 %vm1385_vm1, %v5683_v32  ;;  %v11274_v62 = vpop.f32.mrb[67].mxu0  ;;  %v6028_v8 = vpop.permute.xlu0 %6027 }
 0xbfc   :  { %12983 = vmatpush1.bf16.msra.mxu1 %v17811_v26  ;;  %11297 = vmatprep.mubr.msk.f32.mxu1 %vm14145_vm3, %v21681_v33  ;;  %v18956_v25 = vsel %vm4807_vm7, %v6017_v49, %v6028_v8 }
 0xbfd   :  { %12985 = vmatprep.subr.bf16.mxu1 %v17822_v31 }
 0xbfe   :  { %v5675_v38 = vpop.f32.mrb[68].mxu0 }
 0xbff   :  { %v5693_v29 = vmul.f32 %v5675_v38, %v18466_v24  ;;  %11298 = vmatmul.mubr.msk.f32.gmra.mrb[100].mxu1 %vm1385_vm1, %v5688_v50  ;;  %v11277_v41 = vpop.f32.mrb[69].mxu0  ;;  %v6030_v24 = vpop.permute.xlu0 %6029 }
 0xc00   :  { %12987 = vmatpush1.bf16.msra.mxu1 %v17843_v45  ;;  %11300 = vmatprep.mubr.msk.f32.mxu1 %vm14145_vm3, %v21681_v33  ;;  %v18962_v47 = vsel %vm4807_vm7, %v6019_v59, %v6030_v24 }
 0xc01   :  { %12989 = vmatprep.subr.bf16.mxu1 %v17855_v48 }
 0xc03   :  { %11301 = vmatmul.mubr.msk.f32.gmra.mrb[102].mxu1 %vm1385_vm1, %v5693_v29  ;;  %v6032_v46 = vpop.permute.xlu0 %6031 }
 0xc04   :  { %12991 = vmatpush1.bf16.msra.mxu1 %v17874_v39  ;;  %6195 = vmatprep.mubr.f32.mxu1 %v21681_v33  ;;  %v18968_v15 = vsel %vm4807_vm7, %v6021_v58, %v6032_v46 }
 0xc05   :  { %12993 = vmatprep.subr.bf16.mxu1 %v17886_v34 }
 0xc08   :  { %12995 = vmatpush1.bf16.msra.mxu1 %v17898_v11 }
 0xc0b   :  { %9776 = vmatmul.mubr.msk.f32.vlgmr.msra.gmra.mrb[104].mxu1 %vm1385_vm1, %v18956_v25 }
 0xc0c   :  { %6201 = vmatprep.mubr.f32.mxu1 %v21681_v33 }
 0xc0f   :  { %9777 = vmatmul.mubr.msk.f32.gmra.mrb[106].mxu1 %vm1385_vm1, %v18962_v47 }
 0xc10   :  { %6207 = vmatprep.mubr.f32.mxu1 %v21681_v33 }
 0xc13   :  { %9778 = vmatmul.mubr.msk.f32.gmra.mrb[108].mxu1 %vm1385_vm1, %v18968_v15 }
 0xc27   :  { %v10313_v52 = vpop.f32.mrb[74].mxu1 }
 0xc28   :  { %v10314_v55 = vpop.f32.mrb[75].mxu1 }
 0xc29   :  { %v10315_v20 = vadd.f32 %v10314_v55, %v10313_v52 }
 0xc2b   :  { %v10316_v17 = vpop.f32.mrb[76].mxu1 }
 0xc2c   :  { %v10317_v60 = vpop.f32.mrb[77].mxu1 }
 0xc2d   :  { %v10318_v51 = vadd.f32 %v10317_v60, %v10316_v17 }
 0xc2f   :  { %v10319_v19 = vpop.f32.mrb[78].mxu1 }
 0xc30   :  { %v10320_v43 = vpop.f32.mrb[79].mxu1 }
 0xc31   :  { %v10321_v32 = vadd.f32 %v10320_v43, %v10319_v19 }
 0xc47   :  { %v10354_v16 = vpop.f32.mrb[80].mxu1 }
 0xc48   :  { %v10355_v40 = vpop.f32.mrb[81].mxu1 }
 0xc49   :  { %v10356_v50 = vadd.f32 %v10355_v40, %v10354_v16 }
 0xc4b   :  { %v5309_v62 = vadd.f32 %v10356_v50, %v10315_v20  ;;  %v10357_v38 = vpop.f32.mrb[82].mxu1 }
 0xc4c   :  { %v10358_v29 = vpop.f32.mrb[83].mxu1 }
 0xc4d   :  { %v18973_v41 = vadd.f32 %v18882_v36, %v5309_v62  ;;  %v10359_v8 = vadd.f32 %v10358_v29, %v10357_v38  ;;  %v9830_v62 = vld [vmem:[%s21537_s15 + $0x600] sm:$0xff]  ;;  %v9831_v38 = vld [vmem:[%s21537_s15 + $0x608] sm:$0xff] }
 0xc4e   :  { %v13040_v29 = vpack.c.bf16 %v9831_v38, %v9830_v62  ;;  %v9821_v62 = vld [vmem:[%s21537_s15 + $0x5b8] sm:$0xff]  ;;  %v9838_v38 = vld [vmem:[%s21537_s15 + $0x640] sm:$0xff] }
 0xc4f   :  { %v5314_v49 = vadd.f32 %v10359_v8, %v10318_v51  ;;  %v10360_v24 = vpop.f32.mrb[84].mxu1  ;;  %v9814_v8 = vld [vmem:[%s21537_s15 + $0x580] sm:$0xff] }
 0xc50   :  { %v10361_v59 = vpop.f32.mrb[85].mxu1 }
 0xc51   :  { %v18976_v46 = vadd.f32 %v18896_v44, %v5314_v49  ;;  %v10362_v58 = vadd.f32 %v10361_v59, %v10360_v24  ;;  %v9815_v49 = vld [vmem:[%s21537_s15 + $0x588] sm:$0xff]  ;;  %v9832_v24 = vld [vmem:[%s21537_s15 + $0x610] sm:$0xff]  ;;  %v9833_v59 = vld [vmem:[%s21537_s15 + $0x618] sm:$0xff] }
 0xc53   :  { %v13446_v52 = vpack.c.bf16 %v18976_v46, %v18973_v41  ;;  %v5319_v55 = vadd.f32 %v10362_v58, %v10321_v32  ;;  %v13042_v58 = vpack.c.bf16 %v9815_v49, %v9814_v8  ;;  %v9822_v49 = vld [vmem:[%s21537_s15 + $0x5c0] sm:$0xff] }
 0xc54   :  { %v8686_v41 = vld [vmem:[%s21539_s16] sm:$0xff] }
 0xc55   :  { %v18981_v17 = vadd.f32 %v18899_v61, %v5319_v55  ;;  %v13044_v55 = vpack.c.bf16 %v9833_v59, %v9832_v24  ;;  %v9823_v24 = vld [vmem:[%s21537_s15 + $0x5c8] sm:$0xff]  ;;  %v9840_v59 = vld [vmem:[%s21537_s15 + $0x650] sm:$0xff] }
 0xc57   :  { %v5582_v20 = vpop.f32.mrb[86].mxu1 }
 0xc58   :  { %v5584_v60 = vpop.f32.mrb[87].mxu1  ;;  %v5681_v19 = vmul.f32 %v5582_v20, %v18652_v4  ;;  %v9816_v20 = vld [vmem:[%s21537_s15 + $0x590] sm:$0xff] }
 0xc59   :  { %v5682_v36 = vmul.f32 %v5584_v60, %v18589_v57  ;;  %v9817_v60 = vld [vmem:[%s21537_s15 + $0x598] sm:$0xff] }
 0xc5b   :  { %v5588_v51 = vpop.f32.mrb[88].mxu1  ;;  %5920 = vmatprep.mubr.f32.mxu0 %v5682_v36  ;;  %v9834_v36 = vld [vmem:[%s21537_s15 + $0x620] sm:$0xff] }
 0xc5c   :  { %v5590_v43 = vpop.f32.mrb[89].mxu1  ;;  %5921 = vmatmul.mubr.f32.vlgmr.msra.gmra.mrb[70].mxu0 %v5681_v19  ;;  %v5686_v16 = vmul.f32 %v5588_v51, %v18665_v21  ;;  %v9835_v19 = vld [vmem:[%s21537_s15 + $0x628] sm:$0xff]  ;;  %v13046_v51 = vpack.c.bf16 %v9817_v60, %v9816_v20  ;;  %v9825_v60 = vld [vmem:[%s21537_s15 + $0x5d8] sm:$0xff] }
 0xc5d   :  { %v5687_v44 = vmul.f32 %v5590_v43, %v18657_v6  ;;  %12967 = vmatpush1.bf16.msra.mxu0 %v18239_v18  ;;  %v13048_v43 = vpack.c.bf16 %v9835_v19, %v9834_v36  ;;  %v9842_v36 = vld [vmem:[%s21537_s15 + $0x660] sm:$0xff]  ;;  %v9843_v19 = vld [vmem:[%s21537_s15 + $0x668] sm:$0xff] }
 0xc5e   :  { %12969 = vmatprep.subr.bf16.mxu0 %v18242_v56 }
 0xc5f   :  { %v5594_v61 = vpop.f32.mrb[90].mxu1  ;;  %5925 = vmatprep.mubr.f32.mxu0 %v5687_v44  ;;  %v9818_v44 = vld [vmem:[%s21537_s15 + $0x5a0] sm:$0xff] }
 0xc60   :  { %v5596_v32 = vpop.f32.mrb[91].mxu1  ;;  %5926 = vmatmul.mubr.f32.gmra.mrb[72].mxu0 %v5686_v16  ;;  %v5691_v50 = vmul.f32 %v5594_v61, %v18681_v53  ;;  %v9819_v16 = vld [vmem:[%s21537_s15 + $0x5a8] sm:$0xff]  ;;  %v9836_v61 = vld [vmem:[%s21537_s15 + $0x630] sm:$0xff] }
 0xc61   :  { %v5692_v40 = vmul.f32 %v5596_v32, %v18672_v63  ;;  %12971 = vmatpush1.bf16.msra.mxu0 %v18258_v3  ;;  %v13050_v32 = vpack.c.bf16 %v9819_v16, %v9818_v44  ;;  %v9782_v44 = vld [vmem:[%s21537_s15 + $0x480] sm:$0xff] }
 0xc62   :  { %12973 = vmatprep.subr.bf16.mxu0 %v18262_v28 }
 0xc63   :  { %5930 = vmatprep.mubr.f32.mxu0 %v5692_v40 }
 0xc64   :  { %5931 = vmatmul.mubr.f32.gmra.mrb[74].mxu0 %v5691_v50  ;;  %v9820_v50 = vld [vmem:[%s21537_s15 + $0x5b0] sm:$0xff] }
 0xc65   :  { %12975 = vmatpush1.bf16.msra.mxu0 %v18277_v54  ;;  %6112 = vmatprep.mubr.f32.mxu0 %v21681_v33 }
 0xc66   :  { %12977 = vmatprep.subr.bf16.mxu0 %v18280_v7 }
 0xc69   :  { %12979 = vmatpush1.bf16.msra.mxu0 %v18289_v0 }
 0xc6a   :  { %12996 = vmatprep.subr.bf16.mxu0 %v21850_v35 }
 0xc6c   :  { %9773 = vmatmul.mubr.msk.f32.vlgmr.msra.gmra.mrb[76].mxu0 %vm1385_vm1, %v18956_v25 }
 0xc6d   :  { %12998 = vmatpush3.bf16.msra.mxu0 %v17922_v30  ;;  %6118 = vmatprep.mubr.f32.mxu0 %v21681_v33 }
 0xc6e   :  { %12999 = vmatprep.subr.bf16.mxu0 %v21850_v35 }
 0xc70   :  { %9774 = vmatmul.mubr.msk.f32.gmra.mrb[78].mxu0 %vm1385_vm1, %v18962_v47 }
 0xc71   :  { %13001 = vmatpush3.bf16.msra.mxu0 %v17954_v13  ;;  %6124 = vmatprep.mubr.f32.mxu0 %v21681_v33 }
 0xc72   :  { %13002 = vmatprep.subr.bf16.mxu0 %v21850_v35 }
 0xc74   :  { %9775 = vmatmul.mubr.msk.f32.gmra.mrb[80].mxu0 %vm1385_vm1, %v18968_v15 }
 0xc75   :  { %13004 = vmatpush3.bf16.msra.mxu0 %v17986_v22  ;;  %11319 = vmatprep.mubr.msk.f32.mxu0 %vm14145_vm3, %v21681_v33 }
 0xc76   :  { %13005 = vmatprep.subr.bf16.mxu0 %v21850_v35 }
 0xc79   :  { %13007 = vmatpush3.bf16.msra.mxu0 %v18015_v14 }
 0xc7a   :  { %13041 = vmatprep.subr.bf16.mxu0 %v13040_v29  ;;  %v13054_v29 = vpack.c.bf16 %v9821_v62, %v9820_v50 }
 0xc7c   :  { %11320 = vmatmul.mubr.msk.f32.vlgmr.msra.gmra.mrb[82].mxu0 %vm1385_vm1, %v18956_v25  ;;  %v9837_v25 = vld [vmem:[%s21537_s15 + $0x638] sm:$0xff] }
 0xc7d   :  { %11322 = vmatprep.mubr.msk.f32.mxu0 %vm14145_vm3, %v21681_v33  ;;  %13043 = vmatpush3.bf16.msra.mxu0 %v13042_v58  ;;  %v13052_v40 = vpack.c.bf16 %v9837_v25, %v9836_v61  ;;  %v13058_v58 = vpack.c.bf16 %v9823_v24, %v9822_v49  ;;  %v9783_v61 = vld [vmem:[%s21537_s15 + $0x488] sm:$0xff]  ;;  %v9800_v25 = vld [vmem:[%s21537_s15 + $0x510] sm:$0xff]  ;;  %v9826_v49 = vld [vmem:[%s21537_s15 + $0x5e0] sm:$0xff] }
 0xc7e   :  { %13045 = vmatprep.subr.bf16.mxu0 %v13044_v55  ;;  %v9824_v55 = vld [vmem:[%s21537_s15 + $0x5d0] sm:$0xff]  ;;  %v13010_v50 = vpack.c.bf16 %v9783_v61, %v9782_v44  ;;  %v9827_v24 = vld [vmem:[%s21537_s15 + $0x5e8] sm:$0xff]  ;;  %v9829_v61 = vld [vmem:[%s21537_s15 + $0x5f8] sm:$0xff] }
 0xc80   :  { %11323 = vmatmul.mubr.msk.f32.gmra.mrb[84].mxu0 %vm1385_vm1, %v18962_v47  ;;  %v9839_v47 = vld [vmem:[%s21537_s15 + $0x648] sm:$0xff] }
 0xc81   :  { %11325 = vmatprep.mubr.msk.f32.mxu0 %vm14145_vm3, %v21681_v33  ;;  %13047 = vmatpush3.bf16.msra.mxu0 %v13046_v51  ;;  %v13056_v8 = vpack.c.bf16 %v9839_v47, %v9838_v38  ;;  %v9798_v51 = vld [vmem:[%s21537_s15 + $0x500] sm:$0xff]  ;;  %v9784_v38 = vld [vmem:[%s21537_s15 + $0x490] sm:$0xff]  ;;  %v9785_v47 = vld [vmem:[%s21537_s15 + $0x498] sm:$0xff] }
 0xc82   :  { %13049 = vmatprep.subr.bf16.mxu0 %v13048_v43  ;;  %v9799_v43 = vld [vmem:[%s21537_s15 + $0x508] sm:$0xff] }
 0xc83   :  { %v13008_v16 = vpack.c.bf16 %v9799_v43, %v9798_v51  ;;  %v9804_v51 = vld [vmem:[%s21537_s15 + $0x530] sm:$0xff]  ;;  %v9805_v43 = vld [vmem:[%s21537_s15 + $0x538] sm:$0xff] }
 0xc84   :  { %11326 = vmatmul.mubr.msk.f32.gmra.mrb[86].mxu0 %vm1385_vm1, %v18968_v15  ;;  %v9841_v15 = vld [vmem:[%s21537_s15 + $0x658] sm:$0xff] }
 0xc85   :  { %13051 = vmatpush3.bf16.msra.mxu0 %v13050_v32  ;;  %v13060_v20 = vpack.c.bf16 %v9841_v15, %v9840_v59  ;;  %v9801_v32 = vld [vmem:[%s21537_s15 + $0x518] sm:$0xff]  ;;  %13009 = vmatprep.subr.bf16.mxu1 %v13008_v16  ;;  %v9803_v59 = vld [vmem:[%s21537_s15 + $0x528] sm:$0xff]  ;;  %v9844_v15 = vld [vmem:[%s21537_s15 + $0x670] sm:$0xff] }
 0xc86   :  { %13053 = vmatprep.subr.bf16.mxu0 %v13052_v40  ;;  %v13062_v40 = vpack.c.bf16 %v9825_v60, %v9824_v55  ;;  %v13012_v62 = vpack.c.bf16 %v9801_v32, %v9800_v25  ;;  %13011 = vmatpush3.bf16.msra.mxu1 %v13010_v50  ;;  %v13014_v55 = vpack.c.bf16 %v9785_v47, %v9784_v38  ;;  %v9786_v60 = vld [vmem:[%s21537_s15 + $0x4a0] sm:$0xff]  ;;  %v9828_v16 = vld [vmem:[%s21537_s15 + $0x5f0] sm:$0xff] }
 0xc87   :  { %v13020_v32 = vpack.c.bf16 %v9805_v43, %v9804_v51  ;;  %v9788_v50 = vld [vmem:[%s21537_s15 + $0x4b0] sm:$0xff]  ;;  %v9806_v47 = vld [vmem:[%s21537_s15 + $0x540] sm:$0xff]  ;;  %v9811_v51 = vld [vmem:[%s21537_s15 + $0x568] sm:$0xff] }
 0xc88   :  { %13013 = vmatprep.subr.bf16.mxu1 %v13012_v62  ;;  %v9789_v62 = vld [vmem:[%s21537_s15 + $0x4b8] sm:$0xff] }
 0xc89   :  { %13055 = vmatpush3.bf16.msra.mxu0 %v13054_v29  ;;  %v9802_v29 = vld [vmem:[%s21537_s15 + $0x520] sm:$0xff]  ;;  %v13022_v38 = vpack.c.bf16 %v9789_v62, %v9788_v50 }
 0xc8a   :  { %13057 = vmatprep.subr.bf16.mxu0 %v13056_v8  ;;  %v13064_v8 = vpack.c.bf16 %v9843_v19, %v9842_v36  ;;  %v9787_v36 = vld [vmem:[%s21537_s15 + $0x4a8] sm:$0xff]  ;;  %v13066_v19 = vpack.c.bf16 %v9827_v24, %v9826_v49  ;;  %13015 = vmatpush3.bf16.msra.mxu1 %v13014_v55  ;;  %v9790_v49 = vld [vmem:[%s21537_s15 + $0x4c0] sm:$0xff] }
 0xc8b   :  { %v13018_v25 = vpack.c.bf16 %v9787_v36, %v9786_v60  ;;  %v9791_v24 = vld [vmem:[%s21537_s15 + $0x4c8] sm:$0xff]  ;;  %v9793_v60 = vld [vmem:[%s21537_s15 + $0x4d8] sm:$0xff] }
 0xc8d   :  { %13059 = vmatpush3.bf16.msra.mxu0 %v13058_v58  ;;  %v9845_v58 = vld [vmem:[%s21537_s15 + $0x678] sm:$0xff] }
 0xc8e   :  { %13061 = vmatprep.subr.bf16.mxu0 %v13060_v20  ;;  %v13016_v20 = vpack.c.bf16 %v9803_v59, %v9802_v29  ;;  %v13068_v44 = vpack.c.bf16 %v9845_v58, %v9844_v15  ;;  %v9807_v29 = vld [vmem:[%s21537_s15 + $0x548] sm:$0xff]  ;;  %v13026_v59 = vpack.c.bf16 %v9791_v24, %v9790_v49  ;;  %v9808_v15 = vld [vmem:[%s21537_s15 + $0x550] sm:$0xff]  ;;  %v9809_v58 = vld [vmem:[%s21537_s15 + $0x558] sm:$0xff] }
 0xc8f   :  { %v13028_v55 = vpack.c.bf16 %v9809_v58, %v9808_v15 }
 0xc90   :  { %13017 = vmatprep.subr.bf16.mxu1 %v13016_v20  ;;  %v9792_v20 = vld [vmem:[%s21537_s15 + $0x4d0] sm:$0xff] }
 0xc91   :  { %13063 = vmatpush3.bf16.msra.mxu0 %v13062_v40  ;;  %v13070_v40 = vpack.c.bf16 %v9829_v61, %v9828_v16  ;;  %13019 = vmatpush3.bf16.msra.mxu1 %v13018_v25  ;;  %v13030_v36 = vpack.c.bf16 %v9793_v60, %v9792_v20  ;;  %v9795_v16 = vld [vmem:[%s21537_s15 + $0x4e8] sm:$0xff] }
 0xc92   :  { %13065 = vmatprep.subr.bf16.mxu0 %v13064_v8  ;;  %13021 = vmatprep.subr.bf16.mxu1 %v13020_v32  ;;  %v13024_v8 = vpack.c.bf16 %v9807_v29, %v9806_v47  ;;  %v9812_v32 = vld [vmem:[%s21537_s15 + $0x570] sm:$0xff]  ;;  %v9797_v47 = vld [vmem:[%s21537_s15 + $0x4f8] sm:$0xff] }
 0xc95   :  { %13067 = vmatpush3.bf16.msra.mxu0 %v13066_v19  ;;  %13023 = vmatpush3.bf16.msra.mxu1 %v13022_v38  ;;  %v9810_v19 = vld [vmem:[%s21537_s15 + $0x560] sm:$0xff]  ;;  %v9796_v38 = vld [vmem:[%s21537_s15 + $0x4f0] sm:$0xff] }
 0xc96   :  { %13069 = vmatprep.subr.bf16.mxu0 %v13068_v44  ;;  %13025 = vmatprep.subr.bf16.mxu1 %v13024_v8  ;;  %v13032_v43 = vpack.c.bf16 %v9811_v51, %v9810_v19  ;;  %v9794_v44 = vld [vmem:[%s21537_s15 + $0x4e0] sm:$0xff]  ;;  %v13038_v8 = vpack.c.bf16 %v9797_v47, %v9796_v38 }
 0xc97   :  { %v13034_v61 = vpack.c.bf16 %v9795_v16, %v9794_v44 }
 0xc99   :  { %13071 = vmatpush3.bf16.msra.mxu0 %v13070_v40  ;;  %13027 = vmatpush3.bf16.msra.mxu1 %v13026_v59  ;;  %v9813_v40 = vld [vmem:[%s21537_s15 + $0x578] sm:$0xff] }
 0xc9a   :  { %13085 = vmatprep.subr.bf16.mxu0 %v18225_v42  ;;  %13029 = vmatprep.subr.bf16.mxu1 %v13028_v55  ;;  %v13036_v62 = vpack.c.bf16 %v9813_v40, %v9812_v32 }
 0xc9d   :  { %13031 = vmatpush3.bf16.msra.mxu1 %v13030_v36 }
 0xc9e   :  { %13033 = vmatprep.subr.bf16.mxu1 %v13032_v43 }
 0xca1   :  { %13035 = vmatpush3.bf16.msra.mxu1 %v13034_v61 }
 0xca2   :  { %13037 = vmatprep.subr.bf16.mxu1 %v13036_v62 }
 0xca5   :  { %13039 = vmatpush3.bf16.msra.mxu1 %v13038_v8 }
 0xca6   :  { %13072 = vmatprep.subr.bf16.mxu1 %v21850_v35 }
 0xcbe   :  { %v10417_v25 = vpop.f32.mrb[92].mxu1 }
 0xcbf   :  { %v10418_v50 = vpop.f32.mrb[93].mxu1 }
 0xcc0   :  { %v19218_v29 = vadd.f32 %v10418_v50, %v10417_v25 }
 0xcc2   :  { %v10420_v49 = vpop.f32.mrb[94].mxu1 }
 0xcc3   :  { %v10421_v24 = vpop.f32.mrb[95].mxu1 }
 0xcc4   :  { %v19221_v59 = vadd.f32 %v10421_v24, %v10420_v49 }
 0xcc6   :  { %v10423_v15 = vpop.f32.mrb[96].mxu1 }
 0xcc7   :  { %v10424_v58 = vpop.f32.mrb[97].mxu1 }
 0xcc8   :  { %v19223_v55 = vadd.f32 %v10424_v58, %v10423_v15 }
 0xcce   :  { %v19225_v20 = vpop.f32.mrb[98].mxu1 }
 0xccf   :  { %v11296_v60 = vpop.f32.mrb[99].mxu1 }
 0xcd2   :  { %v19227_v36 = vpop.f32.mrb[100].mxu1 }
 0xcd3   :  { %v11299_v19 = vpop.f32.mrb[101].mxu1 }
 0xcd6   :  { %v19229_v51 = vpop.f32.mrb[102].mxu1 }
 0xcd7   :  { %v11302_v43 = vpop.f32.mrb[103].mxu1 }
 0xcde   :  { %v6197_v44 = vpop.f32.mrb[104].mxu1 }
 0xcdf   :  { %v6199_v16 = vpop.f32.mrb[105].mxu1  ;;  %v6296_v25 = vmul.f32 %v6197_v44, %v18652_v4 }
 0xce0   :  { %v6297_v61 = vmul.f32 %v6199_v16, %v18589_v57 }
 0xce2   :  { %v6203_v32 = vpop.f32.mrb[106].mxu1  ;;  %6535 = vmatprep.mubr.f32.mxu0 %v6297_v61 }
 0xce3   :  { %v6205_v40 = vpop.f32.mrb[107].mxu1  ;;  %6536 = vmatmul.mubr.f32.vlgmr.msra.gmra.mrb[88].mxu0 %v6296_v25  ;;  %v6301_v62 = vmul.f32 %v6203_v32, %v18665_v21 }
 0xce4   :  { %v6302_v50 = vmul.f32 %v6205_v40, %v18657_v6  ;;  %13087 = vmatpush1.bf16.msra.mxu0 %v18239_v18  ;;  %v6632_v6 = vpop.permute.xlu1 %6631 }
 0xce5   :  { %13089 = vmatprep.subr.bf16.mxu0 %v18242_v56  ;;  %v19248_v21 = vsel %vm4807_vm7, %v6632_v6, %v16724_v5 }
 0xce6   :  { %v6209_v38 = vpop.f32.mrb[108].mxu1  ;;  %6540 = vmatprep.mubr.f32.mxu0 %v6302_v50 }
 0xce7   :  { %v6211_v47 = vpop.f32.mrb[109].mxu1  ;;  %6541 = vmatmul.mubr.f32.gmra.mrb[90].mxu0 %v6301_v62  ;;  %v6306_v4 = vmul.f32 %v6209_v38, %v18681_v53 }
 0xce8   :  { %v6307_v57 = vmul.f32 %v6211_v47, %v18672_v63  ;;  %13091 = vmatpush1.bf16.msra.mxu0 %v18258_v3  ;;  %v6634_v63 = vpop.permute.xlu0 %6633  ;;  %v6636_v8 = vpop.permute.xlu1 %6635 }
 0xce9   :  { %13093 = vmatprep.subr.bf16.mxu0 %v18262_v28  ;;  %v19257_v53 = vsel %vm4807_vm7, %v6634_v63, %v16743_v2  ;;  %v19266_v5 = vsel %vm4807_vm7, %v6636_v8, %v16040_v27  ;;  %v19326_v8 = vld [vmem:[%s21538_s4 + $0x30] sm:$0xff] }
 0xcea   :  { %6545 = vmatprep.mubr.f32.mxu0 %v6307_v57  ;;  %v9848_v57 = vld [vmem:[%s21537_s15 + $0x690] sm:$0xff] }
 0xceb   :  { %6546 = vmatmul.mubr.f32.gmra.mrb[92].mxu0 %v6306_v4  ;;  %v9849_v4 = vld [vmem:[%s21537_s15 + $0x698] sm:$0xff] }
 0xcec   :  { %13095 = vmatpush1.bf16.msra.mxu0 %v18277_v54  ;;  %6716 = vmatprep.mubr.f32.mxu0 %v21681_v33 }
 0xced   :  { %13097 = vmatprep.subr.bf16.mxu0 %v18280_v7 }
 0xcf0   :  { %13099 = vmatpush1.bf16.msra.mxu0 %v18289_v0 }
 0xcf1   :  { %13116 = vmatprep.subr.bf16.mxu0 %v21850_v35 }
 0xcf3   :  { %9857 = vmatmul.mubr.msk.f32.vlgmr.msra.gmra.mrb[94].mxu0 %vm1385_vm1, %v19248_v21 }
 0xcf4   :  { %13118 = vmatpush3.bf16.msra.mxu0 %v17922_v30  ;;  %6722 = vmatprep.mubr.f32.mxu0 %v21681_v33 }
 0xcf5   :  { %13119 = vmatprep.subr.bf16.mxu0 %v21850_v35 }
 0xcf7   :  { %9858 = vmatmul.mubr.msk.f32.gmra.mrb[96].mxu0 %vm1385_vm1, %v19257_v53 }
 0xcf8   :  { %13121 = vmatpush3.bf16.msra.mxu0 %v17954_v13  ;;  %6728 = vmatprep.mubr.f32.mxu0 %v21681_v33 }
 0xcf9   :  { %13122 = vmatprep.subr.bf16.mxu0 %v21850_v35 }
 0xcfb   :  { %9859 = vmatmul.mubr.msk.f32.gmra.mrb[98].mxu0 %vm1385_vm1, %v19266_v5 }
 0xcfc   :  { %13124 = vmatpush3.bf16.msra.mxu0 %v17986_v22  ;;  %11369 = vmatprep.mubr.msk.f32.mxu0 %vm14145_vm3, %v21681_v33 }
 0xcfd   :  { %13125 = vmatprep.subr.bf16.mxu0 %v21850_v35 }
 0xd00   :  { %13127 = vmatpush3.bf16.msra.mxu0 %v18015_v14 }
 0xd03   :  { %11370 = vmatmul.mubr.msk.f32.vlgmr.msra.gmra.mrb[100].mxu0 %vm1385_vm1, %v19248_v21 }
 0xd04   :  { %11372 = vmatprep.mubr.msk.f32.mxu0 %vm14145_vm3, %v21681_v33 }
 0xd07   :  { %11373 = vmatmul.mubr.msk.f32.gmra.mrb[102].mxu0 %vm1385_vm1, %v19257_v53 }
 0xd08   :  { %11375 = vmatprep.mubr.msk.f32.mxu0 %vm14145_vm3, %v21681_v33 }
 0xd0b   :  { %11376 = vmatmul.mubr.msk.f32.gmra.mrb[104].mxu0 %vm1385_vm1, %v19266_v5 }
 0xd2f   :  { %v10458_v27 = vpop.f32.mrb[70].mxu0 }
 0xd30   :  { %v10459_v2 = vpop.f32.mrb[71].mxu0 }
 0xd31   :  { %v10460_v49 = vadd.f32 %v10459_v2, %v10458_v27  ;;  %v13076_v2 = vpack.c.bf16 %v9849_v4, %v9848_v57 }
 0xd33   :  { %v5923_v24 = vadd.f32 %v10460_v49, %v19218_v29  ;;  %v10461_v15 = vpop.f32.mrb[72].mxu0  ;;  %v19332_v49 = vld [vmem:[%s21538_s4 + $0x28] sm:$0xff] }
 0xd34   :  { %v10462_v58 = vpop.f32.mrb[73].mxu0 }
 0xd35   :  { %v19287_v60 = vadd.f32 %v19225_v20, %v5923_v24  ;;  %v10463_v19 = vadd.f32 %v10462_v58, %v10461_v15  ;;  %v9846_v20 = vld [vmem:[%s21537_s15 + $0x680] sm:$0xff]  ;;  %v9851_v58 = vld [vmem:[%s21537_s15 + $0x6a8] sm:$0xff] }
 0xd36   :  { %v9850_v15 = vld [vmem:[%s21537_s15 + $0x6a0] sm:$0xff] }
 0xd37   :  { %v5928_v43 = vadd.f32 %v10463_v19, %v19221_v59  ;;  %v10464_v44 = vpop.f32.mrb[74].mxu0  ;;  %v9847_v59 = vld [vmem:[%s21537_s15 + $0x688] sm:$0xff] }
 0xd38   :  { %v10465_v16 = vpop.f32.mrb[75].mxu0  ;;  %v13073_v38 = vpack.c.bf16 %v9847_v59, %v9846_v20  ;;  %v9852_v59 = vld [vmem:[%s21537_s15 + $0x6b0] sm:$0xff] }
 0xd39   :  { %v19291_v61 = vadd.f32 %v19227_v36, %v5928_v43  ;;  %v10466_v25 = vadd.f32 %v10465_v16, %v10464_v44  ;;  %v19345_v44 = vld [vmem:[%s21538_s4 + $0x58] sm:$0x3] }
 0xd3b   :  { %v5933_v32 = vadd.f32 %v10466_v25, %v19223_v55  ;;  %v13444_v40 = vpack.c.bf16 %v19291_v61, %v19287_v60  ;;  %v19308_v55 = vld [vmem:[%s21538_s4 + $0x8] sm:$0xff]  ;;  %v13079_v25 = vpack.c.bf16 %v9851_v58, %v9850_v15 }
 0xd3d   :  { %v19297_v29 = vadd.f32 %v19229_v51, %v5933_v32  ;;  %v19314_v51 = vld [vmem:[%s21538_s4] sm:$0xff]  ;;  %v19351_v32 = vld [vmem:[%s21538_s4 + $0x50] sm:$0x3] }
 0xd3f   :  { %v6114_v50 = vpop.f32.mrb[76].mxu0 }
 0xd40   :  { %v6116_v36 = vpop.f32.mrb[77].mxu0  ;;  %v6294_v47 = vmul.f32 %v19314_v51, %v6114_v50  ;;  %v9853_v50 = vld [vmem:[%s21537_s15 + $0x6b8] sm:$0xff] }
 0xd41   :  { %v6295_v62 = vmul.f32 %v19308_v55, %v6116_v36  ;;  %v13082_v36 = vpack.c.bf16 %v9853_v50, %v9852_v59  ;;  %v9884_v59 = vld [vmem:[%s21537_s15 + $0x750] sm:$0xff]  ;;  %v9885_v50 = vld [vmem:[%s21537_s15 + $0x758] sm:$0xff] }
 0xd43   :  { %v6120_v6 = vpop.f32.mrb[78].mxu0  ;;  %6455 = vmatprep.mubr.f32.mxu1 %v6295_v62 }
 0xd44   :  { %v6122_v63 = vpop.f32.mrb[79].mxu0  ;;  %6456 = vmatmul.mubr.f32.vlgmr.msra.gmra.mrb[110].mxu1 %v6294_v47  ;;  %v6299_v24 = vmul.f32 %v19332_v49, %v6120_v6  ;;  %v19374_v6 = vld [vmem:[%s21538_s4 + $0x48] sm:$0xff] }
 0xd45   :  { %v6300_v27 = vmul.f32 %v19326_v8, %v6122_v63  ;;  %13074 = vmatpush3.bf16.msra.mxu1 %v13073_v38  ;;  %v19367_v38 = vld [vmem:[%s21538_s4 + $0x20] sm:$0xff] }
 0xd46   :  { %13075 = vmatprep.subr.bf16.mxu1 %v21850_v35 }
 0xd47   :  { %v6126_v19 = vpop.f32.mrb[80].mxu0  ;;  %6460 = vmatprep.mubr.f32.mxu1 %v6300_v27 }
 0xd48   :  { %v6128_v43 = vpop.f32.mrb[81].mxu0  ;;  %6461 = vmatmul.mubr.f32.gmra.mrb[112].mxu1 %v6299_v24  ;;  %v6304_v20 = vmul.f32 %v19351_v32, %v6126_v19  ;;  %v19385_v24 = vld [vmem:[%s21538_s4 + $0x70] sm:$0x3]  ;;  %v9882_v19 = vld [vmem:[%s21537_s15 + $0x740] sm:$0xff] }
 0xd49   :  { %v6305_v16 = vmul.f32 %v19345_v44, %v6128_v43  ;;  %13077 = vmatpush3.bf16.msra.mxu1 %v13076_v2  ;;  %v9883_v43 = vld [vmem:[%s21537_s15 + $0x748] sm:$0xff] }
 0xd4a   :  { %13078 = vmatprep.subr.bf16.mxu1 %v21850_v35 }
 0xd4b   :  { %6465 = vmatprep.mubr.f32.mxu1 %v6305_v16  ;;  %v13128_v16 = vpack.c.bf16 %v9883_v43, %v9882_v19  ;;  %v9888_v19 = vld [vmem:[%s21537_s15 + $0x770] sm:$0xff] }
 0xd4c   :  { %6466 = vmatmul.mubr.f32.gmra.mrb[114].mxu1 %v6304_v20  ;;  %v9867_v20 = vld [vmem:[%s21537_s15 + $0x6c8] sm:$0xff] }
 0xd4d   :  { %13080 = vmatpush3.bf16.msra.mxu1 %v13079_v25  ;;  %11344 = vmatprep.mubr.msk.f32.mxu1 %vm14145_vm3, %v21681_v33  ;;  %v9866_v25 = vld [vmem:[%s21537_s15 + $0x6c0] sm:$0xff] }
 0xd4e   :  { %13081 = vmatprep.subr.bf16.mxu1 %v21850_v35 }
 0xd4f   :  { %v6280_v62 = vpop.f32.mrb[82].mxu0 }
 0xd50   :  { %v6298_v47 = vmul.f32 %v19367_v38, %v6280_v62  ;;  %v11321_v57 = vpop.f32.mrb[83].mxu0  ;;  %v13132_v62 = vpack.c.bf16 %v9885_v50, %v9884_v59  ;;  %v9890_v59 = vld [vmem:[%s21537_s15 + $0x780] sm:$0xff] }
 0xd51   :  { %13083 = vmatpush3.bf16.msra.mxu1 %v13082_v36  ;;  %v13130_v36 = vpack.c.bf16 %v9867_v20, %v9866_v25  ;;  %v9869_v57 = vld [vmem:[%s21537_s15 + $0x6d8] sm:$0xff]  ;;  %v9872_v25 = vld [vmem:[%s21537_s15 + $0x6f0] sm:$0xff] }
 0xd52   :  { %13101 = vmatprep.subr.bf16.mxu1 %v17784_v12  ;;  %v9873_v20 = vld [vmem:[%s21537_s15 + $0x6f8] sm:$0xff] }
 0xd53   :  { %v6285_v4 = vpop.f32.mrb[84].mxu0  ;;  %v13142_v50 = vpack.c.bf16 %v9873_v20, %v9872_v25  ;;  %v9896_v25 = vld [vmem:[%s21537_s15 + $0x7b0] sm:$0xff]  ;;  %v9897_v20 = vld [vmem:[%s21537_s15 + $0x7b8] sm:$0xff] }
 0xd54   :  { %v6303_v63 = vmul.f32 %v19374_v6, %v6285_v4  ;;  %11345 = vmatmul.mubr.msk.f32.vlgmr.msra.gmra.mrb[116].mxu1 %vm1385_vm1, %v6298_v47  ;;  %v11324_v27 = vpop.f32.mrb[85].mxu0  ;;  %v9868_v47 = vld [vmem:[%s21537_s15 + $0x6d0] sm:$0xff]  ;;  %v9886_v4 = vld [vmem:[%s21537_s15 + $0x760] sm:$0xff] }
 0xd55   :  { %13103 = vmatpush1.bf16.msra.mxu1 %v17811_v26  ;;  %11347 = vmatprep.mubr.msk.f32.mxu1 %vm14145_vm3, %v21681_v33  ;;  %v13134_v27 = vpack.c.bf16 %v9869_v57, %v9868_v47  ;;  %v9875_v47 = vld [vmem:[%s21537_s15 + $0x708] sm:$0xff]  ;;  %v9892_v57 = vld [vmem:[%s21537_s15 + $0x790] sm:$0xff] }
 0xd56   :  { %13105 = vmatprep.subr.bf16.mxu1 %v17822_v31 }
 0xd57   :  { %v6290_v2 = vpop.f32.mrb[86].mxu0 }
 0xd58   :  { %v6308_v15 = vmul.f32 %v19385_v24, %v6290_v2  ;;  %11348 = vmatmul.mubr.msk.f32.gmra.mrb[118].mxu1 %vm1385_vm1, %v6303_v63  ;;  %v11327_v58 = vpop.f32.mrb[87].mxu0  ;;  %v9887_v63 = vld [vmem:[%s21537_s15 + $0x768] sm:$0xff] }
 0xd59   :  { %13107 = vmatpush1.bf16.msra.mxu1 %v17843_v45  ;;  %11350 = vmatprep.mubr.msk.f32.mxu1 %vm14145_vm3, %v21681_v33  ;;  %v13136_v2 = vpack.c.bf16 %v9887_v63, %v9886_v4  ;;  %v9871_v58 = vld [vmem:[%s21537_s15 + $0x6e8] sm:$0xff] }
 0xd5a   :  { %13109 = vmatprep.subr.bf16.mxu1 %v17855_v48 }
 0xd5c   :  { %11351 = vmatmul.mubr.msk.f32.gmra.mrb[120].mxu1 %vm1385_vm1, %v6308_v15  ;;  %v9870_v15 = vld [vmem:[%s21537_s15 + $0x6e0] sm:$0xff] }
 0xd5d   :  { %13111 = vmatpush1.bf16.msra.mxu1 %v17874_v39  ;;  %6799 = vmatprep.mubr.f32.mxu1 %v21681_v33  ;;  %v13138_v43 = vpack.c.bf16 %v9871_v58, %v9870_v15  ;;  %v9894_v15 = vld [vmem:[%s21537_s15 + $0x7a0] sm:$0xff]  ;;  %v9895_v58 = vld [vmem:[%s21537_s15 + $0x7a8] sm:$0xff] }
 0xd5e   :  { %13113 = vmatprep.subr.bf16.mxu1 %v17886_v34 }
 0xd61   :  { %13115 = vmatpush1.bf16.msra.mxu1 %v17898_v11 }
 0xd62   :  { %13129 = vmatprep.subr.bf16.mxu1 %v13128_v16 }
 0xd64   :  { %9860 = vmatmul.mubr.msk.f32.vlgmr.msra.gmra.mrb[122].mxu1 %vm1385_vm1, %v19248_v21  ;;  %v9889_v21 = vld [vmem:[%s21537_s15 + $0x778] sm:$0xff] }
 0xd65   :  { %6805 = vmatprep.mubr.f32.mxu1 %v21681_v33  ;;  %13131 = vmatpush3.bf16.msra.mxu1 %v13130_v36  ;;  %v13140_v16 = vpack.c.bf16 %v9889_v21, %v9888_v19  ;;  %v13152_v21 = vpack.c.bf16 %v9895_v58, %v9894_v15  ;;  %v9917_v15 = vld [vmem:[%s21537_s15 + $0x858] sm:$0xff] }
 0xd66   :  { %13133 = vmatprep.subr.bf16.mxu1 %v13132_v62  ;;  %v9874_v62 = vld [vmem:[%s21537_s15 + $0x700] sm:$0xff] }
 0xd67   :  { %v13146_v4 = vpack.c.bf16 %v9875_v47, %v9874_v62  ;;  %v9914_v47 = vld [vmem:[%s21537_s15 + $0x840] sm:$0xff] }
 0xd68   :  { %9861 = vmatmul.mubr.msk.f32.gmra.mrb[124].mxu1 %vm1385_vm1, %v19257_v53  ;;  %v9891_v53 = vld [vmem:[%s21537_s15 + $0x788] sm:$0xff] }
 0xd69   :  { %6811 = vmatprep.mubr.f32.mxu1 %v21681_v33  ;;  %13135 = vmatpush3.bf16.msra.mxu1 %v13134_v27  ;;  %v13144_v36 = vpack.c.bf16 %v9891_v53, %v9890_v59  ;;  %v9876_v27 = vld [vmem:[%s21537_s15 + $0x710] sm:$0xff]  ;;  %v13156_v53 = vpack.c.bf16 %v9897_v20, %v9896_v25  ;;  %v9919_v25 = vld [vmem:[%s21537_s15 + $0x868] sm:$0xff]  ;;  %v9902_v20 = vld [vmem:[%s21537_s15 + $0x7e0] sm:$0xff] }
 0xd6a   :  { %13137 = vmatprep.subr.bf16.mxu1 %v13136_v2  ;;  %v9877_v2 = vld [vmem:[%s21537_s15 + $0x718] sm:$0xff] }
 0xd6b   :  { %v13150_v19 = vpack.c.bf16 %v9877_v2, %v9876_v27  ;;  %v9916_v2 = vld [vmem:[%s21537_s15 + $0x850] sm:$0xff] }
 0xd6c   :  { %9862 = vmatmul.mubr.msk.f32.gmra.mrb[126].mxu1 %vm1385_vm1, %v19266_v5  ;;  %v9893_v5 = vld [vmem:[%s21537_s15 + $0x798] sm:$0xff]  ;;  %v13164_v58 = vpack.c.bf16 %v9917_v15, %v9916_v2  ;;  %v9906_v15 = vld [vmem:[%s21537_s15 + $0x800] sm:$0xff] }
 0xd6d   :  { %13139 = vmatpush3.bf16.msra.mxu1 %v13138_v43  ;;  %v13148_v63 = vpack.c.bf16 %v9893_v5, %v9892_v57  ;;  %v9878_v43 = vld [vmem:[%s21537_s15 + $0x720] sm:$0xff]  ;;  %v9915_v57 = vld [vmem:[%s21537_s15 + $0x848] sm:$0xff] }
 0xd6e   :  { %13141 = vmatprep.subr.bf16.mxu1 %v13140_v16  ;;  %v9879_v16 = vld [vmem:[%s21537_s15 + $0x728] sm:$0xff]  ;;  %v13160_v5 = vpack.c.bf16 %v9915_v57, %v9914_v47  ;;  %v9904_v57 = vld [vmem:[%s21537_s15 + $0x7f0] sm:$0xff] }
 0xd6f   :  { %v13154_v59 = vpack.c.bf16 %v9879_v16, %v9878_v43  ;;  %v9918_v16 = vld [vmem:[%s21537_s15 + $0x860] sm:$0xff] }
 0xd70   :  { %13161 = vmatprep.subr.bf16.mxu0 %v13160_v5  ;;  %v9905_v5 = vld [vmem:[%s21537_s15 + $0x7f8] sm:$0xff] }
 0xd71   :  { %13143 = vmatpush3.bf16.msra.mxu1 %v13142_v50  ;;  %v9880_v50 = vld [vmem:[%s21537_s15 + $0x730] sm:$0xff] }
 0xd72   :  { %13145 = vmatprep.subr.bf16.mxu1 %v13144_v36  ;;  %v9881_v36 = vld [vmem:[%s21537_s15 + $0x738] sm:$0xff] }
 0xd73   :  { %v13158_v62 = vpack.c.bf16 %v9881_v36, %v9880_v50  ;;  %v9920_v36 = vld [vmem:[%s21537_s15 + $0x870] sm:$0xff] }
 0xd75   :  { %13147 = vmatpush3.bf16.msra.mxu1 %v13146_v4  ;;  %v9898_v4 = vld [vmem:[%s21537_s15 + $0x7c0] sm:$0xff] }
 0xd76   :  { %13149 = vmatprep.subr.bf16.mxu1 %v13148_v63  ;;  %v9899_v63 = vld [vmem:[%s21537_s15 + $0x7c8] sm:$0xff] }
 0xd77   :  { %v13162_v27 = vpack.c.bf16 %v9899_v63, %v9898_v4  ;;  %v13174_v4 = vpack.c.bf16 %v9905_v5, %v9904_v57  ;;  %v9922_v63 = vld [vmem:[%s21537_s15 + $0x880] sm:$0xff] }
 0xd79   :  { %13151 = vmatpush3.bf16.msra.mxu1 %v13150_v19  ;;  %13163 = vmatpush3.bf16.msra.mxu0 %v13162_v27  ;;  %v9900_v19 = vld [vmem:[%s21537_s15 + $0x7d0] sm:$0xff]  ;;  %v9923_v27 = vld [vmem:[%s21537_s15 + $0x888] sm:$0xff] }
 0xd7a   :  { %13153 = vmatprep.subr.bf16.mxu1 %v13152_v21  ;;  %v9901_v21 = vld [vmem:[%s21537_s15 + $0x7d8] sm:$0xff]  ;;  %13165 = vmatprep.subr.bf16.mxu0 %v13164_v58  ;;  %v13176_v2 = vpack.c.bf16 %v9923_v27, %v9922_v63  ;;  %v9907_v58 = vld [vmem:[%s21537_s15 + $0x808] sm:$0xff] }
 0xd7b   :  { %v13166_v43 = vpack.c.bf16 %v9901_v21, %v9900_v19  ;;  %v13178_v19 = vpack.c.bf16 %v9907_v58, %v9906_v15  ;;  %v9924_v21 = vld [vmem:[%s21537_s15 + $0x890] sm:$0xff]  ;;  %v9929_v63 = vld [vmem:[%s21537_s15 + $0x8b8] sm:$0xff] }
 0xd7c   :  { %v9912_v15 = vld [vmem:[%s21537_s15 + $0x830] sm:$0xff]  ;;  %v9913_v58 = vld [vmem:[%s21537_s15 + $0x838] sm:$0xff] }
 0xd7d   :  { %13155 = vmatpush3.bf16.msra.mxu1 %v13154_v59  ;;  %13167 = vmatpush3.bf16.msra.mxu0 %v13166_v43  ;;  %v13168_v59 = vpack.c.bf16 %v9919_v25, %v9918_v16  ;;  %v9925_v43 = vld [vmem:[%s21537_s15 + $0x898] sm:$0xff]  ;;  %v9908_v25 = vld [vmem:[%s21537_s15 + $0x810] sm:$0xff] }
 0xd7e   :  { %13157 = vmatprep.subr.bf16.mxu1 %v13156_v53  ;;  %v9903_v53 = vld [vmem:[%s21537_s15 + $0x7e8] sm:$0xff]  ;;  %v13180_v16 = vpack.c.bf16 %v9925_v43, %v9924_v21  ;;  %v13190_v21 = vpack.c.bf16 %v9913_v58, %v9912_v15 }
 0xd7f   :  { %v13170_v50 = vpack.c.bf16 %v9903_v53, %v9902_v20  ;;  %13169 = vmatprep.subr.bf16.mxu0 %v13168_v59  ;;  %v9909_v20 = vld [vmem:[%s21537_s15 + $0x818] sm:$0xff]  ;;  %v9926_v53 = vld [vmem:[%s21537_s15 + $0x8a0] sm:$0xff] }
 0xd80   :  { %v13182_v59 = vpack.c.bf16 %v9909_v20, %v9908_v25 }
 0xd81   :  { %13159 = vmatpush3.bf16.msra.mxu1 %v13158_v62  ;;  %13171 = vmatpush3.bf16.msra.mxu0 %v13170_v50  ;;  %v9921_v62 = vld [vmem:[%s21537_s15 + $0x878] sm:$0xff]  ;;  %v9927_v50 = vld [vmem:[%s21537_s15 + $0x8a8] sm:$0xff] }
 0xd82   :  { %13192 = vmatprep.subr.bf16.mxu1 %v21850_v35  ;;  %v13172_v47 = vpack.c.bf16 %v9921_v62, %v9920_v36  ;;  %v9910_v36 = vld [vmem:[%s21537_s15 + $0x820] sm:$0xff]  ;;  %v13184_v62 = vpack.c.bf16 %v9927_v50, %v9926_v53 }
 0xd83   :  { %v9930_v50 = vld [vmem:[%s21537_s15 + $0x8c0] sm:$0xff] }
 0xd84   :  { %13173 = vmatprep.subr.bf16.mxu0 %v13172_v47  ;;  %v9911_v47 = vld [vmem:[%s21537_s15 + $0x828] sm:$0xff] }
 0xd85   :  { %13175 = vmatpush3.bf16.msra.mxu0 %v13174_v4  ;;  %v13186_v57 = vpack.c.bf16 %v9911_v47, %v9910_v36  ;;  %v9928_v4 = vld [vmem:[%s21537_s15 + $0x8b0] sm:$0xff]  ;;  %v9931_v36 = vld [vmem:[%s21537_s15 + $0x8c8] sm:$0xff] }
 0xd86   :  { %13177 = vmatprep.subr.bf16.mxu0 %v13176_v2  ;;  %v13188_v2 = vpack.c.bf16 %v9929_v63, %v9928_v4  ;;  %v9932_v63 = vld [vmem:[%s21537_s15 + $0x8d0] sm:$0xff] }
 0xd89   :  { %13179 = vmatpush3.bf16.msra.mxu0 %v13178_v19 }
 0xd8a   :  { %13181 = vmatprep.subr.bf16.mxu0 %v13180_v16 }
 0xd8d   :  { %13183 = vmatpush3.bf16.msra.mxu0 %v13182_v59 }
 0xd8e   :  { %13185 = vmatprep.subr.bf16.mxu0 %v13184_v62 }
 0xd91   :  { %13187 = vmatpush3.bf16.msra.mxu0 %v13186_v57 }
 0xd92   :  { %13189 = vmatprep.subr.bf16.mxu0 %v13188_v2 }
 0xd95   :  { %13191 = vmatpush3.bf16.msra.mxu0 %v13190_v21 }
 0xd96   :  { %13205 = vmatprep.subr.bf16.mxu0 %v18225_v42 }
 0xdb6   :  { %v10562_v5 = vpop.f32.mrb[88].mxu0 }
 0xdb7   :  { %v10563_v27 = vpop.f32.mrb[89].mxu0 }
 0xdb8   :  { %v19599_v19 = vadd.f32 %v10563_v27, %v10562_v5  ;;  %v13193_v5 = vpack.c.bf16 %v9931_v36, %v9930_v50  ;;  %v9933_v27 = vld [vmem:[%s21537_s15 + $0x8d8] sm:$0xff]  ;;  %v9936_v50 = vld [vmem:[%s21537_s15 + $0x8f0] sm:$0xff] }
 0xdb9   :  { %v13196_v21 = vpack.c.bf16 %v9933_v27, %v9932_v63  ;;  %v9937_v36 = vld [vmem:[%s21537_s15 + $0x8f8] sm:$0xff] }
 0xdba   :  { %v10565_v43 = vpop.f32.mrb[90].mxu0 }
 0xdbb   :  { %v10566_v16 = vpop.f32.mrb[91].mxu0 }
 0xdbc   :  { %v19602_v25 = vadd.f32 %v10566_v16, %v10565_v43  ;;  %v9935_v43 = vld [vmem:[%s21537_s15 + $0x8e8] sm:$0xff] }
 0xdbe   :  { %v10568_v20 = vpop.f32.mrb[92].mxu0 }
 0xdbf   :  { %v10569_v59 = vpop.f32.mrb[93].mxu0 }
 0xdc0   :  { %v19604_v53 = vadd.f32 %v10569_v59, %v10568_v20 }
 0xdc6   :  { %v6718_v62 = vpop.f32.mrb[94].mxu0 }
 0xdc7   :  { %v6720_v47 = vpop.f32.mrb[95].mxu0  ;;  %v6898_v4 = vmul.f32 %v19314_v51, %v6718_v62  ;;  %v9934_v51 = vld [vmem:[%s21537_s15 + $0x8e0] sm:$0xff]  ;;  %v13202_v62 = vpack.c.bf16 %v9937_v36, %v9936_v50 }
 0xdc8   :  { %v6899_v57 = vmul.f32 %v19308_v55, %v6720_v47  ;;  %v13199_v59 = vpack.c.bf16 %v9935_v43, %v9934_v51 }
 0xdca   :  { %v6724_v2 = vpop.f32.mrb[96].mxu0  ;;  %7059 = vmatprep.mubr.f32.mxu1 %v6899_v57 }
 0xdcb   :  { %v6726_v15 = vpop.f32.mrb[97].mxu0  ;;  %7060 = vmatmul.mubr.f32.vlgmr.msra.gmra.mrb[128].mxu1 %v6898_v4  ;;  %v6903_v55 = vmul.f32 %v19332_v49, %v6724_v2  ;;  %v7238_v2 = vpop.permute.xlu1 %7237 }
 0xdcc   :  { %v6904_v58 = vmul.f32 %v19326_v8, %v6726_v15  ;;  %13194 = vmatpush3.bf16.msra.mxu1 %v13193_v5  ;;  %v19669_v15 = vsel %vm4807_vm7, %v16699_v23, %v7238_v2 }
 0xdcd   :  { %13195 = vmatprep.subr.bf16.mxu1 %v21850_v35 }
 0xdce   :  { %v6730_v16 = vpop.f32.mrb[98].mxu0  ;;  %7064 = vmatprep.mubr.f32.mxu1 %v6904_v58 }
 0xdcf   :  { %v6732_v20 = vpop.f32.mrb[99].mxu0  ;;  %7065 = vmatmul.mubr.f32.gmra.mrb[130].mxu1 %v6903_v55  ;;  %v6908_v49 = vmul.f32 %v19351_v32, %v6730_v16 }
 0xdd0   :  { %v6909_v8 = vmul.f32 %v19345_v44, %v6732_v20  ;;  %13197 = vmatpush3.bf16.msra.mxu1 %v13196_v21 }
 0xdd1   :  { %13198 = vmatprep.subr.bf16.mxu1 %v21850_v35 }
 0xdd2   :  { %7069 = vmatprep.mubr.f32.mxu1 %v6909_v8 }
 0xdd3   :  { %7070 = vmatmul.mubr.f32.gmra.mrb[132].mxu1 %v6908_v49 }
 0xdd4   :  { %13200 = vmatpush3.bf16.msra.mxu1 %v13199_v59  ;;  %11394 = vmatprep.mubr.msk.f32.mxu1 %vm14145_vm3, %v21681_v33 }
 0xdd5   :  { %13201 = vmatprep.subr.bf16.mxu1 %v21850_v35 }
 0xdd6   :  { %v6884_v44 = vpop.f32.mrb[100].mxu0 }
 0xdd7   :  { %v6902_v32 = vmul.f32 %v19367_v38, %v6884_v44  ;;  %v11371_v47 = vpop.f32.mrb[101].mxu0 }
 0xdd8   :  { %13203 = vmatpush3.bf16.msra.mxu1 %v13202_v62 }
 0xdd9   :  { %13221 = vmatprep.subr.bf16.mxu1 %v17784_v12 }
 0xdda   :  { %v6889_v57 = vpop.f32.mrb[102].mxu0 }
 0xddb   :  { %v6907_v5 = vmul.f32 %v19374_v6, %v6889_v57  ;;  %11395 = vmatmul.mubr.msk.f32.vlgmr.msra.gmra.mrb[134].mxu1 %vm1385_vm1, %v6902_v32  ;;  %v11374_v4 = vpop.f32.mrb[103].mxu0  ;;  %v7236_v6 = vpop.permute.xlu0 %7235 }
 0xddc   :  { %13223 = vmatpush1.bf16.msra.mxu1 %v17811_v26  ;;  %11397 = vmatprep.mubr.msk.f32.mxu1 %vm14145_vm3, %v21681_v33 }
 0xddd   :  { %13225 = vmatprep.subr.bf16.mxu1 %v17822_v31 }
 0xdde   :  { %v6894_v63 = vpop.f32.mrb[104].mxu0 }
 0xddf   :  { %v6912_v38 = vmul.f32 %v19385_v24, %v6894_v63  ;;  %11398 = vmatmul.mubr.msk.f32.gmra.mrb[136].mxu1 %vm1385_vm1, %v6907_v5  ;;  %v11377_v27 = vpop.f32.mrb[105].mxu0  ;;  %v19662_v24 = vsel %vm4807_vm7, %v16543_v1, %v7236_v6  ;;  %v7240_v58 = vpop.permute.xlu0 %7239  ;;  %v19700_v6 = vld [vmem:[%s21538_s4 + $0x10] sm:$0xff] }
 0xde0   :  { %13227 = vmatpush1.bf16.msra.mxu1 %v17843_v45  ;;  %11400 = vmatprep.mubr.msk.f32.mxu1 %vm14145_vm3, %v21681_v33  ;;  %v19676_v1 = vsel %vm4807_vm7, %v16713_v9, %v7240_v58 }
 0xde1   :  { %13229 = vmatprep.subr.bf16.mxu1 %v17855_v48 }
 0xde3   :  { %11401 = vmatmul.mubr.msk.f32.gmra.mrb[138].mxu1 %vm1385_vm1, %v6912_v38 }
 0xde4   :  { %13231 = vmatpush1.bf16.msra.mxu1 %v17874_v39  ;;  %7403 = vmatprep.mubr.f32.mxu1 %v21681_v33 }
 0xde5   :  { %13233 = vmatprep.subr.bf16.mxu1 %v17886_v34 }
 0xde8   :  { %13235 = vmatpush1.bf16.msra.mxu1 %v17898_v11 }
 0xdeb   :  { %9944 = vmatmul.mubr.msk.f32.vlgmr.msra.gmra.mrb[140].mxu1 %vm1385_vm1, %v19662_v24 }
 0xdec   :  { %7409 = vmatprep.mubr.f32.mxu1 %v21681_v33 }
 0xdef   :  { %9945 = vmatmul.mubr.msk.f32.gmra.mrb[142].mxu1 %vm1385_vm1, %v19669_v15 }
 0xdf0   :  { %7415 = vmatprep.mubr.f32.mxu1 %v21681_v33 }
 0xdf3   :  { %9946 = vmatmul.mubr.msk.f32.gmra.mrb[144].mxu1 %vm1385_vm1, %v19676_v1 }
 0xe17   :  { %v10521_v21 = vpop.f32.mrb[110].mxu1 }
 0xe18   :  { %v10522_v55 = vpop.f32.mrb[111].mxu1 }
 0xe19   :  { %v10523_v51 = vadd.f32 %v10522_v55, %v10521_v21  ;;  %v19706_v55 = vld [vmem:[%s21538_s4 + $0x40] sm:$0xff] }
 0xe1b   :  { %v10524_v43 = vpop.f32.mrb[112].mxu1  ;;  %v6538_v23 = vadd.f32 %v19599_v19, %v10523_v51 }
 0xe1c   :  { %v10525_v16 = vpop.f32.mrb[113].mxu1 }
 0xe1d   :  { %v10526_v20 = vadd.f32 %v10525_v16, %v10524_v43  ;;  %v19713_v43 = vld [vmem:[%s21538_s4 + $0x38] sm:$0xff] }
 0xe1f   :  { %v10527_v8 = vpop.f32.mrb[114].mxu1  ;;  %v6543_v59 = vadd.f32 %v19602_v25, %v10526_v20 }
 0xe20   :  { %v10528_v49 = vpop.f32.mrb[115].mxu1 }
 0xe21   :  { %v10529_v50 = vadd.f32 %v10528_v49, %v10527_v8  ;;  %v19720_v8 = vld [vmem:[%s21538_s4 + $0x68] sm:$0x3]  ;;  %v19727_v49 = vld [vmem:[%s21538_s4 + $0x60] sm:$0x3] }
 0xe23   :  { %v6548_v36 = vadd.f32 %v19604_v53, %v10529_v50  ;;  %v19694_v53 = vld [vmem:[%s21538_s4 + $0x18] sm:$0xff] }
 0xe27   :  { %v6617_v9 = vpop.f32.mrb[116].mxu1 }
 0xe28   :  { %v19683_v62 = vadd.f32 %v6617_v9, %v6538_v23  ;;  %v11346_v44 = vpop.f32.mrb[117].mxu1  ;;  %v9999_v9 = vld [vmem:[%s21537_s15 + $0xa88] sm:$0xff] }
 0xe2b   :  { %v6622_v32 = vpop.f32.mrb[118].mxu1 }
 0xe2c   :  { %v19685_v47 = vadd.f32 %v6622_v32, %v6543_v59  ;;  %v11349_v57 = vpop.f32.mrb[119].mxu1  ;;  %v9982_v32 = vld [vmem:[%s21537_s15 + $0xa00] sm:$0xff] }
 0xe2d   :  { %v9983_v57 = vld [vmem:[%s21537_s15 + $0xa08] sm:$0xff] }
 0xe2e   :  { %v13450_v19 = vpack.c.bf16 %v19685_v47, %v19683_v62  ;;  %v20405_v62 = vld [vmem:[%s21531_s1] sm:$0x3] }
 0xe2f   :  { %v6627_v5 = vpop.f32.mrb[120].mxu1 }
 0xe30   :  { %v19689_v4 = vadd.f32 %v6627_v5, %v6548_v36  ;;  %v11352_v63 = vpop.f32.mrb[121].mxu1  ;;  %v9998_v36 = vld [vmem:[%s21537_s15 + $0xa80] sm:$0xff]  ;;  %v10000_v5 = vld [vmem:[%s21537_s15 + $0xa90] sm:$0xff] }
 0xe31   :  { %v13280_v44 = vpack.c.bf16 %v9999_v9, %v9998_v36  ;;  %v10001_v63 = vld [vmem:[%s21537_s15 + $0xa98] sm:$0xff]  ;;  %v9988_v9 = vld [vmem:[%s21537_s15 + $0xa30] sm:$0xff] }
 0xe37   :  { %v6801_v25 = vpop.f32.mrb[122].mxu1 }
 0xe38   :  { %v6803_v38 = vpop.f32.mrb[123].mxu1  ;;  %v6900_v2 = vmul.f32 %v19700_v6, %v6801_v25  ;;  %v13282_v25 = vpack.c.bf16 %v9983_v57, %v9982_v32  ;;  %v10006_v32 = vld [vmem:[%s21537_s15 + $0xac0] sm:$0xff] }
 0xe39   :  { %v6901_v27 = vmul.f32 %v19694_v53, %v6803_v38  ;;  %v13284_v38 = vpack.c.bf16 %v10001_v63, %v10000_v5  ;;  %v9990_v63 = vld [vmem:[%s21537_s15 + $0xa40] sm:$0xff] }
 0xe3b   :  { %v6807_v58 = vpop.f32.mrb[124].mxu1  ;;  %7139 = vmatprep.mubr.f32.mxu0 %v6901_v27  ;;  %v9984_v27 = vld [vmem:[%s21537_s15 + $0xa10] sm:$0xff] }
 0xe3c   :  { %v6809_v21 = vpop.f32.mrb[125].mxu1  ;;  %7140 = vmatmul.mubr.f32.vlgmr.msra.gmra.mrb[106].mxu0 %v6900_v2  ;;  %v6905_v23 = vmul.f32 %v19713_v43, %v6807_v58  ;;  %v9985_v2 = vld [vmem:[%s21537_s15 + $0xa18] sm:$0xff]  ;;  %v10002_v58 = vld [vmem:[%s21537_s15 + $0xaa0] sm:$0xff] }
 0xe3d   :  { %v6906_v51 = vmul.f32 %v19706_v55, %v6809_v21  ;;  %13207 = vmatpush1.bf16.msra.mxu0 %v18239_v18  ;;  %v10003_v21 = vld [vmem:[%s21537_s15 + $0xaa8] sm:$0xff] }
 0xe3e   :  { %13209 = vmatprep.subr.bf16.mxu0 %v18242_v56 }
 0xe3f   :  { %v6813_v16 = vpop.f32.mrb[126].mxu1  ;;  %7144 = vmatprep.mubr.f32.mxu0 %v6906_v51  ;;  %v13286_v51 = vpack.c.bf16 %v9985_v2, %v9984_v27 }
 0xe40   :  { %v6815_v20 = vpop.f32.mrb[127].mxu1  ;;  %7145 = vmatmul.mubr.f32.gmra.mrb[108].mxu0 %v6905_v23  ;;  %v6910_v50 = vmul.f32 %v19727_v49, %v6813_v16  ;;  %v13288_v23 = vpack.c.bf16 %v10003_v21, %v10002_v58  ;;  %v9986_v16 = vld [vmem:[%s21537_s15 + $0xa20] sm:$0xff]  ;;  %v9992_v58 = vld [vmem:[%s21537_s15 + $0xa50] sm:$0xff]  ;;  %v9993_v21 = vld [vmem:[%s21537_s15 + $0xa58] sm:$0xff] }
 0xe41   :  { %v6911_v59 = vmul.f32 %v19720_v8, %v6815_v20  ;;  %13211 = vmatpush1.bf16.msra.mxu0 %v18258_v3  ;;  %v9987_v20 = vld [vmem:[%s21537_s15 + $0xa28] sm:$0xff] }
 0xe42   :  { %13213 = vmatprep.subr.bf16.mxu0 %v18262_v28 }
 0xe43   :  { %7149 = vmatprep.mubr.f32.mxu0 %v6911_v59  ;;  %v10004_v59 = vld [vmem:[%s21537_s15 + $0xab0] sm:$0xff] }
 0xe44   :  { %7150 = vmatmul.mubr.f32.gmra.mrb[110].mxu0 %v6910_v50  ;;  %v13290_v50 = vpack.c.bf16 %v9987_v20, %v9986_v16  ;;  %v13302_v16 = vpack.c.bf16 %v9993_v21, %v9992_v58  ;;  %v9952_v21 = vld [vmem:[%s21537_s15 + $0x910] sm:$0xff] }
 0xe45   :  { %13215 = vmatpush1.bf16.msra.mxu0 %v18277_v54  ;;  %7320 = vmatprep.mubr.f32.mxu0 %v21681_v33 }
 0xe46   :  { %13217 = vmatprep.subr.bf16.mxu0 %v18280_v7 }
 0xe49   :  { %13219 = vmatpush1.bf16.msra.mxu0 %v18289_v0 }
 0xe4a   :  { %13236 = vmatprep.subr.bf16.mxu0 %v21850_v35 }
 0xe4c   :  { %9941 = vmatmul.mubr.msk.f32.vlgmr.msra.gmra.mrb[112].mxu0 %vm1385_vm1, %v19662_v24 }
 0xe4d   :  { %13238 = vmatpush3.bf16.msra.mxu0 %v17922_v30  ;;  %7326 = vmatprep.mubr.f32.mxu0 %v21681_v33 }
 0xe4e   :  { %13239 = vmatprep.subr.bf16.mxu0 %v21850_v35 }
 0xe50   :  { %9942 = vmatmul.mubr.msk.f32.gmra.mrb[114].mxu0 %vm1385_vm1, %v19669_v15 }
 0xe51   :  { %13241 = vmatpush3.bf16.msra.mxu0 %v17954_v13  ;;  %7332 = vmatprep.mubr.f32.mxu0 %v21681_v33 }
 0xe52   :  { %13242 = vmatprep.subr.bf16.mxu0 %v21850_v35 }
 0xe54   :  { %9943 = vmatmul.mubr.msk.f32.gmra.mrb[116].mxu0 %vm1385_vm1, %v19676_v1 }
 0xe55   :  { %13244 = vmatpush3.bf16.msra.mxu0 %v17986_v22  ;;  %11419 = vmatprep.mubr.msk.f32.mxu0 %vm14145_vm3, %v21681_v33 }
 0xe56   :  { %13245 = vmatprep.subr.bf16.mxu0 %v21850_v35 }
 0xe59   :  { %13247 = vmatpush3.bf16.msra.mxu0 %v18015_v14 }
 0xe5a   :  { %13281 = vmatprep.subr.bf16.mxu0 %v13280_v44  ;;  %v9989_v44 = vld [vmem:[%s21537_s15 + $0xa38] sm:$0xff] }
 0xe5b   :  { %v13294_v57 = vpack.c.bf16 %v9989_v44, %v9988_v9 }
 0xe5c   :  { %11420 = vmatmul.mubr.msk.f32.vlgmr.msra.gmra.mrb[118].mxu0 %vm1385_vm1, %v19662_v24  ;;  %v10005_v24 = vld [vmem:[%s21537_s15 + $0xab8] sm:$0xff] }
 0xe5d   :  { %11422 = vmatprep.mubr.msk.f32.mxu0 %vm14145_vm3, %v21681_v33  ;;  %13283 = vmatpush3.bf16.msra.mxu0 %v13282_v25  ;;  %v13292_v36 = vpack.c.bf16 %v10005_v24, %v10004_v59  ;;  %v9991_v25 = vld [vmem:[%s21537_s15 + $0xa48] sm:$0xff]  ;;  %v9994_v59 = vld [vmem:[%s21537_s15 + $0xa60] sm:$0xff] }
 0xe5e   :  { %13285 = vmatprep.subr.bf16.mxu0 %v13284_v38  ;;  %v10008_v38 = vld [vmem:[%s21537_s15 + $0xad0] sm:$0xff]  ;;  %v13298_v27 = vpack.c.bf16 %v9991_v25, %v9990_v63  ;;  %v9995_v24 = vld [vmem:[%s21537_s15 + $0xa68] sm:$0xff]  ;;  %v9950_v25 = vld [vmem:[%s21537_s15 + $0x900] sm:$0xff] }
 0xe5f   :  { %v13306_v9 = vpack.c.bf16 %v9995_v24, %v9994_v59  ;;  %v9967_v63 = vld [vmem:[%s21537_s15 + $0x988] sm:$0xff]  ;;  %v9954_v24 = vld [vmem:[%s21537_s15 + $0x920] sm:$0xff] }
 0xe60   :  { %11423 = vmatmul.mubr.msk.f32.gmra.mrb[120].mxu0 %vm1385_vm1, %v19669_v15  ;;  %v10007_v15 = vld [vmem:[%s21537_s15 + $0xac8] sm:$0xff] }
 0xe61   :  { %11425 = vmatprep.mubr.msk.f32.mxu0 %vm14145_vm3, %v21681_v33  ;;  %13287 = vmatpush3.bf16.msra.mxu0 %v13286_v51  ;;  %v13296_v5 = vpack.c.bf16 %v10007_v15, %v10006_v32  ;;  %v10010_v51 = vld [vmem:[%s21537_s15 + $0xae0] sm:$0xff]  ;;  %v9996_v32 = vld [vmem:[%s21537_s15 + $0xa70] sm:$0xff]  ;;  %v9997_v15 = vld [vmem:[%s21537_s15 + $0xa78] sm:$0xff] }
 0xe62   :  { %13289 = vmatprep.subr.bf16.mxu0 %v13288_v23  ;;  %v10011_v23 = vld [vmem:[%s21537_s15 + $0xae8] sm:$0xff] }
 0xe63   :  { %v13304_v20 = vpack.c.bf16 %v10011_v23, %v10010_v51  ;;  %v9953_v51 = vld [vmem:[%s21537_s15 + $0x918] sm:$0xff]  ;;  %v9970_v23 = vld [vmem:[%s21537_s15 + $0x9a0] sm:$0xff] }
 0xe64   :  { %11426 = vmatmul.mubr.msk.f32.gmra.mrb[122].mxu0 %vm1385_vm1, %v19676_v1  ;;  %v10009_v1 = vld [vmem:[%s21537_s15 + $0xad8] sm:$0xff] }
 0xe65   :  { %13291 = vmatpush3.bf16.msra.mxu0 %v13290_v50  ;;  %v13300_v2 = vpack.c.bf16 %v10009_v1, %v10008_v38  ;;  %v10012_v50 = vld [vmem:[%s21537_s15 + $0xaf0] sm:$0xff]  ;;  %v9951_v1 = vld [vmem:[%s21537_s15 + $0x908] sm:$0xff] }
 0xe66   :  { %13293 = vmatprep.subr.bf16.mxu0 %v13292_v36  ;;  %v10013_v36 = vld [vmem:[%s21537_s15 + $0xaf8] sm:$0xff] }
 0xe67   :  { %v13308_v44 = vpack.c.bf16 %v10013_v36, %v10012_v50  ;;  %v9955_v50 = vld [vmem:[%s21537_s15 + $0x928] sm:$0xff]  ;;  %v9972_v36 = vld [vmem:[%s21537_s15 + $0x9b0] sm:$0xff] }
 0xe69   :  { %13295 = vmatpush3.bf16.msra.mxu0 %v13294_v57  ;;  %v13310_v57 = vpack.c.bf16 %v9997_v15, %v9996_v32  ;;  %v9956_v15 = vld [vmem:[%s21537_s15 + $0x930] sm:$0xff] }
 0xe6a   :  { %13297 = vmatprep.subr.bf16.mxu0 %v13296_v5  ;;  %v9966_v5 = vld [vmem:[%s21537_s15 + $0x980] sm:$0xff] }
 0xe6b   :  { %v13248_v38 = vpack.c.bf16 %v9967_v63, %v9966_v5  ;;  %v9974_v63 = vld [vmem:[%s21537_s15 + $0x9c0] sm:$0xff] }
 0xe6d   :  { %13299 = vmatpush3.bf16.msra.mxu0 %v13298_v27  ;;  %v9969_v27 = vld [vmem:[%s21537_s15 + $0x998] sm:$0xff]  ;;  %13249 = vmatprep.subr.bf16.mxu1 %v13248_v38 }
 0xe6e   :  { %13301 = vmatprep.subr.bf16.mxu0 %v13300_v2  ;;  %v13250_v2 = vpack.c.bf16 %v9951_v1, %v9950_v25  ;;  %v9975_v25 = vld [vmem:[%s21537_s15 + $0x9c8] sm:$0xff]  ;;  %v9958_v1 = vld [vmem:[%s21537_s15 + $0x940] sm:$0xff] }
 0xe6f   :  { %v13264_v38 = vpack.c.bf16 %v9975_v25, %v9974_v63  ;;  %v9964_v63 = vld [vmem:[%s21537_s15 + $0x970] sm:$0xff]  ;;  %v9965_v25 = vld [vmem:[%s21537_s15 + $0x978] sm:$0xff] }
 0xe70   :  { %13251 = vmatpush3.bf16.msra.mxu1 %v13250_v2  ;;  %v9976_v2 = vld [vmem:[%s21537_s15 + $0x9d0] sm:$0xff] }
 0xe71   :  { %13303 = vmatpush3.bf16.msra.mxu0 %v13302_v16  ;;  %v9971_v16 = vld [vmem:[%s21537_s15 + $0x9a8] sm:$0xff] }
 0xe72   :  { %13305 = vmatprep.subr.bf16.mxu0 %v13304_v20  ;;  %v13254_v20 = vpack.c.bf16 %v9953_v51, %v9952_v21  ;;  %v13256_v59 = vpack.c.bf16 %v9971_v16, %v9970_v23  ;;  %v9960_v51 = vld [vmem:[%s21537_s15 + $0x950] sm:$0xff]  ;;  %v9961_v23 = vld [vmem:[%s21537_s15 + $0x958] sm:$0xff] }
 0xe73   :  { %v13270_v16 = vpack.c.bf16 %v9961_v23, %v9960_v51 }
 0xe75   :  { %13307 = vmatpush3.bf16.msra.mxu0 %v13306_v9  ;;  %v9973_v9 = vld [vmem:[%s21537_s15 + $0x9b8] sm:$0xff] }
 0xe76   :  { %13309 = vmatprep.subr.bf16.mxu0 %v13308_v44  ;;  %v13258_v44 = vpack.c.bf16 %v9955_v50, %v9954_v24  ;;  %v13260_v32 = vpack.c.bf16 %v9973_v9, %v9972_v36  ;;  %v9962_v50 = vld [vmem:[%s21537_s15 + $0x960] sm:$0xff]  ;;  %v9963_v36 = vld [vmem:[%s21537_s15 + $0x968] sm:$0xff] }
 0xe77   :  { %v13274_v9 = vpack.c.bf16 %v9963_v36, %v9962_v50 }
 0xe79   :  { %13311 = vmatpush3.bf16.msra.mxu0 %v13310_v57  ;;  %v9957_v57 = vld [vmem:[%s21537_s15 + $0x938] sm:$0xff] }
 0xe7a   :  { %13325 = vmatprep.subr.bf16.mxu0 %v18225_v42  ;;  %v9968_v42 = vld [vmem:[%s21537_s15 + $0x990] sm:$0xff]  ;;  %v13262_v5 = vpack.c.bf16 %v9957_v57, %v9956_v15  ;;  %v9981_v15 = vld [vmem:[%s21537_s15 + $0x9f8] sm:$0xff] }
 0xe7b   :  { %v13252_v58 = vpack.c.bf16 %v9969_v27, %v9968_v42  ;;  %v9959_v42 = vld [vmem:[%s21537_s15 + $0x948] sm:$0xff] }
 0xe7c   :  { %v13266_v27 = vpack.c.bf16 %v9959_v42, %v9958_v1  ;;  %v13278_v1 = vpack.c.bf16 %v9965_v25, %v9964_v63 }
 0xe7d   :  { %13253 = vmatprep.subr.bf16.mxu1 %v13252_v58  ;;  %v9977_v58 = vld [vmem:[%s21537_s15 + $0x9d8] sm:$0xff] }
 0xe7e   :  { %13255 = vmatpush3.bf16.msra.mxu1 %v13254_v20  ;;  %v13268_v21 = vpack.c.bf16 %v9977_v58, %v9976_v2  ;;  %v9978_v20 = vld [vmem:[%s21537_s15 + $0x9e0] sm:$0xff] }
 0xe7f   :  { %13257 = vmatprep.subr.bf16.mxu1 %v13256_v59  ;;  %v9979_v59 = vld [vmem:[%s21537_s15 + $0x9e8] sm:$0xff] }
 0xe80   :  { %v13272_v24 = vpack.c.bf16 %v9979_v59, %v9978_v20 }
 0xe82   :  { %13259 = vmatpush3.bf16.msra.mxu1 %v13258_v44 }
 0xe83   :  { %13261 = vmatprep.subr.bf16.mxu1 %v13260_v32  ;;  %v9980_v32 = vld [vmem:[%s21537_s15 + $0x9f0] sm:$0xff] }
 0xe86   :  { %13263 = vmatpush3.bf16.msra.mxu1 %v13262_v5  ;;  %v13276_v5 = vpack.c.bf16 %v9981_v15, %v9980_v32 }
 0xe87   :  { %13265 = vmatprep.subr.bf16.mxu1 %v13264_v38 }
 0xe8a   :  { %13267 = vmatpush3.bf16.msra.mxu1 %v13266_v27 }
 0xe8b   :  { %13269 = vmatprep.subr.bf16.mxu1 %v13268_v21 }
 0xe8e   :  { %13271 = vmatpush3.bf16.msra.mxu1 %v13270_v16 }
 0xe8f   :  { %13273 = vmatprep.subr.bf16.mxu1 %v13272_v24 }
 0xe92   :  { %13275 = vmatpush3.bf16.msra.mxu1 %v13274_v9 }
 0xe93   :  { %13277 = vmatprep.subr.bf16.mxu1 %v13276_v5 }
 0xe96   :  { %13279 = vmatpush3.bf16.msra.mxu1 %v13278_v1 }
 0xe97   :  { %13312 = vmatprep.subr.bf16.mxu1 %v21850_v35 }
 0xe9e   :  { %v10625_v44 = vpop.f32.mrb[128].mxu1 }
 0xe9f   :  { %v10626_v57 = vpop.f32.mrb[129].mxu1 }
 0xea0   :  { %v19956_v38 = vadd.f32 %v10626_v57, %v10625_v44 }
 0xea2   :  { %v10628_v42 = vpop.f32.mrb[130].mxu1 }
 0xea3   :  { %v10629_v27 = vpop.f32.mrb[131].mxu1 }
 0xea4   :  { %v19959_v2 = vadd.f32 %v10629_v27, %v10628_v42  ;;  %v10068_v42 = vld [vmem:[%s21537_s15 + $0xc50] sm:$0xff]  ;;  %v10069_v27 = vld [vmem:[%s21537_s15 + $0xc58] sm:$0xff] }
 0xea6   :  { %v10631_v58 = vpop.f32.mrb[132].mxu1 }
 0xea7   :  { %v10632_v21 = vpop.f32.mrb[133].mxu1 }
 0xea8   :  { %v19961_v51 = vadd.f32 %v10632_v21, %v10631_v58  ;;  %v10086_v58 = vld [vmem:[%s21537_s15 + $0xce0] sm:$0xff]  ;;  %v10087_v21 = vld [vmem:[%s21537_s15 + $0xce8] sm:$0xff] }
 0xeae   :  { %v19963_v23 = vpop.f32.mrb[134].mxu1 }
 0xeaf   :  { %v11396_v16 = vpop.f32.mrb[135].mxu1 }
 0xeb0   :  { %v13408_v16 = vpack.c.bf16 %v10087_v21, %v10086_v58  ;;  %v10080_v21 = vld [vmem:[%s21537_s15 + $0xcb0] sm:$0xff] }
 0xeb2   :  { %v19965_v20 = vpop.f32.mrb[136].mxu1 }
 0xeb3   :  { %v11399_v59 = vpop.f32.mrb[137].mxu1 }
 0xeb4   :  { %v10070_v59 = vld [vmem:[%s21537_s15 + $0xc60] sm:$0xff] }
 0xeb6   :  { %v19967_v24 = vpop.f32.mrb[138].mxu1 }
 0xeb7   :  { %v11402_v50 = vpop.f32.mrb[139].mxu1 }
 0xeb8   :  { %v10071_v50 = vld [vmem:[%s21537_s15 + $0xc68] sm:$0xff] }
 0xebe   :  { %v7405_v36 = vpop.f32.mrb[140].mxu1 }
 0xebf   :  { %v7407_v9 = vpop.f32.mrb[141].mxu1  ;;  %v7504_v32 = vmul.f32 %v19700_v6, %v7405_v36  ;;  %v10088_v36 = vld [vmem:[%s21537_s15 + $0xcf0] sm:$0xff] }
 0xec0   :  { %v7505_v44 = vmul.f32 %v19694_v53, %v7407_v9  ;;  %v10089_v9 = vld [vmem:[%s21537_s15 + $0xcf8] sm:$0xff] }
 0xec2   :  { %v7411_v15 = vpop.f32.mrb[142].mxu1  ;;  %7743 = vmatprep.mubr.f32.mxu0 %v7505_v44  ;;  %v13410_v44 = vpack.c.bf16 %v10071_v50, %v10070_v59 }
 0xec3   :  { %v7413_v57 = vpop.f32.mrb[143].mxu1  ;;  %7744 = vmatmul.mubr.f32.vlgmr.msra.gmra.mrb[124].mxu0 %v7504_v32  ;;  %v7509_v63 = vmul.f32 %v19713_v43, %v7411_v15  ;;  %v10084_v43 = vld [vmem:[%s21537_s15 + $0xcd0] sm:$0xff]  ;;  %v13412_v32 = vpack.c.bf16 %v10089_v9, %v10088_v36 }
 0xec4   :  { %v7510_v5 = vmul.f32 %v19706_v55, %v7413_v57  ;;  %13327 = vmatpush1.bf16.msra.mxu0 %v18239_v18  ;;  %v7840_v18 = vpop.permute.xlu1 %7839  ;;  %v10067_v55 = vld [vmem:[%s21537_s15 + $0xc48] sm:$0xff]  ;;  %v10072_v15 = vld [vmem:[%s21537_s15 + $0xc70] sm:$0xff]  ;;  %v10073_v57 = vld [vmem:[%s21537_s15 + $0xc78] sm:$0xff] }
 0xec5   :  { %13329 = vmatprep.subr.bf16.mxu0 %v18242_v56  ;;  %v19986_v56 = vsel %vm4807_vm7, %v17919_v37, %v7840_v18  ;;  %v21851_v37 = vld [vmem:[#allocation6_spill] sm:$0xff]  ;;  %v10092_v18 = vld [vmem:[%s21537_s15 + $0xd10] sm:$0xff] }
 0xec6   :  { %v7417_v25 = vpop.f32.mrb[144].mxu1  ;;  %7748 = vmatprep.mubr.f32.mxu0 %v7510_v5  ;;  %v10090_v5 = vld [vmem:[%s21537_s15 + $0xd00] sm:$0xff] }
 0xec7   :  { %v7419_v1 = vpop.f32.mrb[145].mxu1  ;;  %7749 = vmatmul.mubr.f32.gmra.mrb[126].mxu0 %v7509_v63  ;;  %v7514_v6 = vmul.f32 %v19727_v49, %v7417_v25  ;;  %v10091_v63 = vld [vmem:[%s21537_s15 + $0xd08] sm:$0xff]  ;;  %v13414_v25 = vpack.c.bf16 %v10073_v57, %v10072_v15 }
 0xec8   :  { %v7515_v53 = vmul.f32 %v19720_v8, %v7419_v1  ;;  %13331 = vmatpush1.bf16.msra.mxu0 %v18258_v3  ;;  %v7842_v3 = vpop.permute.xlu0 %7841  ;;  %v13416_v1 = vpack.c.bf16 %v10091_v63, %v10090_v5 }
 0xec9   :  { %13333 = vmatprep.subr.bf16.mxu0 %v18262_v28  ;;  %v19995_v28 = vsel %vm4807_vm7, %v17948_v10, %v7842_v3  ;;  %v10083_v10 = vld [vmem:[%s21537_s15 + $0xcc8] sm:$0xff]  ;;  %v10093_v3 = vld [vmem:[%s21537_s15 + $0xd18] sm:$0xff] }
 0xeca   :  { %7753 = vmatprep.mubr.f32.mxu0 %v7515_v53  ;;  %v10074_v53 = vld [vmem:[%s21537_s15 + $0xc80] sm:$0xff] }
 0xecb   :  { %7754 = vmatmul.mubr.f32.gmra.mrb[128].mxu0 %v7514_v6  ;;  %v10075_v6 = vld [vmem:[%s21537_s15 + $0xc88] sm:$0xff] }
 0xecc   :  { %13335 = vmatpush1.bf16.msra.mxu0 %v18277_v54  ;;  %7924 = vmatprep.mubr.f32.mxu0 %v21681_v33  ;;  %v7844_v54 = vpop.permute.xlu1 %7843 }
 0xecd   :  { %13337 = vmatprep.subr.bf16.mxu0 %v18280_v7  ;;  %v10082_v7 = vld [vmem:[%s21537_s15 + $0xcc0] sm:$0xff] }
 0xed0   :  { %13339 = vmatpush1.bf16.msra.mxu0 %v18289_v0  ;;  %v10066_v0 = vld [vmem:[%s21537_s15 + $0xc40] sm:$0xff] }
 0xed1   :  { %13356 = vmatprep.subr.bf16.mxu0 %v21850_v35  ;;  %v13402_v8 = vpack.c.bf16 %v10067_v55, %v10066_v0  ;;  %v10095_v0 = vld [vmem:[%s21537_s15 + $0xd28] sm:$0xff] }
 0xed3   :  { %10025 = vmatmul.mubr.msk.f32.vlgmr.msra.gmra.mrb[130].mxu0 %vm1385_vm1, %v19986_v56 }
 0xed4   :  { %13358 = vmatpush3.bf16.msra.mxu0 %v17922_v30  ;;  %7930 = vmatprep.mubr.f32.mxu0 %v21681_v33  ;;  %v20004_v30 = vsel %vm4807_vm7, %v21851_v37, %v7844_v54  ;;  %v13418_v54 = vpack.c.bf16 %v10075_v6, %v10074_v53  ;;  %v13420_v37 = vpack.c.bf16 %v10093_v3, %v10092_v18 }
 0xed5   :  { %13359 = vmatprep.subr.bf16.mxu0 %v21850_v35 }
 0xed7   :  { %10026 = vmatmul.mubr.msk.f32.gmra.mrb[132].mxu0 %vm1385_vm1, %v19995_v28 }
 0xed8   :  { %13361 = vmatpush3.bf16.msra.mxu0 %v17954_v13  ;;  %7936 = vmatprep.mubr.f32.mxu0 %v21681_v33  ;;  %v13400_v13 = vpack.c.bf16 %v10083_v10, %v10082_v7  ;;  %v10076_v7 = vld [vmem:[%s21537_s15 + $0xc90] sm:$0xff]  ;;  %v10077_v10 = vld [vmem:[%s21537_s15 + $0xc98] sm:$0xff] }
 0xed9   :  { %13362 = vmatprep.subr.bf16.mxu0 %v21850_v35  ;;  %v13422_v55 = vpack.c.bf16 %v10077_v10, %v10076_v7 }
 0xedb   :  { %10027 = vmatmul.mubr.msk.f32.gmra.mrb[134].mxu0 %vm1385_vm1, %v20004_v30 }
 0xedc   :  { %13364 = vmatpush3.bf16.msra.mxu0 %v17986_v22  ;;  %11469 = vmatprep.mubr.msk.f32.mxu0 %vm14145_vm3, %v21681_v33  ;;  %v10085_v22 = vld [vmem:[%s21537_s15 + $0xcd8] sm:$0xff] }
 0xedd   :  { %13365 = vmatprep.subr.bf16.mxu0 %v21850_v35  ;;  %v13404_v49 = vpack.c.bf16 %v10085_v22, %v10084_v43  ;;  %v10078_v22 = vld [vmem:[%s21537_s15 + $0xca0] sm:$0xff] }
 0xee0   :  { %13367 = vmatpush3.bf16.msra.mxu0 %v18015_v14  ;;  %v13406_v14 = vpack.c.bf16 %v10069_v27, %v10068_v42  ;;  %v10097_v42 = vld [vmem:[%s21537_s15 + $0xd38] sm:$0xff] }
 0xee1   :  { %13401 = vmatprep.subr.bf16.mxu0 %v13400_v13  ;;  %v10094_v13 = vld [vmem:[%s21537_s15 + $0xd20] sm:$0xff] }
 0xee2   :  { %v13424_v43 = vpack.c.bf16 %v10095_v0, %v10094_v13  ;;  %v20163_v13 = vld [vmem:[%s21538_s4 + $0x30] sm:$0xff] }
 0xee3   :  { %11470 = vmatmul.mubr.msk.f32.vlgmr.msra.gmra.mrb[136].mxu0 %vm1385_vm1, %v19986_v56 }
 0xee4   :  { %13403 = vmatpush3.bf16.msra.mxu0 %v13402_v8  ;;  %11472 = vmatprep.mubr.msk.f32.mxu0 %vm14145_vm3, %v21681_v33  ;;  %v10079_v8 = vld [vmem:[%s21537_s15 + $0xca8] sm:$0xff] }
 0xee5   :  { %13405 = vmatprep.subr.bf16.mxu0 %v13404_v49  ;;  %v10096_v49 = vld [vmem:[%s21537_s15 + $0xd30] sm:$0xff]  ;;  %v13426_v27 = vpack.c.bf16 %v10079_v8, %v10078_v22  ;;  %v10018_v8 = vld [vmem:[%s21537_s15 + $0xb20] sm:$0xff] }
 0xee6   :  { %v13428_v58 = vpack.c.bf16 %v10097_v42, %v10096_v49  ;;  %v10019_v49 = vld [vmem:[%s21537_s15 + $0xb28] sm:$0xff] }
 0xee7   :  { %11473 = vmatmul.mubr.msk.f32.gmra.mrb[138].mxu0 %vm1385_vm1, %v19995_v28 }
 0xee8   :  { %13407 = vmatpush3.bf16.msra.mxu0 %v13406_v14  ;;  %11475 = vmatprep.mubr.msk.f32.mxu0 %vm14145_vm3, %v21681_v33  ;;  %v10081_v14 = vld [vmem:[%s21537_s15 + $0xcb8] sm:$0xff] }
 0xee9   :  { %13409 = vmatprep.subr.bf16.mxu0 %v13408_v16  ;;  %v13430_v16 = vpack.c.bf16 %v10081_v14, %v10080_v21  ;;  %v13319_v14 = vpack.c.bf16 %v10019_v49, %v10018_v8 }
 0xeeb   :  { %11476 = vmatmul.mubr.msk.f32.gmra.mrb[140].mxu0 %vm1385_vm1, %v20004_v30 }
 0xeec   :  { %13411 = vmatpush3.bf16.msra.mxu0 %v13410_v44 }
 0xeed   :  { %13413 = vmatprep.subr.bf16.mxu0 %v13412_v32 }
 0xef0   :  { %13415 = vmatpush3.bf16.msra.mxu0 %v13414_v25 }
 0xef1   :  { %13417 = vmatprep.subr.bf16.mxu0 %v13416_v1 }
 0xef4   :  { %13419 = vmatpush3.bf16.msra.mxu0 %v13418_v54  ;;  %v10016_v54 = vld [vmem:[%s21537_s15 + $0xb10] sm:$0xff] }
 0xef5   :  { %13421 = vmatprep.subr.bf16.mxu0 %v13420_v37  ;;  %v10017_v37 = vld [vmem:[%s21537_s15 + $0xb18] sm:$0xff] }
 0xef8   :  { %13423 = vmatpush3.bf16.msra.mxu0 %v13422_v55  ;;  %v13316_v55 = vpack.c.bf16 %v10017_v37, %v10016_v54  ;;  %v10037_v54 = vld [vmem:[%s21537_s15 + $0xb58] sm:$0xff]  ;;  %v10054_v37 = vld [vmem:[%s21537_s15 + $0xbe0] sm:$0xff] }
 0xef9   :  { %13425 = vmatprep.subr.bf16.mxu0 %v13424_v43  ;;  %v20169_v43 = vld [vmem:[%s21538_s4 + $0x28] sm:$0xff] }
 0xefc   :  { %13427 = vmatpush3.bf16.msra.mxu0 %v13426_v27 }
 0xefd   :  { %13429 = vmatprep.subr.bf16.mxu0 %v13428_v58  ;;  %v20182_v58 = vld [vmem:[%s21538_s4 + $0x58] sm:$0x3] }
 0xf00   :  { %13431 = vmatpush3.bf16.msra.mxu0 %v13430_v16  ;;  %v20188_v16 = vld [vmem:[%s21538_s4 + $0x50] sm:$0x3] }
 0xf01   :  { %13445 = vmatprep.subr.bf16.mxu0 %v13444_v40 }
 0xf0f   :  { %v10666_v59 = vpop.f32.mrb[106].mxu0 }
 0xf10   :  { %v10667_v50 = vpop.f32.mrb[107].mxu0 }
 0xf11   :  { %v10668_v36 = vadd.f32 %v10667_v50, %v10666_v59  ;;  %v10020_v50 = vld [vmem:[%s21537_s15 + $0xb30] sm:$0xff] }
 0xf13   :  { %v7142_v9 = vadd.f32 %v10668_v36, %v19956_v38  ;;  %v10669_v44 = vpop.f32.mrb[108].mxu0  ;;  %v10021_v36 = vld [vmem:[%s21537_s15 + $0xb38] sm:$0xff] }
 0xf14   :  { %v10670_v32 = vpop.f32.mrb[109].mxu0 }
 0xf15   :  { %v20124_v15 = vadd.f32 %v19963_v23, %v7142_v9  ;;  %v10671_v57 = vadd.f32 %v10670_v32, %v10669_v44  ;;  %v10014_v23 = vld [vmem:[%s21537_s15 + $0xb00] sm:$0xff]  ;;  %v13322_v9 = vpack.c.bf16 %v10021_v36, %v10020_v50  ;;  %v10043_v36 = vld [vmem:[%s21537_s15 + $0xb88] sm:$0xff] }
 0xf16   :  { %v20204_v32 = vld [vmem:[%s21538_s4 + $0x20] sm:$0xff] }
 0xf17   :  { %v7147_v5 = vadd.f32 %v10671_v57, %v19959_v2  ;;  %v10672_v63 = vpop.f32.mrb[110].mxu0  ;;  %v10015_v2 = vld [vmem:[%s21537_s15 + $0xb08] sm:$0xff]  ;;  %v10042_v50 = vld [vmem:[%s21537_s15 + $0xb80] sm:$0xff] }
 0xf18   :  { %v10673_v25 = vpop.f32.mrb[111].mxu0  ;;  %v13313_v18 = vpack.c.bf16 %v10015_v2, %v10014_v23 }
 0xf19   :  { %v20128_v1 = vadd.f32 %v19965_v20, %v7147_v5  ;;  %v10674_v60 = vadd.f32 %v10673_v25, %v10672_v63  ;;  %v20211_v25 = vld [vmem:[%s21538_s4 + $0x48] sm:$0xff] }
 0xf1b   :  { %v7152_v61 = vadd.f32 %v10674_v60, %v19961_v51  ;;  %v13448_v40 = vpack.c.bf16 %v20128_v1, %v20124_v15  ;;  %v20145_v51 = vld [vmem:[%s21538_s4 + $0x8] sm:$0xff] }
 0xf1d   :  { %v20134_v38 = vadd.f32 %v19967_v24, %v7152_v61  ;;  %v20151_v24 = vld [vmem:[%s21538_s4] sm:$0xff] }
 0xf1f   :  { %v7322_v53 = vpop.f32.mrb[112].mxu0 }
 0xf20   :  { %v7324_v20 = vpop.f32.mrb[113].mxu0  ;;  %v7502_v3 = vmul.f32 %v20151_v24, %v7322_v53 }
 0xf21   :  { %v7503_v6 = vmul.f32 %v20145_v51, %v7324_v20  ;;  %v10035_v20 = vld [vmem:[%s21537_s15 + $0xb48] sm:$0xff] }
 0xf23   :  { %v7328_v7 = vpop.f32.mrb[114].mxu0  ;;  %7663 = vmatprep.mubr.f32.mxu1 %v7503_v6  ;;  %v10052_v6 = vld [vmem:[%s21537_s15 + $0xbd0] sm:$0xff] }
 0xf24   :  { %v7330_v10 = vpop.f32.mrb[115].mxu0  ;;  %7664 = vmatmul.mubr.f32.vlgmr.msra.gmra.mrb[146].mxu1 %v7502_v3  ;;  %v7507_v22 = vmul.f32 %v20169_v43, %v7328_v7  ;;  %v10036_v3 = vld [vmem:[%s21537_s15 + $0xb50] sm:$0xff]  ;;  %v10055_v7 = vld [vmem:[%s21537_s15 + $0xbe8] sm:$0xff] }
 0xf25   :  { %v7508_v0 = vmul.f32 %v20163_v13, %v7330_v10  ;;  %13314 = vmatpush3.bf16.msra.mxu1 %v13313_v18  ;;  %v13376_v10 = vpack.c.bf16 %v10055_v7, %v10054_v37 }
 0xf26   :  { %13315 = vmatprep.subr.bf16.mxu1 %v21850_v35 }
 0xf27   :  { %v7334_v42 = vpop.f32.mrb[116].mxu0  ;;  %7668 = vmatprep.mubr.f32.mxu1 %v7508_v0  ;;  %v10038_v0 = vld [vmem:[%s21537_s15 + $0xb60] sm:$0xff] }
 0xf28   :  { %v7336_v27 = vpop.f32.mrb[117].mxu0  ;;  %7669 = vmatmul.mubr.f32.gmra.mrb[148].mxu1 %v7507_v22  ;;  %v7512_v59 = vmul.f32 %v20188_v16, %v7334_v42  ;;  %v10056_v22 = vld [vmem:[%s21537_s15 + $0xbf0] sm:$0xff] }
 0xf29   :  { %v7513_v21 = vmul.f32 %v20182_v58, %v7336_v27  ;;  %13317 = vmatpush3.bf16.msra.mxu1 %v13316_v55  ;;  %v10039_v55 = vld [vmem:[%s21537_s15 + $0xb68] sm:$0xff]  ;;  %v10040_v42 = vld [vmem:[%s21537_s15 + $0xb70] sm:$0xff]  ;;  %v10041_v27 = vld [vmem:[%s21537_s15 + $0xb78] sm:$0xff] }
 0xf2a   :  { %13318 = vmatprep.subr.bf16.mxu1 %v21850_v35  ;;  %v13378_v8 = vpack.c.bf16 %v10039_v55, %v10038_v0 }
 0xf2b   :  { %7673 = vmatprep.mubr.f32.mxu1 %v7513_v21  ;;  %v10058_v21 = vld [vmem:[%s21537_s15 + $0xc00] sm:$0xff] }
 0xf2c   :  { %7674 = vmatmul.mubr.f32.gmra.mrb[150].mxu1 %v7512_v59 }
 0xf2d   :  { %13320 = vmatpush3.bf16.msra.mxu1 %v13319_v14  ;;  %11444 = vmatprep.mubr.msk.f32.mxu1 %vm14145_vm3, %v21681_v33  ;;  %v13382_v14 = vpack.c.bf16 %v10041_v27, %v10040_v42 }
 0xf2e   :  { %13321 = vmatprep.subr.bf16.mxu1 %v21850_v35 }
 0xf2f   :  { %v7488_v44 = vpop.f32.mrb[118].mxu0 }
 0xf30   :  { %v7506_v57 = vmul.f32 %v20204_v32, %v7488_v44  ;;  %v11421_v5 = vpop.f32.mrb[119].mxu0  ;;  %v13386_v44 = vpack.c.bf16 %v10043_v36, %v10042_v50 }
 0xf31   :  { %13323 = vmatpush3.bf16.msra.mxu1 %v13322_v9  ;;  %v10060_v9 = vld [vmem:[%s21537_s15 + $0xc10] sm:$0xff] }
 0xf32   :  { %13341 = vmatprep.subr.bf16.mxu1 %v17784_v12  ;;  %v20222_v12 = vld [vmem:[%s21538_s4 + $0x70] sm:$0x3] }
 0xf33   :  { %v7493_v63 = vpop.f32.mrb[120].mxu0  ;;  %v10044_v5 = vld [vmem:[%s21537_s15 + $0xb90] sm:$0xff] }
 0xf34   :  { %v7511_v60 = vmul.f32 %v20211_v25, %v7493_v63  ;;  %11445 = vmatmul.mubr.msk.f32.vlgmr.msra.gmra.mrb[152].mxu1 %vm1385_vm1, %v7506_v57  ;;  %v11424_v61 = vpop.f32.mrb[121].mxu0  ;;  %v10045_v63 = vld [vmem:[%s21537_s15 + $0xb98] sm:$0xff] }
 0xf35   :  { %13343 = vmatpush1.bf16.msra.mxu1 %v17811_v26  ;;  %11447 = vmatprep.mubr.msk.f32.mxu1 %vm14145_vm3, %v21681_v33  ;;  %v10050_v26 = vld [vmem:[%s21537_s15 + $0xbc0] sm:$0xff]  ;;  %v10063_v61 = vld [vmem:[%s21537_s15 + $0xc28] sm:$0xff] }
 0xf36   :  { %13345 = vmatprep.subr.bf16.mxu1 %v17822_v31  ;;  %v10051_v31 = vld [vmem:[%s21537_s15 + $0xbc8] sm:$0xff] }
 0xf37   :  { %v7498_v23 = vpop.f32.mrb[122].mxu0 }
 0xf38   :  { %v7516_v2 = vmul.f32 %v20222_v12, %v7498_v23  ;;  %11448 = vmatmul.mubr.msk.f32.gmra.mrb[154].mxu1 %vm1385_vm1, %v7511_v60  ;;  %v11427_v53 = vpop.f32.mrb[123].mxu0  ;;  %v10062_v60 = vld [vmem:[%s21537_s15 + $0xc20] sm:$0xff]  ;;  %v13390_v23 = vpack.c.bf16 %v10045_v63, %v10044_v5  ;;  %v10104_v63 = vld [vmem:[%s21537_s15 + $0xd70] sm:$0xff] }
 0xf39   :  { %13347 = vmatpush1.bf16.msra.mxu1 %v17843_v45  ;;  %11450 = vmatprep.mubr.msk.f32.mxu1 %vm14145_vm3, %v21681_v33  ;;  %v13368_v45 = vpack.c.bf16 %v10051_v31, %v10050_v26  ;;  %v10046_v53 = vld [vmem:[%s21537_s15 + $0xba0] sm:$0xff]  ;;  %v10047_v26 = vld [vmem:[%s21537_s15 + $0xba8] sm:$0xff]  ;;  %v10064_v31 = vld [vmem:[%s21537_s15 + $0xc30] sm:$0xff] }
 0xf3a   :  { %13349 = vmatprep.subr.bf16.mxu1 %v17855_v48  ;;  %v10034_v48 = vld [vmem:[%s21537_s15 + $0xb40] sm:$0xff] }
 0xf3c   :  { %11451 = vmatmul.mubr.msk.f32.gmra.mrb[156].mxu1 %vm1385_vm1, %v7516_v2  ;;  %v13392_v2 = vpack.c.bf16 %v10063_v61, %v10062_v60  ;;  %v10105_v60 = vld [vmem:[%s21537_s15 + $0xd78] sm:$0xff] }
 0xf3d   :  { %13351 = vmatpush1.bf16.msra.mxu1 %v17874_v39  ;;  %8007 = vmatprep.mubr.f32.mxu1 %v21681_v33  ;;  %v10053_v39 = vld [vmem:[%s21537_s15 + $0xbd8] sm:$0xff]  ;;  %v13442_v61 = vpack.c.bf16 %v10105_v60, %v10104_v63  ;;  %v8695_v63 = vld [vmem:[%s21539_s16 + $0x48] sm:$0xff] }
 0xf3e   :  { %13353 = vmatprep.subr.bf16.mxu1 %v17886_v34  ;;  %v13370_v34 = vpack.c.bf16 %v10035_v20, %v10034_v48  ;;  %v13372_v18 = vpack.c.bf16 %v10053_v39, %v10052_v6  ;;  %v13394_v48 = vpack.c.bf16 %v10047_v26, %v10046_v53  ;;  %v10048_v6 = vld [vmem:[%s21537_s15 + $0xbb0] sm:$0xff]  ;;  %v10049_v39 = vld [vmem:[%s21537_s15 + $0xbb8] sm:$0xff]  ;;  %v8699_v60 = vld [vmem:[%s21539_s16 + $0x68] sm:$0xff] }
 0xf41   :  { %13355 = vmatpush1.bf16.msra.mxu1 %v17898_v11  ;;  %v13374_v11 = vpack.c.bf16 %v10037_v54, %v10036_v3 }
 0xf42   :  { %13369 = vmatprep.subr.bf16.mxu1 %v13368_v45  ;;  %v10065_v45 = vld [vmem:[%s21537_s15 + $0xc38] sm:$0xff] }
 0xf43   :  { %v13396_v20 = vpack.c.bf16 %v10065_v45, %v10064_v31 }
 0xf44   :  { %10028 = vmatmul.mubr.msk.f32.vlgmr.msra.gmra.mrb[158].mxu1 %vm1385_vm1, %v19986_v56  ;;  %v10057_v56 = vld [vmem:[%s21537_s15 + $0xbf8] sm:$0xff] }
 0xf45   :  { %8013 = vmatprep.mubr.f32.mxu1 %v21681_v33  ;;  %13371 = vmatpush3.bf16.msra.mxu1 %v13370_v34  ;;  %v13380_v49 = vpack.c.bf16 %v10057_v56, %v10056_v22  ;;  %v13398_v34 = vpack.c.bf16 %v10049_v39, %v10048_v6  ;;  %v10098_v22 = vld [vmem:[%s21537_s15 + $0xd40] sm:$0xff]  ;;  %v10099_v56 = vld [vmem:[%s21537_s15 + $0xd48] sm:$0xff] }
 0xf46   :  { %13373 = vmatprep.subr.bf16.mxu1 %v13372_v18  ;;  %v13433_v27 = vpack.c.bf16 %v10099_v56, %v10098_v22 }
 0xf48   :  { %10029 = vmatmul.mubr.msk.f32.gmra.mrb[160].mxu1 %vm1385_vm1, %v19995_v28  ;;  %v10059_v28 = vld [vmem:[%s21537_s15 + $0xc08] sm:$0xff] }
 0xf49   :  { %8019 = vmatprep.mubr.f32.mxu1 %v21681_v33  ;;  %13375 = vmatpush3.bf16.msra.mxu1 %v13374_v11  ;;  %v13384_v59 = vpack.c.bf16 %v10059_v28, %v10058_v21  ;;  %v10100_v28 = vld [vmem:[%s21537_s15 + $0xd50] sm:$0xff] }
 0xf4a   :  { %13377 = vmatprep.subr.bf16.mxu1 %v13376_v10 }
 0xf4c   :  { %10030 = vmatmul.mubr.msk.f32.gmra.mrb[162].mxu1 %vm1385_vm1, %v20004_v30  ;;  %v10061_v30 = vld [vmem:[%s21537_s15 + $0xc18] sm:$0xff] }
 0xf4d   :  { %13379 = vmatpush3.bf16.msra.mxu1 %v13378_v8  ;;  %v13388_v57 = vpack.c.bf16 %v10061_v30, %v10060_v9  ;;  %v10103_v30 = vld [vmem:[%s21537_s15 + $0xd68] sm:$0xff] }
 0xf4e   :  { %13381 = vmatprep.subr.bf16.mxu1 %v13380_v49 }
 0xf51   :  { %13383 = vmatpush3.bf16.msra.mxu1 %v13382_v14  ;;  %v10101_v14 = vld [vmem:[%s21537_s15 + $0xd58] sm:$0xff] }
 0xf52   :  { %13385 = vmatprep.subr.bf16.mxu1 %v13384_v59  ;;  %v13436_v9 = vpack.c.bf16 %v10101_v14, %v10100_v28  ;;  %v14137_v28 = vld [vmem:[%s21538_s4 + $0x40] sm:$0xff] }
 0xf55   :  { %13387 = vmatpush3.bf16.msra.mxu1 %v13386_v44 }
 0xf56   :  { %13389 = vmatprep.subr.bf16.mxu1 %v13388_v57 }
 0xf59   :  { %13391 = vmatpush3.bf16.msra.mxu1 %v13390_v23 }
 0xf5a   :  { %13393 = vmatprep.subr.bf16.mxu1 %v13392_v2 }
 0xf5d   :  { %13395 = vmatpush3.bf16.msra.mxu1 %v13394_v48 }
 0xf5e   :  { %13397 = vmatprep.subr.bf16.mxu1 %v13396_v20 }
 0xf61   :  { %13399 = vmatpush3.bf16.msra.mxu1 %v13398_v34 }
 0xf62   :  { %13432 = vmatprep.subr.bf16.mxu1 %v21850_v35 }
 0xf96   :  { %v10770_v18 = vpop.f32.mrb[124].mxu0 }
 0xf97   :  { %v10771_v3 = vpop.f32.mrb[125].mxu0 }
 0xf98   :  { %v20340_v54 = vadd.f32 %v10771_v3, %v10770_v18 }
 0xf9a   :  { %v10773_v37 = vpop.f32.mrb[126].mxu0 }
 0xf9b   :  { %v10774_v7 = vpop.f32.mrb[127].mxu0 }
 0xf9c   :  { %v20342_v11 = vadd.f32 %v10774_v7, %v10773_v37 }
 0xf9e   :  { %v10776_v10 = vpop.f32.mrb[128].mxu0 }
 0xf9f   :  { %v10777_v0 = vpop.f32.mrb[129].mxu0 }
 0xfa0   :  { %v20344_v55 = vadd.f32 %v10777_v0, %v10776_v10 }
 0xfa6   :  { %v7926_v8 = vpop.f32.mrb[130].mxu0 }
 0xfa7   :  { %v7928_v49 = vpop.f32.mrb[131].mxu0  ;;  %v8106_v21 = vmul.f32 %v20151_v24, %v7926_v8  ;;  %v10102_v24 = vld [vmem:[%s21537_s15 + $0xd60] sm:$0xff] }
 0xfa8   :  { %v8107_v42 = vmul.f32 %v20145_v51, %v7928_v49  ;;  %v13439_v5 = vpack.c.bf16 %v10103_v30, %v10102_v24  ;;  %v14136_v49 = vld [vmem:[%s21538_s4 + $0x10] sm:$0xff]  ;;  %v8693_v24 = vld [vmem:[%s21539_s16 + $0x38] sm:$0xff] }
 0xfa9   :  { %v8696_v30 = vld [vmem:[%s21539_s16 + $0x50] sm:$0xff] }
 0xfaa   :  { %v7932_v59 = vpop.f32.mrb[132].mxu0  ;;  %8267 = vmatprep.mubr.f32.mxu1 %v8107_v42 }
 0xfab   :  { %v7934_v50 = vpop.f32.mrb[133].mxu0  ;;  %8268 = vmatmul.mubr.f32.vlgmr.msra.gmra.mrb[164].mxu1 %v8106_v21  ;;  %v8111_v51 = vmul.f32 %v20169_v43, %v7932_v59  ;;  %v14138_v59 = vld [vmem:[%s21538_s4 + $0x38] sm:$0xff] }
 0xfac   :  { %v8112_v36 = vmul.f32 %v20163_v13, %v7934_v50  ;;  %13434 = vmatpush3.bf16.msra.mxu1 %v13433_v27 }
 0xfad   :  { %13435 = vmatprep.subr.bf16.mxu1 %v21850_v35 }
 0xfae   :  { %v7938_v44 = vpop.f32.mrb[134].mxu0  ;;  %8272 = vmatprep.mubr.f32.mxu1 %v8112_v36 }
 0xfaf   :  { %v7940_v57 = vpop.f32.mrb[135].mxu0  ;;  %8273 = vmatmul.mubr.f32.gmra.mrb[166].mxu1 %v8111_v51  ;;  %v8116_v43 = vmul.f32 %v20188_v16, %v7938_v44  ;;  %v8690_v51 = vld [vmem:[%s21539_s16 + $0x20] sm:$0xff]  ;;  %v14139_v44 = vld [vmem:[%s21538_s4 + $0x68] sm:$0x3] }
 0xfb0   :  { %v8117_v13 = vmul.f32 %v20182_v58, %v7940_v57  ;;  %13437 = vmatpush3.bf16.msra.mxu1 %v13436_v9  ;;  %v8687_v9 = vld [vmem:[%s21539_s16 + $0x8] sm:$0xff] }
 0xfb1   :  { %13438 = vmatprep.subr.bf16.mxu1 %v21850_v35 }
 0xfb2   :  { %8277 = vmatprep.mubr.f32.mxu1 %v8117_v13 }
 0xfb3   :  { %8278 = vmatmul.mubr.f32.gmra.mrb[168].mxu1 %v8116_v43  ;;  %v8692_v43 = vld [vmem:[%s21539_s16 + $0x30] sm:$0xff] }
 0xfb4   :  { %13440 = vmatpush3.bf16.msra.mxu1 %v13439_v5  ;;  %11494 = vmatprep.mubr.msk.f32.mxu1 %vm14145_vm3, %v21681_v33  ;;  %v13460_v5 = vpack.c.bf16 %v8696_v30, %v8693_v24  ;;  %v8743_v24 = vld [vmem:[%s21539_s16 + $0x1c8] sm:$0xff] }
 0xfb5   :  { %13441 = vmatprep.subr.bf16.mxu1 %v21850_v35  ;;  %v8747_v30 = vld [vmem:[%s21539_s16 + $0x1e8] sm:$0xff] }
 0xfb6   :  { %v8092_v58 = vpop.f32.mrb[136].mxu0 }
 0xfb7   :  { %v8110_v16 = vmul.f32 %v20204_v32, %v8092_v58  ;;  %v11471_v23 = vpop.f32.mrb[137].mxu0 }
 0xfb8   :  { %13443 = vmatpush3.bf16.msra.mxu1 %v13442_v61  ;;  %v14140_v61 = vld [vmem:[%s21538_s4 + $0x60] sm:$0x3] }
 0xfb9   :  { %13449 = vmatprep.subr.bf16.mxu1 %v13448_v40 }
 0xfba   :  { %v8097_v2 = vpop.f32.mrb[138].mxu0 }
 0xfbb   :  { %v8115_v53 = vmul.f32 %v20211_v25, %v8097_v2  ;;  %11495 = vmatmul.mubr.msk.f32.vlgmr.msra.gmra.mrb[170].mxu1 %vm1385_vm1, %v8110_v16  ;;  %v11474_v26 = vpop.f32.mrb[139].mxu0  ;;  %v13462_v16 = vpack.c.bf16 %v8695_v63, %v8692_v43  ;;  %v8698_v2 = vld [vmem:[%s21539_s16 + $0x60] sm:$0xff]  ;;  %v8749_v43 = vld [vmem:[%s21539_s16 + $0x1f8] sm:$0xff] }
 0xfbc   :  { %13451 = vmatpush1.bf16.msra.mxu1 %v13450_v19  ;;  %11497 = vmatprep.mubr.msk.f32.mxu1 %vm14145_vm3, %v21681_v33  ;;  %v8705_v26 = vld [vmem:[%s21539_s16 + $0x98] sm:$0xff] }
 0xfbd   :  { %10112 = vmatprep.subr.msk.mxu1 %vm3535_vm4, %v20134_v38  ;;  %v8753_v63 = vld [vmem:[%s21539_s16 + $0x218] sm:$0xff] }
 0xfbe   :  { %v8102_v32 = vpop.f32.mrb[140].mxu0 }
 0xfbf   :  { %v8120_v15 = vmul.f32 %v20222_v12, %v8102_v32  ;;  %11498 = vmatmul.mubr.msk.f32.gmra.mrb[172].mxu1 %vm1385_vm1, %v8115_v53  ;;  %v11477_v1 = vpop.f32.mrb[141].mxu0  ;;  %v8701_v53 = vld [vmem:[%s21539_s16 + $0x78] sm:$0xff]  ;;  %v8708_v32 = vld [vmem:[%s21539_s16 + $0xb0] sm:$0xff] }
 0xfc0   :  { %10113 = vmatpush1.msk.msra.mxu1 %vm3535_vm4, %v19689_v4  ;;  %11500 = vmatprep.mubr.msk.f32.mxu1 %vm14145_vm3, %v21681_v33  ;;  %v13468_v1 = vpack.c.bf16 %v8708_v32, %v8705_v26  ;;  %v8758_v32 = vld [vmem:[%s21539_s16 + $0x240] sm:$0xff] }
 0xfc3   :  { %11501 = vmatmul.mubr.msk.f32.gmra.mrb[174].mxu1 %vm1385_vm1, %v8120_v15  ;;  %v13466_v15 = vpack.c.bf16 %v8701_v53, %v8698_v2  ;;  %v8759_v2 = vld [vmem:[%s21539_s16 + $0x248] sm:$0xff]  ;;  %v8762_v53 = vld [vmem:[%s21539_s16 + $0x260] sm:$0xff] }
 0xfc4   :  { %8596 = vmatprep.mubr.f32.mxu1 %v21681_v33  ;;  %v13504_v26 = vpack.c.bf16 %v8762_v53, %v8759_v2 }
 0xfc7   :  { %10114 = vmatmul.mubr.msk.f32.vlgmr.msra.gmra.mrb[60].mxu1 %vm3554_vm5, %v20405_v62 }
 0xff7   :  { %v10729_v47 = vpop.f32.mrb[146].mxu1 }
 0xff8   :  { %v10730_v19 = vpop.f32.mrb[147].mxu1 }
 0xff9   :  { %v10731_v40 = vadd.f32 %v10730_v19, %v10729_v47  ;;  %v8704_v47 = vld [vmem:[%s21539_s16 + $0x90] sm:$0xff]  ;;  %v8707_v19 = vld [vmem:[%s21539_s16 + $0xa8] sm:$0xff] }
 0xffb   :  { %v10732_v38 = vpop.f32.mrb[148].mxu1  ;;  %v7746_v4 = vadd.f32 %v20340_v54, %v10731_v40  ;;  %v8711_v40 = vld [vmem:[%s21539_s16 + $0xc8] sm:$0xff] }
 0xffc   :  { %v10733_v25 = vpop.f32.mrb[149].mxu1 }
 0xffd   :  { %v10734_v12 = vadd.f32 %v10733_v25, %v10732_v38  ;;  %v8714_v38 = vld [vmem:[%s21539_s16 + $0xe0] sm:$0xff] }
 0xffe   :  { %v13472_v25 = vpack.c.bf16 %v8714_v38, %v8711_v40  ;;  %v8764_v38 = vld [vmem:[%s21539_s16 + $0x270] sm:$0xff] }
 0xfff   :  { %v10735_v31 = vpop.f32.mrb[150].mxu1  ;;  %v7751_v45 = vadd.f32 %v20342_v11, %v10734_v12  ;;  %v8710_v12 = vld [vmem:[%s21539_s16 + $0xc0] sm:$0xff] }
0x1000   :  { %v10736_v48 = vpop.f32.mrb[151].mxu1 }
0x1001   :  { %v10737_v20 = vadd.f32 %v10736_v48, %v10735_v31  ;;  %v8713_v31 = vld [vmem:[%s21539_s16 + $0xd8] sm:$0xff]  ;;  %v8720_v48 = vld [vmem:[%s21539_s16 + $0x110] sm:$0xff] }
0x1003   :  { %v7756_v6 = vadd.f32 %v20344_v55, %v10737_v20  ;;  %v14135_v55 = vld [vmem:[%s21538_s4 + $0x18] sm:$0xff]  ;;  %v13474_v20 = vpack.c.bf16 %v8713_v31, %v8710_v12  ;;  %v8771_v12 = vld [vmem:[%s21539_s16 + $0x2a8] sm:$0xff]  ;;  %v8774_v31 = vld [vmem:[%s21539_s16 + $0x2c0] sm:$0xff] }
0x1007   :  { %v7825_v39 = vpop.f32.mrb[152].mxu1 }
0x1008   :  { %v20412_v34 = vadd.f32 %v7825_v39, %v7746_v4  ;;  %v11446_v18 = vpop.f32.mrb[153].mxu1  ;;  %v13470_v4 = vpack.c.bf16 %v8707_v19, %v8704_v47  ;;  %v8716_v39 = vld [vmem:[%s21539_s16 + $0xf0] sm:$0xff]  ;;  %v8765_v47 = vld [vmem:[%s21539_s16 + $0x278] sm:$0xff] }
0x1009   :  { %v8719_v18 = vld [vmem:[%s21539_s16 + $0x108] sm:$0xff]  ;;  %v8768_v19 = vld [vmem:[%s21539_s16 + $0x290] sm:$0xff] }
0x100a   :  { %v13508_v40 = vpack.c.bf16 %v8768_v19, %v8765_v47 }
0x100b   :  { %v7830_v3 = vpop.f32.mrb[154].mxu1 }
0x100c   :  { %v20414_v37 = vadd.f32 %v7830_v3, %v7751_v45  ;;  %v11449_v7 = vpop.f32.mrb[155].mxu1  ;;  %v8717_v45 = vld [vmem:[%s21539_s16 + $0xf8] sm:$0xff]  ;;  %v8723_v3 = vld [vmem:[%s21539_s16 + $0x128] sm:$0xff] }
0x100d   :  { %v8726_v7 = vld [vmem:[%s21539_s16 + $0x140] sm:$0xff] }
0x100e   :  { %v13454_v54 = vpack.c.bf16 %v20414_v37, %v20412_v34  ;;  %v8792_v34 = vld [vmem:[%s21539_s16 + $0x350] sm:$0xff]  ;;  %v8742_v37 = vld [vmem:[%s21539_s16 + $0x1c0] sm:$0xff] }
0x100f   :  { %v7835_v10 = vpop.f32.mrb[156].mxu1 }
0x1010   :  { %v20418_v0 = vadd.f32 %v7835_v10, %v7756_v6  ;;  %v11452_v22 = vpop.f32.mrb[157].mxu1  ;;  %v13476_v6 = vpack.c.bf16 %v8720_v48, %v8717_v45  ;;  %v13478_v10 = vpack.c.bf16 %v8719_v18, %v8716_v39  ;;  %v13512_v45 = vpack.c.bf16 %v8774_v31, %v8771_v12  ;;  %v8770_v48 = vld [vmem:[%s21539_s16 + $0x2a0] sm:$0xff]  ;;  %v8777_v39 = vld [vmem:[%s21539_s16 + $0x2d8] sm:$0xff]  ;;  %v8780_v18 = vld [vmem:[%s21539_s16 + $0x2f0] sm:$0xff] }
0x1011   :  { %v13480_v22 = vpack.c.bf16 %v8726_v7, %v8723_v3  ;;  %v13516_v3 = vpack.c.bf16 %v8780_v18, %v8777_v39  ;;  %v8776_v7 = vld [vmem:[%s21539_s16 + $0x2d0] sm:$0xff]  ;;  %v8782_v12 = vld [vmem:[%s21539_s16 + $0x300] sm:$0xff]  ;;  %v8785_v31 = vld [vmem:[%s21539_s16 + $0x318] sm:$0xff] }
0x1012   :  { %v8688_v18 = vld [vmem:[%s21539_s16 + $0x10] sm:$0xff] }
0x1017   :  { %v8009_v11 = vpop.f32.mrb[158].mxu1 }
0x1018   :  { %v8011_v56 = vpop.f32.mrb[159].mxu1  ;;  %v8108_v42 = vmul.f32 %v14136_v49, %v8009_v11  ;;  %v8722_v11 = vld [vmem:[%s21539_s16 + $0x120] sm:$0xff] }
0x1019   :  { %v8109_v8 = vmul.f32 %v14135_v55, %v8011_v56  ;;  %v8725_v56 = vld [vmem:[%s21539_s16 + $0x138] sm:$0xff] }
0x101a   :  { %v8729_v55 = vld [vmem:[%s21539_s16 + $0x158] sm:$0xff]  ;;  %v13482_v49 = vpack.c.bf16 %v8725_v56, %v8722_v11 }
0x101b   :  { %v8015_v27 = vpop.f32.mrb[160].mxu1  ;;  %8347 = vmatprep.mubr.f32.mxu0 %v8109_v8  ;;  %v8732_v8 = vld [vmem:[%s21539_s16 + $0x170] sm:$0xff] }
0x101c   :  { %v8017_v21 = vpop.f32.mrb[161].mxu1  ;;  %8348 = vmatmul.mubr.f32.vlgmr.msra.gmra.mrb[142].mxu0 %v8108_v42  ;;  %v8113_v50 = vmul.f32 %v14138_v59, %v8015_v27  ;;  %v13484_v42 = vpack.c.bf16 %v8732_v8, %v8729_v55  ;;  %v8728_v27 = vld [vmem:[%s21539_s16 + $0x150] sm:$0xff]  ;;  %v8783_v8 = vld [vmem:[%s21539_s16 + $0x308] sm:$0xff] }
0x101d   :  { %v8114_v14 = vmul.f32 %v14137_v28, %v8017_v21  ;;  %13447 = vmatpush1.bf16.msra.mxu0 %v13446_v52  ;;  %v13456_v52 = vpack.c.bf16 %v8690_v51, %v8687_v9  ;;  %v8731_v21 = vld [vmem:[%s21539_s16 + $0x168] sm:$0xff]  ;;  %v8737_v9 = vld [vmem:[%s21539_s16 + $0x198] sm:$0xff] }
0x101e   :  { %10109 = vmatprep.subr.msk.mxu0 %vm3535_vm4, %v19297_v29  ;;  %v8689_v29 = vld [vmem:[%s21539_s16 + $0x18] sm:$0xff]  ;;  %v8735_v28 = vld [vmem:[%s21539_s16 + $0x188] sm:$0xff]  ;;  %v13486_v59 = vpack.c.bf16 %v8731_v21, %v8728_v27 }
0x101f   :  { %v8021_v36 = vpop.f32.mrb[162].mxu1  ;;  %8352 = vmatprep.mubr.f32.mxu0 %v8114_v14  ;;  %v13458_v13 = vpack.c.bf16 %v8689_v29, %v8686_v41  ;;  %13457 = vmatprep.subr.bf16.mxu1 %v13456_v52  ;;  %v8738_v14 = vld [vmem:[%s21539_s16 + $0x1a0] sm:$0xff]  ;;  %v8741_v51 = vld [vmem:[%s21539_s16 + $0x1b8] sm:$0xff]  ;;  %v8744_v41 = vld [vmem:[%s21539_s16 + $0x1d0] sm:$0xff] }
0x1020   :  { %v8023_v46 = vpop.f32.mrb[163].mxu1  ;;  %8353 = vmatmul.mubr.f32.gmra.mrb[144].mxu0 %v8113_v50  ;;  %v8118_v58 = vmul.f32 %v14140_v61, %v8021_v36  ;;  %v13488_v50 = vpack.c.bf16 %v8738_v14, %v8735_v28  ;;  %v8734_v36 = vld [vmem:[%s21539_s16 + $0x180] sm:$0xff]  ;;  %v13492_v52 = vpack.c.bf16 %v8744_v41, %v8741_v51  ;;  %v8740_v29 = vld [vmem:[%s21539_s16 + $0x1b0] sm:$0xff] }
0x1021   :  { %v8119_v57 = vmul.f32 %v14139_v44, %v8023_v46  ;;  %10110 = vmatpush1.msk.msra.mxu0 %vm3535_vm4, %v18981_v17  ;;  %v8702_v17 = vld [vmem:[%s21539_s16 + $0x80] sm:$0xff]  ;;  %13459 = vmatpush1.bf16.msra.mxu1 %v13458_v13  ;;  %v13490_v46 = vpack.c.bf16 %v8737_v9, %v8734_v36 }
0x1022   :  { %13461 = vmatprep.subr.bf16.mxu1 %v13460_v5  ;;  %v13464_v23 = vpack.c.bf16 %v8702_v17, %v8699_v60  ;;  %v8750_v44 = vld [vmem:[%s21539_s16 + $0x200] sm:$0xff]  ;;  %v8756_v60 = vld [vmem:[%s21539_s16 + $0x230] sm:$0xff] }
0x1023   :  { %8357 = vmatprep.mubr.f32.mxu0 %v8119_v57  ;;  %v13494_v57 = vpack.c.bf16 %v8743_v24, %v8740_v29  ;;  %v13496_v13 = vpack.c.bf16 %v8750_v44, %v8747_v30  ;;  %v8746_v5 = vld [vmem:[%s21539_s16 + $0x1e0] sm:$0xff]  ;;  %v8752_v17 = vld [vmem:[%s21539_s16 + $0x210] sm:$0xff] }
0x1024   :  { %8358 = vmatmul.mubr.f32.gmra.mrb[146].mxu0 %v8118_v58  ;;  %v13498_v61 = vpack.c.bf16 %v8749_v43, %v8746_v5  ;;  %v13500_v58 = vpack.c.bf16 %v8756_v60, %v8753_v63 }
0x1025   :  { %8525 = vmatprep.mubr.f32.mxu0 %v21681_v33  ;;  %13463 = vmatpush1.bf16.msra.mxu1 %v13462_v16  ;;  %v8755_v16 = vld [vmem:[%s21539_s16 + $0x228] sm:$0xff] }
0x1026   :  { %13465 = vmatprep.subr.bf16.mxu1 %v13464_v23  ;;  %v13502_v23 = vpack.c.bf16 %v8755_v16, %v8752_v17 }
0x1028   :  { %10111 = vmatmul.mubr.msk.f32.vlgmr.msra.gmra.mrb[42].mxu0 %vm3554_vm5, %v20405_v62 }
0x1029   :  { %8667 = vmatprep.mubr.f32.mxu0 %v21681_v33  ;;  %13467 = vmatpush1.bf16.msra.mxu1 %v13466_v15  ;;  %v8761_v15 = vld [vmem:[%s21539_s16 + $0x258] sm:$0xff] }
0x102a   :  { %13469 = vmatprep.subr.bf16.mxu1 %v13468_v1  ;;  %v13506_v1 = vpack.c.bf16 %v8761_v15, %v8758_v32  ;;  %v21853_v32 = vld [vmem:[#allocation5_spill] sm:$0xff] }
0x102d   :  { %13471 = vmatpush1.bf16.msra.mxu1 %v13470_v4  ;;  %v8767_v4 = vld [vmem:[%s21539_s16 + $0x288] sm:$0xff] }
0x102e   :  { %13473 = vmatprep.subr.bf16.mxu1 %v13472_v25  ;;  %v13510_v25 = vpack.c.bf16 %v8767_v4, %v8764_v38 }
0x1031   :  { %13475 = vmatpush1.bf16.msra.mxu1 %v13474_v20  ;;  %v8773_v20 = vld [vmem:[%s21539_s16 + $0x2b8] sm:$0xff] }
0x1032   :  { %13477 = vmatprep.subr.bf16.mxu1 %v13476_v6  ;;  %v13514_v6 = vpack.c.bf16 %v8773_v20, %v8770_v48  ;;  %v8736_v20 = vld [vmem:[%s21539_s16 + $0x190] sm:$0xff] }
0x1035   :  { %13479 = vmatpush1.bf16.msra.mxu1 %v13478_v10  ;;  %v8779_v10 = vld [vmem:[%s21539_s16 + $0x2e8] sm:$0xff] }
0x1036   :  { %13481 = vmatprep.subr.bf16.mxu1 %v13480_v22  ;;  %v13518_v11 = vpack.c.bf16 %v8779_v10, %v8776_v7  ;;  %v8789_v7 = vld [vmem:[%s21539_s16 + $0x338] sm:$0xff] }
0x1039   :  { %13483 = vmatpush1.bf16.msra.mxu1 %v13482_v49  ;;  %v8786_v49 = vld [vmem:[%s21539_s16 + $0x320] sm:$0xff] }
0x103a   :  { %13485 = vmatprep.subr.bf16.mxu1 %v13484_v42  ;;  %v13520_v42 = vpack.c.bf16 %v8786_v49, %v8783_v8  ;;  %v8791_v8 = vld [vmem:[%s21539_s16 + $0x348] sm:$0xff] }
0x103d   :  { %13487 = vmatpush1.bf16.msra.mxu1 %v13486_v59 }
0x103e   :  { %13489 = vmatprep.subr.bf16.mxu1 %v13488_v50 }
0x1041   :  { %13491 = vmatpush1.bf16.msra.mxu1 %v13490_v46 }
0x1042   :  { %13493 = vmatprep.subr.bf16.mxu1 %v13492_v52 }
0x1045   :  { %13495 = vmatpush1.bf16.msra.mxu1 %v13494_v57 }
0x1046   :  { %13497 = vmatprep.subr.bf16.mxu1 %v13496_v13 }
0x1049   :  { %13499 = vmatpush1.bf16.msra.mxu1 %v13498_v61  ;;  %v20652_v61 = vld [vmem:[%s21540_s14] sm:$0x3f] }
0x104a   :  { %13501 = vmatprep.subr.bf16.mxu1 %v13500_v58  ;;  %v4347_v15 = vrot.slane %v20652_v61, %v21853_v32 }
0x104d   :  { %13503 = vmatpush1.bf16.msra.mxu1 %v13502_v23  ;;  %v21852_v23 = vld [vmem:[#allocation3_spill] sm:$0xff] }
0x104e   :  { %13505 = vmatprep.subr.bf16.mxu1 %v13504_v26  ;;  %v4343_v2 = vrot.slane %v20652_v61, %v21852_v23 }
0x1051   :  { %13507 = vmatpush1.bf16.msra.mxu1 %v13506_v1  ;;  %v21854_v1 = vld [vmem:[#allocation4_spill] sm:$0xff] }
0x1052   :  { %13509 = vmatprep.subr.bf16.mxu1 %v13508_v40  ;;  %v4355_v47 = vrot.slane %v20652_v61, %v21854_v1 }
0x1055   :  { %13511 = vmatpush1.bf16.msra.mxu1 %v13510_v25 }
0x1056   :  { %13513 = vmatprep.subr.bf16.mxu1 %v13512_v45 }
0x1059   :  { %13515 = vmatpush1.bf16.msra.mxu1 %v13514_v6  ;;  %v8739_v6 = vld [vmem:[%s21539_s16 + $0x1a8] sm:$0xff] }
0x105a   :  { %13517 = vmatprep.subr.bf16.mxu1 %v13516_v3  ;;  %v8691_v3 = vld [vmem:[%s21539_s16 + $0x28] sm:$0xff] }
0x105b   :  { %v13650_v49 = vpack.c.bf16 %v8691_v3, %v8688_v18  ;;  %v8766_v3 = vld [vmem:[%s21539_s16 + $0x280] sm:$0xff] }
0x105d   :  { %13519 = vmatpush1.bf16.msra.mxu1 %v13518_v11 }
0x105e   :  { %13521 = vmatprep.subr.bf16.mxu1 %v13520_v42  ;;  %v8795_v42 = vld [vmem:[%s21539_s16 + $0x368] sm:$0xff] }
0x107e   :  { %v10833_v22 = vpop.f32.mrb[164].mxu1 }
0x107f   :  { %v10834_v56 = vpop.f32.mrb[165].mxu1 }
0x1080   :  { %v10835_v55 = vadd.f32 %v10834_v56, %v10833_v22  ;;  %v13522_v22 = vpack.c.bf16 %v8785_v31, %v8782_v12  ;;  %v13648_v56 = vpack.c.bf16 %v8739_v6, %v8736_v20  ;;  %v8813_v31 = vld [vmem:[%s21539_s16 + $0x3f8] sm:$0xff]  ;;  %v8712_v20 = vld [vmem:[%s21539_s16 + $0xd0] sm:$0xff]  ;;  %v8715_v6 = vld [vmem:[%s21539_s16 + $0xe8] sm:$0xff] }
0x1082   :  { %v10836_v27 = vpop.f32.mrb[166].mxu1 }
0x1083   :  { %v10837_v21 = vpop.f32.mrb[167].mxu1 }
0x1084   :  { %v10838_v28 = vadd.f32 %v10837_v21, %v10836_v27  ;;  %v8798_v27 = vld [vmem:[%s21539_s16 + $0x380] sm:$0xff] }
0x1086   :  { %v10839_v14 = vpop.f32.mrb[168].mxu1 }
0x1087   :  { %v10840_v59 = vpop.f32.mrb[169].mxu1 }
0x1088   :  { %v10841_v50 = vadd.f32 %v10840_v59, %v10839_v14  ;;  %v8694_v59 = vld [vmem:[%s21539_s16 + $0x40] sm:$0xff] }
0x108e   :  { %v8429_v36 = vpop.f32.mrb[170].mxu1 }
0x108f   :  { %v11496_v9 = vpop.f32.mrb[171].mxu1 }
0x1090   :  { %v8751_v9 = vld [vmem:[%s21539_s16 + $0x208] sm:$0xff] }
0x1092   :  { %v8434_v51 = vpop.f32.mrb[172].mxu1 }
0x1093   :  { %v11499_v41 = vpop.f32.mrb[173].mxu1 }
0x1094   :  { %v8794_v41 = vld [vmem:[%s21539_s16 + $0x360] sm:$0xff] }
0x1096   :  { %v8439_v46 = vpop.f32.mrb[174].mxu1 }
0x1097   :  { %v11502_v52 = vpop.f32.mrb[175].mxu1 }
0x1098   :  { %v8801_v52 = vld [vmem:[%s21539_s16 + $0x398] sm:$0xff] }
0x109a   :  { %v20647_v29 = vpop.f32.mrb[60].mxu1 }
0x109b   :  { %v8600_v24 = vpop.f32.mrb[61].mxu1 }
0x109c   :  { %v20674_v39 = vadd.f32 %v8600_v24, %v4355_v47  ;;  %v8804_v24 = vld [vmem:[%s21539_s16 + $0x3b0] sm:$0xff] }
0x109d   :  { %v8760_v47 = vld [vmem:[%s21539_s16 + $0x250] sm:$0xff] }
0x109e   :  { %v8683_v21 = vmax.f32 %v20674_v39, 0.0  ;;  %v8799_v39 = vld [vmem:[%s21539_s16 + $0x388] sm:$0xff] }
0x10ef   :  { %v10874_v30 = vpop.f32.mrb[142].mxu0 }
0x10f0   :  { %v10875_v44 = vpop.f32.mrb[143].mxu0 }
0x10f1   :  { %v10876_v57 = vadd.f32 %v10875_v44, %v10874_v30  ;;  %v8700_v44 = vld [vmem:[%s21539_s16 + $0x70] sm:$0xff] }
0x10f3   :  { %v8350_v13 = vadd.f32 %v10876_v57, %v10835_v55  ;;  %v10877_v5 = vpop.f32.mrb[144].mxu0  ;;  %v8788_v55 = vld [vmem:[%s21539_s16 + $0x330] sm:$0xff]  ;;  %v8703_v57 = vld [vmem:[%s21539_s16 + $0x88] sm:$0xff] }
0x10f4   :  { %v10878_v43 = vpop.f32.mrb[145].mxu0 }
0x10f5   :  { %v8430_v63 = vadd.f32 %v8429_v36, %v8350_v13  ;;  %v10879_v60 = vadd.f32 %v10878_v43, %v10877_v5  ;;  %v13526_v36 = vpack.c.bf16 %v8791_v8, %v8788_v55  ;;  %v8754_v5 = vld [vmem:[%s21539_s16 + $0x220] sm:$0xff]  ;;  %v8757_v43 = vld [vmem:[%s21539_s16 + $0x238] sm:$0xff] }
0x10f6   :  { %v8718_v8 = vld [vmem:[%s21539_s16 + $0x100] sm:$0xff] }
0x10f7   :  { %v8355_v58 = vadd.f32 %v10879_v60, %v10838_v28  ;;  %v10880_v17 = vpop.f32.mrb[146].mxu0  ;;  %v13524_v28 = vpack.c.bf16 %v8792_v34, %v8789_v7  ;;  %v8800_v60 = vld [vmem:[%s21539_s16 + $0x390] sm:$0xff]  ;;  %v8769_v7 = vld [vmem:[%s21539_s16 + $0x298] sm:$0xff]  ;;  %v8815_v34 = vld [vmem:[%s21539_s16 + $0x408] sm:$0xff] }
0x10f8   :  { %v10881_v16 = vpop.f32.mrb[147].mxu0  ;;  %v13668_v55 = vpack.c.bf16 %v8769_v7, %v8766_v3  ;;  %v8843_v3 = vld [vmem:[%s21539_s16 + $0x4e8] sm:$0xff]  ;;  %v8846_v7 = vld [vmem:[%s21539_s16 + $0x500] sm:$0xff] }
0x10f9   :  { %v8435_v53 = vadd.f32 %v8434_v51, %v8355_v58  ;;  %v10882_v26 = vadd.f32 %v10881_v16, %v10880_v17  ;;  %v13528_v51 = vpack.c.bf16 %v8798_v27, %v8795_v42  ;;  %v8803_v58 = vld [vmem:[%s21539_s16 + $0x3a8] sm:$0xff]  ;;  %v13658_v17 = vpack.c.bf16 %v8703_v57, %v8700_v44  ;;  %v8772_v27 = vld [vmem:[%s21539_s16 + $0x2b0] sm:$0xff] }
0x10fa   :  { %v8807_v16 = vld [vmem:[%s21539_s16 + $0x3c8] sm:$0xff]  ;;  %v13534_v1 = vpack.c.bf16 %v8803_v58, %v8800_v60  ;;  %v8824_v44 = vld [vmem:[%s21539_s16 + $0x450] sm:$0xff]  ;;  %v8730_v60 = vld [vmem:[%s21539_s16 + $0x160] sm:$0xff] }
0x10fb   :  { %v8360_v19 = vadd.f32 %v10882_v26, %v10841_v50  ;;  %v8527_v40 = vpop.f32.mrb[42].mxu0  ;;  %v13452_v38 = vpack.c.bf16 %v8435_v53, %v8430_v63  ;;  %v8697_v50 = vld [vmem:[%s21539_s16 + $0x58] sm:$0xff]  ;;  %v13532_v63 = vpack.c.bf16 %v8804_v24, %v8801_v52  ;;  %v13660_v53 = vpack.c.bf16 %v8757_v43, %v8754_v5  ;;  %v8706_v26 = vld [vmem:[%s21539_s16 + $0xa0] sm:$0xff]  ;;  %v8827_v57 = vld [vmem:[%s21539_s16 + $0x468] sm:$0xff] }
0x10fc   :  { %v20660_v4 = vadd.f32 %v8527_v40, %v4343_v2  ;;  %v8529_v25 = vpop.f32.mrb[43].mxu0  ;;  %v8810_v2 = vld [vmem:[%s21539_s16 + $0x3e0] sm:$0xff]  ;;  %v8781_v24 = vld [vmem:[%s21539_s16 + $0x2f8] sm:$0xff]  ;;  %v8831_v5 = vld [vmem:[%s21539_s16 + $0x488] sm:$0xff] }
0x10fd   :  { %v8440_v45 = vadd.f32 %v8439_v46, %v8360_v19  ;;  %v13855_v48 = vadd.f32 %v8529_v25, %v4347_v15  ;;  %13453 = vmatprep.subr.bf16.mxu0 %v13452_v38  ;;  %v13654_v46 = vpack.c.bf16 %v8697_v50, %v8694_v59  ;;  %v8709_v15 = vld [vmem:[%s21539_s16 + $0xb8] sm:$0xff]  ;;  %v8763_v19 = vld [vmem:[%s21539_s16 + $0x268] sm:$0xff]  ;;  %v13536_v40 = vpack.c.bf16 %v8810_v2, %v8807_v16  ;;  %v8806_v38 = vld [vmem:[%s21539_s16 + $0x3c0] sm:$0xff] }
0x10fe   :  { %13455 = vmatpush1.bf16.msra.mxu0 %v13454_v54  ;;  %v8745_v54 = vld [vmem:[%s21539_s16 + $0x1d8] sm:$0xff]  ;;  %v8680_v11 = vmax.f32 %v20660_v4, 0.0  ;;  %v13662_v12 = vpack.c.bf16 %v8709_v15, %v8706_v26  ;;  %v8818_v59 = vld [vmem:[%s21539_s16 + $0x420] sm:$0xff]  ;;  %v8832_v16 = vld [vmem:[%s21539_s16 + $0x490] sm:$0xff] }
0x10ff   :  { %v8681_v10 = vmax.f32 %v13855_v48, 0.0  ;;  %10115 = vmatprep.subr.msk.mxu0 %vm3535_vm4, %v8440_v45  ;;  %v13652_v14 = vpack.c.bf16 %v8745_v54, %v8742_v37  ;;  %v8809_v25 = vld [vmem:[%s21539_s16 + $0x3d8] sm:$0xff]  ;;  %v8816_v45 = vld [vmem:[%s21539_s16 + $0x410] sm:$0xff]  ;;  %v13664_v48 = vpack.c.bf16 %v8763_v19, %v8760_v47  ;;  %v13666_v37 = vpack.c.bf16 %v8715_v6, %v8712_v20  ;;  %v8819_v54 = vld [vmem:[%s21539_s16 + $0x428] sm:$0xff] }
0x1100   :  { %v13538_v18 = vpack.c.bf16 %v8809_v25, %v8806_v38  ;;  %v8821_v50 = vld [vmem:[%s21539_s16 + $0x438] sm:$0xff]  ;;  %v8778_v52 = vld [vmem:[%s21539_s16 + $0x2e0] sm:$0xff]  ;;  %v8835_v2 = vld [vmem:[%s21539_s16 + $0x4a8] sm:$0xff] }
0x1101   :  { %9055 = vmatprep.mubr.f32.mxu1 %v8681_v10  ;;  %v8834_v43 = vld [vmem:[%s21539_s16 + $0x4a0] sm:$0xff]  ;;  %v8733_v58 = vld [vmem:[%s21539_s16 + $0x178] sm:$0xff]  ;;  %v8840_v19 = vld [vmem:[%s21539_s16 + $0x4d0] sm:$0xff] }
0x1102   :  { %10116 = vmatpush1.msk.msra.mxu0 %vm3535_vm4, %v20418_v0  ;;  %9056 = vmatmul.mubr.f32.vlgmr.msra.gmra.mrb[176].mxu1 %v8680_v11  ;;  %v8748_v0 = vld [vmem:[%s21539_s16 + $0x1f0] sm:$0xff]  ;;  %v8830_v26 = vld [vmem:[%s21539_s16 + $0x480] sm:$0xff]  ;;  %v8833_v15 = vld [vmem:[%s21539_s16 + $0x498] sm:$0xff] }
0x1103   :  { %13523 = vmatpush1.bf16.msra.mxu1 %v13522_v22  ;;  %10117 = vmatmul.mubr.msk.f32.vlgmr.msra.gmra.mrb[44].mxu0 %vm3554_vm5, %v20405_v62  ;;  %v8797_v62 = vld [vmem:[%s21539_s16 + $0x378] sm:$0xff]  ;;  %v13656_v30 = vpack.c.bf16 %v8751_v9, %v8748_v0  ;;  %v8812_v22 = vld [vmem:[%s21539_s16 + $0x3f0] sm:$0xff]  ;;  %v8787_v25 = vld [vmem:[%s21539_s16 + $0x328] sm:$0xff] }
0x1104   :  { %9126 = vmatprep.mubr.f32.mxu1 %v8683_v21  ;;  %13649 = vmatprep.subr.bf16.mxu0 %v13648_v56  ;;  %v13530_v13 = vpack.c.bf16 %v8797_v62, %v8794_v41  ;;  %v8822_v56 = vld [vmem:[%s21539_s16 + $0x440] sm:$0xff]  ;;  %v13542_v42 = vpack.c.bf16 %v8815_v34, %v8812_v22  ;;  %v8825_v0 = vld [vmem:[%s21539_s16 + $0x458] sm:$0xff]  ;;  %v8828_v9 = vld [vmem:[%s21539_s16 + $0x470] sm:$0xff] }
0x1105   :  { %13651 = vmatpush3.bf16.msra.mxu0 %v13650_v49  ;;  %9268 = vmatprep.mubr.f32.mxu0 %v8681_v10  ;;  %v13540_v10 = vpack.c.bf16 %v8816_v45, %v8813_v31  ;;  %v8721_v49 = vld [vmem:[%s21539_s16 + $0x118] sm:$0xff]  ;;  %v8724_v41 = vld [vmem:[%s21539_s16 + $0x130] sm:$0xff]  ;;  %v8727_v62 = vld [vmem:[%s21539_s16 + $0x148] sm:$0xff] }
0x1106   :  { %13525 = vmatprep.subr.bf16.mxu1 %v13524_v28  ;;  %13653 = vmatprep.subr.bf16.mxu0 %v13652_v14  ;;  %v8775_v28 = vld [vmem:[%s21539_s16 + $0x2c8] sm:$0xff]  ;;  %v13544_v14 = vpack.c.bf16 %v8822_v56, %v8819_v54  ;;  %v8837_v47 = vld [vmem:[%s21539_s16 + $0x4b8] sm:$0xff]  ;;  %v8784_v38 = vld [vmem:[%s21539_s16 + $0x310] sm:$0xff] }
0x1107   :  { %13527 = vmatpush1.bf16.msra.mxu1 %v13526_v36  ;;  %v13670_v36 = vpack.c.bf16 %v8721_v49, %v8718_v8  ;;  %v8838_v31 = vld [vmem:[%s21539_s16 + $0x4c0] sm:$0xff]  ;;  %v8841_v45 = vld [vmem:[%s21539_s16 + $0x4d8] sm:$0xff]  ;;  %v8836_v20 = vld [vmem:[%s21539_s16 + $0x4b0] sm:$0xff] }
0x1108   :  { %13529 = vmatprep.subr.bf16.mxu1 %v13528_v51  ;;  %v13672_v51 = vpack.c.bf16 %v8775_v28, %v8772_v27  ;;  %v8839_v6 = vld [vmem:[%s21539_s16 + $0x4c8] sm:$0xff]  ;;  %v8790_v22 = vld [vmem:[%s21539_s16 + $0x340] sm:$0xff]  ;;  %v8793_v34 = vld [vmem:[%s21539_s16 + $0x358] sm:$0xff] }
0x1109   :  { %13655 = vmatpush3.bf16.msra.mxu0 %v13654_v46  ;;  %v13546_v46 = vpack.c.bf16 %v8821_v50, %v8818_v59  ;;  %v8844_v54 = vld [vmem:[%s21539_s16 + $0x4f0] sm:$0xff]  ;;  %v8847_v56 = vld [vmem:[%s21539_s16 + $0x508] sm:$0xff]  ;;  %v8842_v8 = vld [vmem:[%s21539_s16 + $0x4e0] sm:$0xff] }
0x110a   :  { %13657 = vmatprep.subr.bf16.mxu0 %v13656_v30  ;;  %v13548_v30 = vpack.c.bf16 %v8828_v9, %v8825_v0  ;;  %v8845_v49 = vld [vmem:[%s21539_s16 + $0x4f8] sm:$0xff]  ;;  %v13688_v27 = vpack.c.bf16 %v8847_v56, %v8844_v54  ;;  %v8796_v28 = vld [vmem:[%s21539_s16 + $0x370] sm:$0xff]  ;;  %v8851_v0 = vld [vmem:[%s21539_s16 + $0x528] sm:$0xff] }
0x110b   :  { %13531 = vmatpush1.bf16.msra.mxu1 %v13530_v13  ;;  %v13674_v13 = vpack.c.bf16 %v8727_v62, %v8724_v41  ;;  %v8849_v4 = vld [vmem:[%s21539_s16 + $0x518] sm:$0xff]  ;;  %v13690_v9 = vpack.c.bf16 %v8799_v39, %v8796_v28  ;;  %v8858_v41 = vld [vmem:[%s21539_s16 + $0x560] sm:$0xff]  ;;  %v8823_v54 = vld [vmem:[%s21539_s16 + $0x448] sm:$0xff] }
0x110c   :  { %13533 = vmatprep.subr.bf16.mxu1 %v13532_v63  ;;  %v13676_v63 = vpack.c.bf16 %v8781_v24, %v8778_v52  ;;  %v8853_v59 = vld [vmem:[%s21539_s16 + $0x538] sm:$0xff]  ;;  %v8879_v39 = vld [vmem:[%s21539_s16 + $0x608] sm:$0xff] }
0x110d   :  { %13659 = vmatpush3.bf16.msra.mxu0 %v13658_v17  ;;  %v13550_v17 = vpack.c.bf16 %v8827_v57, %v8824_v44  ;;  %v8805_v52 = vld [vmem:[%s21539_s16 + $0x3b8] sm:$0xff]  ;;  %v8859_v44 = vld [vmem:[%s21539_s16 + $0x568] sm:$0xff] }
0x110e   :  { %13661 = vmatprep.subr.bf16.mxu0 %v13660_v53  ;;  %v13552_v53 = vpack.c.bf16 %v8834_v43, %v8831_v5  ;;  %v8857_v5 = vld [vmem:[%s21539_s16 + $0x558] sm:$0xff] }
0x110f   :  { %13535 = vmatpush1.bf16.msra.mxu1 %v13534_v1  ;;  %v13678_v1 = vpack.c.bf16 %v8733_v58, %v8730_v60  ;;  %v8864_v60 = vld [vmem:[%s21539_s16 + $0x590] sm:$0xff] }
0x1110   :  { %13537 = vmatprep.subr.bf16.mxu1 %v13536_v40  ;;  %v13680_v40 = vpack.c.bf16 %v8835_v2, %v8832_v16  ;;  %v8811_v16 = vld [vmem:[%s21539_s16 + $0x3e8] sm:$0xff] }
0x1111   :  { %13663 = vmatpush3.bf16.msra.mxu0 %v13662_v12  ;;  %v13554_v12 = vpack.c.bf16 %v8833_v15, %v8830_v26  ;;  %v8865_v26 = vld [vmem:[%s21539_s16 + $0x598] sm:$0xff] }
0x1112   :  { %13665 = vmatprep.subr.bf16.mxu0 %v13664_v48  ;;  %v13556_v48 = vpack.c.bf16 %v8840_v19, %v8837_v47  ;;  %v8863_v47 = vld [vmem:[%s21539_s16 + $0x588] sm:$0xff] }
0x1113   :  { %13539 = vmatpush1.bf16.msra.mxu1 %v13538_v18  ;;  %v13682_v18 = vpack.c.bf16 %v8787_v25, %v8784_v38  ;;  %v8870_v38 = vld [vmem:[%s21539_s16 + $0x5c0] sm:$0xff] }
0x1114   :  { %13541 = vmatprep.subr.bf16.mxu1 %v13540_v10  ;;  %v13684_v10 = vpack.c.bf16 %v8841_v45, %v8838_v31  ;;  %v8817_v31 = vld [vmem:[%s21539_s16 + $0x418] sm:$0xff] }
0x1115   :  { %13667 = vmatpush3.bf16.msra.mxu0 %v13666_v37  ;;  %v13558_v37 = vpack.c.bf16 %v8839_v6, %v8836_v20  ;;  %v8871_v20 = vld [vmem:[%s21539_s16 + $0x5c8] sm:$0xff] }
0x1116   :  { %13669 = vmatprep.subr.bf16.mxu0 %v13668_v55  ;;  %v13560_v55 = vpack.c.bf16 %v8846_v7, %v8843_v3  ;;  %v8869_v3 = vld [vmem:[%s21539_s16 + $0x5b8] sm:$0xff] }
0x1117   :  { %13543 = vmatpush1.bf16.msra.mxu1 %v13542_v42  ;;  %v13686_v42 = vpack.c.bf16 %v8793_v34, %v8790_v22  ;;  %v8876_v22 = vld [vmem:[%s21539_s16 + $0x5f0] sm:$0xff] }
0x1118   :  { %13545 = vmatprep.subr.bf16.mxu1 %v13544_v14  ;;  %v8850_v14 = vld [vmem:[%s21539_s16 + $0x520] sm:$0xff] }
0x1119   :  { %13671 = vmatpush3.bf16.msra.mxu0 %v13670_v36  ;;  %v8848_v36 = vld [vmem:[%s21539_s16 + $0x510] sm:$0xff]  ;;  %v13692_v62 = vpack.c.bf16 %v8853_v59, %v8850_v14  ;;  %v8826_v59 = vld [vmem:[%s21539_s16 + $0x460] sm:$0xff] }
0x111a   :  { %13673 = vmatprep.subr.bf16.mxu0 %v13672_v51  ;;  %v8855_v51 = vld [vmem:[%s21539_s16 + $0x548] sm:$0xff]  ;;  %v13566_v24 = vpack.c.bf16 %v8851_v0, %v8848_v36  ;;  %v8928_v0 = vld [vmem:[%s21539_s16 + $0x790] sm:$0xff] }
0x111b   :  { %13547 = vmatpush1.bf16.msra.mxu1 %v13546_v46  ;;  %v8802_v46 = vld [vmem:[%s21539_s16 + $0x3a0] sm:$0xff]  ;;  %v13568_v57 = vpack.c.bf16 %v8858_v41, %v8855_v51 }
0x111c   :  { %13549 = vmatprep.subr.bf16.mxu1 %v13548_v30  ;;  %v8856_v30 = vld [vmem:[%s21539_s16 + $0x550] sm:$0xff]  ;;  %v13694_v43 = vpack.c.bf16 %v8805_v52, %v8802_v46  ;;  %v8881_v46 = vld [vmem:[%s21539_s16 + $0x618] sm:$0xff] }
0x111d   :  { %13675 = vmatpush3.bf16.msra.mxu0 %v13674_v13  ;;  %v8854_v13 = vld [vmem:[%s21539_s16 + $0x540] sm:$0xff]  ;;  %v13696_v58 = vpack.c.bf16 %v8859_v44, %v8856_v30  ;;  %v8880_v44 = vld [vmem:[%s21539_s16 + $0x610] sm:$0xff] }
0x111e   :  { %13677 = vmatprep.subr.bf16.mxu0 %v13676_v63  ;;  %v8861_v63 = vld [vmem:[%s21539_s16 + $0x578] sm:$0xff]  ;;  %v13570_v2 = vpack.c.bf16 %v8857_v5, %v8854_v13  ;;  %v8934_v5 = vld [vmem:[%s21539_s16 + $0x7c0] sm:$0xff] }
0x111f   :  { %13551 = vmatpush1.bf16.msra.mxu1 %v13550_v17  ;;  %v8808_v17 = vld [vmem:[%s21539_s16 + $0x3d0] sm:$0xff]  ;;  %v13572_v15 = vpack.c.bf16 %v8864_v60, %v8861_v63 }
0x1120   :  { %13553 = vmatprep.subr.bf16.mxu1 %v13552_v53  ;;  %v8862_v53 = vld [vmem:[%s21539_s16 + $0x580] sm:$0xff]  ;;  %v13698_v19 = vpack.c.bf16 %v8811_v16, %v8808_v17  ;;  %v8887_v17 = vld [vmem:[%s21539_s16 + $0x648] sm:$0xff] }
0x1121   :  { %13679 = vmatpush3.bf16.msra.mxu0 %v13678_v1  ;;  %v8860_v1 = vld [vmem:[%s21539_s16 + $0x570] sm:$0xff]  ;;  %v13700_v25 = vpack.c.bf16 %v8865_v26, %v8862_v53  ;;  %v8891_v16 = vld [vmem:[%s21539_s16 + $0x668] sm:$0xff] }
0x1122   :  { %13681 = vmatprep.subr.bf16.mxu0 %v13680_v40  ;;  %v8867_v40 = vld [vmem:[%s21539_s16 + $0x5a8] sm:$0xff]  ;;  %v13574_v45 = vpack.c.bf16 %v8863_v47, %v8860_v1  ;;  %v8889_v1 = vld [vmem:[%s21539_s16 + $0x658] sm:$0xff] }
0x1123   :  { %13555 = vmatpush1.bf16.msra.mxu1 %v13554_v12  ;;  %v8814_v12 = vld [vmem:[%s21539_s16 + $0x400] sm:$0xff]  ;;  %v13576_v6 = vpack.c.bf16 %v8870_v38, %v8867_v40  ;;  %v8943_v40 = vld [vmem:[%s21539_s16 + $0x808] sm:$0xff] }
0x1124   :  { %9269 = vmatmul.mubr.f32.vlgmr.msra.gmra.mrb[148].mxu0 %v8680_v11  ;;  %13557 = vmatprep.subr.bf16.mxu1 %v13556_v48  ;;  %v8852_v11 = vld [vmem:[%s21539_s16 + $0x530] sm:$0xff]  ;;  %v13702_v7 = vpack.c.bf16 %v8817_v31, %v8814_v12  ;;  %v8893_v12 = vld [vmem:[%s21539_s16 + $0x678] sm:$0xff] }
0x1125   :  { %13683 = vmatpush3.bf16.msra.mxu0 %v13682_v18  ;;  %9338 = vmatprep.mubr.f32.mxu0 %v8683_v21  ;;  %v13562_v21 = vpack.c.bf16 %v8845_v49, %v8842_v8  ;;  %v13564_v50 = vpack.c.bf16 %v8852_v11, %v8849_v4  ;;  %v8868_v48 = vld [vmem:[%s21539_s16 + $0x5b0] sm:$0xff]  ;;  %v8866_v18 = vld [vmem:[%s21539_s16 + $0x5a0] sm:$0xff]  ;;  %v8877_v8 = vld [vmem:[%s21539_s16 + $0x5f8] sm:$0xff] }
0x1126   :  { %13685 = vmatprep.subr.bf16.mxu0 %v13684_v10  ;;  %v8873_v10 = vld [vmem:[%s21539_s16 + $0x5d8] sm:$0xff]  ;;  %v13704_v34 = vpack.c.bf16 %v8871_v20, %v8868_v48  ;;  %v13578_v56 = vpack.c.bf16 %v8869_v3, %v8866_v18  ;;  %v21855_v49 = vld [vmem:[#allocation90_spill] sm:$0xff]  ;;  %v8872_v11 = vld [vmem:[%s21539_s16 + $0x5d0] sm:$0xff] }
0x1127   :  { %13559 = vmatpush1.bf16.msra.mxu1 %v13558_v37  ;;  %v8820_v37 = vld [vmem:[%s21539_s16 + $0x430] sm:$0xff]  ;;  %v13580_v4 = vpack.c.bf16 %v8876_v22, %v8873_v10  ;;  %v8897_v31 = vld [vmem:[%s21539_s16 + $0x698] sm:$0xff]  ;;  %v8895_v18 = vld [vmem:[%s21539_s16 + $0x688] sm:$0xff] }
0x1128   :  { %13561 = vmatprep.subr.bf16.mxu1 %v13560_v55  ;;  %v8874_v55 = vld [vmem:[%s21539_s16 + $0x5e0] sm:$0xff]  ;;  %v13706_v28 = vpack.c.bf16 %v8823_v54, %v8820_v37  ;;  %v8949_v10 = vld [vmem:[%s21539_s16 + $0x838] sm:$0xff]  ;;  %v8899_v37 = vld [vmem:[%s21539_s16 + $0x6a8] sm:$0xff] }
0x1129   :  { %13687 = vmatpush3.bf16.msra.mxu0 %v13686_v42  ;;  %v4351_v42 = vrot.slane %v20652_v61, %v21855_v49  ;;  %v13708_v14 = vpack.c.bf16 %v8877_v8, %v8874_v55  ;;  %v8903_v54 = vld [vmem:[%s21539_s16 + $0x6c8] sm:$0xff] }
0x112a   :  { %13689 = vmatprep.subr.bf16.mxu0 %v13688_v27  ;;  %v8875_v27 = vld [vmem:[%s21539_s16 + $0x5e8] sm:$0xff] }
0x112b   :  { %13563 = vmatpush1.bf16.msra.mxu1 %v13562_v21  ;;  %v8882_v21 = vld [vmem:[%s21539_s16 + $0x620] sm:$0xff]  ;;  %v13582_v36 = vpack.c.bf16 %v8875_v27, %v8872_v11  ;;  %v13856_v51 = vadd.f32 %v20647_v29, %v4351_v42  ;;  %v8888_v29 = vld [vmem:[%s21539_s16 + $0x650] sm:$0xff] }
0x112c   :  { %13565 = vmatprep.subr.bf16.mxu1 %v13564_v50  ;;  %v8829_v50 = vld [vmem:[%s21539_s16 + $0x478] sm:$0xff]  ;;  %v13584_v41 = vpack.c.bf16 %v8882_v21, %v8879_v39  ;;  %v8898_v42 = vld [vmem:[%s21539_s16 + $0x6a0] sm:$0xff]  ;;  %v8952_v27 = vld [vmem:[%s21539_s16 + $0x850] sm:$0xff] }
0x112d   :  { %13691 = vmatpush3.bf16.msra.mxu0 %v13690_v9  ;;  %v8931_v9 = vld [vmem:[%s21539_s16 + $0x7a8] sm:$0xff]  ;;  %v13710_v52 = vpack.c.bf16 %v8829_v50, %v8826_v59  ;;  %v8682_v63 = vmax.f32 %v13856_v51, 0.0  ;;  %v8902_v21 = vld [vmem:[%s21539_s16 + $0x6c0] sm:$0xff]  ;;  %v8909_v59 = vld [vmem:[%s21539_s16 + $0x6f8] sm:$0xff] }
0x112e   :  { %13693 = vmatprep.subr.bf16.mxu0 %v13692_v62  ;;  %v8878_v62 = vld [vmem:[%s21539_s16 + $0x600] sm:$0xff]  ;;  %v13712_v30 = vpack.c.bf16 %v8931_v9, %v8928_v0  ;;  %v8912_v50 = vld [vmem:[%s21539_s16 + $0x710] sm:$0xff]  ;;  %v8907_v51 = vld [vmem:[%s21539_s16 + $0x6e8] sm:$0xff] }
0x112f   :  { %13567 = vmatpush1.bf16.msra.mxu1 %v13566_v24  ;;  %v8885_v24 = vld [vmem:[%s21539_s16 + $0x638] sm:$0xff]  ;;  %v13586_v13 = vpack.c.bf16 %v8881_v46, %v8878_v62  ;;  %v8904_v9 = vld [vmem:[%s21539_s16 + $0x6d0] sm:$0xff]  ;;  %v8958_v62 = vld [vmem:[%s21539_s16 + $0x880] sm:$0xff] }
0x1130   :  { %13569 = vmatprep.subr.bf16.mxu1 %v13568_v57  ;;  %v8883_v57 = vld [vmem:[%s21539_s16 + $0x628] sm:$0xff]  ;;  %v13588_v60 = vpack.c.bf16 %v8888_v29, %v8885_v24  ;;  %v8961_v46 = vld [vmem:[%s21539_s16 + $0x898] sm:$0xff]  ;;  %v8908_v24 = vld [vmem:[%s21539_s16 + $0x6f0] sm:$0xff] }
0x1131   :  { %13695 = vmatpush3.bf16.msra.mxu0 %v13694_v43  ;;  %v8937_v43 = vld [vmem:[%s21539_s16 + $0x7d8] sm:$0xff]  ;;  %v13714_v53 = vpack.c.bf16 %v8883_v57, %v8880_v44  ;;  %v8911_v29 = vld [vmem:[%s21539_s16 + $0x708] sm:$0xff]  ;;  %v8918_v44 = vld [vmem:[%s21539_s16 + $0x740] sm:$0xff]  ;;  %v13730_v57 = vpack.c.bf16 %v8907_v51, %v8904_v9 }
0x1132   :  { %13697 = vmatprep.subr.bf16.mxu0 %v13696_v58  ;;  %v8884_v58 = vld [vmem:[%s21539_s16 + $0x630] sm:$0xff]  ;;  %v13716_v26 = vpack.c.bf16 %v8937_v43, %v8934_v5  ;;  %v8910_v5 = vld [vmem:[%s21539_s16 + $0x700] sm:$0xff]  ;;  %v8913_v43 = vld [vmem:[%s21539_s16 + $0x718] sm:$0xff] }
0x1133   :  { %13571 = vmatpush1.bf16.msra.mxu1 %v13570_v2  ;;  %v8894_v2 = vld [vmem:[%s21539_s16 + $0x680] sm:$0xff]  ;;  %v13590_v47 = vpack.c.bf16 %v8887_v17, %v8884_v58  ;;  %v8967_v58 = vld [vmem:[%s21539_s16 + $0x8c8] sm:$0xff]  ;;  %v8944_v51 = vld [vmem:[%s21539_s16 + $0x810] sm:$0xff] }
0x1134   :  { %13573 = vmatprep.subr.bf16.mxu1 %v13572_v15  ;;  %v8886_v15 = vld [vmem:[%s21539_s16 + $0x640] sm:$0xff]  ;;  %v13592_v38 = vpack.c.bf16 %v8894_v2, %v8891_v16  ;;  %v8917_v2 = vld [vmem:[%s21539_s16 + $0x738] sm:$0xff] }
0x1135   :  { %13699 = vmatpush3.bf16.msra.mxu0 %v13698_v19  ;;  %v8940_v19 = vld [vmem:[%s21539_s16 + $0x7f0] sm:$0xff]  ;;  %v13718_v48 = vpack.c.bf16 %v8889_v1, %v8886_v15  ;;  %v8914_v16 = vld [vmem:[%s21539_s16 + $0x720] sm:$0xff]  ;;  %v13734_v15 = vpack.c.bf16 %v8913_v43, %v8910_v5 }
0x1136   :  { %13701 = vmatprep.subr.bf16.mxu0 %v13700_v25  ;;  %v8890_v25 = vld [vmem:[%s21539_s16 + $0x660] sm:$0xff]  ;;  %v13720_v20 = vpack.c.bf16 %v8943_v40, %v8940_v19  ;;  %v8919_v19 = vld [vmem:[%s21539_s16 + $0x748] sm:$0xff]  ;;  %v13610_v40 = vpack.c.bf16 %v8917_v2, %v8914_v16  ;;  %v8956_v43 = vld [vmem:[%s21539_s16 + $0x870] sm:$0xff] }
0x1137   :  { %13575 = vmatpush1.bf16.msra.mxu1 %v13574_v45  ;;  %v8900_v45 = vld [vmem:[%s21539_s16 + $0x6b0] sm:$0xff]  ;;  %v13594_v3 = vpack.c.bf16 %v8893_v12, %v8890_v25  ;;  %v8923_v12 = vld [vmem:[%s21539_s16 + $0x768] sm:$0xff]  ;;  %v8962_v2 = vld [vmem:[%s21539_s16 + $0x8a0] sm:$0xff] }
0x1138   :  { %13577 = vmatprep.subr.bf16.mxu1 %v13576_v6  ;;  %v8892_v6 = vld [vmem:[%s21539_s16 + $0x670] sm:$0xff]  ;;  %v13596_v22 = vpack.c.bf16 %v8900_v45, %v8897_v31  ;;  %v8970_v31 = vld [vmem:[%s21539_s16 + $0x8e0] sm:$0xff]  ;;  %v8927_v45 = vld [vmem:[%s21539_s16 + $0x788] sm:$0xff] }
0x1139   :  { %13703 = vmatpush3.bf16.msra.mxu0 %v13702_v7  ;;  %v8946_v7 = vld [vmem:[%s21539_s16 + $0x820] sm:$0xff]  ;;  %v13722_v55 = vpack.c.bf16 %v8895_v18, %v8892_v6  ;;  %v8920_v25 = vld [vmem:[%s21539_s16 + $0x750] sm:$0xff]  ;;  %v8973_v6 = vld [vmem:[%s21539_s16 + $0x8f8] sm:$0xff] }
0x113a   :  { %13705 = vmatprep.subr.bf16.mxu0 %v13704_v34  ;;  %v8896_v34 = vld [vmem:[%s21539_s16 + $0x690] sm:$0xff]  ;;  %v13724_v8 = vpack.c.bf16 %v8949_v10, %v8946_v7  ;;  %v13740_v18 = vpack.c.bf16 %v8973_v6, %v8970_v31  ;;  %v8925_v7 = vld [vmem:[%s21539_s16 + $0x778] sm:$0xff]  ;;  %v13614_v10 = vpack.c.bf16 %v8923_v12, %v8920_v25  ;;  %v9433_v25 = vld [vmem:[%s21541_s18 + $0x80] sm:$0xff] }
0x113b   :  { %13579 = vmatpush1.bf16.msra.mxu1 %v13578_v56  ;;  %v8906_v56 = vld [vmem:[%s21539_s16 + $0x6e0] sm:$0xff]  ;;  %v13598_v11 = vpack.c.bf16 %v8899_v37, %v8896_v34  ;;  %v8929_v37 = vld [vmem:[%s21539_s16 + $0x798] sm:$0xff]  ;;  %v9434_v12 = vld [vmem:[%s21541_s18 + $0x88] sm:$0xff] }
0x113c   :  { %13581 = vmatprep.subr.bf16.mxu1 %v13580_v4  ;;  %v8901_v4 = vld [vmem:[%s21539_s16 + $0x6b8] sm:$0xff]  ;;  %v13600_v39 = vpack.c.bf16 %v8906_v56, %v8903_v54  ;;  %v8926_v34 = vld [vmem:[%s21539_s16 + $0x780] sm:$0xff]  ;;  %v8936_v56 = vld [vmem:[%s21539_s16 + $0x7d0] sm:$0xff]  ;;  %v13744_v31 = vpack.c.bf16 %v9434_v12, %v9433_v25 }
0x113d   :  { %13707 = vmatpush3.bf16.msra.mxu0 %v13706_v28  ;;  %v8955_v28 = vld [vmem:[%s21539_s16 + $0x868] sm:$0xff]  ;;  %v8933_v54 = vld [vmem:[%s21539_s16 + $0x7b8] sm:$0xff] }
0x113e   :  { %13709 = vmatprep.subr.bf16.mxu0 %v13708_v14  ;;  %v8905_v14 = vld [vmem:[%s21539_s16 + $0x6d8] sm:$0xff]  ;;  %v13728_v0 = vpack.c.bf16 %v8955_v28, %v8952_v27  ;;  %v8939_v27 = vld [vmem:[%s21539_s16 + $0x7e8] sm:$0xff]  ;;  %v8942_v28 = vld [vmem:[%s21539_s16 + $0x800] sm:$0xff] }
0x113f   :  { %13583 = vmatpush1.bf16.msra.mxu1 %v13582_v36  ;;  %v13726_v36 = vpack.c.bf16 %v8901_v4, %v8898_v42  ;;  %v13620_v42 = vpack.c.bf16 %v8936_v56, %v8933_v54  ;;  %v8932_v4 = vld [vmem:[%s21539_s16 + $0x7b0] sm:$0xff] }
0x1140   :  { %13585 = vmatprep.subr.bf16.mxu1 %v13584_v41  ;;  %v13602_v41 = vpack.c.bf16 %v8905_v14, %v8902_v21  ;;  %v13624_v21 = vpack.c.bf16 %v8942_v28, %v8939_v27  ;;  %v8938_v14 = vld [vmem:[%s21539_s16 + $0x7e0] sm:$0xff]  ;;  %v9435_v54 = vld [vmem:[%s21541_s18 + $0x90] sm:$0xff]  ;;  %v9438_v28 = vld [vmem:[%s21541_s18 + $0xa8] sm:$0xff] }
0x1141   :  { %13711 = vmatpush3.bf16.msra.mxu0 %v13710_v52  ;;  %v13604_v52 = vpack.c.bf16 %v8912_v50, %v8909_v59  ;;  %v8941_v59 = vld [vmem:[%s21539_s16 + $0x7f8] sm:$0xff]  ;;  %v9437_v27 = vld [vmem:[%s21541_s18 + $0xa0] sm:$0xff] }
0x1142   :  { %9127 = vmatmul.mubr.f32.vlgmr.msra.gmra.mrb[176].mxu1 %v8682_v63  ;;  %13713 = vmatprep.subr.bf16.mxu0 %v13712_v30  ;;  %v8915_v30 = vld [vmem:[%s21539_s16 + $0x728] sm:$0xff]  ;;  %v8945_v50 = vld [vmem:[%s21539_s16 + $0x818] sm:$0xff] }
0x1143   :  { %13587 = vmatpush1.bf16.msra.mxu1 %v13586_v13  ;;  %v13732_v13 = vpack.c.bf16 %v8961_v46, %v8958_v62  ;;  %v13608_v17 = vpack.c.bf16 %v8918_v44, %v8915_v30  ;;  %v8951_v62 = vld [vmem:[%s21539_s16 + $0x848] sm:$0xff]  ;;  %v8954_v46 = vld [vmem:[%s21539_s16 + $0x860] sm:$0xff]  ;;  %v8953_v30 = vld [vmem:[%s21539_s16 + $0x858] sm:$0xff] }
0x1144   :  { %9339 = vmatmul.mubr.f32.vlgmr.msra.gmra.mrb[150].mxu0 %v8682_v63  ;;  %13589 = vmatprep.subr.bf16.mxu1 %v13588_v60  ;;  %v13606_v63 = vpack.c.bf16 %v8911_v29, %v8908_v24  ;;  %v8964_v60 = vld [vmem:[%s21539_s16 + $0x8b0] sm:$0xff]  ;;  %v13632_v24 = vpack.c.bf16 %v8954_v46, %v8951_v62  ;;  %v8950_v29 = vld [vmem:[%s21539_s16 + $0x840] sm:$0xff]  ;;  %v8957_v44 = vld [vmem:[%s21539_s16 + $0x878] sm:$0xff] }
0x1145   :  { %13715 = vmatpush3.bf16.msra.mxu0 %v13714_v53  ;;  %v8921_v53 = vld [vmem:[%s21539_s16 + $0x758] sm:$0xff]  ;;  %v13736_v1 = vpack.c.bf16 %v8967_v58, %v8964_v60  ;;  %v8963_v60 = vld [vmem:[%s21539_s16 + $0x8a8] sm:$0xff]  ;;  %v8966_v58 = vld [vmem:[%s21539_s16 + $0x8c0] sm:$0xff] }
0x1146   :  { %13717 = vmatprep.subr.bf16.mxu0 %v13716_v26  ;;  %v8924_v26 = vld [vmem:[%s21539_s16 + $0x770] sm:$0xff]  ;;  %v13640_v16 = vpack.c.bf16 %v8966_v58, %v8963_v60  ;;  %v9441_v62 = vld [vmem:[%s21541_s18 + $0xc0] sm:$0xff]  ;;  %v9442_v46 = vld [vmem:[%s21541_s18 + $0xc8] sm:$0xff] }
0x1147   :  { %13591 = vmatpush1.bf16.msra.mxu1 %v13590_v47  ;;  %v8916_v47 = vld [vmem:[%s21539_s16 + $0x730] sm:$0xff]  ;;  %v9445_v60 = vld [vmem:[%s21541_s18 + $0xe0] sm:$0xff]  ;;  %v9446_v58 = vld [vmem:[%s21541_s18 + $0xe8] sm:$0xff] }
0x1148   :  { %13593 = vmatprep.subr.bf16.mxu1 %v13592_v38  ;;  %v13612_v38 = vpack.c.bf16 %v8924_v26, %v8921_v53  ;;  %v8965_v53 = vld [vmem:[%s21539_s16 + $0x8b8] sm:$0xff] }
0x1149   :  { %13719 = vmatpush3.bf16.msra.mxu0 %v13718_v48  ;;  %v8930_v48 = vld [vmem:[%s21539_s16 + $0x7a0] sm:$0xff]  ;;  %v8969_v26 = vld [vmem:[%s21539_s16 + $0x8d8] sm:$0xff] }
0x114a   :  { %13721 = vmatprep.subr.bf16.mxu0 %v13720_v20  ;;  %v13738_v20 = vpack.c.bf16 %v8919_v19, %v8916_v47  ;;  %v8968_v19 = vld [vmem:[%s21539_s16 + $0x8d0] sm:$0xff] }
0x114b   :  { %13595 = vmatpush1.bf16.msra.mxu1 %v13594_v3  ;;  %v8922_v3 = vld [vmem:[%s21539_s16 + $0x760] sm:$0xff] }
0x114c   :  { %13597 = vmatprep.subr.bf16.mxu1 %v13596_v22  ;;  %v13616_v22 = vpack.c.bf16 %v8930_v48, %v8927_v45  ;;  %v21856_v45 = vld [vmem:[#allocation2_spill] sm:$0xff] }
0x114d   :  { %13723 = vmatpush3.bf16.msra.mxu0 %v13722_v55  ;;  %v13742_v55 = vpack.c.bf16 %v8925_v7, %v8922_v3  ;;  %v21857_v48 = vsub.s32 4, %v21856_v45  ;;  %v21858_v6 = vsub.s32 5, %v21856_v45 }
0x114e   :  { %13725 = vmatprep.subr.bf16.mxu0 %v13724_v8  ;;  %v13618_v8 = vpack.c.bf16 %v8929_v37, %v8926_v34  ;;  %v9418_v34 = vld [vmem:[%s21541_s18 + $0x8] sm:$0xff] }
0x114f   :  { %13599 = vmatpush1.bf16.msra.mxu1 %v13598_v11  ;;  %v8935_v11 = vld [vmem:[%s21539_s16 + $0x7c8] sm:$0xff] }
0x1150   :  { %13601 = vmatprep.subr.bf16.mxu1 %v13600_v39  ;;  %v13622_v39 = vpack.c.bf16 %v8935_v11, %v8932_v4  ;;  %v9419_v4 = vld [vmem:[%s21541_s18 + $0x10] sm:$0xff]  ;;  %v9420_v11 = vld [vmem:[%s21541_s18 + $0x18] sm:$0xff] }
0x1151   :  { %13727 = vmatpush3.bf16.msra.mxu0 %v13726_v36  ;;  %v8948_v36 = vld [vmem:[%s21539_s16 + $0x830] sm:$0xff] }
0x1152   :  { %13729 = vmatprep.subr.bf16.mxu0 %v13728_v0  ;;  %v13626_v0 = vpack.c.bf16 %v8941_v59, %v8938_v14  ;;  %v13628_v9 = vpack.c.bf16 %v8948_v36, %v8945_v50  ;;  %v9421_v14 = vld [vmem:[%s21541_s18 + $0x20] sm:$0xff]  ;;  %v9422_v59 = vld [vmem:[%s21541_s18 + $0x28] sm:$0xff]  ;;  %v9439_v50 = vld [vmem:[%s21541_s18 + $0xb0] sm:$0xff] }
0x1153   :  { %13603 = vmatpush1.bf16.msra.mxu1 %v13602_v41  ;;  %v8947_v41 = vld [vmem:[%s21539_s16 + $0x828] sm:$0xff]  ;;  %v9440_v36 = vld [vmem:[%s21541_s18 + $0xb8] sm:$0xff] }
0x1154   :  { %13605 = vmatprep.subr.bf16.mxu1 %v13604_v52  ;;  %v13630_v52 = vpack.c.bf16 %v8947_v41, %v8944_v51  ;;  %v9423_v51 = vld [vmem:[%s21541_s18 + $0x30] sm:$0xff]  ;;  %v9424_v41 = vld [vmem:[%s21541_s18 + $0x38] sm:$0xff] }
0x1155   :  { %13731 = vmatpush3.bf16.msra.mxu0 %v13730_v57  ;;  %v8960_v57 = vld [vmem:[%s21539_s16 + $0x890] sm:$0xff] }
0x1156   :  { %13733 = vmatprep.subr.bf16.mxu0 %v13732_v13  ;;  %v13634_v13 = vpack.c.bf16 %v8953_v30, %v8950_v29  ;;  %v13636_v5 = vpack.c.bf16 %v8960_v57, %v8957_v44  ;;  %v9425_v29 = vld [vmem:[%s21541_s18 + $0x40] sm:$0xff]  ;;  %v9426_v30 = vld [vmem:[%s21541_s18 + $0x48] sm:$0xff]  ;;  %v9443_v44 = vld [vmem:[%s21541_s18 + $0xd0] sm:$0xff] }
0x1157   :  { %13607 = vmatpush1.bf16.msra.mxu1 %v13606_v63  ;;  %v8959_v63 = vld [vmem:[%s21539_s16 + $0x888] sm:$0xff]  ;;  %v9444_v57 = vld [vmem:[%s21541_s18 + $0xd8] sm:$0xff] }
0x1158   :  { %13609 = vmatprep.subr.bf16.mxu1 %v13608_v17  ;;  %v13638_v17 = vpack.c.bf16 %v8959_v63, %v8956_v43  ;;  %v9427_v43 = vld [vmem:[%s21541_s18 + $0x50] sm:$0xff]  ;;  %v9428_v63 = vld [vmem:[%s21541_s18 + $0x58] sm:$0xff] }
0x1159   :  { %13735 = vmatpush3.bf16.msra.mxu0 %v13734_v15  ;;  %v8972_v15 = vld [vmem:[%s21539_s16 + $0x8f0] sm:$0xff] }
0x115a   :  { %13737 = vmatprep.subr.bf16.mxu0 %v13736_v1  ;;  %v13642_v1 = vpack.c.bf16 %v8965_v53, %v8962_v2  ;;  %v13644_v47 = vpack.c.bf16 %v8972_v15, %v8969_v26  ;;  %v9429_v2 = vld [vmem:[%s21541_s18 + $0x60] sm:$0xff]  ;;  %v9430_v53 = vld [vmem:[%s21541_s18 + $0x68] sm:$0xff] }
0x115b   :  { %13611 = vmatpush1.bf16.msra.mxu1 %v13610_v40  ;;  %v8971_v40 = vld [vmem:[%s21539_s16 + $0x8e8] sm:$0xff]  ;;  %v13770_v26 = vpack.c.bf16 %v9430_v53, %v9429_v2 }
0x115c   :  { %13613 = vmatprep.subr.bf16.mxu1 %v13612_v38  ;;  %v13646_v38 = vpack.c.bf16 %v8971_v40, %v8968_v19  ;;  %v8974_v19 = vld [vmem:[%s21542_s17] sm:$0x7] }
0x115d   :  { %13739 = vmatpush3.bf16.msra.mxu0 %v13738_v20  ;;  %v4359_v20 = vrot.slane %v20652_v61, %v21857_v48  ;;  %v8987_v40 = vrot.slane %v8974_v19, %v21855_v49  ;;  %v9447_v48 = vld [vmem:[%s21541_s18 + $0xf0] sm:$0xff]  ;;  %v9432_v49 = vld [vmem:[%s21541_s18 + $0x78] sm:$0xff] }
0x115e   :  { %13741 = vmatprep.subr.bf16.mxu0 %v13740_v18  ;;  %v4363_v18 = vrot.slane %v20652_v61, %v21858_v6  ;;  %v9436_v61 = vld [vmem:[%s21541_s18 + $0x98] sm:$0xff] }
0x115f   :  { %13615 = vmatpush1.bf16.msra.mxu1 %v13614_v10 }
0x1160   :  { %13617 = vmatprep.subr.bf16.mxu1 %v13616_v22  ;;  %v9417_v22 = vld [vmem:[%s21541_s18] sm:$0xff] }
0x1161   :  { %13743 = vmatpush3.bf16.msra.mxu0 %v13742_v55  ;;  %v13746_v55 = vpack.c.bf16 %v9418_v34, %v9417_v22 }
0x1162   :  { %13745 = vmatprep.subr.bf16.mxu0 %v13744_v31 }
0x1163   :  { %13619 = vmatpush1.bf16.msra.mxu1 %v13618_v8 }
0x1164   :  { %13621 = vmatprep.subr.bf16.mxu1 %v13620_v42  ;;  %v13748_v42 = vpack.c.bf16 %v9436_v61, %v9435_v54 }
0x1167   :  { %13623 = vmatpush1.bf16.msra.mxu1 %v13622_v39  ;;  %v13750_v39 = vpack.c.bf16 %v9420_v11, %v9419_v4 }
0x1168   :  { %13625 = vmatprep.subr.bf16.mxu1 %v13624_v21  ;;  %v13752_v21 = vpack.c.bf16 %v9438_v28, %v9437_v27  ;;  %v9452_v28 = vld [vmem:[%s21541_s18 + $0x118] sm:$0xff] }
0x116b   :  { %13627 = vmatpush1.bf16.msra.mxu1 %v13626_v0  ;;  %v13754_v0 = vpack.c.bf16 %v9422_v59, %v9421_v14  ;;  %v9454_v14 = vld [vmem:[%s21541_s18 + $0x128] sm:$0xff] }
0x116c   :  { %13629 = vmatprep.subr.bf16.mxu1 %v13628_v9  ;;  %v13756_v9 = vpack.c.bf16 %v9440_v36, %v9439_v50  ;;  %v9455_v50 = vld [vmem:[%s21541_s18 + $0x130] sm:$0xff] }
0x116f   :  { %13631 = vmatpush1.bf16.msra.mxu1 %v13630_v52  ;;  %v13758_v52 = vpack.c.bf16 %v9424_v41, %v9423_v51  ;;  %v9459_v41 = vld [vmem:[%s21541_s18 + $0x150] sm:$0xff] }
0x1170   :  { %13633 = vmatprep.subr.bf16.mxu1 %v13632_v24  ;;  %v13760_v24 = vpack.c.bf16 %v9442_v46, %v9441_v62  ;;  %v9460_v62 = vld [vmem:[%s21541_s18 + $0x158] sm:$0xff] }
0x1171   :  { %v13792_v46 = vpack.c.bf16 %v9460_v62, %v9459_v41 }
0x1173   :  { %13635 = vmatpush1.bf16.msra.mxu1 %v13634_v13  ;;  %v13762_v13 = vpack.c.bf16 %v9426_v30, %v9425_v29  ;;  %v9463_v30 = vld [vmem:[%s21541_s18 + $0x170] sm:$0xff] }
0x1174   :  { %13637 = vmatprep.subr.bf16.mxu1 %v13636_v5  ;;  %v13764_v5 = vpack.c.bf16 %v9444_v57, %v9443_v44  ;;  %v9464_v44 = vld [vmem:[%s21541_s18 + $0x178] sm:$0xff] }
0x1175   :  { %v13798_v57 = vpack.c.bf16 %v9464_v44, %v9463_v30 }
0x1177   :  { %13639 = vmatpush1.bf16.msra.mxu1 %v13638_v17  ;;  %v13766_v17 = vpack.c.bf16 %v9428_v63, %v9427_v43 }
0x1178   :  { %13641 = vmatprep.subr.bf16.mxu1 %v13640_v16  ;;  %v13768_v16 = vpack.c.bf16 %v9446_v58, %v9445_v60  ;;  %v10118_v60 = vld [vmem:[%s21543_s19] ss:$0 sm:$0xff] }
0x117b   :  { %13643 = vmatpush1.bf16.msra.mxu1 %v13642_v1 }
0x117c   :  { %13645 = vmatprep.subr.bf16.mxu1 %v13644_v47 }
0x117f   :  { %13647 = vmatpush1.bf16.msra.mxu1 %v13646_v38 }
0x11d6   :  { %v8669_v3 = vpop.f32.mrb[44].mxu0 }
0x11d7   :  { %v13858_v7 = vadd.f32 %v8669_v3, %v4359_v20  ;;  %v8671_v10 = vpop.f32.mrb[45].mxu0  ;;  %v9448_v20 = vld [vmem:[%s21541_s18 + $0xf8] sm:$0xff] }
0x11d8   :  { %v13859_v37 = vadd.f32 %v8671_v10, %v4363_v18  ;;  %v13772_v6 = vpack.c.bf16 %v9448_v20, %v9447_v48  ;;  %v9431_v18 = vld [vmem:[%s21541_s18 + $0x70] sm:$0xff]  ;;  %v8983_v10 = vrot.slane %v8974_v19, %v21853_v32 }
0x11d9   :  { %v8684_v8 = vmax.f32 %v13858_v7, 0.0  ;;  %v13774_v3 = vpack.c.bf16 %v9432_v49, %v9431_v18  ;;  %v8979_v7 = vrot.slane %v8974_v19, %v21852_v23  ;;  %v9451_v32 = vld [vmem:[%s21541_s18 + $0x110] sm:$0xff] }
0x11da   :  { %v8685_v56 = vmax.f32 %v13859_v37, 0.0 }
0x11dc   :  { %9197 = vmatprep.mubr.f32.mxu1 %v8685_v56  ;;  %9408 = vmatprep.mubr.f32.mxu0 %v8685_v56  ;;  %v9449_v56 = vld [vmem:[%s21541_s18 + $0x100] sm:$0xff] }
0x11dd   :  { %9198 = vmatmul.mubr.f32.vlgmr.msra.gmra.mrb[176].mxu1 %v8684_v8  ;;  %9409 = vmatmul.mubr.f32.vlgmr.msra.gmra.mrb[152].mxu0 %v8684_v8 }
0x11de   :  { %13747 = vmatpush3.bf16.msra.mxu0 %v13746_v55  ;;  %v9450_v55 = vld [vmem:[%s21541_s18 + $0x108] sm:$0xff] }
0x11df   :  { %13749 = vmatprep.subr.bf16.mxu0 %v13748_v42  ;;  %v13777_v23 = vpack.c.bf16 %v9450_v55, %v9449_v56 }
0x11e2   :  { %13751 = vmatpush3.bf16.msra.mxu0 %v13750_v39  ;;  %v13780_v39 = vpack.c.bf16 %v9452_v28, %v9451_v32 }
0x11e3   :  { %13753 = vmatprep.subr.bf16.mxu0 %v13752_v21  ;;  %v9453_v21 = vld [vmem:[%s21541_s18 + $0x120] sm:$0xff] }
0x11e4   :  { %v13783_v59 = vpack.c.bf16 %v9454_v14, %v9453_v21 }
0x11e6   :  { %13755 = vmatpush3.bf16.msra.mxu0 %v13754_v0  ;;  %v9457_v0 = vld [vmem:[%s21541_s18 + $0x140] sm:$0xff] }
0x11e7   :  { %13757 = vmatprep.subr.bf16.mxu0 %v13756_v9  ;;  %v9458_v9 = vld [vmem:[%s21541_s18 + $0x148] sm:$0xff] }
0x11e8   :  { %v13789_v51 = vpack.c.bf16 %v9458_v9, %v9457_v0 }
0x11ea   :  { %13759 = vmatpush3.bf16.msra.mxu0 %v13758_v52  ;;  %v9461_v52 = vld [vmem:[%s21541_s18 + $0x160] sm:$0xff] }
0x11eb   :  { %13761 = vmatprep.subr.bf16.mxu0 %v13760_v24  ;;  %v9462_v24 = vld [vmem:[%s21541_s18 + $0x168] sm:$0xff] }
0x11ec   :  { %v13795_v29 = vpack.c.bf16 %v9462_v24, %v9461_v52 }
0x11ee   :  { %13763 = vmatpush3.bf16.msra.mxu0 %v13762_v13 }
0x11ef   :  { %13765 = vmatprep.subr.bf16.mxu0 %v13764_v5 }
0x11f2   :  { %13767 = vmatpush3.bf16.msra.mxu0 %v13766_v17 }
0x11f3   :  { %13769 = vmatprep.subr.bf16.mxu0 %v13768_v16 }
0x11f6   :  { %13771 = vmatpush3.bf16.msra.mxu0 %v13770_v26 }
0x11f7   :  { %v10926_v15 = vpop.f32.mrb[148].mxu0  ;;  %13773 = vmatprep.subr.bf16.mxu0 %v13772_v6 }
0x11f8   :  { %v10927_v1 = vpop.f32.mrb[149].mxu0 }
0x11f9   :  { %v10928_v47 = vadd.f32 %v10927_v1, %v10926_v15 }
0x11fa   :  { %13775 = vmatpush3.bf16.msra.mxu0 %v13774_v3 }
0x11fb   :  { %v9271_v12 = vadd.f32 %v10928_v47, %v8987_v40  ;;  %13776 = vmatprep.subr.bf16.mxu0 %v21850_v35 }
0x1217   :  { %v10961_v38 = vpop.f32.mrb[150].mxu0 }
0x1218   :  { %v10962_v25 = vpop.f32.mrb[151].mxu0 }
0x1219   :  { %v10963_v31 = vadd.f32 %v10962_v25, %v10961_v38 }
0x121b   :  { %v9341_v45 = vadd.f32 %v10963_v31, %v9271_v12 }
0x12b0   :  { %v9199_v22 = vpop.f32.mrb[176].mxu1  ;;  %v10996_v34 = vpop.f32.mrb[152].mxu0 }
0x12b1   :  { %v13860_v37 = vadd.f32 %v9199_v22, %v8979_v7  ;;  %v9201_v54 = vpop.f32.mrb[177].mxu1  ;;  %v10997_v61 = vpop.f32.mrb[153].mxu0 }
0x12b2   :  { %v13861_v8 = vadd.f32 %v9201_v54, %v8983_v10  ;;  %v10998_v42 = vadd.f32 %v10997_v61, %v10996_v34 }
0x12b3   :  { %v9414_v27 = vmax.f32 %v13860_v37, 0.0 }
0x12b4   :  { %v9415_v4 = vmax.f32 %v13861_v8, 0.0  ;;  %v9411_v11 = vadd.f32 %v10998_v42, %v9341_v45 }
0x12b6   :  { %9536 = vmatprep.mubr.f32.mxu0 %v9415_v4  ;;  %v9416_v13 = vmax.f32 %v9411_v11, 0.0 }
0x12b7   :  { %9537 = vmatmul.mubr.f32.vlgmr.msra.gmra.mrb[154].mxu0 %v9414_v27 }
0x12b8   :  { %13778 = vmatpush3.bf16.msra.mxu0 %v13777_v23  ;;  %11535 = vmatprep.mubr.msk.f32.mxu0 %vm14145_vm3, %v21681_v33  ;;  %v9456_v33 = vld [vmem:[%s21541_s18 + $0x138] sm:$0xff] }
0x12b9   :  { %13779 = vmatprep.subr.bf16.mxu0 %v21850_v35  ;;  %v13786_v36 = vpack.c.bf16 %v9456_v33, %v9455_v50 }
0x12bc   :  { %13781 = vmatpush3.bf16.msra.mxu0 %v13780_v39 }
0x12bd   :  { %13782 = vmatprep.subr.bf16.mxu0 %v21850_v35 }
0x12c0   :  { %13784 = vmatpush3.bf16.msra.mxu0 %v13783_v59 }
0x12c1   :  { %13785 = vmatprep.subr.bf16.mxu0 %v21850_v35 }
0x12c4   :  { %13787 = vmatpush3.bf16.msra.mxu0 %v13786_v36 }
0x12c5   :  { %13788 = vmatprep.subr.bf16.mxu0 %v21850_v35 }
0x12c8   :  { %13790 = vmatpush3.bf16.msra.mxu0 %v13789_v51 }
0x12c9   :  { %13791 = vmatprep.subr.bf16.mxu0 %v21850_v35 }
0x12cc   :  { %13793 = vmatpush3.bf16.msra.mxu0 %v13792_v46 }
0x12cd   :  { %13794 = vmatprep.subr.bf16.mxu0 %v21850_v35 }
0x12d0   :  { %13796 = vmatpush3.bf16.msra.mxu0 %v13795_v29 }
0x12d1   :  { %13797 = vmatprep.subr.bf16.mxu0 %v21850_v35 }
0x12d4   :  { %13799 = vmatpush3.bf16.msra.mxu0 %v13798_v57 }
0x12d7   :  { %11536 = vmatmul.mubr.f32.vlgmr.msra.gmra.mrb[156].mxu0 %v9416_v13 }
0x138a   :  { %v11031_v5 = vpop.f32.mrb[154].mxu0 }
0x138b   :  { %v11032_v43 = vpop.f32.mrb[155].mxu0 }
0x138c   :  { %v11033_v63 = vadd.f32 %v11032_v43, %v11031_v5 }
0x138e   :  { %v9539_v58 = vadd.f32 %v11033_v63, %v10118_v60 }
0x13aa   :  { %v9608_v17 = vpop.f32.mrb[156].mxu0 }
0x13ab   :  { %v9609_v16 = vadd.f32 %v9608_v17, %v9539_v58  ;;  %v11537_v2 = vpop.f32.mrb[157].mxu0 }
0x13ad   :  { %v9612_v53 = vmul.f32 0.5, %v9609_v16 }
0x13af   :  { %14108 = vtanh.f32 %v9612_v53 }
0x13b9   :  { %v14109_v26 = vpop.eup %14108 }
0x13ba   :  { %v9614_v15 = vadd.f32 1.0, %v14109_v26 }
0x13bc   :  { %v9615_v1 = vmul.f32 0.5, %v9614_v15 }
0x13be   :  { %9616 = vst [vmem:[%s21544_s20] sm:$0x3] %v9615_v1 }

</bundles_post_ra>
